<compile_context>
chip_gen: v7x
topology: tpu7x:2x2x1
jax: 0.10.0
libtpu: 0.0.40
codegen_flags: <defaults>
</compile_context>

<pallas_src>
import math
from functools import partial

import numpy as np
import jax
import jax.numpy as jnp
from jax.experimental import pallas as pl
from jax.experimental.pallas import tpu as pltpu

ATOM_TYPES = 10
EDGE_TYPES = ATOM_TYPES * ATOM_TYPES      # 100
K = 32                                    # number of gaussian kernels
EMB = 32                                  # embed_dim
DIM_HIDDEN = 32                           # cfg.gt.dim_hidden == cfg.gnn.dim_inner
MAX_NODES = 30                            # to_dense_batch(max_num_nodes=30)
NPAD = 32                                 # padded node count (multiple of 8)
PK = NPAD * K                             # 1024 lanes: (neighbour j, gaussian k)
EPACK = 4                                 # edges packed per row: 4*K = 4*H = 128 lanes
TILE_ROWS_E = 512                         # edge rows / grid step  (2048 edges / step)
_SQRT_2PI = math.sqrt(2.0 * 3.14159)      # matches reference GaussianLayer (pi=3.14159)
_SQRT_2 = math.sqrt(2.0)
_MASK_BIG = 1e9                           # padded-target pairs -> gaussian underflows to 0.0


def _pick_gb(num_graphs):
    """Graphs per grid step: 8 (M=256) on 256-wide-MXU chips, 4 on v5e and for
    tiny batches (keep >= 2 grid steps so both v7x TensorCores get work)."""
    kind = ""
    try:
        kind = jax.devices()[0].device_kind.lower()
    except Exception:
        pass
    small_mxu = any(v in kind for v in ("v2", "v3", "v4", "v5"))
    gb = 4 if small_mxu else 8
    if gb == 8 and (num_graphs + gb - 1) // gb < 2:
        gb = 4
    return gb


# --------------------------------------------------------------------------- #
# Kernel A: node features.
#   rows = GB*NPAD nodes, lanes = NPAD (neighbour) then PK (neighbour, gaussian)
#   nf = atom_proj[z] (bias folded) + sum_{j,k} exp(-((x*s_k - m_k))^2) * Wc'[k,:]
# --------------------------------------------------------------------------- #
def _node_kernel(x_ref, atomf_ref, brep_ref, m_ref, wct_ref, nf_ref):
    # x_ref    : (GB*NPAD, NPAD)  mul*dist + bias (+1e9 where target j is padding)
    # atomf_ref: (GB*NPAD, H)     atom emb pre-projected through proj_in_nodes + fused bias
    # brep_ref : (NPAD, PK)       scaled replication: brep[j, j*K+k] = inv_std[k]/sqrt(2)
    # m_ref    : (1, PK)          pre-scaled means mean[k]*inv_std[k]/sqrt(2) (tiled over j)
    # wct_ref  : (PK, H)          coeff[k] * (edge_proj.W @ proj_in_nodes.W) tiled over j
    xrep = jnp.dot(x_ref[...], brep_ref[...],
                   preferred_element_type=jnp.float32)          # (GB*NPAD, PK) scaled arg
    z = xrep - m_ref[...]
    ef = jnp.exp(-(z * z))                                      # masked pairs -> exactly 0
    nf_ref[...] = atomf_ref[...] + jnp.dot(ef, wct_ref[...],
                                           preferred_element_type=jnp.float32)


def _run_nodes(xarg2, atomf2, brep_a, mscaled_n, wcts, gb):
    rows = xarg2.shape[0]                  # G_pad * NPAD
    grid = (rows // (gb * NPAD),)
    ce = pl.CostEstimate(
        flops=2 * rows * NPAD * PK + 2 * rows * PK * DIM_HIDDEN + 3 * rows * PK,
        transcendentals=rows * PK,
        bytes_accessed=4 * (rows * NPAD + rows * DIM_HIDDEN + NPAD * PK + PK
                            + PK * DIM_HIDDEN + rows * DIM_HIDDEN),
    )
    return pl.pallas_call(
        _node_kernel,
        out_shape=jax.ShapeDtypeStruct((rows, DIM_HIDDEN), jnp.float32),
        grid=grid,
        in_specs=[
            pl.BlockSpec((gb * NPAD, NPAD), lambda s: (s, 0)),
            pl.BlockSpec((gb * NPAD, DIM_HIDDEN), lambda s: (s, 0)),
            pl.BlockSpec((NPAD, PK), lambda s: (0, 0)),
            pl.BlockSpec((1, PK), lambda s: (0, 0)),
            pl.BlockSpec((PK, DIM_HIDDEN), lambda s: (0, 0)),
        ],
        out_specs=pl.BlockSpec((gb * NPAD, DIM_HIDDEN), lambda s: (s, 0)),
        compiler_params=pltpu.CompilerParams(dimension_semantics=("parallel",)),
        cost_estimate=ce,
    )(xarg2, atomf2, brep_a, mscaled_n, wcts)


# --------------------------------------------------------------------------- #
# Kernel B: per-edge gaussian features + proj_in_edges, 4 edges packed per row.
#   input  (rows, 4)   : gaussian argument of edges 4r..4r+3
#   output (rows, 128) : [feat(edge 4r), feat(edge 4r+1), feat(edge 4r+2), feat(edge 4r+3)]
# --------------------------------------------------------------------------- #
def _edge_kernel(x4_ref, brep4_ref, m_ref, wblk_ref, b_ref, o_ref):
    xrep = jnp.dot(x4_ref[...], brep4_ref[...],
                   preferred_element_type=jnp.float32)          # (rows, 128) scaled arg
    z = xrep - m_ref[...]
    g = jnp.exp(-(z * z))
    o_ref[...] = (jnp.dot(g, wblk_ref[...], preferred_element_type=jnp.float32)
                  + b_ref[...])


def _run_edges(x4, brep4, mscaled_e, wblk, bias4):
    rows = x4.shape[0]                     # Ep // EPACK, multiple of TILE_ROWS_E
    grid = (rows // TILE_ROWS_E,)
    L = EPACK * K                          # 128
    ce = pl.CostEstimate(
        flops=2 * rows * EPACK * L + 2 * rows * L * L + 3 * rows * L,
        transcendentals=rows * L,
        bytes_accessed=4 * (rows * EPACK + EPACK * L + L + L * L + L + rows * L),
    )
    return pl.pallas_call(
        _edge_kernel,
        out_shape=jax.ShapeDtypeStruct((rows, EPACK * DIM_HIDDEN), jnp.float32),
        grid=grid,
        in_specs=[
            pl.BlockSpec((TILE_ROWS_E, EPACK), lambda s: (s, 0)),
            pl.BlockSpec((EPACK, L), lambda s: (0, 0)),
            pl.BlockSpec((1, L), lambda s: (0, 0)),
            pl.BlockSpec((L, EPACK * DIM_HIDDEN), lambda s: (0, 0)),
            pl.BlockSpec((1, EPACK * DIM_HIDDEN), lambda s: (0, 0)),
        ],
        out_specs=pl.BlockSpec((TILE_ROWS_E, EPACK * DIM_HIDDEN), lambda s: (s, 0)),
        compiler_params=pltpu.CompilerParams(dimension_semantics=("parallel",)),
        cost_estimate=ce,
    )(x4, brep4, mscaled_e, wblk, bias4)


# --------------------------------------------------------------------------- #
# Parameters (deterministic synthetic init; shapes from GPSModel.__init__)
# --------------------------------------------------------------------------- #
def init_params(key):
    ks = jax.random.split(key, 8)
    atom_emb = 0.1 * jax.random.normal(ks[0], (ATOM_TYPES, EMB), jnp.float32)
    atom_emb = atom_emb.at[0].set(0.0)                          # padding_idx = 0
    return dict(
        atom_emb=atom_emb,                                      # Embedding(10, 32)
        gbf_means=jax.random.uniform(ks[1], (1, K), jnp.float32, 0.0, 3.0),
        gbf_stds=jax.random.uniform(ks[2], (1, K), jnp.float32, 0.5, 3.0),
        gbf_mul=1.0 + 0.1 * jax.random.normal(ks[3], (EDGE_TYPES, 1), jnp.float32),
        gbf_bias=0.1 * jax.random.normal(ks[4], (EDGE_TYPES, 1), jnp.float32),
        w_edge_proj=0.1 * jax.random.normal(ks[5], (K, EMB), jnp.float32),       # Linear(k, embed_dim)
        b_edge_proj=jnp.zeros((1, EMB), jnp.float32),
        w_nodes=0.1 * jax.random.normal(ks[6], (EMB, DIM_HIDDEN), jnp.float32),  # proj_in_nodes
        b_nodes=0.01 * jnp.ones((1, DIM_HIDDEN), jnp.float32),
        w_edges=0.1 * jax.random.normal(ks[7], (EMB, DIM_HIDDEN), jnp.float32),  # proj_in_edges
        b_edges=0.01 * jnp.ones((1, DIM_HIDDEN), jnp.float32),
    )


def _derived(params):
    """Fused / folded constants (tiny jnp work, done once per jit trace).

    All gaussian affine constants are folded into the matmul operands:
      scaled arg  = x @ brep_a            (brep_a carries inv_std/sqrt(2))
      z           = scaled arg - mscaled  (pre-scaled means)
      contribution= exp(-z^2) @ (coeff folded into the projection weight)
    """
    std = jnp.abs(params['gbf_stds']) + 1e-5                    # (1, K)
    inv_std = 1.0 / std
    mean = params['gbf_means']
    scale = inv_std / _SQRT_2                                   # (1, K)
    mscale = mean * scale                                       # (1, K)
    coeff = inv_std / _SQRT_2PI                                 # (1, K)

    # --- node kernel constants ---
    brep_a = (jnp.repeat(jnp.eye(NPAD, dtype=jnp.float32), K, axis=1)
              * jnp.tile(scale, (1, NPAD)))                     # (NPAD, PK)
    mscaled_n = jnp.tile(mscale, (1, NPAD))                     # (1, PK)
    wc = params['w_edge_proj'] @ params['w_nodes']              # (K, H)
    wc_scaled = coeff.T * wc                                    # coeff folded into rows
    wcts = jnp.tile(wc_scaled, (NPAD, 1))                       # (PK, H)
    b_fused = params['b_edge_proj'] @ params['w_nodes'] + params['b_nodes']   # (1, H)
    atom_proj = params['atom_emb'] @ params['w_nodes'] + b_fused               # (10, H), bias folded

    # --- edge kernel constants (4 edges packed per row) ---
    brep4 = (jnp.repeat(jnp.eye(EPACK, dtype=jnp.float32), K, axis=1)
             * jnp.tile(scale, (1, EPACK)))                     # (4, 128)
    mscaled_e = jnp.tile(mscale, (1, EPACK))                    # (1, 128)
    w_e_scaled = coeff.T * params['w_edges']                    # (K, H)
    wblk = jnp.kron(jnp.eye(EPACK, dtype=jnp.float32), w_e_scaled)   # (128, 128) block-diag
    bias4 = jnp.tile(params['b_edges'], (1, EPACK))             # (1, 128)

    return (brep_a, mscaled_n, wcts, atom_proj,
            brep4, mscaled_e, wblk, bias4)


# --------------------------------------------------------------------------- #
# Jitted forward core (dense batching + gathers in fused XLA glue, kernels A/B)
# --------------------------------------------------------------------------- #
@partial(jax.jit, static_argnums=(5, 6))
def _forward_core(params, z, pos, batch_map, edge_index, num_graphs, gb):
    G = num_graphs
    G_pad = ((G + gb - 1) // gb) * gb
    N = z.shape[0]
    E = edge_index.shape[1]

    (brep_a, mscaled_n, wcts, atom_proj,
     brep4, mscaled_e, wblk, bias4) = _derived(params)

    # ---- to_dense_batch(z / pos, max_num_nodes=30), padded to NPAD=32 ----
    offsets = jnp.searchsorted(batch_map, jnp.arange(G_pad, dtype=jnp.int32)).astype(jnp.int32)
    local = jnp.arange(N, dtype=jnp.int32) - offsets[batch_map]
    z_dense = jnp.zeros((G_pad, NPAD), jnp.int32).at[batch_map, local].set(z)
    pos_dense = jnp.zeros((G_pad, NPAD, 3), jnp.float32).at[batch_map, local].set(pos)

    # ---- per-pair gaussian argument  x = mul*dist + bias (+1e9 on padded targets) ----
    diff = pos_dense[:, :, None, :] - pos_dense[:, None, :, :]
    dist = jnp.sqrt(jnp.sum(diff * diff, axis=-1))                      # (G_pad, NPAD, NPAD)
    edge_type = z_dense[:, :, None] * ATOM_TYPES + z_dense[:, None, :]
    mul_d = params['gbf_mul'][edge_type, 0]
    bias_d = params['gbf_bias'][edge_type, 0]
    pad_j = jnp.where(z_dense == 0, _MASK_BIG, 0.0)                     # mask target j only
    xarg = mul_d * dist + bias_d + pad_j[:, None, :]
    xarg2 = xarg.reshape(G_pad * NPAD, NPAD)

    atomf2 = atom_proj[z_dense].reshape(G_pad * NPAD, DIM_HIDDEN)

    # ---- Kernel A: node features (fused edge_proj + proj_in_nodes) ----
    nf2 = _run_nodes(xarg2, atomf2, brep_a, mscaled_n, wcts, gb)        # (G_pad*NPAD, H)
    node_feat = nf2[batch_map * NPAD + local]                           # original node order

    # ---- per-edge gaussian argument (edge_index_radius = edge_index[[1,0],:]) ----
    ii = edge_index[1]                                                  # swapped row 0
    jj = edge_index[0]                                                  # swapped row 1 (masked axis j)
    d_e = jnp.sqrt(jnp.sum((pos[ii] - pos[jj]) ** 2, axis=-1))
    et_e = z[ii] * ATOM_TYPES + z[jj]
    x_e = params['gbf_mul'][et_e, 0] * d_e + params['gbf_bias'][et_e, 0]
    edges_per_step = EPACK * TILE_ROWS_E
    Ep = ((E + edges_per_step - 1) // edges_per_step) * edges_per_step
    x4 = jnp.zeros((Ep,), jnp.float32).at[:E].set(x_e).reshape(Ep // EPACK, EPACK)

    # ---- Kernel B: proj_in_edges on per-edge gaussian features (lane-dense) ----
    ef_packed = _run_edges(x4, brep4, mscaled_e, wblk, bias4)           # (Ep/4, 128)
    edge_feat = ef_packed.reshape(Ep, DIM_HIDDEN)[:E]

    return node_feat, edge_feat


def gps_forward(params, z, pos, batch_map, edge_index, num_graphs):
    b_np = np.asarray(batch_map)
    counts = np.bincount(b_np, minlength=num_graphs)
    assert counts.max() <= MAX_NODES, "graph exceeds max_num_nodes=30"
    assert np.all(np.diff(b_np) >= 0), "batch mapping must be sorted (PyG convention)"
    z = jnp.asarray(z, jnp.int32)
    pos = jnp.asarray(pos, jnp.float32)
    batch_map = jnp.asarray(b_np, jnp.int32)
    edge_index = jnp.asarray(edge_index, jnp.int32)
    gb = _pick_gb(int(num_graphs))
    node_feat, edge_feat = _forward_core(params, z, pos, batch_map, edge_index,
                                         int(num_graphs), gb)
    # TODO(synk): FeatureEncoder / GNNPreMP / GPSLayer stack / GNNHead post_mp
    # (list(self.children())[:-5]) need external GraphGPS cfg / register modules.
    return {'x': node_feat, 'edge_attr': edge_feat,
            'edge_index': edge_index, 'batch': batch_map}


# --------------------------------------------------------------------------- #
# Pure numpy reference (mirrors the PyTorch forward) — correctness check only.
# --------------------------------------------------------------------------- #
def _reference(params, z, pos, batch_map, edge_index, G):
    z_np = np.asarray(z); pos_np = np.asarray(pos); b_np = np.asarray(batch_map)
    N = z_np.shape[0]
    zd = np.zeros((G, NPAD), np.int32)
    pd = np.zeros((G, NPAD, 3), np.float32)
    loc = np.zeros(N, np.int64)
    for g in range(G):
        idx = np.where(b_np == g)[0]
        zd[g, :len(idx)] = z_np[idx]
        pd[g, :len(idx)] = pos_np[idx]
        loc[idx] = np.arange(len(idx))
    p = {k: np.asarray(v) for k, v in params.items()}
    delta = pd[:, :, None, :] - pd[:, None, :, :]
    dist = np.sqrt((delta ** 2).sum(-1))
    et = zd[:, :, None] * ATOM_TYPES + zd[:, None, :]
    x = (p['gbf_mul'][et, 0] * dist + p['gbf_bias'][et, 0])[..., None]
    std = np.abs(p['gbf_stds']) + 1e-5
    gbf = np.exp(-0.5 * ((x - p['gbf_means']) / std) ** 2) / (_SQRT_2PI * std)
    ef = np.where((zd == 0)[:, None, :, None], 0.0, gbf)
    esum = ef.sum(axis=2)
    gnf = p['atom_emb'][zd] + esum @ p['w_edge_proj'] + p['b_edge_proj']
    nf = gnf @ p['w_nodes'] + p['b_nodes']
    node_feat = nf[b_np, loc]
    ei = np.asarray(edge_index)
    gi = b_np[ei[1]]; il = loc[ei[1]]; jl = loc[ei[0]]
    edge_feat = ef[gi, il, jl, :] @ p['w_edges'] + p['b_edges']
    return node_feat.astype(np.float32), edge_feat.astype(np.float32)


# --------------------------------------------------------------------------- #
if __name__ == "__main__":
    key = jax.random.PRNGKey(0)
    pkey, zkey, poskey = jax.random.split(key, 3)
    params = init_params(pkey)

    # 16 graphs: grid = 2 steps with GB=8 (v6e/v7x) or 4 steps with GB=4 (v5e).
    nodes_per_graph = [5, 7, 6, 4, 8, 3, 9, 5, 6, 7, 4, 8, 5, 9, 3, 6]
    G = len(nodes_per_graph)
    n_total = sum(nodes_per_graph)
    z = jax.random.randint(zkey, (n_total,), 1, ATOM_TYPES, dtype=jnp.int32)   # atom types 1..9
    pos = jax.random.normal(poskey, (n_total, 3), jnp.float32)
    batch_map = np.concatenate([np.full(n, g, np.int32)
                                for g, n in enumerate(nodes_per_graph)])

    # radius-graph stand-in: chain edges (both directions), grouped per graph
    edges = []
    offset = 0
    for n in nodes_per_graph:
        for a in range(n - 1):
            edges.append((offset + a, offset + a + 1))
            edges.append((offset + a + 1, offset + a))
        offset += n
    edge_index = np.asarray(edges, np.int32).T            # (2, E)

    out = gps_forward(params, z, pos, batch_map, edge_index, num_graphs=G)
    jax.block_until_ready(out['x'])
    jax.block_until_ready(out['edge_attr'])
    assert out['x'].shape == (n_total, DIM_HIDDEN)
    assert out['edge_attr'].shape == (edge_index.shape[1], DIM_HIDDEN)

    ref_x, ref_e = _reference(params, z, pos, batch_map, edge_index, G)
    rel_x = np.max(np.abs(np.asarray(out['x']) - ref_x) / (np.abs(ref_x) + 1.0))
    rel_e = np.max(np.abs(np.asarray(out['edge_attr']) - ref_e) / (np.abs(ref_e) + 1.0))
    assert rel_x < 5e-3 and rel_e < 5e-3, (rel_x, rel_e)
    print("KERNEL_OK")
</pallas_src>

<mosaic_0001>
module attributes {stable_mosaic.version = 11 : i64} {
  func.func @_node_kernel(%arg0: i32, %arg1: memref<256x32xf32, #tpu.memory_space<vmem>>, %arg2: memref<256x32xf32, #tpu.memory_space<vmem>>, %arg3: memref<32x1024xf32, #tpu.memory_space<vmem>>, %arg4: memref<1x1024xf32, #tpu.memory_space<vmem>>, %arg5: memref<1024x32xf32, #tpu.memory_space<vmem>>, %arg6: memref<256x32xf32, #tpu.memory_space<vmem>>) attributes {dimension_semantics = [#tpu.dimension_semantics<parallel>], iteration_bounds = array<i64: 2>, scalar_prefetch = 0 : i64, scratch_operands = 0 : i64, tpu.core_type = #tpu.core_type<tc>, window_params = [{transform_indices = @transform_0, window_bounds = array<i64: 256, 32>}, {transform_indices = @transform_1, window_bounds = array<i64: 256, 32>}, {pipeline_mode = #tpu.pipeline_mode<synchronous>, transform_indices = @transform_2, window_bounds = array<i64: 32, 1024>}, {pipeline_mode = #tpu.pipeline_mode<synchronous>, transform_indices = @transform_3, window_bounds = array<i64: 1, 1024>}, {pipeline_mode = #tpu.pipeline_mode<synchronous>, transform_indices = @transform_4, window_bounds = array<i64: 1024, 32>}, {transform_indices = @transform_5, window_bounds = array<i64: 256, 32>}]} {
    %c0 = arith.constant 0 : index
    %c0_0 = arith.constant 0 : index
    %0 = vector.load %arg1[%c0, %c0_0] : memref<256x32xf32, #tpu.memory_space<vmem>>, vector<256x32xf32>
    %c0_1 = arith.constant 0 : index
    %c0_2 = arith.constant 0 : index
    %1 = vector.load %arg3[%c0_1, %c0_2] : memref<32x1024xf32, #tpu.memory_space<vmem>>, vector<32x1024xf32>
    %cst = arith.constant dense<0.000000e+00> : vector<256x1024xf32>
    %2 = tpu.matmul %0, %1, %cst {dimension_numbers = #tpu.dot_dimension_numbers<[1], [0], [0], [1], [0, 0, 1, 1], [], []>} : vector<256x32xf32>, vector<32x1024xf32>, vector<256x1024xf32> -> vector<256x1024xf32>
    %c0_3 = arith.constant 0 : index
    %c0_4 = arith.constant 0 : index
    %3 = vector.load %arg4[%c0_3, %c0_4] : memref<1x1024xf32, #tpu.memory_space<vmem>>, vector<1x1024xf32>
    %4 = vector.broadcast %3 : vector<1x1024xf32> to vector<256x1024xf32>
    %5 = arith.subf %2, %4 : vector<256x1024xf32>
    %6 = arith.mulf %5, %5 : vector<256x1024xf32>
    %cst_5 = arith.constant 0.000000e+00 : f32
    %7 = vector.broadcast %cst_5 : f32 to vector<256x1024xf32>
    %8 = arith.subf %7, %6 : vector<256x1024xf32>
    %9 = math.exp %8 : vector<256x1024xf32>
    %c0_6 = arith.constant 0 : index
    %c0_7 = arith.constant 0 : index
    %10 = vector.load %arg2[%c0_6, %c0_7] : memref<256x32xf32, #tpu.memory_space<vmem>>, vector<256x32xf32>
    %c0_8 = arith.constant 0 : index
    %c0_9 = arith.constant 0 : index
    %11 = vector.load %arg5[%c0_8, %c0_9] : memref<1024x32xf32, #tpu.memory_space<vmem>>, vector<1024x32xf32>
    %cst_10 = arith.constant dense<0.000000e+00> : vector<256x32xf32>
    %12 = tpu.matmul %9, %11, %cst_10 {dimension_numbers = #tpu.dot_dimension_numbers<[1], [0], [0], [1], [0, 0, 1, 1], [], []>} : vector<256x1024xf32>, vector<1024x32xf32>, vector<256x32xf32> -> vector<256x32xf32>
    %13 = arith.addf %10, %12 : vector<256x32xf32>
    %c0_11 = arith.constant 0 : index
    %c0_12 = arith.constant 0 : index
    %14 = vector.load %arg6[%c0_11, %c0_12] : memref<256x32xf32, #tpu.memory_space<vmem>>, vector<256x32xf32>
    tpu.vector_store %arg6[%c0_11, %c0_12], %13 {strides = array<i32>} : memref<256x32xf32, #tpu.memory_space<vmem>>, vector<256x32xf32>,
    return
  }
  func.func @transform_0(%arg0: i32) -> (i32, i32) {
    %c0_i32 = arith.constant 0 : i32
    %c0_i32_0 = arith.constant 0 : i32
    return %arg0, %c0_i32 : i32, i32
  }
  func.func @transform_1(%arg0: i32) -> (i32, i32) {
    %c0_i32 = arith.constant 0 : i32
    %c0_i32_0 = arith.constant 0 : i32
    return %arg0, %c0_i32 : i32, i32
  }
  func.func @transform_2(%arg0: i32) -> (i32, i32) {
    %c0_i32 = arith.constant 0 : i32
    %c0_i32_0 = arith.constant 0 : i32
    %c0_i32_1 = arith.constant 0 : i32
    return %c0_i32, %c0_i32_0 : i32, i32
  }
  func.func @transform_3(%arg0: i32) -> (i32, i32) {
    %c0_i32 = arith.constant 0 : i32
    %c0_i32_0 = arith.constant 0 : i32
    %c0_i32_1 = arith.constant 0 : i32
    return %c0_i32, %c0_i32_0 : i32, i32
  }
  func.func @transform_4(%arg0: i32) -> (i32, i32) {
    %c0_i32 = arith.constant 0 : i32
    %c0_i32_0 = arith.constant 0 : i32
    %c0_i32_1 = arith.constant 0 : i32
    return %c0_i32, %c0_i32_0 : i32, i32
  }
  func.func @transform_5(%arg0: i32) -> (i32, i32) {
    %c0_i32 = arith.constant 0 : i32
    %c0_i32_0 = arith.constant 0 : i32
    return %arg0, %c0_i32 : i32, i32
  }
}

module attributes {stable_mosaic.version = 11 : i64} {
  func.func @_edge_kernel(%arg0: i32, %arg1: memref<512x4xf32, #tpu.memory_space<vmem>>, %arg2: memref<4x128xf32, #tpu.memory_space<vmem>>, %arg3: memref<1x128xf32, #tpu.memory_space<vmem>>, %arg4: memref<128x128xf32, #tpu.memory_space<vmem>>, %arg5: memref<1x128xf32, #tpu.memory_space<vmem>>, %arg6: memref<512x128xf32, #tpu.memory_space<vmem>>) attributes {dimension_semantics = [#tpu.dimension_semantics<parallel>], iteration_bounds = array<i64: 1>, scalar_prefetch = 0 : i64, scratch_operands = 0 : i64, tpu.core_type = #tpu.core_type<tc>, window_params = [{transform_indices = @transform_0, window_bounds = array<i64: 512, 4>}, {pipeline_mode = #tpu.pipeline_mode<synchronous>, transform_indices = @transform_1, window_bounds = array<i64: 4, 128>}, {pipeline_mode = #tpu.pipeline_mode<synchronous>, transform_indices = @transform_2, window_bounds = array<i64: 1, 128>}, {pipeline_mode = #tpu.pipeline_mode<synchronous>, transform_indices = @transform_3, window_bounds = array<i64: 128, 128>}, {pipeline_mode = #tpu.pipeline_mode<synchronous>, transform_indices = @transform_4, window_bounds = array<i64: 1, 128>}, {transform_indices = @transform_5, window_bounds = array<i64: 512, 128>}]} {
    %c0 = arith.constant 0 : index
    %c0_0 = arith.constant 0 : index
    %0 = vector.load %arg1[%c0, %c0_0] : memref<512x4xf32, #tpu.memory_space<vmem>>, vector<512x4xf32>
    %c0_1 = arith.constant 0 : index
    %c0_2 = arith.constant 0 : index
    %1 = vector.load %arg2[%c0_1, %c0_2] : memref<4x128xf32, #tpu.memory_space<vmem>>, vector<4x128xf32>
    %cst = arith.constant dense<0.000000e+00> : vector<512x128xf32>
    %2 = tpu.matmul %0, %1, %cst {dimension_numbers = #tpu.dot_dimension_numbers<[1], [0], [0], [1], [0, 0, 1, 1], [], []>} : vector<512x4xf32>, vector<4x128xf32>, vector<512x128xf32> -> vector<512x128xf32>
    %c0_3 = arith.constant 0 : index
    %c0_4 = arith.constant 0 : index
    %3 = vector.load %arg3[%c0_3, %c0_4] : memref<1x128xf32, #tpu.memory_space<vmem>>, vector<1x128xf32>
    %4 = vector.broadcast %3 : vector<1x128xf32> to vector<512x128xf32>
    %5 = arith.subf %2, %4 : vector<512x128xf32>
    %6 = arith.mulf %5, %5 : vector<512x128xf32>
    %cst_5 = arith.constant 0.000000e+00 : f32
    %7 = vector.broadcast %cst_5 : f32 to vector<512x128xf32>
    %8 = arith.subf %7, %6 : vector<512x128xf32>
    %9 = math.exp %8 : vector<512x128xf32>
    %c0_6 = arith.constant 0 : index
    %c0_7 = arith.constant 0 : index
    %10 = vector.load %arg4[%c0_6, %c0_7] : memref<128x128xf32, #tpu.memory_space<vmem>>, vector<128x128xf32>
    %cst_8 = arith.constant dense<0.000000e+00> : vector<512x128xf32>
    %11 = tpu.matmul %9, %10, %cst_8 {dimension_numbers = #tpu.dot_dimension_numbers<[1], [0], [0], [1], [0, 0, 1, 1], [], []>} : vector<512x128xf32>, vector<128x128xf32>, vector<512x128xf32> -> vector<512x128xf32>
    %c0_9 = arith.constant 0 : index
    %c0_10 = arith.constant 0 : index
    %12 = vector.load %arg5[%c0_9, %c0_10] : memref<1x128xf32, #tpu.memory_space<vmem>>, vector<1x128xf32>
    %13 = vector.broadcast %12 : vector<1x128xf32> to vector<512x128xf32>
    %14 = arith.addf %11, %13 : vector<512x128xf32>
    %c0_11 = arith.constant 0 : index
    %c0_12 = arith.constant 0 : index
    %15 = vector.load %arg6[%c0_11, %c0_12] : memref<512x128xf32, #tpu.memory_space<vmem>>, vector<512x128xf32>
    tpu.vector_store %arg6[%c0_11, %c0_12], %14 {strides = array<i32>} : memref<512x128xf32, #tpu.memory_space<vmem>>, vector<512x128xf32>,
    return
  }
  func.func @transform_0(%arg0: i32) -> (i32, i32) {
    %c0_i32 = arith.constant 0 : i32
    %c0_i32_0 = arith.constant 0 : i32
    return %arg0, %c0_i32 : i32, i32
  }
  func.func @transform_1(%arg0: i32) -> (i32, i32) {
    %c0_i32 = arith.constant 0 : i32
    %c0_i32_0 = arith.constant 0 : i32
    %c0_i32_1 = arith.constant 0 : i32
    return %c0_i32, %c0_i32_0 : i32, i32
  }
  func.func @transform_2(%arg0: i32) -> (i32, i32) {
    %c0_i32 = arith.constant 0 : i32
    %c0_i32_0 = arith.constant 0 : i32
    %c0_i32_1 = arith.constant 0 : i32
    return %c0_i32, %c0_i32_0 : i32, i32
  }
  func.func @transform_3(%arg0: i32) -> (i32, i32) {
    %c0_i32 = arith.constant 0 : i32
    %c0_i32_0 = arith.constant 0 : i32
    %c0_i32_1 = arith.constant 0 : i32
    return %c0_i32, %c0_i32_0 : i32, i32
  }
  func.func @transform_4(%arg0: i32) -> (i32, i32) {
    %c0_i32 = arith.constant 0 : i32
    %c0_i32_0 = arith.constant 0 : i32
    %c0_i32_1 = arith.constant 0 : i32
    return %c0_i32, %c0_i32_0 : i32, i32
  }
  func.func @transform_5(%arg0: i32) -> (i32, i32) {
    %c0_i32 = arith.constant 0 : i32
    %c0_i32_0 = arith.constant 0 : i32
    return %arg0, %c0_i32 : i32, i32
  }
}

</mosaic_0001>

<bundles_post_ra>
// kernel: custom-call.12
= control target key start
LH: loop header
LB: loop body
LE: loop exit
PB: predicated region body
PF: predicated region fallthrough
CT: control target
= control target key end

     0   :  { %s6_s0 = inlined_call_operand.vmem [shape: u32[16], index: 0, kind: output, shape index: {}]  }

// kernel: _forward_core.2
= control target key start
LH: loop header
LB: loop body
LE: loop exit
PB: predicated region body
PF: predicated region fallthrough
CT: control target
= control target key end

     0   :  { %s4884_s18 = smov 0   ;;  %s7793_s0 = inlined_call_operand.vmem [shape: f32[512,32], index: 0, kind: input, shape index: {}]   ;;  %s7794_s1 = inlined_call_operand.vmem [shape: f32[512,32], index: 1, kind: input, shape index: {}]   ;;  %s7795_s2 = inlined_call_operand.vmem [shape: f32[32,1024], index: 2, kind: input, shape index: {}]   ;;  %s7796_s3 = inlined_call_operand.vmem [shape: f32[1,1024], index: 3, kind: input, shape index: {}]   ;;  %s7797_s4 = inlined_call_operand.vmem [shape: f32[1024,32], index: 4, kind: input, shape index: {}]   ;;  %s7798_s5 = inlined_call_operand.vmem [shape: f32[512,32], index: 5, kind: output, shape index: {}]  }
   0x1 LB: > { %s3953_s19 = sadd.s32 4294967295, %s4850_s18   ;;  %p3957_p0 = scmp.ge.s32.totalorder %s4850_s18, 1  ;;  %s4850_s18 = sphi %s4884_s18, %s15_s18  }
   0x2   : > { %p199_p1 = scmp.lt.s32.totalorder %s4850_s18, 3 }
   0x4   : > { %p200_p2 = pnand %p3957_p0, %p199_p1 }
   0x6   : > { %203 = sbr.rel (%p200_p2) target bundleno = 803 (0x323), region = 40 }
   0xd   : > { %v283_v0 = vld [vmem:[%s7795_s2 + $0x8] sm:$0xff]  ;;  %v285_v2 = vld [vmem:[%s7795_s2 + $0x18] sm:$0xff]  ;;  %s3958_s26 = sshll.u32 %s3953_s19, 5  ;;  %v282_v5 = vld [vmem:[%s7795_s2] sm:$0xff]  ;;  %v7805_v7 = vmov 0.0   ;;  %vm314_vm0 = vcmask 261120  }
   0xe   : > { %v291_v1 = vld [vmem:[%s7795_s2 + $0x48] sm:$0xff]  ;;  %v293_v4 = vld [vmem:[%s7795_s2 + $0x58] sm:$0xff]  ;;  %v290_v6 = vld [vmem:[%s7795_s2 + $0x40] sm:$0xff]  ;;  %475 = vmatprep.mubr.f32.mxu0 %v7805_v7  ;;  %732 = vmatprep.mubr.f32.mxu1 %v7805_v7  ;;  %p233_p3 = scmp.lt.s32.totalorder %s3958_s26, 63  ;;  %v7799_v53 = vmov 0.0|0.0  }
   0xf   : > { %v4094_v3 = vpack.c.bf16 %v291_v1, %v283_v0  ;;  %v4102_v8 = vpack.c.bf16 %v293_v4, %v285_v2  ;;  %v4096_v9 = vpack.c.bf16 %v290_v6, %v282_v5  ;;  %v284_v10 = vld [vmem:[%s7795_s2 + $0x10] sm:$0xff]  ;;  %v299_v12 = vld [vmem:[%s7795_s2 + $0x88] sm:$0xff]  ;;  %v301_v15 = vld [vmem:[%s7795_s2 + $0x98] sm:$0xff] }
  0x10   : > { %v292_v11 = vld [vmem:[%s7795_s2 + $0x50] sm:$0xff]  ;;  %v307_v14 = vld [vmem:[%s7795_s2 + $0xc8] sm:$0xff]  ;;  %v309_v16 = vld [vmem:[%s7795_s2 + $0xd8] sm:$0xff]  ;;  %s7984_s26 = smov (!%p233_p3, %s3958_s26), 63 }
  0x11   : > { %4095 = vmatprep.subr.bf16.mxu0 %v4094_v3  ;;  %v4104_v13 = vpack.c.bf16 %v292_v11, %v284_v10  ;;  %4103 = vmatprep.subr.bf16.mxu1 %v4102_v8  ;;  %v4098_v17 = vpack.c.bf16 %v307_v14, %v299_v12  ;;  %v4106_v18 = vpack.c.bf16 %v309_v16, %v301_v15  ;;  %v298_v19 = vld [vmem:[%s7795_s2 + $0x80] sm:$0xff]  ;;  %v300_v21 = vld [vmem:[%s7795_s2 + $0x90] sm:$0xff]  ;;  %s4942_s30 = sshll.u32 %s7984_s26, 3  ;;  %v287_v24 = vld [vmem:[%s7795_s2 + $0x28] sm:$0xff] }
  0x12   : > { %4097 = vmatpush1.bf16.msra.mxu0 %v4096_v9  ;;  %v306_v20 = vld [vmem:[%s7795_s2 + $0xc0] sm:$0xff]  ;;  %v308_v23 = vld [vmem:[%s7795_s2 + $0xd0] sm:$0xff]  ;;  %v295_v25 = vld [vmem:[%s7795_s2 + $0x68] sm:$0xff]  ;;  %s4954_s12 = scalar_lea.vmem %s7793_s0, %s4942_s30  ;;  %s7654_s26 = scalar_lea.vmem %s7794_s1, %s4942_s30 }
  0x13   : > { %4105 = vmatpush1.bf16.msra.mxu1 %v4104_v13  ;;  %v4100_v22 = vpack.c.bf16 %v306_v20, %v298_v19  ;;  %4099 = vmatprep.subr.bf16.mxu0 %v4098_v17  ;;  %v4108_v26 = vpack.c.bf16 %v308_v23, %v300_v21  ;;  %v4110_v27 = vpack.c.bf16 %v295_v25, %v287_v24  ;;  %v286_v28 = vld [vmem:[%s7795_s2 + $0x20] sm:$0xff]  ;;  %v289_v30 = vld [vmem:[%s7795_s2 + $0x38] sm:$0xff]  ;;  %v288_v32 = vld [vmem:[%s7795_s2 + $0x30] sm:$0xff]  ;;  %s7662_s15 = scalar_lea.vmem %s7798_s5, %s4942_s30 }
  0x14   : > { %4107 = vmatprep.subr.bf16.mxu1 %v4106_v18  ;;  %v294_v29 = vld [vmem:[%s7795_s2 + $0x60] sm:$0xff]  ;;  %v297_v31 = vld [vmem:[%s7795_s2 + $0x78] sm:$0xff]  ;;  %v296_v36 = vld [vmem:[%s7795_s2 + $0x70] sm:$0xff] }
  0x15   : > { %v4972_v33 = vld [vmem:[%s4954_s12] sm:$0xff]  ;;  %v4112_v34 = vpack.c.bf16 %v294_v29, %v286_v28  ;;  %v4118_v35 = vpack.c.bf16 %v297_v31, %v289_v30  ;;  %v4120_v37 = vpack.c.bf16 %v296_v36, %v288_v32  ;;  %v4982_v38 = vld [vmem:[%s4954_s12 + $0x8] sm:$0xff]  ;;  %v305_v45 = vld [vmem:[%s7795_s2 + $0xb8] sm:$0xff] }
  0x16   : > { %4101 = vmatpush1.bf16.msra.mxu0 %v4100_v22  ;;  %v303_v39 = vld [vmem:[%s7795_s2 + $0xa8] sm:$0xff]  ;;  %v302_v41 = vld [vmem:[%s7795_s2 + $0xa0] sm:$0xff]  ;;  %v313_v46 = vld [vmem:[%s7795_s2 + $0xf8] sm:$0xff] }
  0x17   : > { %4109 = vmatpush1.bf16.msra.mxu1 %v4108_v26  ;;  %4111 = vmatprep.subr.bf16.mxu0 %v4110_v27  ;;  %v311_v40 = vld [vmem:[%s7795_s2 + $0xe8] sm:$0xff]  ;;  %v310_v42 = vld [vmem:[%s7795_s2 + $0xe0] sm:$0xff]  ;;  %v304_v47 = vld [vmem:[%s7795_s2 + $0xb0] sm:$0xff]  ;;  %v4122_v49 = vpack.c.bf16 %v313_v46, %v305_v45 }
  0x18   : > { %4119 = vmatprep.subr.bf16.mxu1 %v4118_v35  ;;  %v4114_v43 = vpack.c.bf16 %v311_v40, %v303_v39  ;;  %v4116_v44 = vpack.c.bf16 %v310_v42, %v302_v41  ;;  %v5013_v48 = vld [vmem:[%s4954_s12 + $0x10] sm:$0xff]  ;;  %v5025_v52 = vld [vmem:[%s4954_s12 + $0x18] sm:$0xff]  ;;  %v5036_v54 = vld [vmem:[%s4954_s12 + $0x20] sm:$0xff] }
  0x19   : > { %3964 = vmatmul.mubr.msk.f32.vlgmr.msra.gmra.mrb[0].mxu0 %vm314_vm0, %v4972_v33  ;;  %v312_v50 = vld [vmem:[%s7795_s2 + $0xf0] sm:$0xff]  ;;  %v5045_v55 = vld [vmem:[%s4954_s12 + $0x28] sm:$0xff]  ;;  %v5063_v57 = vld [vmem:[%s4954_s12 + $0x38] sm:$0xff] }
  0x1a   : > { %3996 = vmatmul.mubr.msk.f32.vlgmr.msra.gmra.mrb[0].mxu1 %vm314_vm0, %v4972_v33  ;;  %4113 = vmatpush1.bf16.msra.mxu0 %v4112_v34  ;;  %v4124_v51 = vpack.c.bf16 %v312_v50, %v304_v47  ;;  %v5054_v56 = vld [vmem:[%s4954_s12 + $0x30] sm:$0xff]  ;;  %v5072_v58 = vld [vmem:[%s4954_s12 + $0x40] sm:$0xff]  ;;  %v5081_v59 = vld [vmem:[%s4954_s12 + $0x48] sm:$0xff] }
  0x1b   : > { %481 = vmatprep.mubr.f32.mxu0 %v7805_v7  ;;  %738 = vmatprep.mubr.f32.mxu1 %v7805_v7  ;;  %v5090_v60 = vld [vmem:[%s4954_s12 + $0x50] sm:$0xff]  ;;  %v5099_v61 = vld [vmem:[%s4954_s12 + $0x58] sm:$0xff]  ;;  %v5108_v62 = vld [vmem:[%s4954_s12 + $0x60] sm:$0xff] }
  0x1c   : > { %4121 = vmatpush1.bf16.msra.mxu1 %v4120_v37  ;;  %4115 = vmatprep.subr.bf16.mxu0 %v4114_v43  ;;  %v5117_v63 = vld [vmem:[%s4954_s12 + $0x68] sm:$0xff]  ;;  %v5126_v0 = vld [vmem:[%s4954_s12 + $0x70] sm:$0xff]  ;;  %v5135_v1 = vld [vmem:[%s4954_s12 + $0x78] sm:$0xff] }
  0x1d   : > { %3965 = vmatmul.mubr.msk.f32.gmra.mrb[2].mxu0 %vm314_vm0, %v4982_v38  ;;  %4123 = vmatprep.subr.bf16.mxu1 %v4122_v49  ;;  %v5144_v2 = vld [vmem:[%s4954_s12 + $0x80] sm:$0xff]  ;;  %v5153_v3 = vld [vmem:[%s4954_s12 + $0x88] sm:$0xff]  ;;  %v5162_v4 = vld [vmem:[%s4954_s12 + $0x90] sm:$0xff] }
  0x1e   : > { %3997 = vmatmul.mubr.msk.f32.gmra.mrb[2].mxu1 %vm314_vm0, %v4982_v38  ;;  %487 = vmatprep.mubr.f32.mxu0 %v7805_v7  ;;  %v5171_v5 = vld [vmem:[%s4954_s12 + $0x98] sm:$0xff]  ;;  %v5180_v6 = vld [vmem:[%s4954_s12 + $0xa0] sm:$0xff]  ;;  %v5189_v8 = vld [vmem:[%s4954_s12 + $0xa8] sm:$0xff] }
  0x1f   : > { %744 = vmatprep.mubr.f32.mxu1 %v7805_v7  ;;  %4117 = vmatpush1.bf16.msra.mxu0 %v4116_v44  ;;  %v5198_v9 = vld [vmem:[%s4954_s12 + $0xb0] sm:$0xff]  ;;  %v5207_v10 = vld [vmem:[%s4954_s12 + $0xb8] sm:$0xff]  ;;  %v5216_v11 = vld [vmem:[%s4954_s12 + $0xc0] sm:$0xff] }
  0x20   : > { %4125 = vmatpush1.bf16.msra.mxu1 %v4124_v51  ;;  %4126 = vmatprep.subr.bf16.mxu0 %v7799_v53  ;;  %v5225_v12 = vld [vmem:[%s4954_s12 + $0xc8] sm:$0xff]  ;;  %v5234_v13 = vld [vmem:[%s4954_s12 + $0xd0] sm:$0xff]  ;;  %v5243_v14 = vld [vmem:[%s4954_s12 + $0xd8] sm:$0xff] }
  0x21   : > { %3966 = vmatmul.mubr.msk.f32.gmra.mrb[4].mxu0 %vm314_vm0, %v5013_v48  ;;  %4174 = vmatprep.subr.bf16.mxu1 %v7799_v53  ;;  %v5252_v15 = vld [vmem:[%s4954_s12 + $0xe0] sm:$0xff]  ;;  %v279_v16 = vld [vmem:[%s4954_s12 + $0xe8] sm:$0xff]  ;;  %v280_v17 = vld [vmem:[%s4954_s12 + $0xf0] sm:$0xff] }
  0x22   : > { %3998 = vmatmul.mubr.msk.f32.gmra.mrb[4].mxu1 %vm314_vm0, %v5013_v48  ;;  %493 = vmatprep.mubr.f32.mxu0 %v7805_v7  ;;  %v281_v18 = vld [vmem:[%s4954_s12 + $0xf8] sm:$0xff]  ;;  %v2793_v19 = vld [vmem:[%s7797_s4] sm:$0xff]  ;;  %v2794_v20 = vld [vmem:[%s7797_s4 + $0x8] sm:$0xff] }
  0x23   : > { %750 = vmatprep.mubr.f32.mxu1 %v7805_v7  ;;  %v2825_v21 = vld [vmem:[%s7797_s4 + $0x100] sm:$0xff]  ;;  %v2826_v22 = vld [vmem:[%s7797_s4 + $0x108] sm:$0xff]  ;;  %v4127_v23 = vpack.c.bf16 %v2794_v20, %v2793_v19  ;;  %v2795_v25 = vld [vmem:[%s7797_s4 + $0x10] sm:$0xff] }
  0x24   : > { %v4175_v24 = vpack.c.bf16 %v2826_v22, %v2825_v21  ;;  %v2796_v26 = vld [vmem:[%s7797_s4 + $0x18] sm:$0xff]  ;;  %v2827_v27 = vld [vmem:[%s7797_s4 + $0x110] sm:$0xff]  ;;  %v2797_v31 = vld [vmem:[%s7797_s4 + $0x20] sm:$0xff] }
  0x25   : > { %3967 = vmatmul.mubr.msk.f32.gmra.mrb[6].mxu0 %vm314_vm0, %v5025_v52  ;;  %v2828_v28 = vld [vmem:[%s7797_s4 + $0x118] sm:$0xff]  ;;  %v4130_v29 = vpack.c.bf16 %v2796_v26, %v2795_v25  ;;  %v2798_v32 = vld [vmem:[%s7797_s4 + $0x28] sm:$0xff]  ;;  %v2799_v37 = vld [vmem:[%s7797_s4 + $0x30] sm:$0xff] }
  0x26   : > { %3999 = vmatmul.mubr.msk.f32.gmra.mrb[6].mxu1 %vm314_vm0, %v5025_v52  ;;  %499 = vmatprep.mubr.f32.mxu0 %v7805_v7  ;;  %v4178_v30 = vpack.c.bf16 %v2828_v28, %v2827_v27  ;;  %v2830_v34 = vld [vmem:[%s7797_s4 + $0x128] sm:$0xff]  ;;  %v4133_v35 = vpack.c.bf16 %v2798_v32, %v2797_v31  ;;  %v2800_v39 = vld [vmem:[%s7797_s4 + $0x38] sm:$0xff]  ;;  %v2801_v43 = vld [vmem:[%s7797_s4 + $0x40] sm:$0xff] }
  0x27   : > { %756 = vmatprep.mubr.f32.mxu1 %v7805_v7  ;;  %v2832_v40 = vld [vmem:[%s7797_s4 + $0x138] sm:$0xff]  ;;  %v4136_v41 = vpack.c.bf16 %v2800_v39, %v2799_v37  ;;  %v2802_v44 = vld [vmem:[%s7797_s4 + $0x48] sm:$0xff]  ;;  %v2833_v45 = vld [vmem:[%s7797_s4 + $0x140] sm:$0xff] }
  0x28   : > { %v2834_v46 = vld [vmem:[%s7797_s4 + $0x148] sm:$0xff]  ;;  %v4139_v47 = vpack.c.bf16 %v2802_v44, %v2801_v43  ;;  %v2803_v49 = vld [vmem:[%s7797_s4 + $0x50] sm:$0xff]  ;;  %v2804_v50 = vld [vmem:[%s7797_s4 + $0x58] sm:$0xff] }
  0x29   : > { %3968 = vmatmul.mubr.msk.f32.gmra.mrb[8].mxu0 %vm314_vm0, %v5036_v54  ;;  %v2835_v51 = vld [vmem:[%s7797_s4 + $0x150] sm:$0xff]  ;;  %v2806_v19 = vld [vmem:[%s7797_s4 + $0x68] sm:$0xff]  ;;  %v2840_v25 = vld [vmem:[%s7797_s4 + $0x178] sm:$0xff] }
  0x2a   : > { %4000 = vmatmul.mubr.msk.f32.gmra.mrb[8].mxu1 %vm314_vm0, %v5036_v54  ;;  %505 = vmatprep.mubr.f32.mxu0 %v7805_v7  ;;  %v2838_v20 = vld [vmem:[%s7797_s4 + $0x168] sm:$0xff]  ;;  %v2809_v28 = vld [vmem:[%s7797_s4 + $0x80] sm:$0xff]  ;;  %v2815_v43 = vld [vmem:[%s7797_s4 + $0xb0] sm:$0xff] }
  0x2b   : > { %762 = vmatprep.mubr.f32.mxu1 %v7805_v7  ;;  %v2813_v39 = vld [vmem:[%s7797_s4 + $0xa0] sm:$0xff]  ;;  %v2816_v44 = vld [vmem:[%s7797_s4 + $0xb8] sm:$0xff] }
  0x2d   : > { %3969 = vmatmul.mubr.msk.f32.gmra.mrb[10].mxu0 %vm314_vm0, %v5045_v55 }
  0x2e   : > { %4001 = vmatmul.mubr.msk.f32.gmra.mrb[10].mxu1 %vm314_vm0, %v5045_v55  ;;  %511 = vmatprep.mubr.f32.mxu0 %v7805_v7 }
  0x2f   : > { %768 = vmatprep.mubr.f32.mxu1 %v7805_v7 }
  0x31   : > { %3970 = vmatmul.mubr.msk.f32.gmra.mrb[12].mxu0 %vm314_vm0, %v5054_v56 }
  0x32   : > { %4002 = vmatmul.mubr.msk.f32.gmra.mrb[12].mxu1 %vm314_vm0, %v5054_v56  ;;  %517 = vmatprep.mubr.f32.mxu0 %v7805_v7 }
  0x33   : > { %774 = vmatprep.mubr.f32.mxu1 %v7805_v7 }
  0x35   : > { %3971 = vmatmul.mubr.msk.f32.gmra.mrb[14].mxu0 %vm314_vm0, %v5063_v57 }
  0x36   : > { %4003 = vmatmul.mubr.msk.f32.gmra.mrb[14].mxu1 %vm314_vm0, %v5063_v57  ;;  %523 = vmatprep.mubr.f32.mxu0 %v7805_v7 }
  0x37   : > { %780 = vmatprep.mubr.f32.mxu1 %v7805_v7 }
  0x39   : > { %3972 = vmatmul.mubr.msk.f32.gmra.mrb[16].mxu0 %vm314_vm0, %v5072_v58 }
  0x3a   : > { %4004 = vmatmul.mubr.msk.f32.gmra.mrb[16].mxu1 %vm314_vm0, %v5072_v58  ;;  %529 = vmatprep.mubr.f32.mxu0 %v7805_v7 }
  0x3b   : > { %786 = vmatprep.mubr.f32.mxu1 %v7805_v7 }
  0x3d   : > { %3973 = vmatmul.mubr.msk.f32.gmra.mrb[18].mxu0 %vm314_vm0, %v5081_v59 }
  0x3e   : > { %4005 = vmatmul.mubr.msk.f32.gmra.mrb[18].mxu1 %vm314_vm0, %v5081_v59  ;;  %535 = vmatprep.mubr.f32.mxu0 %v7805_v7 }
  0x3f   : > { %792 = vmatprep.mubr.f32.mxu1 %v7805_v7 }
  0x41   : > { %3974 = vmatmul.mubr.msk.f32.gmra.mrb[20].mxu0 %vm314_vm0, %v5090_v60 }
  0x42   : > { %4006 = vmatmul.mubr.msk.f32.gmra.mrb[20].mxu1 %vm314_vm0, %v5090_v60  ;;  %541 = vmatprep.mubr.f32.mxu0 %v7805_v7 }
  0x43   : > { %798 = vmatprep.mubr.f32.mxu1 %v7805_v7 }
  0x45   : > { %3975 = vmatmul.mubr.msk.f32.gmra.mrb[22].mxu0 %vm314_vm0, %v5099_v61 }
  0x46   : > { %4007 = vmatmul.mubr.msk.f32.gmra.mrb[22].mxu1 %vm314_vm0, %v5099_v61  ;;  %547 = vmatprep.mubr.f32.mxu0 %v7805_v7 }
  0x47   : > { %804 = vmatprep.mubr.f32.mxu1 %v7805_v7 }
  0x49   : > { %3976 = vmatmul.mubr.msk.f32.gmra.mrb[24].mxu0 %vm314_vm0, %v5108_v62 }
  0x4a   : > { %4008 = vmatmul.mubr.msk.f32.gmra.mrb[24].mxu1 %vm314_vm0, %v5108_v62  ;;  %553 = vmatprep.mubr.f32.mxu0 %v7805_v7 }
  0x4b   : > { %810 = vmatprep.mubr.f32.mxu1 %v7805_v7 }
  0x4d   : > { %3977 = vmatmul.mubr.msk.f32.gmra.mrb[26].mxu0 %vm314_vm0, %v5117_v63 }
  0x4e   : > { %4009 = vmatmul.mubr.msk.f32.gmra.mrb[26].mxu1 %vm314_vm0, %v5117_v63  ;;  %559 = vmatprep.mubr.f32.mxu0 %v7805_v7 }
  0x4f   : > { %816 = vmatprep.mubr.f32.mxu1 %v7805_v7 }
  0x51   : > { %3978 = vmatmul.mubr.msk.f32.gmra.mrb[28].mxu0 %vm314_vm0, %v5126_v0 }
  0x52   : > { %4010 = vmatmul.mubr.msk.f32.gmra.mrb[28].mxu1 %vm314_vm0, %v5126_v0  ;;  %565 = vmatprep.mubr.f32.mxu0 %v7805_v7 }
  0x53   : > { %822 = vmatprep.mubr.f32.mxu1 %v7805_v7 }
  0x55   : > { %3979 = vmatmul.mubr.msk.f32.gmra.mrb[30].mxu0 %vm314_vm0, %v5135_v1 }
  0x56   : > { %4011 = vmatmul.mubr.msk.f32.gmra.mrb[30].mxu1 %vm314_vm0, %v5135_v1  ;;  %571 = vmatprep.mubr.f32.mxu0 %v7805_v7 }
  0x57   : > { %828 = vmatprep.mubr.f32.mxu1 %v7805_v7 }
  0x59   : > { %3980 = vmatmul.mubr.msk.f32.gmra.mrb[32].mxu0 %vm314_vm0, %v5144_v2 }
  0x5a   : > { %4012 = vmatmul.mubr.msk.f32.gmra.mrb[32].mxu1 %vm314_vm0, %v5144_v2  ;;  %577 = vmatprep.mubr.f32.mxu0 %v7805_v7 }
  0x5b   : > { %834 = vmatprep.mubr.f32.mxu1 %v7805_v7 }
  0x5d   : > { %3981 = vmatmul.mubr.msk.f32.gmra.mrb[34].mxu0 %vm314_vm0, %v5153_v3 }
  0x5e   : > { %4013 = vmatmul.mubr.msk.f32.gmra.mrb[34].mxu1 %vm314_vm0, %v5153_v3  ;;  %583 = vmatprep.mubr.f32.mxu0 %v7805_v7 }
  0x5f   : > { %840 = vmatprep.mubr.f32.mxu1 %v7805_v7 }
  0x61   : > { %3982 = vmatmul.mubr.msk.f32.gmra.mrb[36].mxu0 %vm314_vm0, %v5162_v4 }
  0x62   : > { %4014 = vmatmul.mubr.msk.f32.gmra.mrb[36].mxu1 %vm314_vm0, %v5162_v4  ;;  %589 = vmatprep.mubr.f32.mxu0 %v7805_v7 }
  0x63   : > { %846 = vmatprep.mubr.f32.mxu1 %v7805_v7 }
  0x65   : > { %3983 = vmatmul.mubr.msk.f32.gmra.mrb[38].mxu0 %vm314_vm0, %v5171_v5 }
  0x66   : > { %4015 = vmatmul.mubr.msk.f32.gmra.mrb[38].mxu1 %vm314_vm0, %v5171_v5  ;;  %595 = vmatprep.mubr.f32.mxu0 %v7805_v7 }
  0x67   : > { %852 = vmatprep.mubr.f32.mxu1 %v7805_v7 }
  0x69   : > { %3984 = vmatmul.mubr.msk.f32.gmra.mrb[40].mxu0 %vm314_vm0, %v5180_v6 }
  0x6a   : > { %4016 = vmatmul.mubr.msk.f32.gmra.mrb[40].mxu1 %vm314_vm0, %v5180_v6  ;;  %601 = vmatprep.mubr.f32.mxu0 %v7805_v7 }
  0x6b   : > { %858 = vmatprep.mubr.f32.mxu1 %v7805_v7 }
  0x6d   : > { %3985 = vmatmul.mubr.msk.f32.gmra.mrb[42].mxu0 %vm314_vm0, %v5189_v8 }
  0x6e   : > { %4017 = vmatmul.mubr.msk.f32.gmra.mrb[42].mxu1 %vm314_vm0, %v5189_v8  ;;  %607 = vmatprep.mubr.f32.mxu0 %v7805_v7 }
  0x6f   : > { %864 = vmatprep.mubr.f32.mxu1 %v7805_v7 }
  0x71   : > { %3986 = vmatmul.mubr.msk.f32.gmra.mrb[44].mxu0 %vm314_vm0, %v5198_v9 }
  0x72   : > { %4018 = vmatmul.mubr.msk.f32.gmra.mrb[44].mxu1 %vm314_vm0, %v5198_v9  ;;  %613 = vmatprep.mubr.f32.mxu0 %v7805_v7 }
  0x73   : > { %870 = vmatprep.mubr.f32.mxu1 %v7805_v7 }
  0x75   : > { %3987 = vmatmul.mubr.msk.f32.gmra.mrb[46].mxu0 %vm314_vm0, %v5207_v10 }
  0x76   : > { %4019 = vmatmul.mubr.msk.f32.gmra.mrb[46].mxu1 %vm314_vm0, %v5207_v10  ;;  %619 = vmatprep.mubr.f32.mxu0 %v7805_v7 }
  0x77   : > { %876 = vmatprep.mubr.f32.mxu1 %v7805_v7 }
  0x79   : > { %3988 = vmatmul.mubr.msk.f32.gmra.mrb[48].mxu0 %vm314_vm0, %v5216_v11 }
  0x7a   : > { %4020 = vmatmul.mubr.msk.f32.gmra.mrb[48].mxu1 %vm314_vm0, %v5216_v11  ;;  %625 = vmatprep.mubr.f32.mxu0 %v7805_v7 }
  0x7b   : > { %882 = vmatprep.mubr.f32.mxu1 %v7805_v7 }
  0x7d   : > { %3989 = vmatmul.mubr.msk.f32.gmra.mrb[50].mxu0 %vm314_vm0, %v5225_v12 }
  0x7e   : > { %4021 = vmatmul.mubr.msk.f32.gmra.mrb[50].mxu1 %vm314_vm0, %v5225_v12  ;;  %631 = vmatprep.mubr.f32.mxu0 %v7805_v7 }
  0x7f   : > { %888 = vmatprep.mubr.f32.mxu1 %v7805_v7 }
  0x81   : > { %3990 = vmatmul.mubr.msk.f32.gmra.mrb[52].mxu0 %vm314_vm0, %v5234_v13 }
  0x82   : > { %4022 = vmatmul.mubr.msk.f32.gmra.mrb[52].mxu1 %vm314_vm0, %v5234_v13  ;;  %637 = vmatprep.mubr.f32.mxu0 %v7805_v7 }
  0x83   : > { %894 = vmatprep.mubr.f32.mxu1 %v7805_v7 }
  0x85   : > { %3991 = vmatmul.mubr.msk.f32.gmra.mrb[54].mxu0 %vm314_vm0, %v5243_v14 }
  0x86   : > { %4023 = vmatmul.mubr.msk.f32.gmra.mrb[54].mxu1 %vm314_vm0, %v5243_v14  ;;  %643 = vmatprep.mubr.f32.mxu0 %v7805_v7 }
  0x87   : > { %900 = vmatprep.mubr.f32.mxu1 %v7805_v7 }
  0x89   : > { %3992 = vmatmul.mubr.msk.f32.gmra.mrb[56].mxu0 %vm314_vm0, %v5252_v15 }
  0x8a   : > { %4024 = vmatmul.mubr.msk.f32.gmra.mrb[56].mxu1 %vm314_vm0, %v5252_v15  ;;  %649 = vmatprep.mubr.f32.mxu0 %v7805_v7 }
  0x8b   : > { %906 = vmatprep.mubr.f32.mxu1 %v7805_v7 }
  0x8d   : > { %3993 = vmatmul.mubr.msk.f32.gmra.mrb[58].mxu0 %vm314_vm0, %v279_v16 }
  0x8e   : > { %4025 = vmatmul.mubr.msk.f32.gmra.mrb[58].mxu1 %vm314_vm0, %v279_v16  ;;  %655 = vmatprep.mubr.f32.mxu0 %v7805_v7  ;;  %v4142_v16 = vpack.c.bf16 %v2804_v50, %v2803_v49  ;;  %v2818_v49 = vld [vmem:[%s7797_s4 + $0xc8] sm:$0xff] }
  0x8f   : > { %912 = vmatprep.mubr.f32.mxu1 %v7805_v7  ;;  %v2850_v50 = vld [vmem:[%s7797_s4 + $0x1c8] sm:$0xff] }
  0x91   : > { %3994 = vmatmul.mubr.msk.f32.gmra.mrb[60].mxu0 %vm314_vm0, %v280_v17 }
  0x92   : > { %4026 = vmatmul.mubr.msk.f32.gmra.mrb[60].mxu1 %vm314_vm0, %v280_v17  ;;  %661 = vmatprep.mubr.f32.mxu0 %v7805_v7 }
  0x93   : > { %918 = vmatprep.mubr.f32.mxu1 %v7805_v7 }
  0x95   : > { %3995 = vmatmul.mubr.msk.f32.gmra.mrb[62].mxu0 %vm314_vm0, %v281_v18 }
  0x96   : > { %4027 = vmatmul.mubr.msk.f32.gmra.mrb[62].mxu1 %vm314_vm0, %v281_v18  ;;  %989 = vmatprep.mubr.f32.mxu0 %v7805_v7  ;;  %v2805_v18 = vld [vmem:[%s7797_s4 + $0x60] sm:$0xff] }
  0x97   : > { %1246 = vmatprep.mubr.f32.mxu1 %v7805_v7  ;;  %v4145_v21 = vpack.c.bf16 %v2806_v19, %v2805_v18  ;;  %v2852_v18 = vld [vmem:[%s7797_s4 + $0x1d8] sm:$0xff] }
  0x99   : > { %4028 = vmatmul.mubr.msk.f32.vlgmr.msra.gmra.mrb[64].mxu0 %vm314_vm0, %v4972_v33 }
  0x9a   : > { %4060 = vmatmul.mubr.msk.f32.vlgmr.msra.gmra.mrb[64].mxu1 %vm314_vm0, %v4972_v33  ;;  %4128 = vmatpush1.bf16.msra.mxu0 %v4127_v23  ;;  %v2829_v33 = vld [vmem:[%s7797_s4 + $0x120] sm:$0xff]  ;;  %v2807_v23 = vld [vmem:[%s7797_s4 + $0x70] sm:$0xff] }
  0x9b   : > { %995 = vmatprep.mubr.f32.mxu0 %v7805_v7  ;;  %1252 = vmatprep.mubr.f32.mxu1 %v7805_v7  ;;  %v4181_v36 = vpack.c.bf16 %v2830_v34, %v2829_v33  ;;  %v2811_v33 = vld [vmem:[%s7797_s4 + $0x90] sm:$0xff]  ;;  %v2812_v34 = vld [vmem:[%s7797_s4 + $0x98] sm:$0xff] }
  0x9c   : > { %4176 = vmatpush1.bf16.msra.mxu1 %v4175_v24  ;;  %4129 = vmatprep.subr.bf16.mxu0 %v7799_v53  ;;  %v2808_v24 = vld [vmem:[%s7797_s4 + $0x78] sm:$0xff] }
  0x9d   : > { %4029 = vmatmul.mubr.msk.f32.gmra.mrb[66].mxu0 %vm314_vm0, %v4982_v38  ;;  %4177 = vmatprep.subr.bf16.mxu1 %v7799_v53  ;;  %v4148_v26 = vpack.c.bf16 %v2808_v24, %v2807_v23 }
  0x9e   : > { %4061 = vmatmul.mubr.msk.f32.gmra.mrb[66].mxu1 %vm314_vm0, %v4982_v38  ;;  %1001 = vmatprep.mubr.f32.mxu0 %v7805_v7  ;;  %v2831_v38 = vld [vmem:[%s7797_s4 + $0x130] sm:$0xff] }
  0x9f   : > { %1258 = vmatprep.mubr.f32.mxu1 %v7805_v7  ;;  %4131 = vmatpush1.bf16.msra.mxu0 %v4130_v29  ;;  %v4184_v42 = vpack.c.bf16 %v2832_v40, %v2831_v38  ;;  %v2810_v29 = vld [vmem:[%s7797_s4 + $0x88] sm:$0xff] }
  0xa0   : > { %4179 = vmatpush1.bf16.msra.mxu1 %v4178_v30  ;;  %4132 = vmatprep.subr.bf16.mxu0 %v7799_v53  ;;  %v2842_v30 = vld [vmem:[%s7797_s4 + $0x188] sm:$0xff]  ;;  %v4151_v31 = vpack.c.bf16 %v2810_v29, %v2809_v28 }
  0xa1   : > { %4030 = vmatmul.mubr.msk.f32.gmra.mrb[68].mxu0 %vm314_vm0, %v5013_v48  ;;  %4180 = vmatprep.subr.bf16.mxu1 %v7799_v53  ;;  %v2814_v38 = vld [vmem:[%s7797_s4 + $0xa8] sm:$0xff] }
  0xa2   : > { %4062 = vmatmul.mubr.msk.f32.gmra.mrb[68].mxu1 %vm314_vm0, %v5013_v48  ;;  %1007 = vmatprep.mubr.f32.mxu0 %v7805_v7  ;;  %v4187_v48 = vpack.c.bf16 %v2834_v46, %v2833_v45  ;;  %v2846_v40 = vld [vmem:[%s7797_s4 + $0x1a8] sm:$0xff]  ;;  %v2848_v45 = vld [vmem:[%s7797_s4 + $0x1b8] sm:$0xff]  ;;  %v4160_v46 = vpack.c.bf16 %v2816_v44, %v2815_v43  ;;  %v5713_v44 = vld [vmem:[%s7797_s4 + $0x330] sm:$0xff] }
  0xa3   : > { %1264 = vmatprep.mubr.f32.mxu1 %v7805_v7  ;;  %4134 = vmatpush1.bf16.msra.mxu0 %v4133_v35  ;;  %v2844_v35 = vld [vmem:[%s7797_s4 + $0x198] sm:$0xff] }
  0xa4   : > { %4182 = vmatpush1.bf16.msra.mxu1 %v4181_v36  ;;  %4135 = vmatprep.subr.bf16.mxu0 %v7799_v53  ;;  %v4154_v36 = vpack.c.bf16 %v2812_v34, %v2811_v33  ;;  %v5652_v33 = vld [vmem:[%s7797_s4 + $0x210] sm:$0xff]  ;;  %v5657_v34 = vld [vmem:[%s7797_s4 + $0x218] sm:$0xff] }
  0xa5   : > { %4031 = vmatmul.mubr.msk.f32.gmra.mrb[70].mxu0 %vm314_vm0, %v5025_v52  ;;  %4183 = vmatprep.subr.bf16.mxu1 %v7799_v53 }
  0xa6   : > { %4063 = vmatmul.mubr.msk.f32.gmra.mrb[70].mxu1 %vm314_vm0, %v5025_v52  ;;  %1013 = vmatprep.mubr.f32.mxu0 %v7805_v7  ;;  %v2836_v52 = vld [vmem:[%s7797_s4 + $0x158] sm:$0xff] }
  0xa7   : > { %1270 = vmatprep.mubr.f32.mxu1 %v7805_v7  ;;  %4137 = vmatpush1.bf16.msra.mxu0 %v4136_v41  ;;  %v4190_v17 = vpack.c.bf16 %v2836_v52, %v2835_v51  ;;  %v4157_v41 = vpack.c.bf16 %v2814_v38, %v2813_v39  ;;  %v5682_v39 = vld [vmem:[%s7797_s4 + $0x320] sm:$0xff] }
  0xa8   : > { %4185 = vmatpush1.bf16.msra.mxu1 %v4184_v42  ;;  %4138 = vmatprep.subr.bf16.mxu0 %v7799_v53 }
  0xa9   : > { %4032 = vmatmul.mubr.msk.f32.gmra.mrb[72].mxu0 %vm314_vm0, %v5036_v54  ;;  %4186 = vmatprep.subr.bf16.mxu1 %v7799_v53 }
  0xaa   : > { %4064 = vmatmul.mubr.msk.f32.gmra.mrb[72].mxu1 %vm314_vm0, %v5036_v54  ;;  %1019 = vmatprep.mubr.f32.mxu0 %v7805_v7  ;;  %v2837_v54 = vld [vmem:[%s7797_s4 + $0x160] sm:$0xff] }
  0xab   : > { %1276 = vmatprep.mubr.f32.mxu1 %v7805_v7  ;;  %4140 = vmatpush1.bf16.msra.mxu0 %v4139_v47  ;;  %v4193_v22 = vpack.c.bf16 %v2838_v20, %v2837_v54  ;;  %v2821_v20 = vld [vmem:[%s7797_s4 + $0xe0] sm:$0xff] }
  0xac   : > { %4188 = vmatpush1.bf16.msra.mxu1 %v4187_v48  ;;  %4141 = vmatprep.subr.bf16.mxu0 %v7799_v53  ;;  %v2817_v48 = vld [vmem:[%s7797_s4 + $0xc0] sm:$0xff] }
  0xad   : > { %4033 = vmatmul.mubr.msk.f32.gmra.mrb[74].mxu0 %vm314_vm0, %v5045_v55  ;;  %4189 = vmatprep.subr.bf16.mxu1 %v7799_v53  ;;  %v4163_v51 = vpack.c.bf16 %v2818_v49, %v2817_v48  ;;  %v5738_v48 = vld [vmem:[%s7797_s4 + $0x340] sm:$0xff]  ;;  %v5743_v49 = vld [vmem:[%s7797_s4 + $0x348] sm:$0xff] }
  0xae   : > { %4065 = vmatmul.mubr.msk.f32.gmra.mrb[74].mxu1 %vm314_vm0, %v5045_v55  ;;  %1025 = vmatprep.mubr.f32.mxu0 %v7805_v7  ;;  %v2839_v55 = vld [vmem:[%s7797_s4 + $0x170] sm:$0xff]  ;;  %7820 = vst [vmem:[#allocation5_spill] sm:$0xff] %v5738_v48  ;;  %7821 = vst [vmem:[#allocation6_spill] sm:$0xff] %v5743_v49 }
  0xaf   : > { %1282 = vmatprep.mubr.f32.mxu1 %v7805_v7  ;;  %4143 = vmatpush1.bf16.msra.mxu0 %v4142_v16  ;;  %v4196_v27 = vpack.c.bf16 %v2840_v25, %v2839_v55  ;;  %v2819_v16 = vld [vmem:[%s7797_s4 + $0xd0] sm:$0xff]  ;;  %v2824_v25 = vld [vmem:[%s7797_s4 + $0xf8] sm:$0xff] }
  0xb0   : > { %4191 = vmatpush1.bf16.msra.mxu1 %v4190_v17  ;;  %4144 = vmatprep.subr.bf16.mxu0 %v7799_v53  ;;  %v2820_v17 = vld [vmem:[%s7797_s4 + $0xd8] sm:$0xff]  ;;  %v2823_v55 = vld [vmem:[%s7797_s4 + $0xf0] sm:$0xff] }
  0xb1   : > { %4034 = vmatmul.mubr.msk.f32.gmra.mrb[76].mxu0 %vm314_vm0, %v5054_v56  ;;  %4192 = vmatprep.subr.bf16.mxu1 %v7799_v53  ;;  %v4166_v19 = vpack.c.bf16 %v2820_v17, %v2819_v16  ;;  %v5756_v17 = vld [vmem:[%s7797_s4 + $0x250] sm:$0xff] }
  0xb2   : > { %4066 = vmatmul.mubr.msk.f32.gmra.mrb[76].mxu1 %vm314_vm0, %v5054_v56  ;;  %1031 = vmatprep.mubr.f32.mxu0 %v7805_v7  ;;  %v2841_v56 = vld [vmem:[%s7797_s4 + $0x180] sm:$0xff]  ;;  %7822 = vst [vmem:[#allocation7_spill] sm:$0xff] %v5756_v17 }
  0xb3   : > { %1288 = vmatprep.mubr.f32.mxu1 %v7805_v7  ;;  %4146 = vmatpush1.bf16.msra.mxu0 %v4145_v21  ;;  %v4199_v32 = vpack.c.bf16 %v2842_v30, %v2841_v56  ;;  %v2822_v21 = vld [vmem:[%s7797_s4 + $0xe8] sm:$0xff]  ;;  %v5630_v56 = vld [vmem:[%s7797_s4 + $0x200] sm:$0xff] }
  0xb4   : > { %4194 = vmatpush1.bf16.msra.mxu1 %v4193_v22  ;;  %4147 = vmatprep.subr.bf16.mxu0 %v7799_v53  ;;  %v2854_v22 = vld [vmem:[%s7797_s4 + $0x1e8] sm:$0xff]  ;;  %v4169_v23 = vpack.c.bf16 %v2822_v21, %v2821_v20 }
  0xb5   : > { %4035 = vmatmul.mubr.msk.f32.gmra.mrb[78].mxu0 %vm314_vm0, %v5063_v57  ;;  %4195 = vmatprep.subr.bf16.mxu1 %v7799_v53  ;;  %v5635_v30 = vld [vmem:[%s7797_s4 + $0x208] sm:$0xff] }
  0xb6   : > { %4067 = vmatmul.mubr.msk.f32.gmra.mrb[78].mxu1 %vm314_vm0, %v5063_v57  ;;  %1037 = vmatprep.mubr.f32.mxu0 %v7805_v7  ;;  %v2843_v57 = vld [vmem:[%s7797_s4 + $0x190] sm:$0xff] }
  0xb7   : > { %1294 = vmatprep.mubr.f32.mxu1 %v7805_v7  ;;  %4149 = vmatpush1.bf16.msra.mxu0 %v4148_v26  ;;  %v4202_v37 = vpack.c.bf16 %v2844_v35, %v2843_v57  ;;  %v2856_v26 = vld [vmem:[%s7797_s4 + $0x1f8] sm:$0xff]  ;;  %v5662_v57 = vld [vmem:[%s7797_s4 + $0x310] sm:$0xff] }
  0xb8   : > { %4197 = vmatpush1.bf16.msra.mxu1 %v4196_v27  ;;  %4150 = vmatprep.subr.bf16.mxu0 %v7799_v53  ;;  %v4172_v27 = vpack.c.bf16 %v2824_v25, %v2823_v55  ;;  %v5667_v35 = vld [vmem:[%s7797_s4 + $0x318] sm:$0xff]  ;;  %v5790_v55 = vld [vmem:[%s7797_s4 + $0x268] sm:$0xff] }
  0xb9   : > { %4036 = vmatmul.mubr.msk.f32.gmra.mrb[80].mxu0 %vm314_vm0, %v5072_v58  ;;  %4198 = vmatprep.subr.bf16.mxu1 %v7799_v53  ;;  %7827 = vst [vmem:[#allocation12_spill] sm:$0xff] %v5790_v55 }
  0xba   : > { %4068 = vmatmul.mubr.msk.f32.gmra.mrb[80].mxu1 %vm314_vm0, %v5072_v58  ;;  %1043 = vmatprep.mubr.f32.mxu0 %v7805_v7  ;;  %v2845_v58 = vld [vmem:[%s7797_s4 + $0x1a0] sm:$0xff] }
  0xbb   : > { %1300 = vmatprep.mubr.f32.mxu1 %v7805_v7  ;;  %4152 = vmatpush1.bf16.msra.mxu0 %v4151_v31  ;;  %v4205_v42 = vpack.c.bf16 %v2846_v40, %v2845_v58  ;;  %v5642_v31 = vld [vmem:[%s7797_s4 + $0x300] sm:$0xff]  ;;  %v5691_v58 = vld [vmem:[%s7797_s4 + $0x328] sm:$0xff]  ;;  %v5696_v40 = vld [vmem:[%s7797_s4 + $0x230] sm:$0xff] }
  0xbc   : > { %4200 = vmatpush1.bf16.msra.mxu1 %v4199_v32  ;;  %4153 = vmatprep.subr.bf16.mxu0 %v7799_v53  ;;  %v5647_v32 = vld [vmem:[%s7797_s4 + $0x308] sm:$0xff] }
  0xbd   : > { %4037 = vmatmul.mubr.msk.f32.gmra.mrb[82].mxu0 %vm314_vm0, %v5081_v59  ;;  %4201 = vmatprep.subr.bf16.mxu1 %v7799_v53 }
  0xbe   : > { %4069 = vmatmul.mubr.msk.f32.gmra.mrb[82].mxu1 %vm314_vm0, %v5081_v59  ;;  %1049 = vmatprep.mubr.f32.mxu0 %v7805_v7  ;;  %v2847_v59 = vld [vmem:[%s7797_s4 + $0x1b0] sm:$0xff] }
  0xbf   : > { %1306 = vmatprep.mubr.f32.mxu1 %v7805_v7  ;;  %4155 = vmatpush1.bf16.msra.mxu0 %v4154_v36  ;;  %v4208_v47 = vpack.c.bf16 %v2848_v45, %v2847_v59  ;;  %v5672_v36 = vld [vmem:[%s7797_s4 + $0x220] sm:$0xff]  ;;  %v5718_v59 = vld [vmem:[%s7797_s4 + $0x338] sm:$0xff] }
  0xc0   : > { %4203 = vmatpush1.bf16.msra.mxu1 %v4202_v37  ;;  %4156 = vmatprep.subr.bf16.mxu0 %v7799_v53  ;;  %v5677_v37 = vld [vmem:[%s7797_s4 + $0x228] sm:$0xff] }
  0xc1   : > { %4038 = vmatmul.mubr.msk.f32.gmra.mrb[84].mxu0 %vm314_vm0, %v5090_v60  ;;  %4204 = vmatprep.subr.bf16.mxu1 %v7799_v53 }
  0xc2   : > { %4070 = vmatmul.mubr.msk.f32.gmra.mrb[84].mxu1 %vm314_vm0, %v5090_v60  ;;  %1055 = vmatprep.mubr.f32.mxu0 %v7805_v7  ;;  %v2849_v60 = vld [vmem:[%s7797_s4 + $0x1c0] sm:$0xff] }
  0xc3   : > { %1312 = vmatprep.mubr.f32.mxu1 %v7805_v7  ;;  %4158 = vmatpush1.bf16.msra.mxu0 %v4157_v41  ;;  %v4211_v52 = vpack.c.bf16 %v2850_v50, %v2849_v60  ;;  %v5701_v41 = vld [vmem:[%s7797_s4 + $0x238] sm:$0xff] }
  0xc4   : > { %4206 = vmatpush1.bf16.msra.mxu1 %v4205_v42  ;;  %4159 = vmatprep.subr.bf16.mxu0 %v7799_v53 }
  0xc5   : > { %4039 = vmatmul.mubr.msk.f32.gmra.mrb[86].mxu0 %vm314_vm0, %v5099_v61  ;;  %4207 = vmatprep.subr.bf16.mxu1 %v7799_v53 }
  0xc6   : > { %4071 = vmatmul.mubr.msk.f32.gmra.mrb[86].mxu1 %vm314_vm0, %v5099_v61  ;;  %1061 = vmatprep.mubr.f32.mxu0 %v7805_v7  ;;  %v2851_v61 = vld [vmem:[%s7797_s4 + $0x1d0] sm:$0xff] }
  0xc7   : > { %1318 = vmatprep.mubr.f32.mxu1 %v7805_v7  ;;  %4161 = vmatpush1.bf16.msra.mxu0 %v4160_v46  ;;  %v4214_v54 = vpack.c.bf16 %v2852_v18, %v2851_v61  ;;  %v5761_v61 = vld [vmem:[%s7797_s4 + $0x258] sm:$0xff]  ;;  %v5766_v18 = vld [vmem:[%s7797_s4 + $0x350] sm:$0xff] }
  0xc8   : > { %4209 = vmatpush1.bf16.msra.mxu1 %v4208_v47  ;;  %4162 = vmatprep.subr.bf16.mxu0 %v7799_v53  ;;  %v5733_v47 = vld [vmem:[%s7797_s4 + $0x248] sm:$0xff]  ;;  %7823 = vst [vmem:[#allocation8_spill] sm:$0xff] %v5761_v61  ;;  %7824 = vst [vmem:[#allocation9_spill] sm:$0xff] %v5766_v18 }
  0xc9   : > { %4040 = vmatmul.mubr.msk.f32.gmra.mrb[88].mxu0 %vm314_vm0, %v5108_v62  ;;  %4210 = vmatprep.subr.bf16.mxu1 %v7799_v53  ;;  %7819 = vst [vmem:[#allocation4_spill] sm:$0xff] %v5733_v47  ;;  %v4840_v18 = vld [vmem:[%s4954_s12 + $0xe8] sm:$0xff] }
  0xca   : > { %4072 = vmatmul.mubr.msk.f32.gmra.mrb[88].mxu1 %vm314_vm0, %v5108_v62  ;;  %1067 = vmatprep.mubr.f32.mxu0 %v7805_v7  ;;  %v2853_v62 = vld [vmem:[%s7797_s4 + $0x1e0] sm:$0xff] }
  0xcb   : > { %1324 = vmatprep.mubr.f32.mxu1 %v7805_v7  ;;  %4164 = vmatpush1.bf16.msra.mxu0 %v4163_v51  ;;  %v4217_v24 = vpack.c.bf16 %v2854_v22, %v2853_v62 }
  0xcc   : > { %4212 = vmatpush1.bf16.msra.mxu1 %v4211_v52  ;;  %4165 = vmatprep.subr.bf16.mxu0 %v7799_v53 }
  0xcd   : > { %4041 = vmatmul.mubr.msk.f32.gmra.mrb[90].mxu0 %vm314_vm0, %v5117_v63  ;;  %4213 = vmatprep.subr.bf16.mxu1 %v7799_v53 }
  0xce   : > { %4073 = vmatmul.mubr.msk.f32.gmra.mrb[90].mxu1 %vm314_vm0, %v5117_v63  ;;  %1073 = vmatprep.mubr.f32.mxu0 %v7805_v7  ;;  %v2855_v63 = vld [vmem:[%s7797_s4 + $0x1f0] sm:$0xff] }
  0xcf   : > { %1330 = vmatprep.mubr.f32.mxu1 %v7805_v7  ;;  %4167 = vmatpush1.bf16.msra.mxu0 %v4166_v19  ;;  %v4220_v28 = vpack.c.bf16 %v2856_v26, %v2855_v63 }
  0xd0   : > { %4215 = vmatpush1.bf16.msra.mxu1 %v4214_v54  ;;  %4168 = vmatprep.subr.bf16.mxu0 %v7799_v53 }
  0xd1   : > { %4042 = vmatmul.mubr.msk.f32.gmra.mrb[92].mxu0 %vm314_vm0, %v5126_v0  ;;  %4216 = vmatprep.subr.bf16.mxu1 %v7799_v53 }
  0xd2   : > { %4074 = vmatmul.mubr.msk.f32.gmra.mrb[92].mxu1 %vm314_vm0, %v5126_v0  ;;  %1079 = vmatprep.mubr.f32.mxu0 %v7805_v7  ;;  %v1441_v0 = vlaneseq }
  0xd3   : > { %1336 = vmatprep.mubr.f32.mxu1 %v7805_v7  ;;  %4170 = vmatpush1.bf16.msra.mxu0 %v4169_v23  ;;  %v5780_v23 = vld [vmem:[%s7797_s4 + $0x358] sm:$0xff] }
  0xd4   : > { %4218 = vmatpush1.bf16.msra.mxu1 %v4217_v24  ;;  %4171 = vmatprep.subr.bf16.mxu0 %v7799_v53  ;;  %7825 = vst [vmem:[#allocation10_spill] sm:$0xff] %v5780_v23  ;;  %v5785_v24 = vld [vmem:[%s7797_s4 + $0x260] sm:$0xff] }
  0xd5   : > { %4043 = vmatmul.mubr.msk.f32.gmra.mrb[94].mxu0 %vm314_vm0, %v5135_v1  ;;  %4219 = vmatprep.subr.bf16.mxu1 %v7799_v53  ;;  %7826 = vst [vmem:[#allocation11_spill] sm:$0xff] %v5785_v24 }
  0xd6   : > { %4075 = vmatmul.mubr.msk.f32.gmra.mrb[94].mxu1 %vm314_vm0, %v5135_v1  ;;  %1085 = vmatprep.mubr.f32.mxu0 %v7805_v7  ;;  %v5610_v1 = vshrl.u32 %v1441_v0, 7  ;;  %v5807_v0 = vld [vmem:[%s7797_s4 + $0x368] sm:$0xff] }
  0xd7   : > { %1342 = vmatprep.mubr.f32.mxu1 %v7805_v7  ;;  %4173 = vmatpush1.bf16.msra.mxu0 %v4172_v27  ;;  %7829 = vst [vmem:[#allocation14_spill] sm:$0xff] %v5807_v0 }
  0xd8   : > { %4221 = vmatpush1.bf16.msra.mxu1 %v4220_v28  ;;  %4222 = vmatprep.subr.bf16.mxu0 %v7799_v53  ;;  %7817 = vst [vmem:[#allocation2_spill] sm:$0xff] %v5610_v1  ;;  %v1451_v29 = vsub.s32 2, %v5610_v1  ;;  %v5802_v28 = vld [vmem:[%s7797_s4 + $0x360] sm:$0xff] }
  0xd9   : > { %4044 = vmatmul.mubr.msk.f32.gmra.mrb[96].mxu0 %vm314_vm0, %v5144_v2  ;;  %4270 = vmatprep.subr.bf16.mxu1 %v7799_v53  ;;  %7828 = vst [vmem:[#allocation13_spill] sm:$0xff] %v5802_v28 }
  0xda   : > { %4076 = vmatmul.mubr.msk.f32.gmra.mrb[96].mxu1 %vm314_vm0, %v5144_v2  ;;  %1091 = vmatprep.mubr.f32.mxu0 %v7805_v7  ;;  %v1443_v2 = vsub.s32 0, %v5610_v1 }
  0xdb   : > { %1348 = vmatprep.mubr.f32.mxu1 %v7805_v7 }
  0xdd   : > { %4045 = vmatmul.mubr.msk.f32.gmra.mrb[98].mxu0 %vm314_vm0, %v5153_v3 }
  0xde   : > { %4077 = vmatmul.mubr.msk.f32.gmra.mrb[98].mxu1 %vm314_vm0, %v5153_v3  ;;  %1097 = vmatprep.mubr.f32.mxu0 %v7805_v7  ;;  %v1439_v3 = vld [vmem:[%s7796_s3] sm:$0xff] }
  0xdf   : > { %1354 = vmatprep.mubr.f32.mxu1 %v7805_v7  ;;  %v5686_v38 = vrot.slane %v1439_v3, %v1443_v2  ;;  %v5708_v43 = vrot.slane %v1439_v3, %v1451_v29 }
  0xe1   : > { %4046 = vmatmul.mubr.msk.f32.gmra.mrb[100].mxu0 %vm314_vm0, %v5162_v4 }
  0xe2   : > { %4078 = vmatmul.mubr.msk.f32.gmra.mrb[100].mxu1 %vm314_vm0, %v5162_v4  ;;  %1103 = vmatprep.mubr.f32.mxu0 %v7805_v7  ;;  %v1447_v4 = vsub.s32 1, %v5610_v1 }
  0xe3   : > { %1360 = vmatprep.mubr.f32.mxu1 %v7805_v7 }
  0xe4   : > { %v5706_v42 = vrot.slane %v1439_v3, %v1447_v4 }
  0xe5   : > { %4047 = vmatmul.mubr.msk.f32.gmra.mrb[102].mxu0 %vm314_vm0, %v5171_v5 }
  0xe6   : > { %4079 = vmatmul.mubr.msk.f32.gmra.mrb[102].mxu1 %vm314_vm0, %v5171_v5  ;;  %1109 = vmatprep.mubr.f32.mxu0 %v7805_v7  ;;  %v1455_v5 = vsub.s32 3, %v5610_v1 }
  0xe7   : > { %1366 = vmatprep.mubr.f32.mxu1 %v7805_v7 }
  0xe8   : > { %v5726_v45 = vrot.slane %v1439_v3, %v1455_v5 }
  0xe9   : > { %4048 = vmatmul.mubr.msk.f32.gmra.mrb[104].mxu0 %vm314_vm0, %v5180_v6 }
  0xea   : > { %4080 = vmatmul.mubr.msk.f32.gmra.mrb[104].mxu1 %vm314_vm0, %v5180_v6  ;;  %1115 = vmatprep.mubr.f32.mxu0 %v7805_v7  ;;  %v5723_v6 = vld [vmem:[%s7797_s4 + $0x240] sm:$0xff] }
  0xeb   : > { %7818 = vst [vmem:[#allocation3_spill] sm:$0xff] %v5723_v6  ;;  %1372 = vmatprep.mubr.f32.mxu1 %v7805_v7 }
  0xec   : > { %v477_v60 = vpop.f32.mrb[0].mxu0 }
  0xed   : > { %v1481_v19 = vsub.f32 %v477_v60, %v5686_v38  ;;  %v479_v54 = vpop.f32.mrb[1].mxu0  ;;  %4049 = vmatmul.mubr.msk.f32.gmra.mrb[106].mxu0 %vm314_vm0, %v5189_v8  ;;  %v734_v20 = vpop.f32.mrb[0].mxu1 }
  0xee   : > { %v1482_v25 = vsub.f32 %v479_v54, %v5706_v42  ;;  %4081 = vmatmul.mubr.msk.f32.gmra.mrb[106].mxu1 %vm314_vm0, %v5189_v8  ;;  %v1483_v63 = vsub.f32 %v734_v20, %v5708_v43  ;;  %v736_v26 = vpop.f32.mrb[1].mxu1  ;;  %1121 = vmatprep.mubr.f32.mxu0 %v7805_v7 }
  0xef   : > { %v1737_v2 = vmul.f32 %v1481_v19, %v1481_v19  ;;  %v1484_v8 = vsub.f32 %v736_v26, %v5726_v45  ;;  %1378 = vmatprep.mubr.f32.mxu1 %v7805_v7 }
  0xf0   : > { %v1738_v29 = vmul.f32 %v1482_v25, %v1482_v25  ;;  %v1739_v5 = vmul.f32 %v1483_v63, %v1483_v63  ;;  %v483_v60 = vpop.f32.mrb[2].mxu0 }
  0xf1   : > { %v1993_v19 = vsub.f32 0.0, %v1737_v2  ;;  %v1740_v27 = vmul.f32 %v1484_v8, %v1484_v8  ;;  %v1489_v26 = vsub.f32 %v483_v60, %v5686_v38  ;;  %v485_v22 = vpop.f32.mrb[3].mxu0  ;;  %4050 = vmatmul.mubr.msk.f32.gmra.mrb[108].mxu0 %vm314_vm0, %v5198_v9  ;;  %v740_v3 = vpop.f32.mrb[2].mxu1 }
  0xf2   : > { %v1994_v63 = vsub.f32 0.0, %v1738_v29  ;;  %v1995_v4 = vsub.f32 0.0, %v1739_v5  ;;  %v1490_v62 = vsub.f32 %v485_v22, %v5706_v42  ;;  %4082 = vmatmul.mubr.msk.f32.gmra.mrb[108].mxu1 %vm314_vm0, %v5198_v9  ;;  %v1491_v2 = vsub.f32 %v740_v3, %v5708_v43  ;;  %v742_v8 = vpop.f32.mrb[3].mxu1  ;;  %1127 = vmatprep.mubr.f32.mxu0 %v7805_v7 }
  0xf3   : > { %v2249_v60 = vmul.f32 1.442695, %v1993_v19  ;;  %v1996_v20 = vsub.f32 0.0, %v1740_v27  ;;  %v1745_v54 = vmul.f32 %v1489_v26, %v1489_v26  ;;  %v1492_v21 = vsub.f32 %v742_v8, %v5726_v45  ;;  %1384 = vmatprep.mubr.f32.mxu1 %v7805_v7 }
  0xf4   : > { %v2251_v25 = vmul.f32 1.442695, %v1994_v63  ;;  %v2253_v29 = vmul.f32 1.442695, %v1995_v4  ;;  %v1746_v5 = vmul.f32 %v1490_v62, %v1490_v62  ;;  %v1747_v16 = vmul.f32 %v1491_v2, %v1491_v2  ;;  %v489_v22 = vpop.f32.mrb[4].mxu0 }
  0xf5   : > { %4328 = vpow2.f32 %v2249_v60  ;;  %v2255_v52 = vmul.f32 1.442695, %v1996_v20  ;;  %v2001_v9 = vsub.f32 0.0, %v1745_v54  ;;  %v1748_v51 = vmul.f32 %v1492_v21, %v1492_v21  ;;  %v491_v3 = vpop.f32.mrb[5].mxu0  ;;  %4051 = vmatmul.mubr.msk.f32.gmra.mrb[110].mxu0 %vm314_vm0, %v5207_v10  ;;  %v746_v19 = vpop.f32.mrb[4].mxu1 }
  0xf6   : > { %4330 = vpow2.f32 %v2251_v25  ;;  %v2002_v27 = vsub.f32 0.0, %v1746_v5  ;;  %v2003_v26 = vsub.f32 0.0, %v1747_v16  ;;  %v1497_v8 = vsub.f32 %v489_v22, %v5686_v38  ;;  %4083 = vmatmul.mubr.msk.f32.gmra.mrb[110].mxu1 %vm314_vm0, %v5207_v10  ;;  %v748_v62 = vpop.f32.mrb[5].mxu1  ;;  %1133 = vmatprep.mubr.f32.mxu0 %v7805_v7 }
  0xf7   : > { %4332 = vpow2.f32 %v2253_v29  ;;  %v2265_v4 = vmul.f32 1.442695, %v2001_v9  ;;  %v2004_v54 = vsub.f32 0.0, %v1748_v51  ;;  %v1498_v21 = vsub.f32 %v491_v3, %v5706_v42  ;;  %1390 = vmatprep.mubr.f32.mxu1 %v7805_v7 }
  0xf8   : > { %4334 = vpow2.f32 %v2255_v52  ;;  %v2267_v20 = vmul.f32 1.442695, %v2002_v27  ;;  %v2269_v25 = vmul.f32 1.442695, %v2003_v26  ;;  %v1753_v63 = vmul.f32 %v1497_v8, %v1497_v8  ;;  %v495_v16 = vpop.f32.mrb[6].mxu0 }
  0xf9   : > { %4336 = vpow2.f32 %v2265_v4  ;;  %v2271_v2 = vmul.f32 1.442695, %v2004_v54  ;;  %v1754_v60 = vmul.f32 %v1498_v21, %v1498_v21  ;;  %v1499_v10 = vsub.f32 %v746_v19, %v5708_v43  ;;  %v497_v5 = vpop.f32.mrb[7].mxu0  ;;  %4052 = vmatmul.mubr.msk.f32.gmra.mrb[112].mxu0 %vm314_vm0, %v5216_v11  ;;  %v752_v29 = vpop.f32.mrb[6].mxu1 }
  0xfa   : > { %4338 = vpow2.f32 %v2267_v20  ;;  %v2009_v51 = vsub.f32 0.0, %v1753_v63  ;;  %v1500_v22 = vsub.f32 %v748_v62, %v5726_v45  ;;  %v1505_v52 = vsub.f32 %v495_v16, %v5686_v38  ;;  %4084 = vmatmul.mubr.msk.f32.gmra.mrb[112].mxu1 %vm314_vm0, %v5216_v11  ;;  %v754_v9 = vpop.f32.mrb[7].mxu1  ;;  %1139 = vmatprep.mubr.f32.mxu0 %v7805_v7 }
  0xfb   : > { %4340 = vpow2.f32 %v2269_v25  ;;  %v2010_v3 = vsub.f32 0.0, %v1754_v60  ;;  %v1755_v19 = vmul.f32 %v1499_v10, %v1499_v10  ;;  %v1506_v27 = vsub.f32 %v497_v5, %v5706_v42  ;;  %1396 = vmatprep.mubr.f32.mxu1 %v7805_v7 }
  0xfc   : > { %4342 = vpow2.f32 %v2271_v2  ;;  %v2281_v26 = vmul.f32 1.442695, %v2009_v51  ;;  %v1756_v8 = vmul.f32 %v1500_v22, %v1500_v22  ;;  %v1761_v4 = vmul.f32 %v1505_v52, %v1505_v52  ;;  %v501_v62 = vpop.f32.mrb[8].mxu0 }
  0xfd   : > { %v2283_v54 = vmul.f32 1.442695, %v2010_v3  ;;  %v2011_v21 = vsub.f32 0.0, %v1755_v19  ;;  %v1762_v20 = vmul.f32 %v1506_v27, %v1506_v27  ;;  %v1507_v11 = vsub.f32 %v752_v29, %v5708_v43  ;;  %v503_v63 = vpop.f32.mrb[9].mxu0  ;;  %4053 = vmatmul.mubr.msk.f32.gmra.mrb[114].mxu0 %vm314_vm0, %v5225_v12  ;;  %v758_v25 = vpop.f32.mrb[8].mxu1 }
  0xfe   : > { %4344 = vpow2.f32 %v2281_v26  ;;  %v2012_v16 = vsub.f32 0.0, %v1756_v8  ;;  %v2017_v60 = vsub.f32 0.0, %v1761_v4  ;;  %v1508_v10 = vsub.f32 %v754_v9, %v5726_v45  ;;  %4085 = vmatmul.mubr.msk.f32.gmra.mrb[114].mxu1 %vm314_vm0, %v5225_v12  ;;  %v760_v2 = vpop.f32.mrb[9].mxu1  ;;  %1145 = vmatprep.mubr.f32.mxu0 %v7805_v7 }
  0xff   : > { %v5856_v5 = vpop.eup %4328  ;;  %4346 = vpow2.f32 %v2283_v54  ;;  %v2285_v29 = vmul.f32 1.442695, %v2011_v21  ;;  %v2018_v51 = vsub.f32 0.0, %v1762_v20  ;;  %v1763_v22 = vmul.f32 %v1507_v11, %v1507_v11  ;;  %1402 = vmatprep.mubr.f32.mxu1 %v7805_v7 }
 0x100   : > { %v5859_v52 = vpop.eup %4330  ;;  %v2287_v3 = vmul.f32 1.442695, %v2012_v16  ;;  %v2297_v19 = vmul.f32 1.442695, %v2017_v60  ;;  %v1764_v27 = vmul.f32 %v1508_v10, %v1508_v10  ;;  %v1513_v9 = vsub.f32 %v501_v62, %v5686_v38  ;;  %v507_v26 = vpop.f32.mrb[10].mxu0 }
 0x101   : > { %v5862_v12 = vpop.eup %4332  ;;  %4348 = vpow2.f32 %v2285_v29  ;;  %v2299_v8 = vmul.f32 1.442695, %v2018_v51  ;;  %v2019_v4 = vsub.f32 0.0, %v1763_v22  ;;  %v1514_v54 = vsub.f32 %v503_v63, %v5706_v42  ;;  %v509_v21 = vpop.f32.mrb[11].mxu0  ;;  %4054 = vmatmul.mubr.msk.f32.gmra.mrb[116].mxu0 %vm314_vm0, %v5234_v13 }
 0x102   : > { %v764_v20 = vpop.f32.mrb[10].mxu1  ;;  %v5867_v11 = vpop.eup %4334  ;;  %4350 = vpow2.f32 %v2287_v3  ;;  %v2020_v16 = vsub.f32 0.0, %v1764_v27  ;;  %v1769_v60 = vmul.f32 %v1513_v9, %v1513_v9  ;;  %v1515_v62 = vsub.f32 %v758_v25, %v5708_v43  ;;  %4086 = vmatmul.mubr.msk.f32.gmra.mrb[116].mxu1 %vm314_vm0, %v5234_v13  ;;  %1151 = vmatprep.mubr.f32.mxu0 %v7805_v7 }
 0x103   : > { %v766_v10 = vpop.f32.mrb[11].mxu1  ;;  %v5873_v29 = vpop.eup %4336  ;;  %4352 = vpow2.f32 %v2297_v19  ;;  %v2301_v63 = vmul.f32 1.442695, %v2019_v4  ;;  %v1770_v51 = vmul.f32 %v1514_v54, %v1514_v54  ;;  %v1516_v22 = vsub.f32 %v760_v2, %v5726_v45  ;;  %1408 = vmatprep.mubr.f32.mxu1 %v7805_v7 }
 0x104   : > { %v5877_v3 = vpop.eup %4338  ;;  %4354 = vpow2.f32 %v2299_v8  ;;  %v2303_v27 = vmul.f32 1.442695, %v2020_v16  ;;  %v2025_v25 = vsub.f32 0.0, %v1769_v60  ;;  %v1771_v9 = vmul.f32 %v1515_v62, %v1515_v62  ;;  %v513_v53 = vpop.f32.mrb[12].mxu0 }
 0x105   : > { %v5879_v13 = vpop.eup %4340  ;;  %4356 = vpow2.f32 %v2301_v63  ;;  %v2026_v50 = vsub.f32 0.0, %v1770_v51  ;;  %v1772_v46 = vmul.f32 %v1516_v22, %v1516_v22  ;;  %v1521_v19 = vsub.f32 %v507_v26, %v5686_v38  ;;  %v515_v4 = vpop.f32.mrb[13].mxu0  ;;  %4055 = vmatmul.mubr.msk.f32.gmra.mrb[118].mxu0 %vm314_vm0, %v5243_v14 }
 0x106   : > { %v770_v2 = vpop.f32.mrb[12].mxu1  ;;  %v5884_v54 = vpop.eup %4342  ;;  %4358 = vpow2.f32 %v2303_v27  ;;  %v2313_v8 = vmul.f32 1.442695, %v2025_v25  ;;  %v2027_v16 = vsub.f32 0.0, %v1771_v9  ;;  %v1522_v60 = vsub.f32 %v509_v21, %v5706_v42  ;;  %4087 = vmatmul.mubr.msk.f32.gmra.mrb[118].mxu1 %vm314_vm0, %v5243_v14  ;;  %1157 = vmatprep.mubr.f32.mxu0 %v7805_v7 }
 0x107   : > { %v772_v62 = vpop.f32.mrb[13].mxu1  ;;  %v2315_v63 = vmul.f32 1.442695, %v2026_v50  ;;  %v2028_v26 = vsub.f32 0.0, %v1772_v46  ;;  %v1777_v51 = vmul.f32 %v1521_v19, %v1521_v19  ;;  %v1523_v22 = vsub.f32 %v764_v20, %v5708_v43  ;;  %1414 = vmatprep.mubr.f32.mxu1 %v7805_v7 }
 0x108   : > { %v5892_v1 = vpop.eup %4344  ;;  %4360 = vpow2.f32 %v2313_v8  ;;  %v2317_v27 = vmul.f32 1.442695, %v2027_v16  ;;  %v1778_v25 = vmul.f32 %v1522_v60, %v1522_v60  ;;  %v1524_v21 = vsub.f32 %v766_v10, %v5726_v45  ;;  %v519_v9 = vpop.f32.mrb[14].mxu0 }
 0x109   : > { %v5895_v28 = vpop.eup %4346  ;;  %4362 = vpow2.f32 %v2315_v63  ;;  %v2319_v14 = vmul.f32 1.442695, %v2028_v26  ;;  %v2033_v0 = vsub.f32 0.0, %v1777_v51  ;;  %v1779_v50 = vmul.f32 %v1523_v22, %v1523_v22  ;;  %v521_v46 = vpop.f32.mrb[15].mxu0  ;;  %4056 = vmatmul.mubr.msk.f32.gmra.mrb[120].mxu0 %vm314_vm0, %v5252_v15 }
 0x10a   : > { %v776_v20 = vpop.f32.mrb[14].mxu1  ;;  %4364 = vpow2.f32 %v2317_v27  ;;  %v2034_v19 = vsub.f32 0.0, %v1778_v25  ;;  %v1780_v7 = vmul.f32 %v1524_v21, %v1524_v21  ;;  %v1529_v8 = vsub.f32 %v513_v53, %v5686_v38  ;;  %4088 = vmatmul.mubr.msk.f32.gmra.mrb[120].mxu1 %vm314_vm0, %v5252_v15 }
 0x10b   : > { %v778_v10 = vpop.f32.mrb[15].mxu1  ;;  %v7830_v16 = vmov 0.0   ;;  %v5903_v60 = vpop.eup %4348  ;;  %4366 = vpow2.f32 %v2319_v14  ;;  %v2329_v63 = vmul.f32 1.442695, %v2033_v0  ;;  %v2035_v26 = vsub.f32 0.0, %v1779_v50 }
 0x10c   : > { %1163 = vmatprep.mubr.f32.mxu0 %v7830_v16  ;;  %v1530_v51 = vsub.f32 %v515_v4, %v5706_v42  ;;  %1420 = vmatprep.mubr.f32.mxu1 %v7830_v16  ;;  %v5907_v22 = vpop.eup %4350  ;;  %v2331_v27 = vmul.f32 1.442695, %v2034_v19  ;;  %v2036_v53 = vsub.f32 0.0, %v1780_v7  ;;  %v1785_v25 = vmul.f32 %v1529_v8, %v1529_v8  ;;  %v525_v21 = vpop.f32.mrb[16].mxu0 }
 0x10d   : > { %v1531_v15 = vsub.f32 %v770_v2, %v5708_v43  ;;  %v5910_v24 = vpop.eup %4352  ;;  %4368 = vpow2.f32 %v2329_v63  ;;  %v2333_v55 = vmul.f32 1.442695, %v2035_v26  ;;  %v1532_v0 = vsub.f32 %v772_v62, %v5726_v45  ;;  %v527_v50 = vpop.f32.mrb[17].mxu0  ;;  %4057 = vmatmul.mubr.msk.f32.gmra.mrb[122].mxu0 %vm314_vm0, %v4840_v18 }
 0x10e   : > { %v1786_v14 = vmul.f32 %v1530_v51, %v1530_v51  ;;  %v782_v4 = vpop.f32.mrb[16].mxu1  ;;  %v5915_v23 = vpop.eup %4354  ;;  %4370 = vpow2.f32 %v2331_v27  ;;  %v2335_v7 = vmul.f32 1.442695, %v2036_v53  ;;  %v2041_v19 = vsub.f32 0.0, %v1785_v25  ;;  %4089 = vmatmul.mubr.msk.f32.gmra.mrb[122].mxu1 %vm314_vm0, %v4840_v18  ;;  %1169 = vmatprep.mubr.f32.mxu0 %v7830_v16 }
 0x10f   : > { %v1787_v8 = vmul.f32 %v1531_v15, %v1531_v15  ;;  %v784_v2 = vpop.f32.mrb[17].mxu1  ;;  %v5919_v63 = vpop.eup %4356  ;;  %4372 = vpow2.f32 %v2333_v55  ;;  %v1788_v26 = vmul.f32 %v1532_v0, %v1532_v0  ;;  %v1537_v51 = vsub.f32 %v519_v9, %v5686_v38  ;;  %1426 = vmatprep.mubr.f32.mxu1 %v7830_v16 }
 0x110   : > { %v2042_v62 = vsub.f32 0.0, %v1786_v14  ;;  %v5923_v17 = vpop.eup %4358  ;;  %4374 = vpow2.f32 %v2335_v7  ;;  %v2345_v27 = vmul.f32 1.442695, %v2041_v19  ;;  %v1538_v18 = vsub.f32 %v521_v46, %v5706_v42  ;;  %v531_v25 = vpop.f32.mrb[18].mxu0  ;;  %v4841_v14 = vld [vmem:[%s4954_s12 + $0xf0] sm:$0xff] }
 0x111   : > { %v2043_v53 = vsub.f32 0.0, %v1787_v8  ;;  %v2044_v61 = vsub.f32 0.0, %v1788_v26  ;;  %v1793_v48 = vmul.f32 %v1537_v51, %v1537_v51  ;;  %v1539_v55 = vsub.f32 %v776_v20, %v5708_v43  ;;  %v5927_v49 = vpop.f32.mrb[19].mxu0  ;;  %4058 = vmatmul.mubr.msk.f32.gmra.mrb[124].mxu0 %vm314_vm0, %v4841_v14  ;;  %v5931_v9 = vpop.f32.mrb[18].mxu1 }
 0x112   : > { %v2347_v15 = vmul.f32 1.442695, %v2042_v62  ;;  %v5933_v0 = vpop.eup %4360  ;;  %4376 = vpow2.f32 %v2345_v27  ;;  %v1794_v19 = vmul.f32 %v1538_v18, %v1538_v18  ;;  %v1540_v46 = vsub.f32 %v778_v10, %v5726_v45  ;;  %4090 = vmatmul.mubr.msk.f32.gmra.mrb[124].mxu1 %vm314_vm0, %v4841_v14  ;;  %v5937_v8 = vpop.f32.mrb[19].mxu1  ;;  %1175 = vmatprep.mubr.f32.mxu0 %v7830_v16 }
 0x113   : > { %7831 = vst [vmem:[#allocation15_spill] sm:$0xff] %v5933_v0  ;;  %v2349_v7 = vmul.f32 1.442695, %v2043_v53  ;;  %v5940_v20 = vpop.eup %4362  ;;  %v2351_v62 = vmul.f32 1.442695, %v2044_v61  ;;  %v2049_v26 = vsub.f32 0.0, %v1793_v48  ;;  %v1795_v51 = vmul.f32 %v1539_v55, %v1539_v55  ;;  %1432 = vmatprep.mubr.f32.mxu1 %v7830_v16 }
 0x114   : > { %4378 = vpow2.f32 %v2347_v15  ;;  %v5943_v27 = vpop.eup %4364  ;;  %v2050_v53 = vsub.f32 0.0, %v1794_v19  ;;  %v1796_v10 = vmul.f32 %v1540_v46, %v1540_v46  ;;  %v1545_v18 = vsub.f32 %v525_v21, %v5686_v38  ;;  %v5946_v14 = vpop.f32.mrb[20].mxu0  ;;  %v4842_v55 = vld [vmem:[%s4954_s12 + $0xf8] sm:$0xff] }
 0x115   : > { %7832 = vst [vmem:[#allocation16_spill] sm:$0xff] %v5943_v27  ;;  %4380 = vpow2.f32 %v2349_v7  ;;  %v5948_v6 = vpop.eup %4366  ;;  %v2361_v47 = vmul.f32 1.442695, %v2049_v26  ;;  %v2051_v15 = vsub.f32 0.0, %v1795_v51  ;;  %v1546_v61 = vsub.f32 %v527_v50, %v5706_v42  ;;  %v5951_v48 = vpop.f32.mrb[21].mxu0  ;;  %4059 = vmatmul.mubr.msk.f32.gmra.mrb[126].mxu0 %vm314_vm0, %v4842_v55 }
 0x116   : > { %4382 = vpow2.f32 %v2351_v62  ;;  %v5955_v16 = vpop.f32.mrb[20].mxu1  ;;  %v2363_v7 = vmul.f32 1.442695, %v2050_v53  ;;  %v2052_v19 = vsub.f32 0.0, %v1796_v10  ;;  %v1801_v46 = vmul.f32 %v1545_v18, %v1545_v18  ;;  %4091 = vmatmul.mubr.msk.f32.gmra.mrb[126].mxu1 %vm314_vm0, %v4842_v55  ;;  %2985 = vmatprep.mubr.f32.mxu0 %v5859_v52 }
 0x117   : > { %v1547_v21 = vsub.f32 %v782_v4, %v5708_v43  ;;  %v5960_v62 = vpop.f32.mrb[21].mxu1  ;;  %v5962_v26 = vpop.eup %4368  ;;  %4384 = vpow2.f32 %v2361_v47  ;;  %v2365_v50 = vmul.f32 1.442695, %v2051_v15  ;;  %v1802_v51 = vmul.f32 %v1546_v61, %v1546_v61  ;;  %3210 = vmatprep.mubr.f32.mxu1 %v5867_v11 }
 0x118   : > { %7833 = vst [vmem:[#allocation17_spill] sm:$0xff] %v5962_v26  ;;  %v1548_v27 = vsub.f32 %v784_v2, %v5726_v45  ;;  %v5966_v53 = vpop.eup %4370  ;;  %4386 = vpow2.f32 %v2363_v7  ;;  %v2367_v10 = vmul.f32 1.442695, %v2052_v19  ;;  %v2057_v4 = vsub.f32 0.0, %v1801_v46  ;;  %v5968_v55 = vpop.f32.mrb[22].mxu0 }
 0x119   : > { %v1803_v18 = vmul.f32 %v1547_v21, %v1547_v21  ;;  %v5970_v52 = vpop.eup %4372  ;;  %4388 = vpow2.f32 %v2365_v50  ;;  %v2058_v0 = vsub.f32 0.0, %v1802_v51  ;;  %v1553_v47 = vsub.f32 %v531_v25, %v5686_v38  ;;  %v5973_v15 = vpop.f32.mrb[23].mxu0  ;;  %2986 = vmatmul.mubr.f32.vlgmr.msra.gmra.mrb[128].mxu0 %v5856_v5 }
 0x11a   : > { %v1804_v26 = vmul.f32 %v1548_v27, %v1548_v27  ;;  %v5976_v11 = vpop.f32.mrb[22].mxu1  ;;  %v5978_v2 = vpop.eup %4374  ;;  %4390 = vpow2.f32 %v2367_v10  ;;  %v2377_v61 = vmul.f32 1.442695, %v2057_v4  ;;  %v1554_v19 = vsub.f32 %v5927_v49, %v5706_v42  ;;  %3211 = vmatmul.mubr.f32.vlgmr.msra.gmra.mrb[128].mxu1 %v5862_v12  ;;  %2990 = vmatprep.mubr.f32.mxu0 %v5877_v3 }
 0x11b   : > { %v2059_v7 = vsub.f32 0.0, %v1803_v18  ;;  %v5984_v27 = vpop.f32.mrb[23].mxu1  ;;  %v2379_v25 = vmul.f32 1.442695, %v2058_v0  ;;  %v1809_v21 = vmul.f32 %v1553_v47, %v1553_v47  ;;  %v1555_v5 = vsub.f32 %v5931_v9, %v5708_v43  ;;  %3215 = vmatprep.mubr.f32.mxu1 %v5884_v54 }
 0x11c   : > { %v2060_v46 = vsub.f32 0.0, %v1804_v26  ;;  %v7834_v50 = vpack.c.bf16 %v5635_v30, %v5630_v56  ;;  %v5992_v51 = vpop.eup %4376  ;;  %4392 = vpow2.f32 %v2377_v61  ;;  %v1810_v12 = vmul.f32 %v1554_v19, %v1554_v19  ;;  %v5996_v0 = vpop.f32.mrb[24].mxu0 }
 0x11d   : > { %v2381_v49 = vmul.f32 1.442695, %v2059_v7  ;;  %v1556_v3 = vsub.f32 %v5937_v8, %v5726_v45  ;;  %v7835_v26 = vpack.c.bf16 %v5647_v32, %v5642_v31  ;;  %v7836_v9 = vmov 0.0|0.0   ;;  %v6004_v4 = vpop.f32.mrb[25].mxu0  ;;  %2991 = vmatmul.mubr.f32.gmra.mrb[130].mxu0 %v5873_v29  ;;  %v6007_v18 = vpop.f32.mrb[24].mxu1 }
 0x11e   : > { %4224 = vmatpush1.bf16.msra.mxu0 %v7834_v50  ;;  %v6002_v54 = vpop.eup %4378  ;;  %4394 = vpow2.f32 %v2379_v25  ;;  %v2383_v56 = vmul.f32 1.442695, %v2060_v46  ;;  %v2065_v30 = vsub.f32 0.0, %v1809_v21  ;;  %v1811_v10 = vmul.f32 %v1555_v5, %v1555_v5  ;;  %3216 = vmatmul.mubr.f32.gmra.mrb[130].mxu1 %v5879_v13  ;;  %v6016_v61 = vpop.f32.mrb[25].mxu1 }
 0x11f   : > { %4272 = vmatpush1.bf16.msra.mxu1 %v7835_v26  ;;  %4225 = vmatprep.subr.bf16.mxu0 %v7836_v9  ;;  %v6010_v8 = vpop.eup %4380  ;;  %4396 = vpow2.f32 %v2381_v49  ;;  %v2066_v31 = vsub.f32 0.0, %v1810_v12  ;;  %v1812_v32 = vmul.f32 %v1556_v3, %v1556_v3  ;;  %v1561_v47 = vsub.f32 %v5946_v14, %v5686_v38 }
 0x120   : > { %4273 = vmatprep.subr.bf16.mxu1 %v7836_v9  ;;  %2995 = vmatprep.mubr.f32.mxu0 %v5895_v28  ;;  %v6018_v7 = vpop.eup %4382  ;;  %4398 = vpow2.f32 %v2383_v56  ;;  %v2393_v29 = vmul.f32 1.442695, %v2065_v30  ;;  %v2067_v19 = vsub.f32 0.0, %v1811_v10  ;;  %v1562_v25 = vsub.f32 %v5951_v48, %v5706_v42  ;;  %v6028_v5 = vpop.f32.mrb[26].mxu0 }
 0x121   : > { %3220 = vmatprep.mubr.f32.mxu1 %v5907_v22  ;;  %v7837_v46 = vpack.c.bf16 %v5657_v34, %v5652_v33  ;;  %v2395_v14 = vmul.f32 1.442695, %v2066_v31  ;;  %v2068_v13 = vsub.f32 0.0, %v1812_v32  ;;  %v1817_v21 = vmul.f32 %v1561_v47, %v1561_v47  ;;  %v6034_v48 = vpop.eup %4384  ;;  %v6038_v49 = vpop.f32.mrb[27].mxu0  ;;  %2996 = vmatmul.mubr.f32.gmra.mrb[132].mxu0 %v5892_v1 }
 0x122   : > { %v1563_v28 = vsub.f32 %v5955_v16, %v5708_v43  ;;  %v7838_v50 = vpack.c.bf16 %v5667_v35, %v5662_v57  ;;  %4400 = vpow2.f32 %v2393_v29  ;;  %v2397_v22 = vmul.f32 1.442695, %v2067_v19  ;;  %v6041_v16 = vpop.f32.mrb[26].mxu1  ;;  %v6044_v57 = vpop.eup %4386  ;;  %3221 = vmatmul.mubr.f32.gmra.mrb[132].mxu1 %v5903_v60  ;;  %3000 = vmatprep.mubr.f32.mxu0 %v5915_v23 }
 0x123   : > { %4227 = vmatpush1.bf16.msra.mxu0 %v7837_v46  ;;  %v1818_v33 = vmul.f32 %v1562_v25, %v1562_v25  ;;  %v1564_v34 = vsub.f32 %v5960_v62, %v5726_v45  ;;  %4402 = vpow2.f32 %v2395_v14  ;;  %v2399_v35 = vmul.f32 1.442695, %v2068_v13  ;;  %v6048_v26 = vpop.f32.mrb[27].mxu1  ;;  %v6050_v62 = vpop.eup %4388  ;;  %3225 = vmatprep.mubr.f32.mxu1 %v5923_v17 }
 0x124   : > { %4275 = vmatpush1.bf16.msra.mxu1 %v7838_v50  ;;  %4228 = vmatprep.subr.bf16.mxu0 %v7836_v9  ;;  %v2073_v12 = vsub.f32 0.0, %v1817_v21  ;;  %v1819_v3 = vmul.f32 %v1563_v28, %v1563_v28  ;;  %4404 = vpow2.f32 %v2397_v22  ;;  %v1569_v30 = vsub.f32 %v5968_v55, %v5686_v38  ;;  %v6058_v31 = vpop.eup %4390  ;;  %v6062_v47 = vpop.f32.mrb[28].mxu0 }
 0x125   : > { %4276 = vmatprep.subr.bf16.mxu1 %v7836_v9  ;;  %v2074_v1 = vsub.f32 0.0, %v1818_v33  ;;  %v1820_v56 = vmul.f32 %v1564_v34, %v1564_v34  ;;  %v7839_v10 = vpack.c.bf16 %v5677_v37, %v5672_v36  ;;  %4406 = vpow2.f32 %v2399_v35  ;;  %v6070_v19 = vpop.f32.mrb[29].mxu0  ;;  %3001 = vmatmul.mubr.f32.gmra.mrb[134].mxu0 %v5910_v24  ;;  %v6073_v25 = vpop.f32.mrb[28].mxu1 }
 0x126   : > { %v2409_v23 = vmul.f32 1.442695, %v2073_v12  ;;  %v2075_v60 = vsub.f32 0.0, %v1819_v3  ;;  %v1570_v32 = vsub.f32 %v5973_v15, %v5706_v42  ;;  %v7840_v29 = vpack.c.bf16 %v5691_v58, %v5682_v39  ;;  %v6076_v15 = vpop.eup %4392  ;;  %3226 = vmatmul.mubr.f32.gmra.mrb[134].mxu1 %v5919_v63  ;;  %3005 = vmatprep.mubr.f32.mxu0 %v5940_v20  ;;  %v7843_v12 = vld [vmem:[#allocation15_spill] sm:$0xff] }
 0x127   : > { %4230 = vmatpush1.bf16.msra.mxu0 %v7839_v10  ;;  %v2411_v17 = vmul.f32 1.442695, %v2074_v1  ;;  %v2076_v55 = vsub.f32 0.0, %v1820_v56  ;;  %v1825_v36 = vmul.f32 %v1569_v30, %v1569_v30  ;;  %v1571_v37 = vsub.f32 %v5976_v11, %v5708_v43  ;;  %v6082_v11 = vpop.f32.mrb[29].mxu1  ;;  %3230 = vmatprep.mubr.f32.mxu1 %v5948_v6  ;;  %v7844_v56 = vld [vmem:[#allocation16_spill] sm:$0xff] }
 0x128   : > { %4278 = vmatpush1.bf16.msra.mxu1 %v7840_v29  ;;  %4231 = vmatprep.subr.bf16.mxu0 %v7836_v9  ;;  %4408 = vpow2.f32 %v2409_v23  ;;  %v2413_v39 = vmul.f32 1.442695, %v2075_v60  ;;  %v1826_v58 = vmul.f32 %v1570_v32, %v1570_v32  ;;  %v1572_v46 = vsub.f32 %v5984_v27, %v5726_v45  ;;  %v6084_v14 = vpop.eup %4394  ;;  %v6094_v22 = vpop.f32.mrb[30].mxu0  ;;  %v7845_v32 = vld [vmem:[#allocation4_spill] sm:$0xff]  ;;  %v7846_v29 = vld [vmem:[#allocation3_spill] sm:$0xff] }
 0x129   : > { %4279 = vmatprep.subr.bf16.mxu1 %v7836_v9  ;;  %4410 = vpow2.f32 %v2411_v17  ;;  %v2415_v24 = vmul.f32 1.442695, %v2076_v55  ;;  %v2081_v13 = vsub.f32 0.0, %v1825_v36  ;;  %v1827_v21 = vmul.f32 %v1571_v37, %v1571_v37  ;;  %v6090_v50 = vpop.eup %4396  ;;  %v6104_v35 = vpop.f32.mrb[31].mxu0  ;;  %3006 = vmatmul.mubr.f32.gmra.mrb[136].mxu0 %v7843_v12 }
 0x12a   : > { %v7841_v28 = vpack.c.bf16 %v5701_v41, %v5696_v40  ;;  %4412 = vpow2.f32 %v2413_v39  ;;  %v2082_v63 = vsub.f32 0.0, %v1826_v58  ;;  %v1828_v27 = vmul.f32 %v1572_v46, %v1572_v46  ;;  %v6100_v6 = vpop.eup %4398  ;;  %3231 = vmatmul.mubr.f32.gmra.mrb[136].mxu1 %v7844_v56  ;;  %3010 = vmatprep.mubr.f32.mxu0 %v5966_v53  ;;  %v7848_v39 = vld [vmem:[#allocation6_spill] sm:$0xff]  ;;  %v7849_v58 = vld [vmem:[#allocation5_spill] sm:$0xff] }
 0x12b   : > { %v1577_v20 = vsub.f32 %v5996_v0, %v5686_v38  ;;  %v7842_v33 = vpack.c.bf16 %v5718_v59, %v5713_v44  ;;  %4414 = vpow2.f32 %v2415_v24  ;;  %v2425_v40 = vmul.f32 1.442695, %v2081_v13  ;;  %v6107_v0 = vpop.f32.mrb[30].mxu1  ;;  %3235 = vmatprep.mubr.f32.mxu1 %v5978_v2 }
 0x12c   : > { %4233 = vmatpush1.bf16.msra.mxu0 %v7841_v28  ;;  %v2083_v41 = vsub.f32 0.0, %v1827_v21  ;;  %v1578_v34 = vsub.f32 %v6004_v4, %v5706_v42  ;;  %v2427_v44 = vmul.f32 1.442695, %v2082_v63  ;;  %v2084_v59 = vsub.f32 0.0, %v1828_v27  ;;  %v6114_v30 = vpop.f32.mrb[31].mxu1  ;;  %v6116_v4 = vpop.eup %4400  ;;  %v7851_v28 = vld [vmem:[#allocation17_spill] sm:$0xff] }
 0x12d   : > { %4281 = vmatpush1.bf16.msra.mxu1 %v7842_v33  ;;  %4234 = vmatprep.subr.bf16.mxu0 %v7836_v9  ;;  %v1833_v3 = vmul.f32 %v1577_v20, %v1577_v20  ;;  %v1579_v1 = vsub.f32 %v6007_v18, %v5708_v43  ;;  %4416 = vpow2.f32 %v2425_v40  ;;  %v1580_v60 = vsub.f32 %v6016_v61, %v5726_v45  ;;  %v6124_v18 = vpop.eup %4402  ;;  %v6126_v37 = vpop.f32.mrb[32].mxu0 }
 0x12e   : > { %4282 = vmatprep.subr.bf16.mxu1 %v7836_v9  ;;  %v2429_v10 = vmul.f32 1.442695, %v2083_v41  ;;  %v1834_v23 = vmul.f32 %v1578_v34, %v1578_v34  ;;  %v7847_v17 = vpack.c.bf16 %v7845_v32, %v7846_v29  ;;  %4418 = vpow2.f32 %v2427_v44  ;;  %v6132_v61 = vpop.eup %4404  ;;  %v6136_v21 = vpop.f32.mrb[33].mxu0  ;;  %3011 = vmatmul.mubr.f32.gmra.mrb[138].mxu0 %v7851_v28  ;;  %v7858_v28 = vld [vmem:[#allocation12_spill] sm:$0xff] }
 0x12f   : > { %v2431_v53 = vmul.f32 1.442695, %v2084_v59  ;;  %v2089_v55 = vsub.f32 0.0, %v1833_v3  ;;  %v1835_v36 = vmul.f32 %v1579_v1, %v1579_v1  ;;  %v7850_v46 = vpack.c.bf16 %v7848_v39, %v7849_v58  ;;  %v6139_v63 = vpop.f32.mrb[32].mxu1  ;;  %v6142_v27 = vpop.eup %4406  ;;  %3236 = vmatmul.mubr.f32.gmra.mrb[138].mxu1 %v5970_v52  ;;  %3015 = vmatprep.mubr.f32.mxu0 %v6002_v54  ;;  %v7852_v59 = vld [vmem:[#allocation8_spill] sm:$0xff]  ;;  %v7853_v3 = vld [vmem:[#allocation7_spill] sm:$0xff] }
 0x130   : > { %4236 = vmatpush1.bf16.msra.mxu0 %v7847_v17  ;;  %4420 = vpow2.f32 %v2429_v10  ;;  %v2090_v2 = vsub.f32 0.0, %v1834_v23  ;;  %v1836_v24 = vmul.f32 %v1580_v60, %v1580_v60  ;;  %v1585_v13 = vsub.f32 %v6028_v5, %v5686_v38  ;;  %v6148_v5 = vpop.f32.mrb[33].mxu1  ;;  %3240 = vmatprep.mubr.f32.mxu1 %v6018_v7  ;;  %v6160_v10 = vpop.f32.mrb[34].mxu0  ;;  %v7855_v23 = vld [vmem:[#allocation10_spill] sm:$0xff]  ;;  %v7856_v60 = vld [vmem:[#allocation9_spill] sm:$0xff] }
 0x131   : > { %4284 = vmatpush1.bf16.msra.mxu1 %v7850_v46  ;;  %4237 = vmatprep.subr.bf16.mxu0 %v7836_v9  ;;  %4422 = vpow2.f32 %v2431_v53  ;;  %v2441_v20 = vmul.f32 1.442695, %v2089_v55  ;;  %v2091_v33 = vsub.f32 0.0, %v1835_v36  ;;  %v1586_v40 = vsub.f32 %v6038_v49, %v5706_v42  ;;  %v6168_v53 = vpop.f32.mrb[35].mxu0  ;;  %v6171_v55 = vpop.f32.mrb[34].mxu1 }
 0x132   : > { %4285 = vmatprep.subr.bf16.mxu1 %v7836_v9  ;;  %v2443_v41 = vmul.f32 1.442695, %v2090_v2  ;;  %v2092_v34 = vsub.f32 0.0, %v1836_v24  ;;  %v1841_v12 = vmul.f32 %v1585_v13, %v1585_v13  ;;  %v1587_v44 = vsub.f32 %v6041_v16, %v5708_v43  ;;  %v6156_v56 = vpop.eup %4408  ;;  %3016 = vmatmul.mubr.f32.gmra.mrb[140].mxu0 %v5992_v51  ;;  %v6180_v46 = vpop.f32.mrb[35].mxu1 }
 0x133   : > { %v7854_v1 = vpack.c.bf16 %v7852_v59, %v7853_v3  ;;  %4424 = vpow2.f32 %v2441_v20  ;;  %v2445_v52 = vmul.f32 1.442695, %v2091_v33  ;;  %v1842_v49 = vmul.f32 %v1586_v40, %v1586_v40  ;;  %v6166_v7 = vpop.eup %4410  ;;  %3241 = vmatmul.mubr.f32.gmra.mrb[140].mxu1 %v6010_v8  ;;  %3020 = vmatprep.mubr.f32.mxu0 %v6044_v57  ;;  %v7859_v20 = vld [vmem:[#allocation11_spill] sm:$0xff] }
 0x134   : > { %v1588_v54 = vsub.f32 %v6048_v26, %v5726_v45  ;;  %v7857_v32 = vpack.c.bf16 %v7855_v23, %v7856_v60  ;;  %4426 = vpow2.f32 %v2443_v41  ;;  %v2447_v16 = vmul.f32 1.442695, %v2092_v34  ;;  %v6174_v26 = vpop.eup %4412  ;;  %3245 = vmatprep.mubr.f32.mxu1 %v6058_v31  ;;  %v6192_v41 = vpop.f32.mrb[36].mxu0  ;;  %v7861_v34 = vld [vmem:[#allocation14_spill] sm:$0xff] }
 0x135   : > { %4239 = vmatpush1.bf16.msra.mxu0 %v7854_v1  ;;  %v2097_v29 = vsub.f32 0.0, %v1841_v12  ;;  %v1843_v17 = vmul.f32 %v1587_v44, %v1587_v44  ;;  %4428 = vpow2.f32 %v2445_v52  ;;  %v2098_v36 = vsub.f32 0.0, %v1842_v49  ;;  %v6182_v2 = vpop.eup %4414  ;;  %v7862_v12 = vld [vmem:[#allocation13_spill] sm:$0xff]  ;;  %v6202_v1 = vpop.f32.mrb[37].mxu0 }
 0x136   : > { %4287 = vmatpush1.bf16.msra.mxu1 %v7857_v32  ;;  %4240 = vmatprep.subr.bf16.mxu0 %v7836_v9  ;;  %v1844_v39 = vmul.f32 %v1588_v54, %v1588_v54  ;;  %v1593_v58 = vsub.f32 %v6062_v47, %v5686_v38  ;;  %4430 = vpow2.f32 %v2447_v16  ;;  %v1594_v13 = vsub.f32 %v6070_v19, %v5706_v42 }
 0x137   : > { %4288 = vmatprep.subr.bf16.mxu1 %v7836_v9  ;;  %v2457_v51 = vmul.f32 1.442695, %v2097_v29  ;;  %v2099_v24 = vsub.f32 0.0, %v1843_v17  ;;  %v7860_v33 = vpack.c.bf16 %v7858_v28, %v7859_v20  ;;  %v2459_v47 = vmul.f32 1.442695, %v2098_v36  ;;  %v6198_v19 = vpop.eup %4416  ;;  %3021 = vmatmul.mubr.f32.gmra.mrb[142].mxu0 %v6034_v48 }
 0x138   : > { %v2100_v8 = vsub.f32 0.0, %v1844_v39  ;;  %v1849_v40 = vmul.f32 %v1593_v58, %v1593_v58  ;;  %v1595_v57 = vsub.f32 %v6073_v25, %v5708_v43  ;;  %v7863_v44 = vpack.c.bf16 %v7861_v34, %v7862_v12  ;;  %v6205_v25 = vpop.f32.mrb[36].mxu1  ;;  %v6208_v52 = vpop.eup %4418  ;;  %3246 = vmatmul.mubr.f32.gmra.mrb[142].mxu1 %v6050_v62  ;;  %3025 = vmatprep.mubr.f32.mxu0 %v6084_v14 }
 0x139   : > { %4242 = vmatpush1.bf16.msra.mxu0 %v7860_v33  ;;  %4432 = vpow2.f32 %v2457_v51  ;;  %v2461_v31 = vmul.f32 1.442695, %v2099_v24  ;;  %v1850_v59 = vmul.f32 %v1594_v13, %v1594_v13  ;;  %v1596_v3 = vsub.f32 %v6082_v11, %v5726_v45  ;;  %v6212_v60 = vpop.f32.mrb[37].mxu1  ;;  %3250 = vmatprep.mubr.f32.mxu1 %v6100_v6  ;;  %v6223_v14 = vpop.f32.mrb[38].mxu0 }
 0x13a   : > { %4290 = vmatpush1.bf16.msra.mxu1 %v7863_v44  ;;  %4243 = vmatprep.subr.bf16.mxu0 %v7836_v9  ;;  %4434 = vpow2.f32 %v2459_v47  ;;  %v2463_v49 = vmul.f32 1.442695, %v2100_v8  ;;  %v2105_v54 = vsub.f32 0.0, %v1849_v40  ;;  %v1851_v23 = vmul.f32 %v1595_v57, %v1595_v57  ;;  %v6214_v11 = vpop.eup %4420  ;;  %v6227_v13 = vpop.f32.mrb[39].mxu0 }
 0x13b   : > { %4291 = vmatprep.subr.bf16.mxu1 %v7836_v9  ;;  %4436 = vpow2.f32 %v2461_v31  ;;  %v2106_v48 = vsub.f32 0.0, %v1850_v59  ;;  %v1852_v32 = vmul.f32 %v1596_v3, %v1596_v3  ;;  %v1601_v16 = vsub.f32 %v6094_v22, %v5686_v38  ;;  %v6219_v29 = vpop.eup %4422  ;;  %3026 = vmatmul.mubr.f32.gmra.mrb[144].mxu0 %v6076_v15  ;;  %v6230_v22 = vpop.f32.mrb[38].mxu1 }
 0x13c   : > { %4438 = vpow2.f32 %v2463_v49  ;;  %v2473_v17 = vmul.f32 1.442695, %v2105_v54  ;;  %v2107_v36 = vsub.f32 0.0, %v1851_v23  ;;  %v1602_v62 = vsub.f32 %v6104_v35, %v5706_v42  ;;  %3251 = vmatmul.mubr.f32.gmra.mrb[144].mxu1 %v6090_v50  ;;  %3030 = vmatprep.mubr.f32.mxu0 %v6124_v18  ;;  %v6238_v33 = vpop.f32.mrb[39].mxu1 }
 0x13d   : > { %v2475_v39 = vmul.f32 1.442695, %v2106_v48  ;;  %v2108_v58 = vsub.f32 0.0, %v1852_v32  ;;  %v1857_v51 = vmul.f32 %v1601_v16, %v1601_v16  ;;  %v1603_v24 = vsub.f32 %v6107_v0, %v5708_v43  ;;  %v6232_v6 = vpop.eup %4424  ;;  %3255 = vmatprep.mubr.f32.mxu1 %v6142_v27  ;;  %v6256_v27 = vpop.f32.mrb[40].mxu1 }
 0x13e   : > { %4440 = vpow2.f32 %v2473_v17  ;;  %v2477_v28 = vmul.f32 1.442695, %v2107_v36  ;;  %v1858_v20 = vmul.f32 %v1602_v62, %v1602_v62  ;;  %v1604_v35 = vsub.f32 %v6114_v30, %v5726_v45  ;;  %v6240_v0 = vpop.eup %4426  ;;  %v6247_v30 = vpop.f32.mrb[40].mxu0 }
 0x13f   : > { %4442 = vpow2.f32 %v2475_v39  ;;  %v2479_v15 = vmul.f32 1.442695, %v2108_v58  ;;  %v2113_v47 = vsub.f32 0.0, %v1857_v51  ;;  %v1859_v8 = vmul.f32 %v1603_v24, %v1603_v24  ;;  %v6243_v40 = vpop.eup %4428  ;;  %v6253_v59 = vpop.f32.mrb[41].mxu0  ;;  %3031 = vmatmul.mubr.f32.gmra.mrb[146].mxu0 %v6116_v4 }
 0x140   : > { %4444 = vpow2.f32 %v2477_v28  ;;  %v2114_v57 = vsub.f32 0.0, %v1858_v20  ;;  %v1860_v34 = vmul.f32 %v1604_v35, %v1604_v35  ;;  %v1609_v50 = vsub.f32 %v6126_v37, %v5686_v38  ;;  %v6249_v18 = vpop.eup %4430  ;;  %3256 = vmatmul.mubr.f32.gmra.mrb[146].mxu1 %v6132_v61  ;;  %3035 = vmatprep.mubr.f32.mxu0 %v6166_v7  ;;  %v6262_v23 = vpop.f32.mrb[41].mxu1 }
 0x141   : > { %4446 = vpow2.f32 %v2479_v15  ;;  %v2489_v12 = vmul.f32 1.442695, %v2113_v47  ;;  %v2115_v44 = vsub.f32 0.0, %v1859_v8  ;;  %v1610_v31 = vsub.f32 %v6136_v21, %v5706_v42  ;;  %3260 = vmatprep.mubr.f32.mxu1 %v6182_v2  ;;  %v6271_v36 = vpop.f32.mrb[42].mxu0 }
 0x142   : > { %v2491_v3 = vmul.f32 1.442695, %v2114_v57  ;;  %v2116_v49 = vsub.f32 0.0, %v1860_v34  ;;  %v1865_v54 = vmul.f32 %v1609_v50, %v1609_v50  ;;  %v1611_v37 = vsub.f32 %v6139_v63, %v5708_v43  ;;  %v6277_v51 = vpop.f32.mrb[43].mxu0 }
 0x143   : > { %v6264_v48 = vpop.eup %4432  ;;  %4448 = vpow2.f32 %v2489_v12  ;;  %v2493_v21 = vmul.f32 1.442695, %v2115_v44  ;;  %v1866_v32 = vmul.f32 %v1610_v31, %v1610_v31  ;;  %v1612_v4 = vsub.f32 %v6148_v5, %v5726_v45  ;;  %3036 = vmatmul.mubr.f32.gmra.mrb[148].mxu0 %v6156_v56  ;;  %v6280_v5 = vpop.f32.mrb[42].mxu1 }
 0x144   : > { %v6269_v16 = vpop.eup %4434  ;;  %4450 = vpow2.f32 %v2491_v3  ;;  %v2495_v63 = vmul.f32 1.442695, %v2116_v49  ;;  %v2121_v17 = vsub.f32 0.0, %v1865_v54  ;;  %v1867_v61 = vmul.f32 %v1611_v37, %v1611_v37  ;;  %3261 = vmatmul.mubr.f32.gmra.mrb[148].mxu1 %v6174_v26  ;;  %3040 = vmatprep.mubr.f32.mxu0 %v6208_v52  ;;  %v6288_v35 = vpop.f32.mrb[43].mxu1 }
 0x145   : > { %v6273_v7 = vpop.eup %4436  ;;  %4452 = vpow2.f32 %v2493_v21  ;;  %v2122_v62 = vsub.f32 0.0, %v1866_v32  ;;  %v1868_v39 = vmul.f32 %v1612_v4, %v1612_v4  ;;  %v1617_v58 = vsub.f32 %v6160_v10, %v5686_v38  ;;  %3265 = vmatprep.mubr.f32.mxu1 %v6219_v29  ;;  %v6297_v26 = vpop.f32.mrb[44].mxu0 }
 0x146   : > { %v6282_v2 = vpop.eup %4438  ;;  %4454 = vpow2.f32 %v2495_v63  ;;  %v2505_v24 = vmul.f32 1.442695, %v2121_v17  ;;  %v2123_v28 = vsub.f32 0.0, %v1867_v61  ;;  %v1618_v20 = vsub.f32 %v6168_v53, %v5706_v42  ;;  %v6301_v31 = vpop.f32.mrb[45].mxu0 }
 0x147   : > { %v2507_v10 = vmul.f32 1.442695, %v2122_v62  ;;  %v2124_v15 = vsub.f32 0.0, %v1868_v39  ;;  %v1873_v47 = vmul.f32 %v1617_v58, %v1617_v58  ;;  %v1619_v56 = vsub.f32 %v6171_v55, %v5708_v43  ;;  %3041 = vmatmul.mubr.f32.gmra.mrb[150].mxu0 %v6198_v19  ;;  %v6304_v55 = vpop.f32.mrb[44].mxu1 }
 0x148   : > { %v6293_v8 = vpop.eup %4440  ;;  %4456 = vpow2.f32 %v2505_v24  ;;  %v2509_v57 = vmul.f32 1.442695, %v2123_v28  ;;  %v1874_v34 = vmul.f32 %v1618_v20, %v1618_v20  ;;  %v1620_v53 = vsub.f32 %v6180_v46, %v5726_v45  ;;  %3266 = vmatmul.mubr.f32.gmra.mrb[150].mxu1 %v6214_v11  ;;  %3045 = vmatprep.mubr.f32.mxu0 %v6240_v0  ;;  %v6312_v54 = vpop.f32.mrb[45].mxu1 }
 0x149   : > { %v6299_v52 = vpop.eup %4442  ;;  %4458 = vpow2.f32 %v2507_v10  ;;  %v2511_v50 = vmul.f32 1.442695, %v2124_v15  ;;  %v2129_v12 = vsub.f32 0.0, %v1873_v47  ;;  %v1875_v44 = vmul.f32 %v1619_v56, %v1619_v56  ;;  %3270 = vmatprep.mubr.f32.mxu1 %v6249_v18  ;;  %v6319_v11 = vpop.f32.mrb[46].mxu0 }
 0x14a   : > { %v6306_v29 = vpop.eup %4444  ;;  %4460 = vpow2.f32 %v2509_v57  ;;  %v2130_v3 = vsub.f32 0.0, %v1874_v34  ;;  %v1876_v49 = vmul.f32 %v1620_v53, %v1620_v53  ;;  %v1625_v46 = vsub.f32 %v6192_v41, %v5686_v38  ;;  %v6325_v58 = vpop.f32.mrb[47].mxu0 }
 0x14b   : > { %v4447_v37 = vpop.eup %4446  ;;  %4462 = vpow2.f32 %v2511_v50  ;;  %v2521_v21 = vmul.f32 1.442695, %v2129_v12  ;;  %v2131_v19 = vsub.f32 0.0, %v1875_v44  ;;  %v1626_v32 = vsub.f32 %v6202_v1, %v5706_v42  ;;  %3046 = vmatmul.mubr.f32.gmra.mrb[152].mxu0 %v6232_v6  ;;  %v6328_v1 = vpop.f32.mrb[46].mxu1 }
 0x14c   : > { %v2523_v4 = vmul.f32 1.442695, %v2130_v3  ;;  %v2132_v63 = vsub.f32 0.0, %v1876_v49  ;;  %v1881_v17 = vmul.f32 %v1625_v46, %v1625_v46  ;;  %v1627_v41 = vsub.f32 %v6205_v25, %v5708_v43  ;;  %3271 = vmatmul.mubr.f32.gmra.mrb[152].mxu1 %v6243_v40  ;;  %3050 = vmatprep.mubr.f32.mxu0 %v6269_v16  ;;  %v6332_v20 = vpop.f32.mrb[47].mxu1  ;;  %v6341_v16 = vpop.f32.mrb[48].mxu0 }
 0x14d   : > { %v6321_v0 = vpop.eup %4448  ;;  %4464 = vpow2.f32 %v2521_v21  ;;  %v2525_v61 = vmul.f32 1.442695, %v2131_v19  ;;  %v1882_v62 = vmul.f32 %v1626_v32, %v1626_v32  ;;  %v1628_v39 = vsub.f32 %v6212_v60, %v5726_v45  ;;  %3275 = vmatprep.mubr.f32.mxu1 %v6282_v2  ;;  %v6345_v44 = vpop.f32.mrb[49].mxu0 }
 0x14e   : > { %v4451_v18 = vpop.eup %4450  ;;  %4466 = vpow2.f32 %v2523_v4  ;;  %v2527_v24 = vmul.f32 1.442695, %v2132_v63  ;;  %v2137_v25 = vsub.f32 0.0, %v1881_v17  ;;  %v1883_v28 = vmul.f32 %v1627_v41, %v1627_v41 }
 0x14f   : > { %v6334_v10 = vpop.eup %4452  ;;  %4468 = vpow2.f32 %v2525_v61  ;;  %v2138_v60 = vsub.f32 0.0, %v1882_v62  ;;  %v1884_v15 = vmul.f32 %v1628_v39, %v1628_v39  ;;  %v1633_v6 = vsub.f32 %v6223_v14, %v5686_v38  ;;  %3051 = vmatmul.mubr.f32.gmra.mrb[154].mxu0 %v6264_v48  ;;  %v6348_v14 = vpop.f32.mrb[48].mxu1 }
 0x150   : > { %v4455_v47 = vpop.eup %4454  ;;  %4470 = vpow2.f32 %v2527_v24  ;;  %v2537_v56 = vmul.f32 1.442695, %v2137_v25  ;;  %v2139_v57 = vsub.f32 0.0, %v1883_v28  ;;  %v1634_v40 = vsub.f32 %v6227_v13, %v5706_v42  ;;  %3276 = vmatmul.mubr.f32.gmra.mrb[154].mxu1 %v6273_v7  ;;  %3055 = vmatprep.mubr.f32.mxu0 %v6299_v52  ;;  %v6356_v46 = vpop.f32.mrb[49].mxu1 }
 0x151   : > { %v2539_v34 = vmul.f32 1.442695, %v2138_v60  ;;  %v2140_v53 = vsub.f32 0.0, %v1884_v15  ;;  %v1889_v50 = vmul.f32 %v1633_v6, %v1633_v6  ;;  %v1635_v12 = vsub.f32 %v6230_v22, %v5708_v43  ;;  %3280 = vmatprep.mubr.f32.mxu1 %v4447_v37  ;;  %v6362_v17 = vpop.f32.mrb[50].mxu0  ;;  %v6369_v37 = vpop.f32.mrb[50].mxu1 }
 0x152   : > { %v6350_v2 = vpop.eup %4456  ;;  %4472 = vpow2.f32 %v2537_v56  ;;  %v2541_v3 = vmul.f32 1.442695, %v2139_v57  ;;  %v1890_v49 = vmul.f32 %v1634_v40, %v1634_v40  ;;  %v1636_v13 = vsub.f32 %v6238_v33, %v5726_v45  ;;  %v6366_v62 = vpop.f32.mrb[51].mxu0 }
 0x153   : > { %v4459_v22 = vpop.eup %4458  ;;  %4474 = vpow2.f32 %v2539_v34  ;;  %v2543_v21 = vmul.f32 1.442695, %v2140_v53  ;;  %v2145_v48 = vsub.f32 0.0, %v1889_v50  ;;  %v1891_v19 = vmul.f32 %v1635_v12, %v1635_v12  ;;  %3056 = vmatmul.mubr.f32.gmra.mrb[156].mxu0 %v6293_v8  ;;  %v6374_v28 = vpop.f32.mrb[51].mxu1 }
 0x154   : > { %v6358_v32 = vpop.eup %4460  ;;  %4476 = vpow2.f32 %v2541_v3  ;;  %v2146_v4 = vsub.f32 0.0, %v1890_v49  ;;  %v1892_v63 = vmul.f32 %v1636_v13, %v1636_v13  ;;  %v1641_v33 = vsub.f32 %v6247_v30, %v5686_v38  ;;  %3281 = vmatmul.mubr.f32.gmra.mrb[156].mxu1 %v6306_v29  ;;  %3060 = vmatprep.mubr.f32.mxu0 %v4451_v18 }
 0x155   : > { %v4463_v7 = vpop.eup %4462  ;;  %4478 = vpow2.f32 %v2543_v21  ;;  %v2553_v52 = vmul.f32 1.442695, %v2145_v48  ;;  %v2147_v41 = vsub.f32 0.0, %v1891_v19  ;;  %v1642_v61 = vsub.f32 %v6253_v59, %v5706_v42  ;;  %3285 = vmatprep.mubr.f32.mxu1 %v4455_v47 }
 0x156   : > { %v2555_v39 = vmul.f32 1.442695, %v2146_v4  ;;  %v2148_v24 = vsub.f32 0.0, %v1892_v63  ;;  %v1897_v25 = vmul.f32 %v1641_v33, %v1641_v33  ;;  %v1643_v30 = vsub.f32 %v6256_v27, %v5708_v43  ;;  %v6380_v27 = vpop.f32.mrb[52].mxu0 }
 0x157   : > { %v6376_v60 = vpop.eup %4464  ;;  %4480 = vpow2.f32 %v2553_v52  ;;  %v2557_v59 = vmul.f32 1.442695, %v2147_v41  ;;  %v1898_v15 = vmul.f32 %v1642_v61, %v1642_v61  ;;  %v1644_v8 = vsub.f32 %v6262_v23, %v5726_v45  ;;  %v6386_v50 = vpop.f32.mrb[53].mxu0  ;;  %3061 = vmatmul.mubr.f32.gmra.mrb[158].mxu0 %v6321_v0 }
 0x158   : > { %v4467_v6 = vpop.eup %4466  ;;  %4482 = vpow2.f32 %v2555_v39  ;;  %v2559_v56 = vmul.f32 1.442695, %v2148_v24  ;;  %v2153_v57 = vsub.f32 0.0, %v1897_v25  ;;  %v1899_v40 = vmul.f32 %v1643_v30, %v1643_v30  ;;  %v6389_v23 = vpop.f32.mrb[52].mxu1  ;;  %3286 = vmatmul.mubr.f32.gmra.mrb[158].mxu1 %v6334_v10  ;;  %3065 = vmatprep.mubr.f32.mxu0 %v4459_v22 }
 0x159   : > { %v6382_v29 = vpop.eup %4468  ;;  %4484 = vpow2.f32 %v2557_v59  ;;  %v2154_v18 = vsub.f32 0.0, %v1898_v15  ;;  %v1900_v34 = vmul.f32 %v1644_v8, %v1644_v8  ;;  %v1649_v53 = vsub.f32 %v6271_v36, %v5686_v38  ;;  %v6394_v13 = vpop.f32.mrb[53].mxu1  ;;  %3290 = vmatprep.mubr.f32.mxu1 %v4463_v7 }
 0x15a   : > { %v4471_v47 = vpop.eup %4470  ;;  %4486 = vpow2.f32 %v2559_v56  ;;  %v2569_v12 = vmul.f32 1.442695, %v2153_v57  ;;  %v2155_v3 = vsub.f32 0.0, %v1899_v40  ;;  %v1650_v49 = vsub.f32 %v6277_v51, %v5706_v42  ;;  %v6402_v33 = vpop.f32.mrb[54].mxu0 }
 0x15b   : > { %v2571_v21 = vmul.f32 1.442695, %v2154_v18  ;;  %v2156_v36 = vsub.f32 0.0, %v1900_v34  ;;  %v1905_v48 = vmul.f32 %v1649_v53, %v1649_v53  ;;  %v1651_v0 = vsub.f32 %v6280_v5, %v5708_v43  ;;  %v6404_v61 = vpop.f32.mrb[55].mxu0  ;;  %3066 = vmatmul.mubr.f32.gmra.mrb[160].mxu0 %v6350_v2  ;;  %v6407_v5 = vpop.f32.mrb[54].mxu1 }
 0x15c   : > { %v6398_v19 = vpop.eup %4472  ;;  %4488 = vpow2.f32 %v2569_v12  ;;  %v2573_v4 = vmul.f32 1.442695, %v2155_v3  ;;  %v1906_v63 = vmul.f32 %v1650_v49, %v1650_v49  ;;  %v1652_v51 = vsub.f32 %v6288_v35, %v5726_v45  ;;  %3291 = vmatmul.mubr.f32.gmra.mrb[160].mxu1 %v6358_v32  ;;  %3070 = vmatprep.mubr.f32.mxu0 %v4467_v6  ;;  %v6412_v25 = vpop.f32.mrb[55].mxu1 }
 0x15d   : > { %v4475_v10 = vpop.eup %4474  ;;  %4490 = vpow2.f32 %v2571_v21  ;;  %v2575_v22 = vmul.f32 1.442695, %v2156_v36  ;;  %v2161_v52 = vsub.f32 0.0, %v1905_v48  ;;  %v1907_v41 = vmul.f32 %v1651_v0, %v1651_v0  ;;  %3295 = vmatprep.mubr.f32.mxu1 %v4471_v47 }
 0x15e   : > { %v4477_v7 = vpop.eup %4476  ;;  %4492 = vpow2.f32 %v2573_v4  ;;  %v2162_v39 = vsub.f32 0.0, %v1906_v63  ;;  %v1908_v24 = vmul.f32 %v1652_v51, %v1652_v51  ;;  %v1657_v35 = vsub.f32 %v6297_v26, %v5686_v38  ;;  %v6418_v26 = vpop.f32.mrb[56].mxu0 }
 0x15f   : > { %v4479_v30 = vpop.eup %4478  ;;  %4494 = vpow2.f32 %v2575_v22  ;;  %v2585_v59 = vmul.f32 1.442695, %v2161_v52  ;;  %v2163_v15 = vsub.f32 0.0, %v1907_v41  ;;  %v1658_v2 = vsub.f32 %v6301_v31, %v5706_v42  ;;  %v6422_v53 = vpop.f32.mrb[57].mxu0  ;;  %3071 = vmatmul.mubr.f32.gmra.mrb[162].mxu0 %v6376_v60 }
 0x160   : > { %v2587_v8 = vmul.f32 1.442695, %v2162_v39  ;;  %v2164_v56 = vsub.f32 0.0, %v1908_v24  ;;  %v1913_v57 = vmul.f32 %v1657_v35, %v1657_v35  ;;  %v1659_v40 = vsub.f32 %v6304_v55, %v5708_v43  ;;  %v6425_v31 = vpop.f32.mrb[56].mxu1  ;;  %3296 = vmatmul.mubr.f32.gmra.mrb[162].mxu1 %v6382_v29  ;;  %3075 = vmatprep.mubr.f32.mxu0 %v4475_v10  ;;  %v6434_v51 = vpop.f32.mrb[58].mxu0 }
 0x161   : > { %v4481_v32 = vpop.eup %4480  ;;  %4496 = vpow2.f32 %v2585_v59  ;;  %v2589_v6 = vmul.f32 1.442695, %v2163_v15  ;;  %v1914_v18 = vmul.f32 %v1658_v2, %v1658_v2  ;;  %v1660_v34 = vsub.f32 %v6312_v54, %v5726_v45  ;;  %v6428_v49 = vpop.f32.mrb[57].mxu1  ;;  %3300 = vmatprep.mubr.f32.mxu1 %v4479_v30 }
 0x162   : > { %v4483_v47 = vpop.eup %4482  ;;  %4498 = vpow2.f32 %v2587_v8  ;;  %v2591_v12 = vmul.f32 1.442695, %v2164_v56  ;;  %v2169_v3 = vsub.f32 0.0, %v1913_v57  ;;  %v1915_v55 = vmul.f32 %v1659_v40, %v1659_v40  ;;  %v6438_v41 = vpop.f32.mrb[59].mxu0 }
 0x163   : > { %v4485_v21 = vpop.eup %4484  ;;  %4500 = vpow2.f32 %v2589_v6  ;;  %v2170_v36 = vsub.f32 0.0, %v1914_v18  ;;  %v1916_v54 = vmul.f32 %v1660_v34, %v1660_v34  ;;  %v1665_v48 = vsub.f32 %v6319_v11, %v5686_v38  ;;  %3076 = vmatmul.mubr.f32.gmra.mrb[164].mxu0 %v6398_v19  ;;  %v6441_v11 = vpop.f32.mrb[58].mxu1 }
 0x164   : > { %v4487_v60 = vpop.eup %4486  ;;  %4502 = vpow2.f32 %v2591_v12  ;;  %v2601_v0 = vmul.f32 1.442695, %v2169_v3  ;;  %v2171_v4 = vsub.f32 0.0, %v1915_v55  ;;  %v1666_v63 = vsub.f32 %v6325_v58, %v5706_v42  ;;  %3301 = vmatmul.mubr.f32.gmra.mrb[164].mxu1 %v4477_v7  ;;  %3080 = vmatprep.mubr.f32.mxu0 %v4483_v47  ;;  %v6445_v30 = vpop.f32.mrb[59].mxu1 }
 0x165   : > { %v2603_v29 = vmul.f32 1.442695, %v2170_v36  ;;  %v2172_v10 = vsub.f32 0.0, %v1916_v54  ;;  %v1921_v22 = vmul.f32 %v1665_v48, %v1665_v48  ;;  %v1667_v52 = vsub.f32 %v6328_v1, %v5708_v43  ;;  %3305 = vmatprep.mubr.f32.mxu1 %v4487_v60  ;;  %v6449_v40 = vpop.f32.mrb[60].mxu0  ;;  %v6455_v47 = vpop.f32.mrb[60].mxu1 }
 0x166   : > { %v4489_v39 = vpop.eup %4488  ;;  %4504 = vpow2.f32 %v2601_v0  ;;  %v2605_v24 = vmul.f32 1.442695, %v2171_v4  ;;  %v1922_v35 = vmul.f32 %v1666_v63, %v1666_v63  ;;  %v1668_v58 = vsub.f32 %v6332_v20, %v5726_v45  ;;  %v6453_v34 = vpop.f32.mrb[61].mxu0 }
 0x167   : > { %v4491_v59 = vpop.eup %4490  ;;  %4506 = vpow2.f32 %v2603_v29  ;;  %v2607_v1 = vmul.f32 1.442695, %v2172_v10  ;;  %v2177_v15 = vsub.f32 0.0, %v1921_v22  ;;  %v1923_v2 = vmul.f32 %v1667_v52, %v1667_v52  ;;  %3081 = vmatmul.mubr.f32.gmra.mrb[166].mxu0 %v4481_v32  ;;  %v6459_v36 = vpop.f32.mrb[61].mxu1  ;;  %v2871_v52 = vld [vmem:[%s7797_s4 + $0x270] sm:$0xff] }
 0x168   : > { %v4493_v19 = vpop.eup %4492  ;;  %4508 = vpow2.f32 %v2605_v24  ;;  %v2178_v8 = vsub.f32 0.0, %v1922_v35  ;;  %v1924_v56 = vmul.f32 %v1668_v58, %v1668_v58  ;;  %v1673_v57 = vsub.f32 %v6341_v16, %v5686_v38  ;;  %3306 = vmatmul.mubr.f32.gmra.mrb[166].mxu1 %v4485_v21  ;;  %3085 = vmatprep.mubr.f32.mxu0 %v4491_v59  ;;  %v6463_v29 = vpop.f32.mrb[62].mxu0 }
 0x169   : > { %v4495_v20 = vpop.eup %4494  ;;  %4510 = vpow2.f32 %v2607_v1  ;;  %v2617_v7 = vmul.f32 1.442695, %v2177_v15  ;;  %v2179_v6 = vsub.f32 0.0, %v1923_v2  ;;  %v1674_v18 = vsub.f32 %v6345_v44, %v5706_v42  ;;  %v6473_v24 = vpop.f32.mrb[63].mxu0 }
 0x16a   : > { %v2619_v12 = vmul.f32 1.442695, %v2178_v8  ;;  %v2180_v3 = vsub.f32 0.0, %v1924_v56  ;;  %v1929_v55 = vmul.f32 %v1673_v57, %v1673_v57  ;;  %v1675_v16 = vsub.f32 %v6348_v14, %v5708_v43  ;;  %3310 = vmatprep.mubr.f32.mxu1 %v4495_v20  ;;  %v6475_v35 = vpop.f32.mrb[62].mxu1 }
 0x16b   : > { %v4497_v54 = vpop.eup %4496  ;;  %4512 = vpow2.f32 %v2617_v7  ;;  %v2621_v48 = vmul.f32 1.442695, %v2179_v6  ;;  %v1930_v60 = vmul.f32 %v1674_v18, %v1674_v18  ;;  %v1676_v44 = vsub.f32 %v6356_v46, %v5726_v45  ;;  %v2872_v46 = vld [vmem:[%s7797_s4 + $0x278] sm:$0xff]  ;;  %3086 = vmatmul.mubr.f32.gmra.mrb[168].mxu0 %v4489_v39  ;;  %v6479_v15 = vpop.f32.mrb[63].mxu1 }
 0x16c   : > { %v4499_v32 = vpop.eup %4498  ;;  %4514 = vpow2.f32 %v2619_v12  ;;  %v2623_v0 = vmul.f32 1.442695, %v2180_v3  ;;  %v2185_v4 = vsub.f32 0.0, %v1929_v55  ;;  %v1931_v63 = vmul.f32 %v1675_v16, %v1675_v16  ;;  %3311 = vmatmul.mubr.f32.gmra.mrb[168].mxu1 %v4493_v19  ;;  %v2904_v19 = vld [vmem:[%s7797_s4 + $0x378] sm:$0xff]  ;;  %v6489_v18 = vpop.f32.mrb[64].mxu0 }
 0x16d   : > { %v4501_v14 = vpop.eup %4500  ;;  %4516 = vpow2.f32 %v2621_v48  ;;  %v2186_v21 = vsub.f32 0.0, %v1930_v60  ;;  %v1932_v10 = vmul.f32 %v1676_v44, %v1676_v44  ;;  %v1681_v22 = vsub.f32 %v6362_v17, %v5686_v38  ;;  %3090 = vmatprep.mubr.f32.mxu0 %v4499_v32  ;;  %v6491_v16 = vpop.f32.mrb[65].mxu0 }
 0x16e   : > { %v4503_v58 = vpop.eup %4502  ;;  %4518 = vpow2.f32 %v2623_v0  ;;  %v2633_v59 = vmul.f32 1.442695, %v2185_v4  ;;  %v2187_v1 = vsub.f32 0.0, %v1931_v63  ;;  %v1682_v17 = vsub.f32 %v6366_v62, %v5706_v42  ;;  %v2903_v62 = vld [vmem:[%s7797_s4 + $0x370] sm:$0xff]  ;;  %v6493_v48 = vpop.f32.mrb[64].mxu1 }
 0x16f   : > { %v2635_v2 = vmul.f32 1.442695, %v2186_v21  ;;  %v2188_v8 = vsub.f32 0.0, %v1932_v10  ;;  %v1937_v56 = vmul.f32 %v1681_v22, %v1681_v22  ;;  %v1683_v57 = vsub.f32 %v6369_v37, %v5708_v43  ;;  %3315 = vmatprep.mubr.f32.mxu1 %v4503_v58  ;;  %3091 = vmatmul.mubr.f32.gmra.mrb[170].mxu0 %v4497_v54  ;;  %v6499_v4 = vpop.f32.mrb[65].mxu1 }
 0x170   : > { %v4505_v39 = vpop.eup %4504  ;;  %4520 = vpow2.f32 %v2633_v59  ;;  %v2637_v20 = vmul.f32 1.442695, %v2187_v1  ;;  %v1938_v7 = vmul.f32 %v1682_v17, %v1682_v17  ;;  %v4244_v6 = vpack.c.bf16 %v2872_v46, %v2871_v52  ;;  %3316 = vmatmul.mubr.f32.gmra.mrb[170].mxu1 %v4501_v14  ;;  %v6504_v58 = vpop.f32.mrb[66].mxu0 }
 0x171   : > { %v4507_v12 = vpop.eup %4506  ;;  %4522 = vpow2.f32 %v2635_v2  ;;  %v2639_v3 = vmul.f32 1.442695, %v2188_v8  ;;  %v2193_v37 = vsub.f32 0.0, %v1937_v56  ;;  %v1939_v55 = vmul.f32 %v1683_v57, %v1683_v57  ;;  %v6510_v17 = vpop.f32.mrb[67].mxu0 }
 0x172   : > { %v4509_v60 = vpop.eup %4508  ;;  %4524 = vpow2.f32 %v2637_v20  ;;  %v2194_v44 = vsub.f32 0.0, %v1938_v7  ;;  %4245 = vmatpush1.bf16.msra.mxu0 %v4244_v6  ;;  %v1684_v32 = vsub.f32 %v6374_v28, %v5726_v45  ;;  %v1689_v0 = vsub.f32 %v6380_v27, %v5686_v38  ;;  %3095 = vmatprep.mubr.f32.mxu0 %v4507_v12  ;;  %v6512_v2 = vpop.f32.mrb[66].mxu1 }
 0x173   : > { %v4511_v63 = vpop.eup %4510  ;;  %4526 = vpow2.f32 %v2639_v3  ;;  %v2649_v21 = vmul.f32 1.442695, %v2193_v37  ;;  %v2195_v10 = vsub.f32 0.0, %v1939_v55  ;;  %v4292_v54 = vpack.c.bf16 %v2904_v19, %v2903_v62  ;;  %4246 = vmatprep.subr.bf16.mxu0 %v7836_v9  ;;  %3096 = vmatmul.mubr.f32.gmra.mrb[172].mxu0 %v4505_v39  ;;  %v6515_v20 = vpop.f32.mrb[67].mxu1  ;;  %v2873_v39 = vld [vmem:[%s7797_s4 + $0x280] sm:$0xff]  ;;  %v2874_v62 = vld [vmem:[%s7797_s4 + $0x288] sm:$0xff] }
 0x174   : > { %v2651_v22 = vmul.f32 1.442695, %v2194_v44  ;;  %v1940_v52 = vmul.f32 %v1684_v32, %v1684_v32  ;;  %v1945_v46 = vmul.f32 %v1689_v0, %v1689_v0  ;;  %v1690_v28 = vsub.f32 %v6386_v50, %v5706_v42  ;;  %3320 = vmatprep.mubr.f32.mxu1 %v4511_v63 }
 0x175   : > { %v4513_v27 = vpop.eup %4512  ;;  %4528 = vpow2.f32 %v2649_v21  ;;  %v2653_v14 = vmul.f32 1.442695, %v2195_v10  ;;  %4293 = vmatpush1.bf16.msra.mxu1 %v4292_v54  ;;  %v1691_v59 = vsub.f32 %v6389_v23, %v5708_v43  ;;  %v1692_v1 = vsub.f32 %v6394_v13, %v5726_v45  ;;  %v6533_v21 = vpop.f32.mrb[68].mxu1 }
 0x176   : > { %v4515_v8 = vpop.eup %4514  ;;  %4530 = vpow2.f32 %v2651_v22  ;;  %v2196_v50 = vsub.f32 0.0, %v1940_v52  ;;  %v2201_v56 = vsub.f32 0.0, %v1945_v46  ;;  %v1946_v57 = vmul.f32 %v1690_v28, %v1690_v28  ;;  %4294 = vmatprep.subr.bf16.mxu1 %v7836_v9  ;;  %3321 = vmatmul.mubr.f32.gmra.mrb[172].mxu1 %v4509_v60  ;;  %v6527_v60 = vpop.f32.mrb[68].mxu0  ;;  %v2906_v46 = vld [vmem:[%s7797_s4 + $0x388] sm:$0xff] }
 0x177   : > { %v4517_v7 = vpop.eup %4516  ;;  %4532 = vpow2.f32 %v2653_v14  ;;  %v1947_v23 = vmul.f32 %v1691_v59, %v1691_v59  ;;  %v1948_v6 = vmul.f32 %v1692_v1, %v1692_v1  ;;  %v1697_v13 = vsub.f32 %v6402_v33, %v5686_v38  ;;  %3100 = vmatprep.mubr.f32.mxu0 %v4515_v8  ;;  %v6531_v63 = vpop.f32.mrb[69].mxu0 }
 0x178   : > { %v4519_v19 = vpop.eup %4518  ;;  %v2655_v12 = vmul.f32 1.442695, %v2196_v50  ;;  %v2665_v3 = vmul.f32 1.442695, %v2201_v56  ;;  %v2202_v37 = vsub.f32 0.0, %v1946_v57  ;;  %v1698_v55 = vsub.f32 %v6404_v61, %v5706_v42  ;;  %3101 = vmatmul.mubr.f32.gmra.mrb[174].mxu0 %v4513_v27  ;;  %v2905_v61 = vld [vmem:[%s7797_s4 + $0x380] sm:$0xff] }
 0x179   : > { %v2203_v44 = vsub.f32 0.0, %v1947_v23  ;;  %v2204_v33 = vsub.f32 0.0, %v1948_v6  ;;  %v1953_v32 = vmul.f32 %v1697_v13, %v1697_v13  ;;  %v1699_v0 = vsub.f32 %v6407_v5, %v5708_v43  ;;  %3325 = vmatprep.mubr.f32.mxu1 %v4519_v19  ;;  %v6541_v5 = vpop.f32.mrb[69].mxu1  ;;  %v6545_v57 = vpop.f32.mrb[70].mxu0 }
 0x17a   : > { %v4521_v10 = vpop.eup %4520  ;;  %4534 = vpow2.f32 %v2655_v12  ;;  %v2667_v54 = vmul.f32 1.442695, %v2202_v37  ;;  %v1954_v22 = vmul.f32 %v1698_v55, %v1698_v55  ;;  %v4247_v52 = vpack.c.bf16 %v2874_v62, %v2873_v39  ;;  %3326 = vmatmul.mubr.f32.gmra.mrb[174].mxu1 %v4517_v7  ;;  %v6550_v39 = vpop.f32.mrb[71].mxu0 }
 0x17b   : > { %v4523_v28 = vpop.eup %4522  ;;  %4536 = vpow2.f32 %v2665_v3  ;;  %v2669_v27 = vmul.f32 1.442695, %v2203_v44  ;;  %v2671_v14 = vmul.f32 1.442695, %v2204_v33  ;;  %v2209_v59 = vsub.f32 0.0, %v1953_v32  ;;  %v6552_v62 = vpop.f32.mrb[70].mxu1 }
 0x17c   : > { %v4525_v1 = vpop.eup %4524  ;;  %4538 = vpow2.f32 %v2667_v54  ;;  %v2210_v8 = vsub.f32 0.0, %v1954_v22  ;;  %v1955_v50 = vmul.f32 %v1699_v0, %v1699_v0  ;;  %4248 = vmatpush1.bf16.msra.mxu0 %v4247_v52  ;;  %v1700_v56 = vsub.f32 %v6412_v25, %v5726_v45  ;;  %3105 = vmatprep.mubr.f32.mxu0 %v4523_v28  ;;  %v6554_v3 = vpop.f32.mrb[71].mxu1 }
 0x17d   : > { %v4527_v23 = vpop.eup %4526  ;;  %4540 = vpow2.f32 %v2669_v27  ;;  %v2681_v7 = vmul.f32 1.442695, %v2209_v59  ;;  %v1705_v6 = vsub.f32 %v6418_v26, %v5686_v38  ;;  %v4295_v13 = vpack.c.bf16 %v2906_v46, %v2905_v61  ;;  %4249 = vmatprep.subr.bf16.mxu0 %v7836_v9  ;;  %3106 = vmatmul.mubr.f32.gmra.mrb[176].mxu0 %v4521_v10  ;;  %v6563_v54 = vpop.f32.mrb[72].mxu0 }
 0x17e   : > { %4542 = vpow2.f32 %v2671_v14  ;;  %v2683_v19 = vmul.f32 1.442695, %v2210_v8  ;;  %v2211_v25 = vsub.f32 0.0, %v1955_v50  ;;  %v1956_v12 = vmul.f32 %v1700_v56, %v1700_v56  ;;  %3330 = vmatprep.mubr.f32.mxu1 %v4527_v23  ;;  %v6569_v28 = vpop.f32.mrb[72].mxu1  ;;  %v2876_v23 = vld [vmem:[%s7797_s4 + $0x298] sm:$0xff] }
 0x17f   : > { %v4529_v37 = vpop.eup %4528  ;;  %4544 = vpow2.f32 %v2681_v7  ;;  %v1961_v55 = vmul.f32 %v1705_v6, %v1705_v6  ;;  %4296 = vmatpush1.bf16.msra.mxu1 %v4295_v13  ;;  %v1706_v26 = vsub.f32 %v6422_v53, %v5706_v42  ;;  %v1707_v44 = vsub.f32 %v6425_v31, %v5708_v43  ;;  %v6567_v31 = vpop.f32.mrb[73].mxu0 }
 0x180   : > { %v4531_v33 = vpop.eup %4530  ;;  %4546 = vpow2.f32 %v2683_v19  ;;  %v2685_v32 = vmul.f32 1.442695, %v2211_v25  ;;  %v2212_v0 = vsub.f32 0.0, %v1956_v12  ;;  %v1708_v10 = vsub.f32 %v6428_v49, %v5726_v45  ;;  %4297 = vmatprep.subr.bf16.mxu1 %v7836_v9  ;;  %3331 = vmatmul.mubr.f32.gmra.mrb[176].mxu1 %v4525_v1  ;;  %v6573_v59 = vpop.f32.mrb[73].mxu1  ;;  %v2907_v19 = vld [vmem:[%s7797_s4 + $0x390] sm:$0xff]  ;;  %v2908_v25 = vld [vmem:[%s7797_s4 + $0x398] sm:$0xff] }
 0x181   : > { %v4533_v22 = vpop.eup %4532  ;;  %v2217_v52 = vsub.f32 0.0, %v1961_v55  ;;  %v1962_v61 = vmul.f32 %v1706_v26, %v1706_v26  ;;  %v1963_v46 = vmul.f32 %v1707_v44, %v1707_v44  ;;  %v1713_v53 = vsub.f32 %v6434_v51, %v5686_v38  ;;  %3110 = vmatprep.mubr.f32.mxu0 %v4531_v33  ;;  %v2875_v51 = vld [vmem:[%s7797_s4 + $0x290] sm:$0xff]  ;;  %v6589_v12 = vpop.f32.mrb[74].mxu0 }
 0x182   : > { %4548 = vpow2.f32 %v2685_v32  ;;  %v2687_v27 = vmul.f32 1.442695, %v2212_v0  ;;  %v1964_v49 = vmul.f32 %v1708_v10, %v1708_v10  ;;  %v1714_v14 = vsub.f32 %v6438_v41, %v5706_v42  ;;  %3111 = vmatmul.mubr.f32.gmra.mrb[178].mxu0 %v4529_v37  ;;  %v6591_v33 = vpop.f32.mrb[75].mxu0 }
 0x183   : > { %v2697_v1 = vmul.f32 1.442695, %v2217_v52  ;;  %v2218_v8 = vsub.f32 0.0, %v1962_v61  ;;  %v2219_v50 = vsub.f32 0.0, %v1963_v46  ;;  %v1969_v56 = vmul.f32 %v1713_v53, %v1713_v53  ;;  %v6593_v61 = vpop.f32.mrb[74].mxu1 }
 0x184   : > { %v4535_v7 = vpop.eup %4534  ;;  %4550 = vpow2.f32 %v2687_v27  ;;  %v2220_v6 = vsub.f32 0.0, %v1964_v49  ;;  %v1970_v13 = vmul.f32 %v1714_v14, %v1714_v14  ;;  %v1715_v41 = vsub.f32 %v6441_v11, %v5708_v43  ;;  %v6599_v14 = vpop.f32.mrb[75].mxu1 }
 0x185   : > { %v4537_v37 = vpop.eup %4536  ;;  %4552 = vpow2.f32 %v2697_v1  ;;  %v2699_v55 = vmul.f32 1.442695, %v2218_v8  ;;  %v2701_v26 = vmul.f32 1.442695, %v2219_v50  ;;  %v2225_v44 = vsub.f32 0.0, %v1969_v56  ;;  %3335 = vmatprep.mubr.f32.mxu1 %v4535_v7  ;;  %v6601_v56 = vpop.f32.mrb[76].mxu0 }
 0x186   : > { %v4539_v32 = vpop.eup %4538  ;;  %v2703_v11 = vmul.f32 1.442695, %v2220_v6  ;;  %v2226_v0 = vsub.f32 0.0, %v1970_v13  ;;  %v1971_v10 = vmul.f32 %v1715_v41, %v1715_v41  ;;  %v4250_v52 = vpack.c.bf16 %v2876_v23, %v2875_v51  ;;  %3336 = vmatmul.mubr.f32.gmra.mrb[178].mxu1 %v4533_v22  ;;  %v6608_v6 = vpop.f32.mrb[76].mxu1 }
 0x187   : > { %v4541_v46 = vpop.eup %4540  ;;  %4554 = vpow2.f32 %v2699_v55  ;;  %v2713_v53 = vmul.f32 1.442695, %v2225_v44  ;;  %v1716_v27 = vsub.f32 %v6445_v30, %v5726_v45  ;;  %v1721_v49 = vsub.f32 %v6449_v40, %v5686_v38  ;;  %3115 = vmatprep.mubr.f32.mxu0 %v4539_v32  ;;  %v6606_v40 = vpop.f32.mrb[77].mxu0 }
 0x188   : > { %v4543_v1 = vpop.eup %4542  ;;  %4556 = vpow2.f32 %v2701_v26  ;;  %v2715_v8 = vmul.f32 1.442695, %v2226_v0  ;;  %v2227_v50 = vsub.f32 0.0, %v1971_v10  ;;  %4251 = vmatpush1.bf16.msra.mxu0 %v4250_v52  ;;  %v4298_v22 = vpack.c.bf16 %v2908_v25, %v2907_v19  ;;  %v6614_v55 = vpop.f32.mrb[77].mxu1 }
 0x189   : > { %v4545_v51 = vpop.eup %4544  ;;  %4558 = vpow2.f32 %v2703_v11  ;;  %v1972_v23 = vmul.f32 %v1716_v27, %v1716_v27  ;;  %v1977_v7 = vmul.f32 %v1721_v49, %v1721_v49  ;;  %v1722_v30 = vsub.f32 %v6453_v34, %v5706_v42  ;;  %4252 = vmatprep.subr.bf16.mxu0 %v7836_v9  ;;  %3340 = vmatprep.mubr.f32.mxu1 %v4543_v1  ;;  %v6625_v10 = vpop.f32.mrb[78].mxu0 }
 0x18a   : > { %v4547_v13 = vpop.eup %4546  ;;  %4560 = vpow2.f32 %v2713_v53  ;;  %v2717_v41 = vmul.f32 1.442695, %v2227_v50  ;;  %4299 = vmatpush1.bf16.msra.mxu1 %v4298_v22  ;;  %v1723_v19 = vsub.f32 %v6455_v47, %v5708_v43  ;;  %v1724_v25 = vsub.f32 %v6459_v36, %v5726_v45  ;;  %3116 = vmatmul.mubr.f32.gmra.mrb[180].mxu0 %v4537_v37  ;;  %v2877_v36 = vld [vmem:[%s7797_s4 + $0x2a0] sm:$0xff]  ;;  %v2878_v37 = vld [vmem:[%s7797_s4 + $0x2a8] sm:$0xff]  ;;  %v6629_v49 = vpop.f32.mrb[79].mxu0 }
 0x18b   : > { %4562 = vpow2.f32 %v2715_v8  ;;  %v2228_v34 = vsub.f32 0.0, %v1972_v23  ;;  %v2233_v26 = vsub.f32 0.0, %v1977_v7  ;;  %v1978_v44 = vmul.f32 %v1722_v30, %v1722_v30  ;;  %4300 = vmatprep.subr.bf16.mxu1 %v7836_v9  ;;  %3341 = vmatmul.mubr.f32.gmra.mrb[180].mxu1 %v4541_v46  ;;  %v6633_v22 = vpop.f32.mrb[78].mxu1 }
 0x18c   : > { %v4549_v32 = vpop.eup %4548  ;;  %4564 = vpow2.f32 %v2717_v41  ;;  %v1979_v11 = vmul.f32 %v1723_v19, %v1723_v19  ;;  %v1980_v0 = vmul.f32 %v1724_v25, %v1724_v25  ;;  %v1729_v47 = vsub.f32 %v6463_v29, %v5686_v38  ;;  %3120 = vmatprep.mubr.f32.mxu0 %v4547_v13  ;;  %v6641_v41 = vpop.f32.mrb[79].mxu1 }
 0x18d   : > { %v2719_v52 = vmul.f32 1.442695, %v2228_v34  ;;  %v2729_v46 = vmul.f32 1.442695, %v2233_v26  ;;  %v2234_v53 = vsub.f32 0.0, %v1978_v44  ;;  %v1730_v27 = vsub.f32 %v6473_v24, %v5706_v42  ;;  %v2909_v42 = vld [vmem:[%s7797_s4 + $0x3a0] sm:$0xff] }
 0x18e   : > { %v4551_v38 = vpop.eup %4550  ;;  %v2235_v29 = vsub.f32 0.0, %v1979_v11  ;;  %v2236_v1 = vsub.f32 0.0, %v1980_v0  ;;  %v1985_v8 = vmul.f32 %v1729_v47, %v1729_v47  ;;  %v1731_v50 = vsub.f32 %v6475_v35, %v5708_v43  ;;  %3121 = vmatmul.mubr.f32.gmra.mrb[182].mxu0 %v4545_v51  ;;  %v2910_v24 = vld [vmem:[%s7797_s4 + $0x3a8] sm:$0xff]  ;;  %v6643_v19 = vpop.f32.mrb[80].mxu0 }
 0x18f   : > { %v4553_v23 = vpop.eup %4552  ;;  %4566 = vpow2.f32 %v2719_v52  ;;  %v2731_v7 = vmul.f32 1.442695, %v2234_v53  ;;  %v1986_v30 = vmul.f32 %v1730_v27, %v1730_v27  ;;  %v4253_v13 = vpack.c.bf16 %v2878_v37, %v2877_v36  ;;  %3345 = vmatprep.mubr.f32.mxu1 %v4551_v38  ;;  %v6647_v11 = vpop.f32.mrb[81].mxu0  ;;  %v7864_v37 = vld [vmem:[#allocation2_spill] sm:$0xff] }
 0x190   : > { %4568 = vpow2.f32 %v2729_v46  ;;  %v2733_v43 = vmul.f32 1.442695, %v2235_v29  ;;  %v2735_v35 = vmul.f32 1.442695, %v2236_v1  ;;  %v2241_v51 = vsub.f32 0.0, %v1985_v8  ;;  %3346 = vmatmul.mubr.f32.gmra.mrb[182].mxu1 %v4549_v32  ;;  %v6649_v0 = vpop.f32.mrb[80].mxu1 }
 0x191   : > { %v4555_v25 = vpop.eup %4554  ;;  %4570 = vpow2.f32 %v2731_v7  ;;  %v2242_v34 = vsub.f32 0.0, %v1986_v30  ;;  %v1987_v26 = vmul.f32 %v1731_v50, %v1731_v50  ;;  %4254 = vmatpush1.bf16.msra.mxu0 %v4253_v13  ;;  %v1732_v44 = vsub.f32 %v6479_v15, %v5726_v45  ;;  %v6653_v46 = vpop.f32.mrb[81].mxu1  ;;  %v4843_v29 = vld [vmem:[%s7796_s3] sm:$0xff]  ;;  %v2879_v7 = vld [vmem:[%s7797_s4 + $0x2b0] sm:$0xff] }
 0x192   : > { %v4557_v47 = vpop.eup %4556  ;;  %4572 = vpow2.f32 %v2733_v43  ;;  %v2745_v36 = vmul.f32 1.442695, %v2241_v51  ;;  %v1459_v52 = vsub.s32 4, %v7864_v37  ;;  %v4301_v32 = vpack.c.bf16 %v2910_v24, %v2909_v42  ;;  %4255 = vmatprep.subr.bf16.mxu0 %v7836_v9  ;;  %3125 = vmatprep.mubr.f32.mxu0 %v4555_v25  ;;  %v6668_v30 = vpop.f32.mrb[82].mxu0 }
 0x193   : > { %v4559_v53 = vpop.eup %4558  ;;  %4574 = vpow2.f32 %v2735_v35  ;;  %v2747_v27 = vmul.f32 1.442695, %v2242_v34  ;;  %v2243_v38 = vsub.f32 0.0, %v1987_v26  ;;  %v1988_v45 = vmul.f32 %v1732_v44, %v1732_v44  ;;  %3126 = vmatmul.mubr.f32.gmra.mrb[184].mxu0 %v4553_v23  ;;  %v2880_v23 = vld [vmem:[%s7797_s4 + $0x2b8] sm:$0xff]  ;;  %v6672_v35 = vpop.f32.mrb[83].mxu0 }
 0x194   : > { %v4561_v15 = vpop.eup %4560  ;;  %4576 = vpow2.f32 %v2745_v36  ;;  %v6658_v1 = vrot.slane %v4843_v29, %v1459_v52  ;;  %4302 = vmatpush1.bf16.msra.mxu1 %v4301_v32  ;;  %v1463_v8 = vsub.s32 5, %v7864_v37  ;;  %v1467_v50 = vsub.s32 6, %v7864_v37  ;;  %3350 = vmatprep.mubr.f32.mxu1 %v4559_v53  ;;  %v6674_v51 = vpop.f32.mrb[82].mxu1 }
 0x195   : > { %v4563_v13 = vpop.eup %4562  ;;  %4578 = vpow2.f32 %v2747_v27  ;;  %v2749_v42 = vmul.f32 1.442695, %v2243_v38  ;;  %v2244_v24 = vsub.f32 0.0, %v1988_v45  ;;  %v1471_v43 = vsub.s32 7, %v7864_v37  ;;  %4303 = vmatprep.subr.bf16.mxu1 %v7836_v9  ;;  %3351 = vmatmul.mubr.f32.gmra.mrb[184].mxu1 %v4557_v47  ;;  %v6684_v37 = vpop.f32.mrb[83].mxu1 }
 0x196   : > { %v4565_v25 = vpop.eup %4564  ;;  %v1485_v34 = vsub.f32 %v6489_v18, %v6658_v1  ;;  %v6678_v26 = vrot.slane %v4843_v29, %v1463_v8  ;;  %v6680_v44 = vrot.slane %v4843_v29, %v1467_v50  ;;  %v1493_v36 = vsub.f32 %v6504_v58, %v6658_v1  ;;  %3130 = vmatprep.mubr.f32.mxu0 %v4563_v13  ;;  %v6692_v45 = vpop.f32.mrb[84].mxu0 }
 0x197   : > { %4580 = vpow2.f32 %v2749_v42  ;;  %v2751_v47 = vmul.f32 1.442695, %v2244_v24  ;;  %v6686_v52 = vrot.slane %v4843_v29, %v1471_v43  ;;  %v4256_v32 = vpack.c.bf16 %v2880_v23, %v2879_v7  ;;  %3131 = vmatmul.mubr.f32.gmra.mrb[186].mxu0 %v4561_v15  ;;  %v6700_v50 = vpop.f32.mrb[85].mxu0 }
 0x198   : > { %v1741_v53 = vmul.f32 %v1485_v34, %v1485_v34  ;;  %v1486_v18 = vsub.f32 %v6491_v16, %v6678_v26  ;;  %v1487_v27 = vsub.f32 %v6493_v48, %v6680_v44  ;;  %v1749_v38 = vmul.f32 %v1493_v36, %v1493_v36  ;;  %v6702_v16 = vpop.f32.mrb[84].mxu1  ;;  %v2911_v36 = vld [vmem:[%s7797_s4 + $0x3b0] sm:$0xff] }
 0x199   : > { %v4567_v58 = vpop.eup %4566  ;;  %4582 = vpow2.f32 %v2751_v47  ;;  %v1488_v8 = vsub.f32 %v6499_v4, %v6686_v52  ;;  %v1494_v29 = vsub.f32 %v6510_v17, %v6678_v26  ;;  %v1495_v15 = vsub.f32 %v6512_v2, %v6680_v44  ;;  %4257 = vmatpush1.bf16.msra.mxu0 %v4256_v32  ;;  %7865 = vst [vmem:[#allocation15_spill] sm:$0xff] %v6702_v16  ;;  %v6705_v4 = vpop.f32.mrb[85].mxu1 }
 0x19a   : > { %v4569_v48 = vpop.eup %4568  ;;  %v1997_v7 = vsub.f32 0.0, %v1741_v53  ;;  %v1742_v23 = vmul.f32 %v1486_v18, %v1486_v18  ;;  %v1743_v13 = vmul.f32 %v1487_v27, %v1487_v27  ;;  %v2005_v42 = vsub.f32 0.0, %v1749_v38  ;;  %4258 = vmatprep.subr.bf16.mxu0 %v7836_v9  ;;  %3355 = vmatprep.mubr.f32.mxu1 %v4567_v58  ;;  %7866 = vst [vmem:[#allocation16_spill] sm:$0xff] %v6705_v4  ;;  %v6717_v16 = vpop.f32.mrb[86].mxu1 }
 0x19b   : > { %v4571_v24 = vpop.eup %4570  ;;  %v1744_v17 = vmul.f32 %v1488_v8, %v1488_v8  ;;  %v1750_v43 = vmul.f32 %v1494_v29, %v1494_v29  ;;  %v1751_v34 = vmul.f32 %v1495_v15, %v1495_v15  ;;  %v1496_v2 = vsub.f32 %v6515_v20, %v6686_v52  ;;  %3356 = vmatmul.mubr.f32.gmra.mrb[186].mxu1 %v4565_v25  ;;  %v2912_v20 = vld [vmem:[%s7797_s4 + $0x3b8] sm:$0xff]  ;;  %v6715_v15 = vpop.f32.mrb[86].mxu0 }
 0x19c   : > { %v4573_v47 = vpop.eup %4572  ;;  %v2257_v32 = vmul.f32 1.442695, %v1997_v7  ;;  %v1998_v53 = vsub.f32 0.0, %v1742_v23  ;;  %v1999_v18 = vsub.f32 0.0, %v1743_v13  ;;  %v2273_v27 = vmul.f32 1.442695, %v2005_v42  ;;  %3135 = vmatprep.mubr.f32.mxu0 %v4571_v24 }
 0x19d   : > { %v4575_v38 = vpop.eup %4574  ;;  %v2000_v58 = vsub.f32 0.0, %v1744_v17  ;;  %v2006_v4 = vsub.f32 0.0, %v1750_v43  ;;  %v2007_v8 = vsub.f32 0.0, %v1751_v34  ;;  %v1752_v29 = vmul.f32 %v1496_v2, %v1496_v2  ;;  %3136 = vmatmul.mubr.f32.gmra.mrb[188].mxu0 %v4569_v48  ;;  %7867 = vst [vmem:[#allocation4_spill] sm:$0xff] %v6717_v16  ;;  %v6721_v42 = vpop.f32.mrb[87].mxu0 }
 0x19e   : > { %v4577_v25 = vpop.eup %4576  ;;  %4584 = vpow2.f32 %v2257_v32  ;;  %v2259_v7 = vmul.f32 1.442695, %v1998_v53  ;;  %v2261_v23 = vmul.f32 1.442695, %v1999_v18  ;;  %v1501_v13 = vsub.f32 %v6527_v60, %v6658_v1  ;;  %3360 = vmatprep.mubr.f32.mxu1 %v4575_v38  ;;  %v6723_v24 = vpop.f32.mrb[87].mxu1 }
 0x19f   : > { %v4579_v17 = vpop.eup %4578  ;;  %v2263_v43 = vmul.f32 1.442695, %v2000_v58  ;;  %4586 = vpow2.f32 %v2273_v27  ;;  %v2275_v48 = vmul.f32 1.442695, %v2006_v4  ;;  %v2277_v34 = vmul.f32 1.442695, %v2007_v8  ;;  %3361 = vmatmul.mubr.f32.gmra.mrb[188].mxu1 %v4573_v47 }
 0x1a0   : > { %4588 = vpow2.f32 %v2259_v7  ;;  %v2008_v2 = vsub.f32 0.0, %v1752_v29  ;;  %v1757_v16 = vmul.f32 %v1501_v13, %v1501_v13  ;;  %v4304_v32 = vpack.c.bf16 %v2912_v20, %v2911_v36  ;;  %3140 = vmatprep.mubr.f32.mxu0 %v4579_v17  ;;  %v6725_v53 = vpop.f32.mrb[88].mxu0  ;;  %v6735_v27 = vpop.f32.mrb[88].mxu1 }
 0x1a1   : > { %v4581_v18 = vpop.eup %4580  ;;  %4590 = vpow2.f32 %v2261_v23  ;;  %v1502_v60 = vsub.f32 %v6531_v63, %v6678_v26  ;;  %v1503_v38 = vsub.f32 %v6533_v21, %v6680_v44  ;;  %v1504_v4 = vsub.f32 %v6541_v5, %v6686_v52  ;;  %3141 = vmatmul.mubr.f32.gmra.mrb[190].mxu0 %v4577_v25  ;;  %v6733_v47 = vpop.f32.mrb[89].mxu0 }
 0x1a2   : > { %4592 = vpow2.f32 %v2263_v43  ;;  %v2279_v36 = vmul.f32 1.442695, %v2008_v2  ;;  %v2013_v58 = vsub.f32 0.0, %v1757_v16  ;;  %4305 = vmatpush1.bf16.msra.mxu1 %v4304_v32  ;;  %v1509_v8 = vsub.f32 %v6545_v57, %v6658_v1  ;;  %v6739_v29 = vpop.f32.mrb[89].mxu1  ;;  %v2881_v16 = vld [vmem:[%s7797_s4 + $0x2c0] sm:$0xff]  ;;  %v2882_v57 = vld [vmem:[%s7797_s4 + $0x2c8] sm:$0xff] }
 0x1a3   : > { %v4583_v63 = vpop.eup %4582  ;;  %4594 = vpow2.f32 %v2275_v48  ;;  %v1758_v21 = vmul.f32 %v1502_v60, %v1502_v60  ;;  %v1759_v20 = vmul.f32 %v1503_v38, %v1503_v38  ;;  %v1760_v7 = vmul.f32 %v1504_v4, %v1504_v4  ;;  %4306 = vmatprep.subr.bf16.mxu1 %v7836_v9  ;;  %v6750_v13 = vpop.f32.mrb[90].mxu0  ;;  %v2913_v38 = vld [vmem:[%s7797_s4 + $0x3c0] sm:$0xff]  ;;  %v2914_v4 = vld [vmem:[%s7797_s4 + $0x3c8] sm:$0xff] }
 0x1a4   : > { %4596 = vpow2.f32 %v2277_v34  ;;  %v2289_v5 = vmul.f32 1.442695, %v2013_v58  ;;  %v1765_v25 = vmul.f32 %v1509_v8, %v1509_v8  ;;  %v1510_v23 = vsub.f32 %v6550_v39, %v6678_v26  ;;  %3365 = vmatprep.mubr.f32.mxu1 %v4583_v63  ;;  %v6752_v34 = vpop.f32.mrb[91].mxu0  ;;  %v6754_v2 = vpop.f32.mrb[90].mxu1 }
 0x1a5   : > { %4598 = vpow2.f32 %v2279_v36  ;;  %v2014_v17 = vsub.f32 0.0, %v1758_v21  ;;  %v2015_v43 = vsub.f32 0.0, %v1759_v20  ;;  %v2016_v48 = vsub.f32 0.0, %v1760_v7  ;;  %3366 = vmatmul.mubr.f32.gmra.mrb[190].mxu1 %v4581_v18  ;;  %v6764_v36 = vpop.f32.mrb[91].mxu1 }
 0x1a6   : > { %4600 = vpow2.f32 %v2289_v5  ;;  %v2021_v39 = vsub.f32 0.0, %v1765_v25  ;;  %v1766_v32 = vmul.f32 %v1510_v23, %v1510_v23  ;;  %v1511_v60 = vsub.f32 %v6552_v62, %v6680_v44  ;;  %v6770_v25 = vpop.f32.mrb[92].mxu0 }
 0x1a7   : > { %v2291_v18 = vmul.f32 1.442695, %v2014_v17  ;;  %v2293_v58 = vmul.f32 1.442695, %v2015_v43  ;;  %v2295_v8 = vmul.f32 1.442695, %v2016_v48  ;;  %v4259_v63 = vpack.c.bf16 %v2882_v57, %v2881_v16 }
 0x1a8   : > { %v6766_v21 = vpop.eup %4584  ;;  %v2305_v20 = vmul.f32 1.442695, %v2021_v39  ;;  %v2022_v7 = vsub.f32 0.0, %v1766_v32  ;;  %v1767_v5 = vmul.f32 %v1511_v60, %v1511_v60  ;;  %v1512_v62 = vsub.f32 %v6554_v3, %v6686_v52  ;;  %v6778_v57 = vpop.f32.mrb[93].mxu0 }
 0x1a9   : > { %v6772_v23 = vpop.eup %4586  ;;  %4602 = vpow2.f32 %v2291_v18  ;;  %4260 = vmatpush1.bf16.msra.mxu0 %v4259_v63  ;;  %v1517_v17 = vsub.f32 %v6563_v54, %v6658_v1  ;;  %v4307_v43 = vpack.c.bf16 %v2914_v4, %v2913_v38  ;;  %v1518_v16 = vsub.f32 %v6567_v31, %v6678_v26  ;;  %7868 = vst [vmem:[#allocation3_spill] sm:$0xff] %v6778_v57  ;;  %v6780_v48 = vpop.f32.mrb[92].mxu1 }
 0x1aa   : > { %7869 = vst [vmem:[#allocation6_spill] sm:$0xff] %v6780_v48  ;;  %v4589_v39 = vpop.eup %4588  ;;  %4604 = vpow2.f32 %v2293_v58  ;;  %v2307_v3 = vmul.f32 1.442695, %v2022_v7  ;;  %v2023_v32 = vsub.f32 0.0, %v1767_v5  ;;  %v1768_v60 = vmul.f32 %v1512_v62, %v1512_v62  ;;  %4261 = vmatprep.subr.bf16.mxu0 %v7836_v9  ;;  %v6783_v18 = vpop.f32.mrb[93].mxu1 }
 0x1ab   : > { %7870 = vst [vmem:[#allocation5_spill] sm:$0xff] %v6783_v18  ;;  %v6785_v63 = vpop.eup %4590  ;;  %4606 = vpow2.f32 %v2295_v8  ;;  %v1773_v54 = vmul.f32 %v1517_v17, %v1517_v17  ;;  %4308 = vmatpush1.bf16.msra.mxu1 %v4307_v43  ;;  %v1774_v38 = vmul.f32 %v1518_v16, %v1518_v16  ;;  %v1519_v31 = vsub.f32 %v6569_v28, %v6680_v44  ;;  %v6792_v62 = vpop.f32.mrb[94].mxu0 }
 0x1ac   : > { %3435 = vmatprep.mubr.f32.mxu0 %v4589_v39  ;;  %v4593_v4 = vpop.eup %4592  ;;  %4608 = vpow2.f32 %v2305_v20  ;;  %v2309_v58 = vmul.f32 1.442695, %v2023_v32  ;;  %v2024_v7 = vsub.f32 0.0, %v1768_v60  ;;  %v1520_v5 = vsub.f32 %v6573_v59, %v6686_v52  ;;  %4309 = vmatprep.subr.bf16.mxu1 %v7836_v9  ;;  %7871 = vst [vmem:[#allocation17_spill] sm:$0xff] %v6792_v62  ;;  %v6796_v28 = vpop.f32.mrb[95].mxu0  ;;  %v2884_v60 = vld [vmem:[%s7797_s4 + $0x2d8] sm:$0xff] }
 0x1ad   : > { %v6794_v18 = vpop.eup %4594  ;;  %4610 = vpow2.f32 %v2307_v3  ;;  %v2029_v8 = vsub.f32 0.0, %v1773_v54  ;;  %v2030_v17 = vsub.f32 0.0, %v1774_v38  ;;  %v1775_v43 = vmul.f32 %v1519_v31, %v1519_v31  ;;  %3660 = vmatprep.mubr.f32.mxu1 %v4593_v4  ;;  %7872 = vst [vmem:[#allocation8_spill] sm:$0xff] %v6796_v28  ;;  %v6798_v16 = vpop.f32.mrb[94].mxu1  ;;  %v2883_v3 = vld [vmem:[%s7797_s4 + $0x2d0] sm:$0xff] }
 0x1ae   : > { %7873 = vst [vmem:[#allocation7_spill] sm:$0xff] %v6798_v16  ;;  %v6800_v20 = vpop.eup %4596  ;;  %4612 = vpow2.f32 %v2309_v58  ;;  %v2311_v39 = vmul.f32 1.442695, %v2024_v7  ;;  %v1776_v59 = vmul.f32 %v1520_v5, %v1520_v5  ;;  %v1525_v32 = vsub.f32 %v6589_v12, %v6658_v1  ;;  %v6810_v54 = vpop.f32.mrb[95].mxu1 }
 0x1af   : > { %7874 = vst [vmem:[#allocation10_spill] sm:$0xff] %v6810_v54  ;;  %v6812_v38 = vpop.eup %4598  ;;  %v2321_v31 = vmul.f32 1.442695, %v2029_v8  ;;  %v2323_v4 = vmul.f32 1.442695, %v2030_v17  ;;  %v2031_v58 = vsub.f32 0.0, %v1775_v43  ;;  %v1526_v7 = vsub.f32 %v6591_v33, %v6678_v26 }
 0x1b0   : > { %v6816_v5 = vpop.eup %4600  ;;  %4614 = vpow2.f32 %v2311_v39  ;;  %v2032_v12 = vsub.f32 0.0, %v1776_v59  ;;  %v1781_v16 = vmul.f32 %v1525_v32, %v1525_v32  ;;  %v1527_v28 = vsub.f32 %v6593_v61, %v6680_v44  ;;  %v6820_v62 = vpop.f32.mrb[96].mxu0  ;;  %v2915_v8 = vld [vmem:[%s7797_s4 + $0x3d0] sm:$0xff]  ;;  %v2916_v33 = vld [vmem:[%s7797_s4 + $0x3d8] sm:$0xff] }
 0x1b1   : > { %7875 = vst [vmem:[#allocation9_spill] sm:$0xff] %v6820_v62  ;;  %4616 = vpow2.f32 %v2321_v31  ;;  %v2325_v54 = vmul.f32 1.442695, %v2031_v58  ;;  %v1782_v48 = vmul.f32 %v1526_v7, %v1526_v7  ;;  %v4262_v57 = vpack.c.bf16 %v2884_v60, %v2883_v3  ;;  %v6828_v17 = vpop.f32.mrb[97].mxu0  ;;  %v6830_v43 = vpop.f32.mrb[96].mxu1 }
 0x1b2   : > { %7876 = vst [vmem:[#allocation12_spill] sm:$0xff] %v6828_v17  ;;  %7877 = vst [vmem:[#allocation11_spill] sm:$0xff] %v6830_v43  ;;  %4618 = vpow2.f32 %v2323_v4  ;;  %v2327_v61 = vmul.f32 1.442695, %v2032_v12  ;;  %v2037_v39 = vsub.f32 0.0, %v1781_v16  ;;  %v1783_v59 = vmul.f32 %v1527_v28, %v1527_v28  ;;  %v6832_v32 = vpop.f32.mrb[97].mxu1 }
 0x1b3   : > { %7878 = vst [vmem:[#allocation14_spill] sm:$0xff] %v6832_v32  ;;  %v6834_v31 = vpop.eup %4602  ;;  %4620 = vpow2.f32 %v2325_v54  ;;  %v2038_v3 = vsub.f32 0.0, %v1782_v48  ;;  %4263 = vmatpush1.bf16.msra.mxu0 %v4262_v57  ;;  %v1528_v60 = vsub.f32 %v6599_v14, %v6686_v52  ;;  %v1533_v58 = vsub.f32 %v6601_v56, %v6658_v1  ;;  %v6843_v28 = vpop.f32.mrb[98].mxu0 }
 0x1b4   : > { %v6840_v7 = vpop.eup %4604  ;;  %4622 = vpow2.f32 %v2327_v61  ;;  %v2337_v4 = vmul.f32 1.442695, %v2037_v39  ;;  %v2039_v12 = vsub.f32 0.0, %v1783_v59  ;;  %v4310_v16 = vpack.c.bf16 %v2916_v33, %v2915_v8  ;;  %4264 = vmatprep.subr.bf16.mxu0 %v7836_v9  ;;  %7879 = vst [vmem:[#allocation13_spill] sm:$0xff] %v6843_v28  ;;  %v6849_v43 = vpop.f32.mrb[99].mxu0 }
 0x1b5   : > { %v6845_v32 = vpop.eup %4606  ;;  %v2339_v48 = vmul.f32 1.442695, %v2038_v3  ;;  %v1784_v57 = vmul.f32 %v1528_v60, %v1528_v60  ;;  %v1789_v54 = vmul.f32 %v1533_v58, %v1533_v58  ;;  %v1534_v14 = vsub.f32 %v6606_v40, %v6678_v26  ;;  %7880 = vst [vmem:[#allocation2_spill] sm:$0xff] %v6849_v43  ;;  %v6851_v56 = vpop.f32.mrb[98].mxu1 }
 0x1b6   : > { %7881 = vst [vmem:[#allocation18_spill] sm:$0xff] %v6851_v56  ;;  %v6853_v61 = vpop.eup %4608  ;;  %4624 = vpow2.f32 %v2337_v4  ;;  %v2341_v8 = vmul.f32 1.442695, %v2039_v12  ;;  %4311 = vmatpush1.bf16.msra.mxu1 %v4310_v16  ;;  %v1535_v33 = vsub.f32 %v6608_v6, %v6680_v44  ;;  %v1536_v39 = vsub.f32 %v6614_v55, %v6686_v52  ;;  %v6859_v59 = vpop.f32.mrb[99].mxu1  ;;  %v2885_v55 = vld [vmem:[%s7797_s4 + $0x2e0] sm:$0xff]  ;;  %v2886_v16 = vld [vmem:[%s7797_s4 + $0x2e8] sm:$0xff] }
 0x1b7   : > { %7882 = vst [vmem:[#allocation19_spill] sm:$0xff] %v6859_v59  ;;  %v6861_v3 = vpop.eup %4610  ;;  %4626 = vpow2.f32 %v2339_v48  ;;  %v2040_v40 = vsub.f32 0.0, %v1784_v57  ;;  %v2045_v60 = vsub.f32 0.0, %v1789_v54  ;;  %v1790_v58 = vmul.f32 %v1534_v14, %v1534_v14  ;;  %4312 = vmatprep.subr.bf16.mxu1 %v7836_v9  ;;  %v6874_v48 = vpop.f32.mrb[100].mxu0 }
 0x1b8   : > { %v6864_v56 = vpop.eup %4612  ;;  %4628 = vpow2.f32 %v2341_v8  ;;  %v1791_v4 = vmul.f32 %v1535_v33, %v1535_v33  ;;  %v1792_v12 = vmul.f32 %v1536_v39, %v1536_v39  ;;  %v1541_v6 = vsub.f32 %v6625_v10, %v6658_v1  ;;  %7883 = vst [vmem:[#allocation20_spill] sm:$0xff] %v6874_v48  ;;  %v6878_v33 = vpop.f32.mrb[101].mxu0 }
 0x1b9   : > { %v2343_v57 = vmul.f32 1.442695, %v2040_v40  ;;  %v2353_v54 = vmul.f32 1.442695, %v2045_v60  ;;  %v2046_v14 = vsub.f32 0.0, %v1790_v58  ;;  %v1542_v8 = vsub.f32 %v6629_v49, %v6678_v26  ;;  %7884 = vst [vmem:[#allocation21_spill] sm:$0xff] %v6878_v33 }
 0x1ba   : > { %v6880_v39 = vpop.eup %4614  ;;  %v2047_v10 = vsub.f32 0.0, %v1791_v4  ;;  %v2048_v59 = vsub.f32 0.0, %v1792_v12  ;;  %v1797_v43 = vmul.f32 %v1541_v6, %v1541_v6  ;;  %v1543_v28 = vsub.f32 %v6633_v22, %v6680_v44  ;;  %v6884_v17 = vpop.f32.mrb[100].mxu1  ;;  %v2917_v49 = vld [vmem:[%s7797_s4 + $0x3e0] sm:$0xff]  ;;  %v2918_v4 = vld [vmem:[%s7797_s4 + $0x3e8] sm:$0xff] }
 0x1bb   : > { %7885 = vst [vmem:[#allocation22_spill] sm:$0xff] %v6884_v17  ;;  %v6886_v62 = vpop.eup %4616  ;;  %4630 = vpow2.f32 %v2343_v57  ;;  %v2355_v40 = vmul.f32 1.442695, %v2046_v14  ;;  %v1798_v60 = vmul.f32 %v1542_v8, %v1542_v8  ;;  %v4265_v58 = vpack.c.bf16 %v2886_v16, %v2885_v55  ;;  %v6894_v12 = vpop.f32.mrb[101].mxu1 }
 0x1bc   : > { %7886 = vst [vmem:[#allocation23_spill] sm:$0xff] %v6886_v62  ;;  %7887 = vst [vmem:[#allocation24_spill] sm:$0xff] %v6894_v12  ;;  %v6896_v6 = vpop.eup %4618  ;;  %4632 = vpow2.f32 %v2353_v54  ;;  %v2357_v22 = vmul.f32 1.442695, %v2047_v10  ;;  %v2359_v17 = vmul.f32 1.442695, %v2048_v59  ;;  %v1799_v16 = vmul.f32 %v1543_v28, %v1543_v28 }
 0x1bd   : > { %v2053_v33 = vsub.f32 0.0, %v1797_v43  ;;  %v6898_v57 = vpop.f32.mrb[102].mxu0  ;;  %v6900_v14 = vpop.eup %4620  ;;  %4634 = vpow2.f32 %v2355_v40  ;;  %v2054_v55 = vsub.f32 0.0, %v1798_v60  ;;  %4266 = vmatpush1.bf16.msra.mxu0 %v4265_v58  ;;  %v1544_v8 = vsub.f32 %v6641_v41, %v6686_v52 }
 0x1be   : > { %7888 = vst [vmem:[#allocation25_spill] sm:$0xff] %v6898_v57  ;;  %v6904_v48 = vpop.f32.mrb[103].mxu0  ;;  %v6906_v12 = vpop.f32.mrb[102].mxu1  ;;  %4636 = vpow2.f32 %v2357_v22  ;;  %v1549_v43 = vsub.f32 %v6643_v19, %v6658_v1  ;;  %v4313_v54 = vpack.c.bf16 %v2918_v4, %v2917_v49  ;;  %4267 = vmatprep.subr.bf16.mxu0 %v7836_v9  ;;  %v2055_v40 = vsub.f32 0.0, %v1799_v16 }
 0x1bf   : > { %7889 = vst [vmem:[#allocation26_spill] sm:$0xff] %v6904_v48  ;;  %7890 = vst [vmem:[#allocation27_spill] sm:$0xff] %v6906_v12  ;;  %v6908_v62 = vpop.eup %4622  ;;  %v2369_v59 = vmul.f32 1.442695, %v2053_v33  ;;  %v6913_v10 = vpop.f32.mrb[103].mxu1  ;;  %4638 = vpow2.f32 %v2359_v17  ;;  %v1800_v41 = vmul.f32 %v1544_v8, %v1544_v8  ;;  %v1550_v33 = vsub.f32 %v6647_v11, %v6678_v26 }
 0x1c0   : > { %7891 = vst [vmem:[#allocation28_spill] sm:$0xff] %v6913_v10  ;;  %v2371_v28 = vmul.f32 1.442695, %v2054_v55  ;;  %v6915_v60 = vpop.eup %4624  ;;  %v1805_v58 = vmul.f32 %v1549_v43, %v1549_v43  ;;  %4314 = vmatpush1.bf16.msra.mxu1 %v4313_v54  ;;  %v1551_v19 = vsub.f32 %v6649_v0, %v6680_v44  ;;  %v6921_v49 = vpop.f32.mrb[104].mxu0  ;;  %v2373_v17 = vmul.f32 1.442695, %v2055_v40 }
 0x1c1   : > { %4640 = vpow2.f32 %v2369_v59  ;;  %7892 = vst [vmem:[#allocation29_spill] sm:$0xff] %v6921_v49  ;;  %v6923_v4 = vpop.eup %4626  ;;  %v2056_v22 = vsub.f32 0.0, %v1800_v41  ;;  %v1552_v55 = vsub.f32 %v6653_v46, %v6686_v52  ;;  %4315 = vmatprep.subr.bf16.mxu1 %v7836_v9  ;;  %v6928_v16 = vpop.f32.mrb[105].mxu0  ;;  %v1806_v0 = vmul.f32 %v1550_v33, %v1550_v33  ;;  %v2887_v46 = vld [vmem:[%s7797_s4 + $0x2f0] sm:$0xff] }
 0x1c2   : > { %4642 = vpow2.f32 %v2371_v28  ;;  %7893 = vst [vmem:[#allocation30_spill] sm:$0xff] %v6928_v16  ;;  %v6930_v8 = vpop.f32.mrb[104].mxu1  ;;  %v6932_v11 = vpop.eup %4628  ;;  %v2061_v59 = vsub.f32 0.0, %v1805_v58  ;;  %v1807_v43 = vmul.f32 %v1551_v19, %v1551_v19  ;;  %v1557_v54 = vsub.f32 %v6668_v30, %v6658_v1  ;;  %v2888_v30 = vld [vmem:[%s7797_s4 + $0x2f8] sm:$0xff] }
 0x1c3   : > { %7894 = vst [vmem:[#allocation31_spill] sm:$0xff] %v6930_v8  ;;  %v6936_v28 = vpop.f32.mrb[105].mxu1  ;;  %4644 = vpow2.f32 %v2373_v17  ;;  %v2375_v40 = vmul.f32 1.442695, %v2056_v22  ;;  %v1808_v41 = vmul.f32 %v1552_v55, %v1552_v55  ;;  %v1558_v9 = vsub.f32 %v6672_v35, %v6678_v26  ;;  %v6946_v19 = vpop.f32.mrb[106].mxu0 }
 0x1c4   : > { %7895 = vst [vmem:[#allocation32_spill] sm:$0xff] %v6936_v28  ;;  %v2385_v8 = vmul.f32 1.442695, %v2061_v59  ;;  %v2062_v16 = vsub.f32 0.0, %v1806_v0  ;;  %v2063_v58 = vsub.f32 0.0, %v1807_v43  ;;  %v1813_v33 = vmul.f32 %v1557_v54, %v1557_v54  ;;  %7896 = vst [vmem:[#allocation33_spill] sm:$0xff] %v6946_v19 }
 0x1c5   : > { %v6948_v17 = vpop.eup %4630  ;;  %4646 = vpow2.f32 %v2375_v40  ;;  %v2064_v22 = vsub.f32 0.0, %v1808_v41  ;;  %v1814_v55 = vmul.f32 %v1558_v9, %v1558_v9  ;;  %v1559_v35 = vsub.f32 %v6674_v51, %v6680_v44  ;;  %v2919_v59 = vld [vmem:[%s7797_s4 + $0x3f0] sm:$0xff]  ;;  %v2920_v0 = vld [vmem:[%s7797_s4 + $0x3f8] sm:$0xff]  ;;  %v6958_v43 = vpop.f32.mrb[107].mxu0 }
 0x1c6   : > { %7897 = vst [vmem:[#allocation34_spill] sm:$0xff] %v6958_v43  ;;  %v6960_v54 = vpop.f32.mrb[106].mxu1  ;;  %v6962_v19 = vpop.eup %4632  ;;  %4648 = vpow2.f32 %v2385_v8  ;;  %v2387_v40 = vmul.f32 1.442695, %v2062_v16  ;;  %v2389_v41 = vmul.f32 1.442695, %v2063_v58  ;;  %v4268_v48 = vpack.c.bf16 %v2888_v30, %v2887_v46 }
 0x1c7   : > { %7898 = vst [vmem:[#allocation35_spill] sm:$0xff] %v6960_v54  ;;  %v2069_v9 = vsub.f32 0.0, %v1813_v33  ;;  %v6964_v28 = vpop.f32.mrb[107].mxu1  ;;  %v6966_v51 = vpop.eup %4634  ;;  %v2391_v49 = vmul.f32 1.442695, %v2064_v22  ;;  %v2070_v10 = vsub.f32 0.0, %v1814_v55  ;;  %v1815_v12 = vmul.f32 %v1559_v35, %v1559_v35 }
 0x1c8   : > { %v6968_v57 = vpop.eup %4636  ;;  %4650 = vpow2.f32 %v2387_v40  ;;  %v1560_v54 = vsub.f32 %v6684_v37, %v6686_v52  ;;  %v1565_v16 = vsub.f32 %v6692_v45, %v6658_v1  ;;  %v6974_v8 = vpop.f32.mrb[108].mxu0  ;;  %4269 = vmatpush1.bf16.msra.mxu0 %v4268_v48  ;;  %v4316_v55 = vpack.c.bf16 %v2920_v0, %v2919_v59  ;;  %v7900_v48 = vld [vmem:[#allocation15_spill] sm:$0xff]  ;;  %v7901_v59 = vld [vmem:[#allocation16_spill] sm:$0xff] }
 0x1c9   : > { %v2401_v43 = vmul.f32 1.442695, %v2069_v9  ;;  %7899 = vst [vmem:[#allocation36_spill] sm:$0xff] %v6974_v8  ;;  %v6976_v58 = vpop.eup %4638  ;;  %4652 = vpow2.f32 %v2389_v41  ;;  %v2403_v33 = vmul.f32 1.442695, %v2070_v10  ;;  %v2071_v22 = vsub.f32 0.0, %v1815_v12 }
 0x1ca   : > { %v6978_v46 = vpop.f32.mrb[109].mxu0  ;;  %v6980_v30 = vpop.f32.mrb[108].mxu1  ;;  %4654 = vpow2.f32 %v2391_v49  ;;  %v1816_v37 = vmul.f32 %v1560_v54, %v1560_v54  ;;  %v1821_v40 = vmul.f32 %v1565_v16, %v1565_v16  ;;  %v1566_v45 = vsub.f32 %v6700_v50, %v6678_v26  ;;  %4317 = vmatpush1.bf16.msra.mxu1 %v4316_v55 }
 0x1cb   : > { %v6982_v35 = vpop.eup %4640  ;;  %v6986_v9 = vpop.f32.mrb[109].mxu1  ;;  %4656 = vpow2.f32 %v2401_v43  ;;  %v2405_v12 = vmul.f32 1.442695, %v2071_v22  ;;  %v1567_v10 = vsub.f32 %v7900_v48, %v6680_v44  ;;  %v1568_v0 = vsub.f32 %v7901_v59, %v6686_v52  ;;  %3436 = vmatmul.mubr.f32.vlgmr.msra.gmra.mrb[192].mxu0 %v6766_v21 }
 0x1cc   : > { %v6988_v8 = vpop.eup %4642  ;;  %4658 = vpow2.f32 %v2403_v33  ;;  %v2072_v49 = vsub.f32 0.0, %v1816_v37  ;;  %v2077_v54 = vsub.f32 0.0, %v1821_v40  ;;  %v1822_v41 = vmul.f32 %v1566_v45, %v1566_v45  ;;  %v6995_v50 = vpop.f32.mrb[110].mxu0  ;;  %3440 = vmatprep.mubr.f32.mxu0 %v6794_v18  ;;  %v7903_v18 = vld [vmem:[#allocation4_spill] sm:$0xff] }
 0x1cd   : > { %v6997_v16 = vpop.eup %4644  ;;  %4660 = vpow2.f32 %v2405_v12  ;;  %v1823_v43 = vmul.f32 %v1567_v10, %v1567_v10  ;;  %v1824_v22 = vmul.f32 %v1568_v0, %v1568_v0  ;;  %v1573_v55 = vsub.f32 %v6715_v15, %v6658_v1  ;;  %v7002_v48 = vpop.f32.mrb[111].mxu0  ;;  %3661 = vmatmul.mubr.f32.vlgmr.msra.gmra.mrb[192].mxu1 %v6785_v63 }
 0x1ce   : > { %7902 = vst [vmem:[#allocation15_spill] sm:$0xff] %v7002_v48  ;;  %v7004_v33 = vpop.f32.mrb[110].mxu1  ;;  %v2407_v37 = vmul.f32 1.442695, %v2072_v49  ;;  %v2417_v40 = vmul.f32 1.442695, %v2077_v54  ;;  %v1574_v21 = vsub.f32 %v6721_v42, %v6678_v26  ;;  %v1575_v48 = vsub.f32 %v7903_v18, %v6680_v44  ;;  %3665 = vmatprep.mubr.f32.mxu1 %v6812_v38 }
 0x1cf   : > { %v2078_v45 = vsub.f32 0.0, %v1822_v41  ;;  %v7009_v12 = vpop.f32.mrb[111].mxu1  ;;  %v7011_v10 = vpop.eup %4646  ;;  %v2079_v59 = vsub.f32 0.0, %v1823_v43  ;;  %v2080_v15 = vsub.f32 0.0, %v1824_v22  ;;  %v1829_v0 = vmul.f32 %v1573_v55, %v1573_v55  ;;  %3441 = vmatmul.mubr.f32.gmra.mrb[194].mxu0 %v6772_v23 }
 0x1d0   : > { %v7016_v49 = vpop.eup %4648  ;;  %4662 = vpow2.f32 %v2407_v37  ;;  %v1830_v41 = vmul.f32 %v1574_v21, %v1574_v21  ;;  %v1576_v42 = vsub.f32 %v6723_v24, %v6686_v52  ;;  %v7021_v63 = vpop.f32.mrb[112].mxu0  ;;  %3445 = vmatprep.mubr.f32.mxu0 %v6834_v31  ;;  %v1582_v31 = vsub.f32 %v6733_v47, %v6678_v26 }
 0x1d1   : > { %v2419_v54 = vmul.f32 1.442695, %v2078_v45  ;;  %4664 = vpow2.f32 %v2417_v40  ;;  %v2421_v43 = vmul.f32 1.442695, %v2079_v59  ;;  %v2423_v22 = vmul.f32 1.442695, %v2080_v15  ;;  %3666 = vmatmul.mubr.f32.gmra.mrb[194].mxu1 %v6800_v20 }
 0x1d2   : > { %v2085_v55 = vsub.f32 0.0, %v1829_v0  ;;  %v7024_v18 = vpop.f32.mrb[113].mxu0  ;;  %v7026_v38 = vpop.eup %4650  ;;  %v2086_v37 = vsub.f32 0.0, %v1830_v41  ;;  %v1831_v45 = vmul.f32 %v1575_v48, %v1575_v48  ;;  %v1832_v21 = vmul.f32 %v1576_v42, %v1576_v42  ;;  %3670 = vmatprep.mubr.f32.mxu1 %v6845_v32 }
 0x1d3   : > { %4666 = vpow2.f32 %v2419_v54  ;;  %v7029_v24 = vpop.f32.mrb[112].mxu1  ;;  %v7031_v23 = vpop.eup %4652  ;;  %v1581_v59 = vsub.f32 %v6725_v53, %v6658_v1  ;;  %3446 = vmatmul.mubr.f32.gmra.mrb[196].mxu0 %v6816_v5  ;;  %v1583_v47 = vsub.f32 %v6735_v27, %v6680_v44 }
 0x1d4   : > { %4668 = vpow2.f32 %v2421_v43  ;;  %v2433_v40 = vmul.f32 1.442695, %v2085_v55  ;;  %v7038_v15 = vpop.f32.mrb[113].mxu1  ;;  %v7040_v48 = vpop.eup %4654  ;;  %v2435_v20 = vmul.f32 1.442695, %v2086_v37  ;;  %v2087_v0 = vsub.f32 0.0, %v1831_v45  ;;  %3450 = vmatprep.mubr.f32.mxu0 %v6861_v3 }
 0x1d5   : > { %4670 = vpow2.f32 %v2423_v22  ;;  %v2088_v54 = vsub.f32 0.0, %v1832_v21  ;;  %v7043_v41 = vpop.f32.mrb[114].mxu0  ;;  %v7045_v42 = vpop.eup %4656  ;;  %v1837_v53 = vmul.f32 %v1581_v59, %v1581_v59  ;;  %v1838_v43 = vmul.f32 %v1582_v31, %v1582_v31  ;;  %3671 = vmatmul.mubr.f32.gmra.mrb[196].mxu1 %v6840_v7 }
 0x1d6   : > { %4672 = vpow2.f32 %v2433_v40  ;;  %v7050_v32 = vpop.f32.mrb[115].mxu0  ;;  %v7052_v22 = vpop.f32.mrb[114].mxu1  ;;  %v2437_v5 = vmul.f32 1.442695, %v2087_v0  ;;  %v1584_v45 = vsub.f32 %v6739_v29, %v6686_v52  ;;  %v1839_v59 = vmul.f32 %v1583_v47, %v1583_v47  ;;  %3675 = vmatprep.mubr.f32.mxu1 %v6880_v39 }
 0x1d7   : > { %v7054_v55 = vpop.eup %4658  ;;  %4674 = vpow2.f32 %v2435_v20  ;;  %v2439_v37 = vmul.f32 1.442695, %v2088_v54  ;;  %v7059_v21 = vpop.f32.mrb[115].mxu1  ;;  %v2093_v27 = vsub.f32 0.0, %v1837_v53  ;;  %v2094_v3 = vsub.f32 0.0, %v1838_v43  ;;  %3451 = vmatmul.mubr.f32.gmra.mrb[198].mxu0 %v6853_v61 }
 0x1d8   : > { %v7061_v40 = vpop.eup %4660  ;;  %v1589_v31 = vsub.f32 %v6750_v13, %v6658_v1  ;;  %4676 = vpow2.f32 %v2437_v5  ;;  %v1840_v20 = vmul.f32 %v1584_v45, %v1584_v45  ;;  %v1590_v0 = vsub.f32 %v6752_v34, %v6678_v26  ;;  %v7071_v7 = vpop.f32.mrb[116].mxu0  ;;  %3455 = vmatprep.mubr.f32.mxu0 %v6896_v6 }
 0x1d9   : > { %v1591_v29 = vsub.f32 %v6754_v2, %v6680_v44  ;;  %4678 = vpow2.f32 %v2439_v37  ;;  %v2449_v54 = vmul.f32 1.442695, %v2093_v27  ;;  %v2451_v53 = vmul.f32 1.442695, %v2094_v3  ;;  %v7074_v13 = vpop.f32.mrb[117].mxu0  ;;  %3676 = vmatmul.mubr.f32.gmra.mrb[198].mxu1 %v6864_v56  ;;  %v7079_v2 = vpop.f32.mrb[116].mxu1 }
 0x1da   : > { %v2095_v43 = vsub.f32 0.0, %v1839_v59  ;;  %v7076_v39 = vpop.eup %4662  ;;  %v2096_v47 = vsub.f32 0.0, %v1840_v20  ;;  %v1845_v5 = vmul.f32 %v1589_v31, %v1589_v31  ;;  %v1846_v34 = vmul.f32 %v1590_v0, %v1590_v0  ;;  %3680 = vmatprep.mubr.f32.mxu1 %v6908_v62  ;;  %v7088_v3 = vpop.f32.mrb[117].mxu1  ;;  %v7905_v0 = vld [vmem:[#allocation23_spill] sm:$0xff] }
 0x1db   : > { %v1847_v45 = vmul.f32 %v1591_v29, %v1591_v29  ;;  %v7081_v61 = vpop.eup %4664  ;;  %4680 = vpow2.f32 %v2449_v54  ;;  %v1592_v27 = vsub.f32 %v6764_v36, %v6686_v52  ;;  %v1597_v6 = vsub.f32 %v6770_v25, %v6658_v1  ;;  %7904 = vst [vmem:[#allocation16_spill] sm:$0xff] %v7088_v3  ;;  %3456 = vmatmul.mubr.f32.gmra.mrb[200].mxu0 %v7905_v0  ;;  %v7093_v29 = vpop.f32.mrb[118].mxu0 }
 0x1dc   : > { %v2453_v37 = vmul.f32 1.442695, %v2095_v43  ;;  %4682 = vpow2.f32 %v2451_v53  ;;  %v2455_v56 = vmul.f32 1.442695, %v2096_v47  ;;  %v2101_v31 = vsub.f32 0.0, %v1845_v5  ;;  %7906 = vst [vmem:[#allocation4_spill] sm:$0xff] %v7093_v29  ;;  %3460 = vmatprep.mubr.f32.mxu0 %v6923_v4 }
 0x1dd   : > { %v7090_v59 = vpop.eup %4666  ;;  %v2102_v20 = vsub.f32 0.0, %v1846_v34  ;;  %v2103_v36 = vsub.f32 0.0, %v1847_v45  ;;  %v1848_v43 = vmul.f32 %v1592_v27, %v1592_v27  ;;  %v1853_v25 = vmul.f32 %v1597_v6, %v1597_v6  ;;  %v7098_v62 = vpop.f32.mrb[119].mxu0  ;;  %v7909_v34 = vld [vmem:[#allocation3_spill] sm:$0xff]  ;;  %3681 = vmatmul.mubr.f32.gmra.mrb[200].mxu1 %v6900_v14  ;;  %v7913_v14 = vld [vmem:[#allocation17_spill] sm:$0xff] }
 0x1de   : > { %v7095_v54 = vpop.eup %4668  ;;  %4684 = vpow2.f32 %v2453_v37  ;;  %7907 = vst [vmem:[#allocation23_spill] sm:$0xff] %v7098_v62  ;;  %v7100_v3 = vpop.f32.mrb[118].mxu1  ;;  %v2465_v47 = vmul.f32 1.442695, %v2101_v31  ;;  %v1598_v0 = vsub.f32 %v7909_v34, %v6678_v26  ;;  %v7911_v62 = vld [vmem:[#allocation6_spill] sm:$0xff]  ;;  %3685 = vmatprep.mubr.f32.mxu1 %v6948_v17 }
 0x1df   : > { %7908 = vst [vmem:[#allocation37_spill] sm:$0xff] %v7100_v3  ;;  %v7102_v53 = vpop.eup %4670  ;;  %4686 = vpow2.f32 %v2455_v56  ;;  %v2467_v5 = vmul.f32 1.442695, %v2102_v20  ;;  %v7107_v37 = vpop.f32.mrb[119].mxu1  ;;  %v2469_v27 = vmul.f32 1.442695, %v2103_v36  ;;  %v1599_v3 = vsub.f32 %v7911_v62, %v6680_v44  ;;  %3461 = vmatmul.mubr.f32.gmra.mrb[202].mxu0 %v6915_v60 }
 0x1e0   : > { %7910 = vst [vmem:[#allocation3_spill] sm:$0xff] %v7107_v37  ;;  %v7109_v45 = vpop.eup %4672  ;;  %v2104_v4 = vsub.f32 0.0, %v1848_v43  ;;  %v2109_v6 = vsub.f32 0.0, %v1853_v25  ;;  %4688 = vpow2.f32 %v2465_v47  ;;  %v1854_v31 = vmul.f32 %v1598_v0, %v1598_v0  ;;  %v7912_v20 = vld [vmem:[#allocation5_spill] sm:$0xff]  ;;  %v7121_v36 = vpop.f32.mrb[120].mxu0  ;;  %3465 = vmatprep.mubr.f32.mxu0 %v6966_v51  ;;  %v7917_v51 = vld [vmem:[#allocation8_spill] sm:$0xff] }
 0x1e1   : > { %v7114_v56 = vpop.eup %4674  ;;  %v1600_v34 = vsub.f32 %v7912_v20, %v6686_v52  ;;  %v1605_v37 = vsub.f32 %v7913_v14, %v6658_v1  ;;  %4690 = vpow2.f32 %v2467_v5  ;;  %v1855_v62 = vmul.f32 %v1599_v3, %v1599_v3  ;;  %v7124_v17 = vpop.f32.mrb[121].mxu0  ;;  %3686 = vmatmul.mubr.f32.gmra.mrb[202].mxu1 %v6932_v11 }
 0x1e2   : > { %v2471_v43 = vmul.f32 1.442695, %v2104_v4  ;;  %v2481_v25 = vmul.f32 1.442695, %v2109_v6  ;;  %7914 = vst [vmem:[#allocation6_spill] sm:$0xff] %v7124_v17  ;;  %v7126_v47 = vpop.f32.mrb[120].mxu1  ;;  %v7128_v0 = vpop.eup %4676  ;;  %4692 = vpow2.f32 %v2469_v27  ;;  %v1606_v4 = vsub.f32 %v7917_v51, %v6678_v26  ;;  %3690 = vmatprep.mubr.f32.mxu1 %v6976_v58 }
 0x1e3   : > { %7915 = vst [vmem:[#allocation5_spill] sm:$0xff] %v7126_v47  ;;  %v2110_v20 = vsub.f32 0.0, %v1854_v31  ;;  %v1856_v29 = vmul.f32 %v1600_v34, %v1600_v34  ;;  %v1861_v14 = vmul.f32 %v1605_v37, %v1605_v37  ;;  %v7131_v60 = vpop.f32.mrb[121].mxu1  ;;  %v7133_v5 = vpop.eup %4678  ;;  %v2111_v3 = vsub.f32 0.0, %v1855_v62  ;;  %v7918_v6 = vld [vmem:[#allocation7_spill] sm:$0xff]  ;;  %3466 = vmatmul.mubr.f32.gmra.mrb[204].mxu0 %v6962_v19  ;;  %v7919_v51 = vld [vmem:[#allocation10_spill] sm:$0xff] }
 0x1e4   : > { %7916 = vst [vmem:[#allocation17_spill] sm:$0xff] %v7131_v60  ;;  %4694 = vpow2.f32 %v2471_v43  ;;  %v1607_v47 = vsub.f32 %v7918_v6, %v6680_v44  ;;  %v7141_v11 = vpop.f32.mrb[122].mxu0  ;;  %v1862_v62 = vmul.f32 %v1606_v4, %v1606_v4  ;;  %v1608_v17 = vsub.f32 %v7919_v51, %v6686_v52  ;;  %3470 = vmatprep.mubr.f32.mxu0 %v6988_v8  ;;  %v7150_v58 = vpop.f32.mrb[122].mxu1 }
 0x1e5   : > { %4696 = vpow2.f32 %v2481_v25  ;;  %v2483_v27 = vmul.f32 1.442695, %v2110_v20  ;;  %v2112_v31 = vsub.f32 0.0, %v1856_v29  ;;  %v2117_v37 = vsub.f32 0.0, %v1861_v14  ;;  %v7143_v34 = vpop.eup %4680  ;;  %v7148_v6 = vpop.f32.mrb[123].mxu0  ;;  %7921 = vst [vmem:[#allocation7_spill] sm:$0xff] %v7150_v58  ;;  %3691 = vmatmul.mubr.f32.gmra.mrb[204].mxu1 %v6968_v57 }
 0x1e6   : > { %v2485_v43 = vmul.f32 1.442695, %v2111_v3  ;;  %v1863_v60 = vmul.f32 %v1607_v47, %v1607_v47  ;;  %7920 = vst [vmem:[#allocation8_spill] sm:$0xff] %v7148_v6  ;;  %v7152_v29 = vpop.eup %4682  ;;  %v7922_v20 = vld [vmem:[#allocation9_spill] sm:$0xff]  ;;  %v7157_v47 = vpop.f32.mrb[123].mxu1  ;;  %v2118_v8 = vsub.f32 0.0, %v1862_v62  ;;  %v1864_v51 = vmul.f32 %v1608_v17, %v1608_v17  ;;  %3695 = vmatprep.mubr.f32.mxu1 %v7011_v10 }
 0x1e7   : > { %4698 = vpow2.f32 %v2483_v27  ;;  %v2487_v19 = vmul.f32 1.442695, %v2112_v31  ;;  %v2497_v25 = vmul.f32 1.442695, %v2117_v37  ;;  %v1613_v14 = vsub.f32 %v7922_v20, %v6658_v1  ;;  %7923 = vst [vmem:[#allocation10_spill] sm:$0xff] %v7157_v47  ;;  %v7924_v31 = vld [vmem:[#allocation12_spill] sm:$0xff]  ;;  %3471 = vmatmul.mubr.f32.gmra.mrb[206].mxu0 %v6982_v35 }
 0x1e8   : > { %v7159_v3 = vpop.eup %4684  ;;  %4700 = vpow2.f32 %v2485_v43  ;;  %v2119_v4 = vsub.f32 0.0, %v1863_v60  ;;  %v1614_v37 = vsub.f32 %v7924_v31, %v6678_v26  ;;  %v7925_v20 = vld [vmem:[#allocation11_spill] sm:$0xff]  ;;  %v7169_v47 = vpop.f32.mrb[124].mxu0  ;;  %v2499_v43 = vmul.f32 1.442695, %v2118_v8  ;;  %3475 = vmatprep.mubr.f32.mxu0 %v7026_v38  ;;  %v7927_v6 = vld [vmem:[#allocation14_spill] sm:$0xff] }
 0x1e9   : > { %v7162_v58 = vpop.eup %4686  ;;  %4702 = vpow2.f32 %v2487_v19  ;;  %v1869_v27 = vmul.f32 %v1613_v14, %v1613_v14  ;;  %v1615_v57 = vsub.f32 %v7925_v20, %v6680_v44  ;;  %v2120_v17 = vsub.f32 0.0, %v1864_v51  ;;  %v7172_v10 = vpop.f32.mrb[125].mxu0  ;;  %3696 = vmatmul.mubr.f32.gmra.mrb[206].mxu1 %v6997_v16  ;;  %v7929_v38 = vld [vmem:[#allocation13_spill] sm:$0xff]  ;;  %v7930_v51 = vld [vmem:[#allocation2_spill] sm:$0xff] }
 0x1ea   : > { %4704 = vpow2.f32 %v2497_v25  ;;  %v2501_v60 = vmul.f32 1.442695, %v2119_v4  ;;  %7926 = vst [vmem:[#allocation9_spill] sm:$0xff] %v7172_v10  ;;  %v7174_v62 = vpop.eup %4688  ;;  %v1870_v14 = vmul.f32 %v1614_v37, %v1614_v37  ;;  %v1616_v20 = vsub.f32 %v7927_v6, %v6686_v52  ;;  %v7179_v35 = vpop.f32.mrb[124].mxu1  ;;  %3700 = vmatprep.mubr.f32.mxu1 %v7040_v48 }
 0x1eb   : > { %v2125_v19 = vsub.f32 0.0, %v1869_v27  ;;  %v1871_v31 = vmul.f32 %v1615_v57, %v1615_v57  ;;  %7928 = vst [vmem:[#allocation12_spill] sm:$0xff] %v7179_v35  ;;  %v7181_v25 = vpop.eup %4690  ;;  %4706 = vpow2.f32 %v2499_v43  ;;  %v2503_v8 = vmul.f32 1.442695, %v2120_v17  ;;  %v7188_v27 = vpop.f32.mrb[125].mxu1  ;;  %3476 = vmatmul.mubr.f32.gmra.mrb[208].mxu0 %v7016_v49  ;;  %v7935_v49 = vld [vmem:[#allocation18_spill] sm:$0xff] }
 0x1ec   : > { %v1621_v4 = vsub.f32 %v7929_v38, %v6658_v1  ;;  %v1622_v10 = vsub.f32 %v7930_v51, %v6678_v26  ;;  %7931 = vst [vmem:[#allocation11_spill] sm:$0xff] %v7188_v27  ;;  %v7190_v37 = vpop.eup %4692  ;;  %4708 = vpow2.f32 %v2501_v60  ;;  %v2126_v6 = vsub.f32 0.0, %v1870_v14  ;;  %v7193_v43 = vpop.f32.mrb[126].mxu0  ;;  %3480 = vmatprep.mubr.f32.mxu0 %v7054_v55  ;;  %v7937_v55 = vld [vmem:[#allocation19_spill] sm:$0xff] }
 0x1ed   : > { %v2513_v16 = vmul.f32 1.442695, %v2125_v19  ;;  %v2127_v57 = vsub.f32 0.0, %v1871_v31  ;;  %7932 = vst [vmem:[#allocation14_spill] sm:$0xff] %v7193_v43  ;;  %4710 = vpow2.f32 %v2503_v8  ;;  %v1872_v38 = vmul.f32 %v1616_v20, %v1616_v20  ;;  %v7198_v48 = vpop.f32.mrb[127].mxu0  ;;  %v7200_v27 = vpop.f32.mrb[126].mxu1  ;;  %3701 = vmatmul.mubr.f32.gmra.mrb[208].mxu1 %v7031_v23 }
 0x1ee   : > { %v7195_v17 = vpop.eup %4694  ;;  %v1877_v35 = vmul.f32 %v1621_v4, %v1621_v4  ;;  %v1878_v51 = vmul.f32 %v1622_v10, %v1622_v10  ;;  %7933 = vst [vmem:[#allocation13_spill] sm:$0xff] %v7198_v48  ;;  %7934 = vst [vmem:[#allocation2_spill] sm:$0xff] %v7200_v27  ;;  %v2515_v19 = vmul.f32 1.442695, %v2126_v6  ;;  %v1623_v31 = vsub.f32 %v7935_v49, %v6680_v44  ;;  %v7207_v8 = vpop.f32.mrb[127].mxu1  ;;  %v7938_v6 = vld [vmem:[#allocation20_spill] sm:$0xff] }
 0x1ef   : > { %v7202_v60 = vpop.eup %4696  ;;  %4712 = vpow2.f32 %v2513_v16  ;;  %v2517_v14 = vmul.f32 1.442695, %v2127_v57  ;;  %7936 = vst [vmem:[#allocation18_spill] sm:$0xff] %v7207_v8  ;;  %v2128_v20 = vsub.f32 0.0, %v1872_v38  ;;  %v1624_v48 = vsub.f32 %v7937_v55, %v6686_v52  ;;  %3705 = vmatprep.mubr.f32.mxu1 %v7076_v39  ;;  %v7939_v49 = vld [vmem:[#allocation21_spill] sm:$0xff]  ;;  %3481 = vmatmul.mubr.f32.gmra.mrb[210].mxu0 %v7045_v42  ;;  %v7219_v38 = vpop.f32.mrb[128].mxu0 }
 0x1f0   : > { %v2133_v10 = vsub.f32 0.0, %v1877_v35  ;;  %v2134_v4 = vsub.f32 0.0, %v1878_v51  ;;  %4714 = vpow2.f32 %v2515_v19  ;;  %v1879_v16 = vmul.f32 %v1623_v31, %v1623_v31  ;;  %7940 = vst [vmem:[#allocation19_spill] sm:$0xff] %v7219_v38  ;;  %3485 = vmatprep.mubr.f32.mxu0 %v7090_v59  ;;  %v2989_v42 = vpop.f32.mrb[129].mxu0 }
 0x1f1   : > { %v7212_v27 = vpop.eup %4698  ;;  %v1629_v57 = vsub.f32 %v7938_v6, %v6658_v1  ;;  %v1630_v23 = vsub.f32 %v7939_v49, %v6678_v26  ;;  %4716 = vpow2.f32 %v2517_v14  ;;  %v2519_v51 = vmul.f32 1.442695, %v2128_v20  ;;  %3706 = vmatmul.mubr.f32.gmra.mrb[210].mxu1 %v7061_v40  ;;  %v7227_v49 = vpop.f32.mrb[128].mxu1  ;;  %v7942_v14 = vld [vmem:[#allocation22_spill] sm:$0xff] }
 0x1f2   : > { %v7221_v35 = vpop.eup %4700  ;;  %v2529_v55 = vmul.f32 1.442695, %v2133_v10  ;;  %v2531_v39 = vmul.f32 1.442695, %v2134_v4  ;;  %v2135_v31 = vsub.f32 0.0, %v1879_v16  ;;  %v1880_v8 = vmul.f32 %v1624_v48, %v1624_v48  ;;  %7941 = vst [vmem:[#allocation20_spill] sm:$0xff] %v7227_v49  ;;  %3710 = vmatprep.mubr.f32.mxu1 %v7102_v53 }
 0x1f3   : > { %v7224_v19 = vpop.eup %4702  ;;  %v1885_v6 = vmul.f32 %v1629_v57, %v1629_v57  ;;  %v1886_v43 = vmul.f32 %v1630_v23, %v1630_v23  ;;  %4718 = vpow2.f32 %v2519_v51  ;;  %v1631_v20 = vsub.f32 %v7942_v14, %v6680_v44  ;;  %v7943_v10 = vld [vmem:[#allocation24_spill] sm:$0xff]  ;;  %v7944_v4 = vld [vmem:[#allocation25_spill] sm:$0xff]  ;;  %v3214_v48 = vpop.f32.mrb[129].mxu1  ;;  %3486 = vmatmul.mubr.f32.gmra.mrb[212].mxu0 %v7081_v61 }
 0x1f4   : > { %v7229_v38 = vpop.eup %4704  ;;  %v1632_v59 = vsub.f32 %v7943_v10, %v6686_v52  ;;  %v1637_v16 = vsub.f32 %v7944_v4, %v6658_v1  ;;  %4720 = vpow2.f32 %v2529_v55  ;;  %v2533_v40 = vmul.f32 1.442695, %v2135_v31  ;;  %v7239_v42 = vpop.f32.mrb[130].mxu0  ;;  %3490 = vmatprep.mubr.f32.mxu0 %v7114_v56 }
 0x1f5   : > { %v2136_v57 = vsub.f32 0.0, %v1880_v8  ;;  %v2141_v23 = vsub.f32 0.0, %v1885_v6  ;;  %v7241_v51 = vpop.eup %4706  ;;  %4722 = vpow2.f32 %v2531_v39  ;;  %v2142_v14 = vsub.f32 0.0, %v1886_v43  ;;  %v7244_v4 = vpop.f32.mrb[130].mxu1  ;;  %3711 = vmatmul.mubr.f32.gmra.mrb[212].mxu1 %v7095_v54  ;;  %v7948_v54 = vld [vmem:[#allocation28_spill] sm:$0xff] }
 0x1f6   : > { %v1887_v49 = vmul.f32 %v1631_v20, %v1631_v20  ;;  %v1888_v10 = vmul.f32 %v1632_v59, %v1632_v59  ;;  %7945 = vst [vmem:[#allocation21_spill] sm:$0xff] %v7244_v4  ;;  %v2994_v53 = vpop.f32.mrb[131].mxu0  ;;  %v7246_v48 = vpop.eup %4708  ;;  %4724 = vpow2.f32 %v2533_v40  ;;  %v1893_v31 = vmul.f32 %v1637_v16, %v1637_v16  ;;  %v7946_v59 = vld [vmem:[#allocation26_spill] sm:$0xff]  ;;  %3715 = vmatprep.mubr.f32.mxu1 %v7133_v5 }
 0x1f7   : > { %v2535_v8 = vmul.f32 1.442695, %v2136_v57  ;;  %v2545_v55 = vmul.f32 1.442695, %v2141_v23  ;;  %v3219_v61 = vpop.f32.mrb[131].mxu1  ;;  %v7249_v6 = vpop.eup %4710  ;;  %v1638_v56 = vsub.f32 %v7946_v59, %v6678_v26  ;;  %v7947_v57 = vld [vmem:[#allocation27_spill] sm:$0xff]  ;;  %v1640_v23 = vsub.f32 %v7948_v54, %v6686_v52  ;;  %3491 = vmatmul.mubr.f32.gmra.mrb[214].mxu0 %v7109_v45 }
 0x1f8   : > { %v2547_v39 = vmul.f32 1.442695, %v2142_v14  ;;  %v2143_v43 = vsub.f32 0.0, %v1887_v49  ;;  %v2144_v20 = vsub.f32 0.0, %v1888_v10  ;;  %v2149_v40 = vsub.f32 0.0, %v1893_v31  ;;  %v7261_v14 = vpop.f32.mrb[132].mxu0  ;;  %3495 = vmatprep.mubr.f32.mxu0 %v7152_v29 }
 0x1f9   : > { %v7254_v53 = vpop.eup %4712  ;;  %4726 = vpow2.f32 %v2535_v8  ;;  %v1639_v16 = vsub.f32 %v7947_v57, %v6680_v44  ;;  %v1894_v61 = vmul.f32 %v1638_v56, %v1638_v56  ;;  %v7264_v5 = vpop.f32.mrb[132].mxu1  ;;  %v1896_v4 = vmul.f32 %v1640_v23, %v1640_v23  ;;  %3716 = vmatmul.mubr.f32.gmra.mrb[214].mxu1 %v7128_v0  ;;  %v7950_v29 = vld [vmem:[#allocation30_spill] sm:$0xff] }
 0x1fa   : > { %4728 = vpow2.f32 %v2545_v55  ;;  %v2549_v49 = vmul.f32 1.442695, %v2143_v43  ;;  %v2551_v10 = vmul.f32 1.442695, %v2144_v20  ;;  %v2999_v8 = vpop.f32.mrb[133].mxu0  ;;  %v7266_v31 = vpop.eup %4714  ;;  %v7949_v43 = vld [vmem:[#allocation29_spill] sm:$0xff]  ;;  %v1646_v56 = vsub.f32 %v7950_v29, %v6678_v26  ;;  %3720 = vmatprep.mubr.f32.mxu1 %v7162_v58 }
 0x1fb   : > { %4730 = vpow2.f32 %v2547_v39  ;;  %v2561_v59 = vmul.f32 1.442695, %v2149_v40  ;;  %v1895_v57 = vmul.f32 %v1639_v16, %v1639_v16  ;;  %v3224_v45 = vpop.f32.mrb[133].mxu1  ;;  %v7269_v54 = vpop.eup %4716  ;;  %v2150_v55 = vsub.f32 0.0, %v1894_v61  ;;  %v7951_v16 = vld [vmem:[#allocation31_spill] sm:$0xff]  ;;  %3496 = vmatmul.mubr.f32.gmra.mrb[216].mxu0 %v7143_v34  ;;  %v7954_v34 = vld [vmem:[#allocation32_spill] sm:$0xff] }
 0x1fc   : > { %4732 = vpow2.f32 %v2549_v49  ;;  %v1645_v20 = vsub.f32 %v7949_v43, %v6658_v1  ;;  %v2152_v40 = vsub.f32 0.0, %v1896_v4  ;;  %v1647_v23 = vsub.f32 %v7951_v16, %v6680_v44  ;;  %v7279_v0 = vpop.f32.mrb[134].mxu0  ;;  %3500 = vmatprep.mubr.f32.mxu0 %v7181_v25  ;;  %v7284_v43 = vpop.f32.mrb[134].mxu1  ;;  %v7955_v25 = vld [vmem:[#allocation33_spill] sm:$0xff] }
 0x1fd   : > { %4734 = vpow2.f32 %v2551_v10  ;;  %v2151_v39 = vsub.f32 0.0, %v1895_v57  ;;  %7952 = vst [vmem:[#allocation22_spill] sm:$0xff] %v7279_v0  ;;  %v7281_v49 = vpop.eup %4718  ;;  %v2563_v61 = vmul.f32 1.442695, %v2150_v55  ;;  %v1902_v45 = vmul.f32 %v1646_v56, %v1646_v56  ;;  %7953 = vst [vmem:[#allocation24_spill] sm:$0xff] %v7284_v43  ;;  %v3004_v58 = vpop.f32.mrb[135].mxu0  ;;  %3721 = vmatmul.mubr.f32.gmra.mrb[216].mxu1 %v7159_v3 }
 0x1fe   : > { %4736 = vpow2.f32 %v2561_v59  ;;  %v1901_v8 = vmul.f32 %v1645_v20, %v1645_v20  ;;  %v7286_v10 = vpop.eup %4720  ;;  %v2567_v57 = vmul.f32 1.442695, %v2152_v40  ;;  %v1903_v29 = vmul.f32 %v1647_v23, %v1647_v23  ;;  %v3229_v0 = vpop.f32.mrb[135].mxu1  ;;  %3725 = vmatprep.mubr.f32.mxu1 %v7195_v17  ;;  %v7956_v23 = vld [vmem:[#allocation34_spill] sm:$0xff] }
 0x1ff   : > { %v2565_v4 = vmul.f32 1.442695, %v2151_v39  ;;  %v1648_v16 = vsub.f32 %v7954_v34, %v6686_v52  ;;  %v7291_v59 = vpop.eup %4722  ;;  %4738 = vpow2.f32 %v2563_v61  ;;  %v2158_v20 = vsub.f32 0.0, %v1902_v45  ;;  %3501 = vmatmul.mubr.f32.gmra.mrb[218].mxu0 %v7174_v62  ;;  %v7301_v3 = vpop.f32.mrb[136].mxu0 }
 0x200   : > { %v2157_v55 = vsub.f32 0.0, %v1901_v8  ;;  %v1653_v56 = vsub.f32 %v7955_v25, %v6658_v1  ;;  %v7296_v58 = vpop.eup %4724  ;;  %v2159_v39 = vsub.f32 0.0, %v1903_v29  ;;  %v1654_v34 = vsub.f32 %v7956_v23, %v6678_v26  ;;  %3505 = vmatprep.mubr.f32.mxu0 %v7212_v27  ;;  %v7304_v45 = vpop.f32.mrb[136].mxu1  ;;  %v7957_v23 = vld [vmem:[#allocation35_spill] sm:$0xff] }
 0x201   : > { %4740 = vpow2.f32 %v2565_v4  ;;  %v1904_v40 = vmul.f32 %v1648_v16, %v1648_v16  ;;  %v2579_v61 = vmul.f32 1.442695, %v2158_v20  ;;  %v3009_v17 = vpop.f32.mrb[137].mxu0  ;;  %v1655_v43 = vsub.f32 %v7957_v23, %v6680_v44  ;;  %3726 = vmatmul.mubr.f32.gmra.mrb[218].mxu1 %v7190_v37  ;;  %v3234_v62 = vpop.f32.mrb[137].mxu1  ;;  %v7958_v20 = vld [vmem:[#allocation36_spill] sm:$0xff] }
 0x202   : > { %4742 = vpow2.f32 %v2567_v57  ;;  %v2577_v0 = vmul.f32 1.442695, %v2157_v55  ;;  %v1909_v8 = vmul.f32 %v1653_v56, %v1653_v56  ;;  %v2581_v4 = vmul.f32 1.442695, %v2159_v39  ;;  %3730 = vmatprep.mubr.f32.mxu1 %v7224_v19  ;;  %v7321_v37 = vpop.f32.mrb[138].mxu0  ;;  %v7326_v62 = vpop.f32.mrb[138].mxu1 }
 0x203   : > { %v7306_v25 = vpop.eup %4726  ;;  %v2160_v29 = vsub.f32 0.0, %v1904_v40  ;;  %v1910_v16 = vmul.f32 %v1654_v34, %v1654_v34  ;;  %v1656_v27 = vsub.f32 %v6964_v28, %v6686_v52  ;;  %v1661_v56 = vsub.f32 %v7958_v20, %v6658_v1  ;;  %3506 = vmatmul.mubr.f32.gmra.mrb[220].mxu0 %v7202_v60  ;;  %v3014_v19 = vpop.f32.mrb[139].mxu0 }
 0x204   : > { %v7311_v57 = vpop.eup %4728  ;;  %4744 = vpow2.f32 %v2577_v0  ;;  %v2165_v55 = vsub.f32 0.0, %v1909_v8  ;;  %v1911_v17 = vmul.f32 %v1655_v43, %v1655_v43  ;;  %3510 = vmatprep.mubr.f32.mxu0 %v7241_v51  ;;  %v1662_v60 = vsub.f32 %v6978_v46, %v6678_v26  ;;  %v7959_v19 = vld [vmem:[#allocation15_spill] sm:$0xff] }
 0x205   : > { %v7318_v39 = vpop.eup %4730  ;;  %4746 = vpow2.f32 %v2579_v61  ;;  %v2583_v40 = vmul.f32 1.442695, %v2160_v29  ;;  %v2166_v34 = vsub.f32 0.0, %v1910_v16  ;;  %v1912_v28 = vmul.f32 %v1656_v27, %v1656_v27  ;;  %3731 = vmatmul.mubr.f32.gmra.mrb[220].mxu1 %v7221_v35  ;;  %v3239_v29 = vpop.f32.mrb[139].mxu1 }
 0x206   : > { %v7323_v0 = vpop.eup %4732  ;;  %4748 = vpow2.f32 %v2581_v4  ;;  %v2593_v8 = vmul.f32 1.442695, %v2165_v55  ;;  %v1917_v23 = vmul.f32 %v1661_v56, %v1661_v56  ;;  %v2167_v43 = vsub.f32 0.0, %v1911_v17  ;;  %3735 = vmatprep.mubr.f32.mxu1 %v7249_v6  ;;  %v7341_v46 = vpop.f32.mrb[140].mxu0 }
 0x207   : > { %v7328_v20 = vpop.eup %4734  ;;  %4750 = vpow2.f32 %v2583_v40  ;;  %v2595_v61 = vmul.f32 1.442695, %v2166_v34  ;;  %v2168_v16 = vsub.f32 0.0, %v1912_v28  ;;  %v1663_v51 = vsub.f32 %v6980_v30, %v6680_v44  ;;  %3511 = vmatmul.mubr.f32.gmra.mrb[222].mxu0 %v7229_v38  ;;  %v7348_v6 = vpop.f32.mrb[140].mxu1 }
 0x208   : > { %v7333_v4 = vpop.eup %4736  ;;  %4752 = vpow2.f32 %v2593_v8  ;;  %v2173_v55 = vsub.f32 0.0, %v1917_v23  ;;  %v2597_v27 = vmul.f32 1.442695, %v2167_v43  ;;  %v1918_v56 = vmul.f32 %v1662_v60, %v1662_v60  ;;  %3515 = vmatprep.mubr.f32.mxu0 %v7266_v31  ;;  %v3019_v28 = vpop.f32.mrb[141].mxu0 }
 0x209   : > { %4754 = vpow2.f32 %v2595_v61  ;;  %v1664_v40 = vsub.f32 %v6986_v9, %v6686_v52  ;;  %v7343_v35 = vpop.eup %4738  ;;  %v2599_v34 = vmul.f32 1.442695, %v2168_v16  ;;  %v1919_v8 = vmul.f32 %v1663_v51, %v1663_v51  ;;  %3736 = vmatmul.mubr.f32.gmra.mrb[222].mxu1 %v7246_v48  ;;  %v3244_v43 = vpop.f32.mrb[141].mxu1 }
 0x20a   : > { %v2609_v17 = vmul.f32 1.442695, %v2173_v55  ;;  %v1669_v30 = vsub.f32 %v6995_v50, %v6658_v1  ;;  %4756 = vpow2.f32 %v2597_v27  ;;  %v2174_v9 = vsub.f32 0.0, %v1918_v56  ;;  %3740 = vmatprep.mubr.f32.mxu1 %v7281_v49  ;;  %v7361_v27 = vpop.f32.mrb[142].mxu0 }
 0x20b   : > { %v7350_v23 = vpop.eup %4740  ;;  %v1920_v38 = vmul.f32 %v1664_v40, %v1664_v40  ;;  %v1670_v61 = vsub.f32 %v7959_v19, %v6678_v26  ;;  %4758 = vpow2.f32 %v2599_v34  ;;  %v2175_v50 = vsub.f32 0.0, %v1919_v8  ;;  %3516 = vmatmul.mubr.f32.gmra.mrb[224].mxu0 %v7254_v53  ;;  %v3024_v49 = vpop.f32.mrb[143].mxu0 }
 0x20c   : > { %v7355_v60 = vpop.eup %4742  ;;  %v1925_v29 = vmul.f32 %v1669_v30, %v1669_v30  ;;  %v1671_v31 = vsub.f32 %v7004_v33, %v6680_v44  ;;  %4760 = vpow2.f32 %v2609_v17  ;;  %v2611_v16 = vmul.f32 1.442695, %v2174_v9  ;;  %3520 = vmatprep.mubr.f32.mxu0 %v7291_v59  ;;  %v7368_v33 = vpop.f32.mrb[142].mxu1 }
 0x20d   : > { %v2176_v55 = vsub.f32 0.0, %v1920_v38  ;;  %v1926_v51 = vmul.f32 %v1670_v61, %v1670_v61  ;;  %v2613_v56 = vmul.f32 1.442695, %v2175_v50  ;;  %v1672_v8 = vsub.f32 %v7009_v12, %v6686_v52  ;;  %3741 = vmatmul.mubr.f32.gmra.mrb[224].mxu1 %v7269_v54  ;;  %v3249_v9 = vpop.f32.mrb[143].mxu1 }
 0x20e   : > { %v7363_v48 = vpop.eup %4744  ;;  %v2181_v40 = vsub.f32 0.0, %v1925_v29  ;;  %v1927_v34 = vmul.f32 %v1671_v31, %v1671_v31  ;;  %4762 = vpow2.f32 %v2611_v16  ;;  %v1677_v28 = vsub.f32 %v7021_v63, %v6658_v1  ;;  %3745 = vmatprep.mubr.f32.mxu1 %v7306_v25  ;;  %v7383_v63 = vpop.f32.mrb[144].mxu0 }
 0x20f   : > { %v7370_v17 = vpop.eup %4746  ;;  %v2615_v30 = vmul.f32 1.442695, %v2176_v55  ;;  %v2182_v53 = vsub.f32 0.0, %v1926_v51  ;;  %4764 = vpow2.f32 %v2613_v56  ;;  %v1928_v59 = vmul.f32 %v1672_v8, %v1672_v8  ;;  %3521 = vmatmul.mubr.f32.gmra.mrb[226].mxu0 %v7286_v10  ;;  %v7390_v55 = vpop.f32.mrb[144].mxu1 }
 0x210   : > { %v7375_v38 = vpop.eup %4748  ;;  %v2625_v12 = vmul.f32 1.442695, %v2181_v40  ;;  %v2183_v19 = vsub.f32 0.0, %v1927_v34  ;;  %v1933_v50 = vmul.f32 %v1677_v28, %v1677_v28  ;;  %v1678_v29 = vsub.f32 %v7024_v18, %v6678_v26  ;;  %3525 = vmatprep.mubr.f32.mxu0 %v7318_v39  ;;  %v3029_v51 = vpop.f32.mrb[145].mxu0 }
 0x211   : > { %v7378_v61 = vpop.eup %4750  ;;  %4766 = vpow2.f32 %v2615_v30  ;;  %v2627_v43 = vmul.f32 1.442695, %v2182_v53  ;;  %v2184_v16 = vsub.f32 0.0, %v1928_v59  ;;  %v1679_v25 = vsub.f32 %v7029_v24, %v6680_v44  ;;  %3746 = vmatmul.mubr.f32.gmra.mrb[226].mxu1 %v7296_v58  ;;  %v3254_v34 = vpop.f32.mrb[145].mxu1 }
 0x212   : > { %v7385_v54 = vpop.eup %4752  ;;  %4768 = vpow2.f32 %v2625_v12  ;;  %v2629_v31 = vmul.f32 1.442695, %v2183_v19  ;;  %v2189_v18 = vsub.f32 0.0, %v1933_v50  ;;  %v1934_v10 = vmul.f32 %v1678_v29, %v1678_v29  ;;  %3750 = vmatprep.mubr.f32.mxu1 %v7328_v20 }
 0x213   : > { %v7392_v56 = vpop.eup %4754  ;;  %4770 = vpow2.f32 %v2627_v43  ;;  %v1680_v40 = vsub.f32 %v7038_v15, %v6686_v52  ;;  %v2631_v8 = vmul.f32 1.442695, %v2184_v16  ;;  %v1935_v49 = vmul.f32 %v1679_v25, %v1679_v25  ;;  %3526 = vmatmul.mubr.f32.gmra.mrb[228].mxu0 %v7311_v57  ;;  %v7405_v15 = vpop.f32.mrb[146].mxu0 }
 0x214   : > { %4772 = vpow2.f32 %v2629_v31  ;;  %v1685_v24 = vsub.f32 %v7043_v41, %v6658_v1  ;;  %v7400_v39 = vpop.eup %4756  ;;  %v2641_v30 = vmul.f32 1.442695, %v2189_v18  ;;  %v2190_v53 = vsub.f32 0.0, %v1934_v10  ;;  %3530 = vmatprep.mubr.f32.mxu0 %v7343_v35  ;;  %v7412_v20 = vpop.f32.mrb[146].mxu1 }
 0x215   : > { %v1936_v28 = vmul.f32 %v1680_v40, %v1680_v40  ;;  %v1686_v9 = vsub.f32 %v7050_v32, %v6678_v26  ;;  %v7407_v58 = vpop.eup %4758  ;;  %4774 = vpow2.f32 %v2631_v8  ;;  %v2191_v12 = vsub.f32 0.0, %v1935_v49  ;;  %v3034_v59 = vpop.f32.mrb[147].mxu0  ;;  %3751 = vmatmul.mubr.f32.gmra.mrb[228].mxu1 %v7323_v0 }
 0x216   : > { %v1941_v19 = vmul.f32 %v1685_v24, %v1685_v24  ;;  %v1687_v41 = vsub.f32 %v7052_v22, %v6680_v44  ;;  %v7414_v43 = vpop.eup %4760  ;;  %4776 = vpow2.f32 %v2641_v30  ;;  %v2643_v32 = vmul.f32 1.442695, %v2190_v53  ;;  %v3259_v29 = vpop.f32.mrb[147].mxu1  ;;  %3755 = vmatprep.mubr.f32.mxu1 %v7355_v60 }
 0x217   : > { %v2192_v57 = vsub.f32 0.0, %v1936_v28  ;;  %v1942_v50 = vmul.f32 %v1686_v9, %v1686_v9  ;;  %v2645_v31 = vmul.f32 1.442695, %v2191_v12  ;;  %v1688_v22 = vsub.f32 %v7059_v21, %v6686_v52  ;;  %3531 = vmatmul.mubr.f32.gmra.mrb[230].mxu0 %v7333_v4  ;;  %v7425_v0 = vpop.f32.mrb[148].mxu0  ;;  %v7430_v60 = vpop.f32.mrb[148].mxu1 }
 0x218   : > { %v2197_v16 = vsub.f32 0.0, %v1941_v19  ;;  %v1943_v25 = vmul.f32 %v1687_v41, %v1687_v41  ;;  %v7420_v35 = vpop.eup %4762  ;;  %4778 = vpow2.f32 %v2643_v32  ;;  %v1693_v10 = vsub.f32 %v7071_v7, %v6658_v1  ;;  %3535 = vmatprep.mubr.f32.mxu0 %v7370_v17  ;;  %v3039_v49 = vpop.f32.mrb[149].mxu0 }
 0x219   : > { %v2647_v51 = vmul.f32 1.442695, %v2192_v57  ;;  %v2198_v18 = vsub.f32 0.0, %v1942_v50  ;;  %v7427_v40 = vpop.eup %4764  ;;  %4780 = vpow2.f32 %v2645_v31  ;;  %v1944_v21 = vmul.f32 %v1688_v22, %v1688_v22  ;;  %3756 = vmatmul.mubr.f32.gmra.mrb[230].mxu1 %v7350_v23  ;;  %v3264_v53 = vpop.f32.mrb[149].mxu1  ;;  %v7963_v49 = vld [vmem:[#allocation37_spill] sm:$0xff] }
 0x21a   : > { %v2657_v34 = vmul.f32 1.442695, %v2197_v16  ;;  %v2199_v8 = vsub.f32 0.0, %v1943_v25  ;;  %v1949_v7 = vmul.f32 %v1693_v10, %v1693_v10  ;;  %v1694_v4 = vsub.f32 %v7074_v13, %v6678_v26  ;;  %3760 = vmatprep.mubr.f32.mxu1 %v7378_v61  ;;  %v7960_v13 = vld [vmem:[#allocation16_spill] sm:$0xff]  ;;  %v7447_v23 = vpop.f32.mrb[150].mxu0 }
 0x21b   : > { %v7432_v24 = vpop.eup %4766  ;;  %4782 = vpow2.f32 %v2647_v51  ;;  %v2659_v30 = vmul.f32 1.442695, %v2198_v18  ;;  %v2200_v12 = vsub.f32 0.0, %v1944_v21  ;;  %v1695_v17 = vsub.f32 %v7079_v2, %v6680_v44  ;;  %3536 = vmatmul.mubr.f32.gmra.mrb[232].mxu0 %v7363_v48  ;;  %v7961_v2 = vld [vmem:[#allocation4_spill] sm:$0xff]  ;;  %v7454_v31 = vpop.f32.mrb[150].mxu1  ;;  %v7962_v48 = vld [vmem:[#allocation23_spill] sm:$0xff] }
 0x21c   : > { %v7437_v28 = vpop.eup %4768  ;;  %4784 = vpow2.f32 %v2657_v34  ;;  %v2661_v9 = vmul.f32 1.442695, %v2199_v8  ;;  %v2205_v41 = vsub.f32 0.0, %v1949_v7  ;;  %v1950_v59 = vmul.f32 %v1694_v4, %v1694_v4  ;;  %3540 = vmatprep.mubr.f32.mxu0 %v7392_v56  ;;  %v3044_v16 = vpop.f32.mrb[151].mxu0 }
 0x21d   : > { %v7442_v19 = vpop.eup %4770  ;;  %4786 = vpow2.f32 %v2659_v30  ;;  %v1696_v32 = vsub.f32 %v7960_v13, %v6686_v52  ;;  %v2663_v50 = vmul.f32 1.442695, %v2200_v12  ;;  %v1951_v29 = vmul.f32 %v1695_v17, %v1695_v17  ;;  %3761 = vmatmul.mubr.f32.gmra.mrb[232].mxu1 %v7375_v38  ;;  %v3269_v10 = vpop.f32.mrb[151].mxu1 }
 0x21e   : > { %v7449_v57 = vpop.eup %4772  ;;  %4788 = vpow2.f32 %v2661_v9  ;;  %v1701_v61 = vsub.f32 %v7961_v2, %v6658_v1  ;;  %v2673_v25 = vmul.f32 1.442695, %v2205_v41  ;;  %v2206_v22 = vsub.f32 0.0, %v1950_v59  ;;  %3765 = vmatprep.mubr.f32.mxu1 %v7407_v58  ;;  %v7465_v9 = vpop.f32.mrb[152].mxu0  ;;  %v7964_v41 = vld [vmem:[#allocation3_spill] sm:$0xff] }
 0x21f   : > { %v1952_v51 = vmul.f32 %v1696_v32, %v1696_v32  ;;  %v1702_v18 = vsub.f32 %v7962_v48, %v6678_v26  ;;  %v4775_v34 = vpop.eup %4774  ;;  %4790 = vpow2.f32 %v2663_v50  ;;  %v2207_v8 = vsub.f32 0.0, %v1951_v29  ;;  %3541 = vmatmul.mubr.f32.gmra.mrb[234].mxu0 %v7385_v54  ;;  %v7470_v13 = vpop.f32.mrb[152].mxu1 }
 0x220   : > { %v1957_v21 = vmul.f32 %v1701_v61, %v1701_v61  ;;  %v1703_v30 = vsub.f32 %v7963_v49, %v6680_v44  ;;  %v7462_v56 = vpop.eup %4776  ;;  %4792 = vpow2.f32 %v2673_v25  ;;  %v2675_v7 = vmul.f32 1.442695, %v2206_v22  ;;  %3545 = vmatprep.mubr.f32.mxu0 %v7420_v35  ;;  %v3049_v58 = vpop.f32.mrb[153].mxu0  ;;  %v7966_v49 = vld [vmem:[#allocation5_spill] sm:$0xff] }
 0x221   : > { %v2208_v4 = vsub.f32 0.0, %v1952_v51  ;;  %v1958_v53 = vmul.f32 %v1702_v18, %v1702_v18  ;;  %v2677_v38 = vmul.f32 1.442695, %v2207_v8  ;;  %v1704_v59 = vsub.f32 %v7964_v41, %v6686_v52  ;;  %3766 = vmatmul.mubr.f32.gmra.mrb[234].mxu1 %v7400_v39  ;;  %v3274_v2 = vpop.f32.mrb[153].mxu1  ;;  %v7965_v18 = vld [vmem:[#allocation6_spill] sm:$0xff] }
 0x222   : > { %v2213_v12 = vsub.f32 0.0, %v1957_v21  ;;  %v1959_v17 = vmul.f32 %v1703_v30, %v1703_v30  ;;  %v4779_v32 = vpop.eup %4778  ;;  %4794 = vpow2.f32 %v2675_v7  ;;  %v1709_v54 = vsub.f32 %v7121_v36, %v6658_v1  ;;  %3770 = vmatprep.mubr.f32.mxu1 %v7432_v24  ;;  %v7481_v36 = vpop.f32.mrb[154].mxu0  ;;  %v7968_v2 = vld [vmem:[#allocation8_spill] sm:$0xff] }
 0x223   : > { %v2679_v50 = vmul.f32 1.442695, %v2208_v4  ;;  %v2214_v29 = vsub.f32 0.0, %v1958_v53  ;;  %v7475_v61 = vpop.eup %4780  ;;  %4796 = vpow2.f32 %v2677_v38  ;;  %v1960_v22 = vmul.f32 %v1704_v59, %v1704_v59  ;;  %3546 = vmatmul.mubr.f32.gmra.mrb[236].mxu0 %v7414_v43  ;;  %v7488_v24 = vpop.f32.mrb[154].mxu1  ;;  %v7967_v43 = vld [vmem:[#allocation17_spill] sm:$0xff] }
 0x224   : > { %v2689_v16 = vmul.f32 1.442695, %v2213_v12  ;;  %v2215_v25 = vsub.f32 0.0, %v1959_v17  ;;  %v1965_v48 = vmul.f32 %v1709_v54, %v1709_v54  ;;  %v1710_v10 = vsub.f32 %v7965_v18, %v6678_v26  ;;  %3550 = vmatprep.mubr.f32.mxu0 %v7442_v19  ;;  %v3054_v7 = vpop.f32.mrb[155].mxu0  ;;  %v3279_v17 = vpop.f32.mrb[155].mxu1 }
 0x225   : > { %v4783_v35 = vpop.eup %4782  ;;  %4798 = vpow2.f32 %v2679_v50  ;;  %v2691_v51 = vmul.f32 1.442695, %v2214_v29  ;;  %v2216_v21 = vsub.f32 0.0, %v1960_v22  ;;  %v1711_v30 = vsub.f32 %v7966_v49, %v6680_v44  ;;  %3771 = vmatmul.mubr.f32.gmra.mrb[236].mxu1 %v7427_v40 }
 0x226   : > { %v7483_v39 = vpop.eup %4784  ;;  %4800 = vpow2.f32 %v2689_v16  ;;  %v2693_v8 = vmul.f32 1.442695, %v2215_v25  ;;  %v2221_v53 = vsub.f32 0.0, %v1965_v48  ;;  %v1966_v38 = vmul.f32 %v1710_v10, %v1710_v10  ;;  %3775 = vmatprep.mubr.f32.mxu1 %v4775_v34  ;;  %v7500_v25 = vpop.f32.mrb[156].mxu0  ;;  %v7969_v48 = vld [vmem:[#allocation7_spill] sm:$0xff] }
 0x227   : > { %v4787_v4 = vpop.eup %4786  ;;  %4802 = vpow2.f32 %v2691_v51  ;;  %v1712_v12 = vsub.f32 %v7967_v43, %v6686_v52  ;;  %v2695_v59 = vmul.f32 1.442695, %v2216_v21  ;;  %v1967_v58 = vmul.f32 %v1711_v30, %v1711_v30  ;;  %3551 = vmatmul.mubr.f32.gmra.mrb[238].mxu0 %v7437_v28  ;;  %v3059_v34 = vpop.f32.mrb[157].mxu0 }
 0x228   : > { %v7493_v41 = vpop.eup %4788  ;;  %4804 = vpow2.f32 %v2693_v8  ;;  %v1717_v19 = vsub.f32 %v7141_v11, %v6658_v1  ;;  %v2705_v50 = vmul.f32 1.442695, %v2221_v53  ;;  %v2222_v29 = vsub.f32 0.0, %v1966_v38  ;;  %3555 = vmatprep.mubr.f32.mxu0 %v4779_v32  ;;  %v7504_v11 = vpop.f32.mrb[156].mxu1  ;;  %v7970_v38 = vld [vmem:[#allocation10_spill] sm:$0xff] }
 0x229   : > { %v1968_v54 = vmul.f32 %v1712_v12, %v1712_v12  ;;  %v1718_v16 = vsub.f32 %v7968_v2, %v6678_v26  ;;  %v4791_v40 = vpop.eup %4790  ;;  %4806 = vpow2.f32 %v2695_v59  ;;  %v2223_v22 = vsub.f32 0.0, %v1967_v58  ;;  %3776 = vmatmul.mubr.f32.gmra.mrb[238].mxu1 %v7449_v57  ;;  %v3284_v28 = vpop.f32.mrb[157].mxu1 }
 0x22a   : > { %v1973_v51 = vmul.f32 %v1717_v19, %v1717_v19  ;;  %v1719_v18 = vsub.f32 %v7969_v48, %v6680_v44  ;;  %v7506_v10 = vpop.eup %4792  ;;  %4808 = vpow2.f32 %v2705_v50  ;;  %v2707_v8 = vmul.f32 1.442695, %v2222_v29  ;;  %3780 = vmatprep.mubr.f32.mxu1 %v4783_v35  ;;  %v7514_v58 = vpop.f32.mrb[158].mxu0 }
 0x22b   : > { %v2224_v21 = vsub.f32 0.0, %v1968_v54  ;;  %v1974_v49 = vmul.f32 %v1718_v16, %v1718_v16  ;;  %v2709_v30 = vmul.f32 1.442695, %v2223_v22  ;;  %v1720_v43 = vsub.f32 %v7970_v38, %v6686_v52  ;;  %3556 = vmatmul.mubr.f32.gmra.mrb[240].mxu0 %v7462_v56  ;;  %v7518_v54 = vpop.f32.mrb[158].mxu1  ;;  %v3064_v35 = vpop.f32.mrb[159].mxu0 }
 0x22c   : > { %v2229_v7 = vsub.f32 0.0, %v1973_v51  ;;  %v1975_v53 = vmul.f32 %v1719_v18, %v1719_v18  ;;  %v4795_v32 = vpop.eup %4794  ;;  %4810 = vpow2.f32 %v2707_v8  ;;  %v1725_v59 = vsub.f32 %v7169_v47, %v6658_v1  ;;  %3560 = vmatprep.mubr.f32.mxu0 %v4787_v4  ;;  %v7971_v47 = vld [vmem:[#allocation9_spill] sm:$0xff]  ;;  %v3289_v56 = vpop.f32.mrb[159].mxu1  ;;  %v7972_v4 = vld [vmem:[#allocation12_spill] sm:$0xff] }
 0x22d   : > { %v2711_v12 = vmul.f32 1.442695, %v2224_v21  ;;  %v2230_v17 = vsub.f32 0.0, %v1974_v49  ;;  %v7516_v57 = vpop.eup %4796  ;;  %4812 = vpow2.f32 %v2709_v30  ;;  %v1976_v29 = vmul.f32 %v1720_v43, %v1720_v43  ;;  %3781 = vmatmul.mubr.f32.gmra.mrb[240].mxu1 %v7475_v61  ;;  %v7973_v30 = vld [vmem:[#allocation11_spill] sm:$0xff]  ;;  %v7975_v35 = vld [vmem:[#allocation13_spill] sm:$0xff]  ;;  %v7976_v56 = vld [vmem:[#allocation2_spill] sm:$0xff] }
 0x22e   : > { %v2721_v19 = vmul.f32 1.442695, %v2229_v7  ;;  %v2231_v50 = vsub.f32 0.0, %v1975_v53  ;;  %v1981_v22 = vmul.f32 %v1725_v59, %v1725_v59  ;;  %v1726_v51 = vsub.f32 %v7971_v47, %v6678_v26  ;;  %3785 = vmatprep.mubr.f32.mxu1 %v4791_v40  ;;  %v7530_v61 = vpop.f32.mrb[160].mxu0 }
 0x22f   : > { %v4799_v2 = vpop.eup %4798  ;;  %4814 = vpow2.f32 %v2711_v12  ;;  %v2723_v16 = vmul.f32 1.442695, %v2230_v17  ;;  %v2232_v34 = vsub.f32 0.0, %v1976_v29  ;;  %v1727_v8 = vsub.f32 %v7972_v4, %v6680_v44  ;;  %3561 = vmatmul.mubr.f32.gmra.mrb[242].mxu0 %v7483_v39  ;;  %v7974_v12 = vld [vmem:[#allocation14_spill] sm:$0xff]  ;;  %v7536_v40 = vpop.f32.mrb[160].mxu1 }
 0x230   : > { %v7523_v48 = vpop.eup %4800  ;;  %4816 = vpow2.f32 %v2721_v19  ;;  %v2725_v18 = vmul.f32 1.442695, %v2231_v50  ;;  %v2237_v49 = vsub.f32 0.0, %v1981_v22  ;;  %v1982_v28 = vmul.f32 %v1726_v51, %v1726_v51  ;;  %3565 = vmatprep.mubr.f32.mxu0 %v4795_v32  ;;  %v3069_v59 = vpop.f32.mrb[161].mxu0 }
 0x231   : > { %v4803_v21 = vpop.eup %4802  ;;  %4818 = vpow2.f32 %v2723_v16  ;;  %v1728_v7 = vsub.f32 %v7973_v30, %v6686_v52  ;;  %v2727_v38 = vmul.f32 1.442695, %v2232_v34  ;;  %v1983_v43 = vmul.f32 %v1727_v8, %v1727_v8  ;;  %3786 = vmatmul.mubr.f32.gmra.mrb[242].mxu1 %v7493_v41  ;;  %v3294_v16 = vpop.f32.mrb[161].mxu1 }
 0x232   : > { %v7532_v53 = vpop.eup %4804  ;;  %4820 = vpow2.f32 %v2725_v18  ;;  %v1733_v17 = vsub.f32 %v7974_v12, %v6658_v1  ;;  %v2737_v19 = vmul.f32 1.442695, %v2237_v49  ;;  %v2238_v50 = vsub.f32 0.0, %v1982_v28  ;;  %3790 = vmatprep.mubr.f32.mxu1 %v4799_v2  ;;  %v7544_v8 = vpop.f32.mrb[162].mxu0  ;;  %v7977_v28 = vld [vmem:[#allocation18_spill] sm:$0xff]  ;;  %v7978_v12 = vld [vmem:[#allocation19_spill] sm:$0xff] }
 0x233   : > { %v1984_v29 = vmul.f32 %v1728_v7, %v1728_v7  ;;  %v1734_v39 = vsub.f32 %v7975_v35, %v6678_v26  ;;  %v4807_v22 = vpop.eup %4806  ;;  %4822 = vpow2.f32 %v2727_v38  ;;  %v2239_v47 = vsub.f32 0.0, %v1983_v43  ;;  %3566 = vmatmul.mubr.f32.gmra.mrb[244].mxu0 %v7506_v10  ;;  %v3297_v7 = vpop.f32.mrb[162].mxu1 }
 0x234   : > { %v1989_v51 = vmul.f32 %v1733_v17, %v1733_v17  ;;  %v1735_v1 = vsub.f32 %v7976_v56, %v6680_v44  ;;  %v4809_v32 = vpop.eup %4808  ;;  %4824 = vpow2.f32 %v2737_v19  ;;  %v2739_v18 = vmul.f32 1.442695, %v2238_v50  ;;  %3570 = vmatprep.mubr.f32.mxu0 %v4803_v21  ;;  %v3074_v38 = vpop.f32.mrb[163].mxu0  ;;  %v7979_v17 = vld [vmem:[#allocation20_spill] sm:$0xff] }
 0x235   : > { %v2240_v34 = vsub.f32 0.0, %v1984_v29  ;;  %v1990_v4 = vmul.f32 %v1734_v39, %v1734_v39  ;;  %v2741_v26 = vmul.f32 1.442695, %v2239_v47  ;;  %v1736_v30 = vsub.f32 %v7977_v28, %v6686_v52  ;;  %3791 = vmatmul.mubr.f32.gmra.mrb[244].mxu1 %v7516_v57  ;;  %v3299_v10 = vpop.f32.mrb[163].mxu1  ;;  %v7980_v39 = vld [vmem:[#allocation21_spill] sm:$0xff] }
 0x236   : > { %v2245_v41 = vsub.f32 0.0, %v1989_v51  ;;  %v1991_v49 = vmul.f32 %v1735_v1, %v1735_v1  ;;  %v4811_v44 = vpop.eup %4810  ;;  %4826 = vpow2.f32 %v2739_v18  ;;  %v7550_v59 = vadd.f32 %v7979_v17, %v7978_v12  ;;  %3795 = vmatprep.mubr.f32.mxu1 %v4807_v22  ;;  %v3077_v57 = vpop.f32.mrb[164].mxu0  ;;  %v7981_v1 = vld [vmem:[#allocation22_spill] sm:$0xff]  ;;  %v7982_v18 = vld [vmem:[#allocation24_spill] sm:$0xff] }
 0x237   : > { %v2743_v2 = vmul.f32 1.442695, %v2240_v34  ;;  %v2246_v43 = vsub.f32 0.0, %v1990_v4  ;;  %v4813_v19 = vpop.eup %4812  ;;  %4828 = vpow2.f32 %v2741_v26  ;;  %v1992_v35 = vmul.f32 %v1736_v30, %v1736_v30  ;;  %3571 = vmatmul.mubr.f32.gmra.mrb[246].mxu0 %v7523_v48  ;;  %v3302_v34 = vpop.f32.mrb[164].mxu1 }
 0x238   : > { %v2753_v50 = vmul.f32 1.442695, %v2245_v41  ;;  %v2247_v29 = vsub.f32 0.0, %v1991_v49  ;;  %v7555_v16 = vadd.f32 %v7980_v39, %v7239_v42  ;;  %v7559_v47 = vadd.f32 %v7264_v5, %v7261_v14  ;;  %3575 = vmatprep.mubr.f32.mxu0 %v4811_v44  ;;  %v3079_v4 = vpop.f32.mrb[165].mxu0  ;;  %v3304_v48 = vpop.f32.mrb[165].mxu1 }
 0x239   : > { %v4815_v52 = vpop.eup %4814  ;;  %4830 = vpow2.f32 %v2743_v2  ;;  %v2755_v21 = vmul.f32 1.442695, %v2246_v43  ;;  %v2248_v56 = vsub.f32 0.0, %v1992_v35  ;;  %v7564_v22 = vadd.f32 %v7982_v18, %v7981_v1  ;;  %3796 = vmatmul.mubr.f32.gmra.mrb[246].mxu1 %v7532_v53 }
 0x23a   : > { %v4817_v51 = vpop.eup %4816  ;;  %4832 = vpow2.f32 %v2753_v50  ;;  %v7568_v42 = vadd.f32 %v7304_v45, %v7301_v3  ;;  %v7572_v14 = vadd.f32 %v7326_v62, %v7321_v37  ;;  %v7576_v5 = vadd.f32 %v7348_v6, %v7341_v46  ;;  %3800 = vmatprep.mubr.f32.mxu1 %v4815_v52  ;;  %v3082_v6 = vpop.f32.mrb[166].mxu0 }
 0x23b   : > { %v4819_v26 = vpop.eup %4818  ;;  %4834 = vpow2.f32 %v2755_v21  ;;  %v2757_v49 = vmul.f32 1.442695, %v2247_v29  ;;  %v2759_v28 = vmul.f32 1.442695, %v2248_v56  ;;  %v7581_v30 = vadd.f32 %v7368_v33, %v7361_v27  ;;  %3576 = vmatmul.mubr.f32.gmra.mrb[248].mxu0 %v4809_v32 }
 0x23c   : > { %v4821_v41 = vpop.eup %4820  ;;  %v7585_v3 = vadd.f32 %v7390_v55, %v7383_v63  ;;  %v7589_v45 = vadd.f32 %v7412_v20, %v7405_v15  ;;  %v7593_v37 = vadd.f32 %v7430_v60, %v7425_v0  ;;  %v7597_v62 = vadd.f32 %v7454_v31, %v7447_v23  ;;  %3580 = vmatprep.mubr.f32.mxu0 %v4819_v26  ;;  %v3307_v15 = vpop.f32.mrb[166].mxu1 }
 0x23d   : > { %v7601_v46 = vadd.f32 %v7470_v13, %v7465_v9  ;;  %v4823_v27 = vpop.eup %4822  ;;  %4836 = vpow2.f32 %v2759_v28  ;;  %v7605_v33 = vadd.f32 %v7488_v24, %v7481_v36  ;;  %v7609_v63 = vadd.f32 %v7504_v11, %v7500_v25  ;;  %v3084_v20 = vpop.f32.mrb[167].mxu0  ;;  %3801 = vmatmul.mubr.f32.gmra.mrb[248].mxu1 %v4813_v19 }
 0x23e   : > { %v7613_v55 = vadd.f32 %v7518_v54, %v7514_v58  ;;  %v4825_v0 = vpop.eup %4824  ;;  %v7617_v60 = vadd.f32 %v7536_v40, %v7530_v61  ;;  %v7620_v23 = vadd.f32 %v3297_v7, %v7544_v8  ;;  %v7622_v31 = vadd.f32 %v3302_v34, %v3077_v57  ;;  %v3309_v13 = vpop.f32.mrb[167].mxu1  ;;  %3805 = vmatprep.mubr.f32.mxu1 %v4823_v27 }
 0x23f   : > { %v7624_v9 = vadd.f32 %v3307_v15, %v3082_v6  ;;  %4838 = vpow2.f32 %v2757_v49  ;;  %3581 = vmatmul.mubr.f32.gmra.mrb[250].mxu0 %v4817_v51  ;;  %v3087_v24 = vpop.f32.mrb[168].mxu0  ;;  %v3312_v11 = vpop.f32.mrb[168].mxu1 }
 0x240   : > { %v4827_v36 = vpop.eup %4826  ;;  %v3089_v58 = vpop.f32.mrb[169].mxu0  ;;  %v7626_v61 = vadd.f32 %v3312_v11, %v3087_v24 }
 0x241   : > { %v4829_v25 = vpop.eup %4828  ;;  %3585 = vmatprep.mubr.f32.mxu0 %v4827_v36  ;;  %3806 = vmatmul.mubr.f32.gmra.mrb[250].mxu1 %v4821_v41  ;;  %v3314_v53 = vpop.f32.mrb[169].mxu1 }
 0x242   : > { %v3092_v8 = vpop.f32.mrb[170].mxu0 }
 0x243   : > { %v4831_v54 = vpop.eup %4830  ;;  %3586 = vmatmul.mubr.f32.gmra.mrb[252].mxu0 %v4825_v0  ;;  %v3317_v7 = vpop.f32.mrb[170].mxu1 }
 0x244   : > { %v4833_v40 = vpop.eup %4832  ;;  %3810 = vmatprep.mubr.f32.mxu1 %v4831_v54  ;;  %v3094_v38 = vpop.f32.mrb[171].mxu0  ;;  %v7628_v44 = vadd.f32 %v3317_v7, %v3092_v8 }
 0x245   : > { %v4835_v32 = vpop.eup %4834  ;;  %3811 = vmatmul.mubr.f32.gmra.mrb[252].mxu1 %v4829_v25  ;;  %v3319_v2 = vpop.f32.mrb[171].mxu1 }
 0x246   : > { %3590 = vmatprep.mubr.f32.mxu0 %v4835_v32  ;;  %v3097_v12 = vpop.f32.mrb[172].mxu0 }
 0x247   : > { %v4837_v43 = vpop.eup %4836  ;;  %3591 = vmatmul.mubr.f32.gmra.mrb[254].mxu0 %v4833_v40  ;;  %v3099_v19 = vpop.f32.mrb[173].mxu0 }
 0x248   : > { %3815 = vmatprep.mubr.f32.mxu1 %v4837_v43 }
 0x249   : > { %v4839_v17 = vpop.eup %4838  ;;  %v3322_v10 = vpop.f32.mrb[172].mxu1 }
 0x24a   : > { %3816 = vmatmul.mubr.f32.gmra.mrb[254].mxu1 %v4839_v17  ;;  %v7630_v50 = vadd.f32 %v3322_v10, %v3097_v12  ;;  %v3324_v29 = vpop.f32.mrb[173].mxu1 }
 0x24b   : > { %v3102_v35 = vpop.f32.mrb[174].mxu0 }
 0x24c   : > { %v3104_v21 = vpop.f32.mrb[175].mxu0 }
 0x24d   : > { %v3327_v52 = vpop.f32.mrb[174].mxu1 }
 0x24e   : > { %v7632_v39 = vadd.f32 %v3327_v52, %v3102_v35  ;;  %v3329_v57 = vpop.f32.mrb[175].mxu1 }
 0x250   : > { %v3107_v51 = vpop.f32.mrb[176].mxu0 }
 0x251   : > { %v3109_v56 = vpop.f32.mrb[177].mxu0 }
 0x253   : > { %v3332_v1 = vpop.f32.mrb[176].mxu1 }
 0x254   : > { %v7634_v18 = vadd.f32 %v3332_v1, %v3107_v51  ;;  %v3334_v34 = vpop.f32.mrb[177].mxu1 }
 0x255   : > { %v3112_v4 = vpop.f32.mrb[178].mxu0  ;;  %v2761_v34 = vld [vmem:[%s7654_s26] sm:$0xff] }
 0x256   : > { %v3114_v26 = vpop.f32.mrb[179].mxu0 }
 0x259   : > { %v3337_v48 = vpop.f32.mrb[178].mxu1 }
 0x25a   : > { %v7636_v41 = vadd.f32 %v3337_v48, %v3112_v4  ;;  %v3339_v49 = vpop.f32.mrb[179].mxu1 }
 0x25d   : > { %v3117_v28 = vpop.f32.mrb[180].mxu0 }
 0x25e   : > { %v3342_v6 = vpop.f32.mrb[180].mxu1  ;;  %v3119_v27 = vpop.f32.mrb[181].mxu0 }
 0x25f   : > { %v7638_v15 = vadd.f32 %v3342_v6, %v3117_v28  ;;  %v3344_v20 = vpop.f32.mrb[181].mxu1 }
 0x260   : > { %v2762_v20 = vld [vmem:[%s7654_s26 + $0x8] sm:$0xff] }
 0x261   : > { %v3122_v0 = vpop.f32.mrb[182].mxu0 }
 0x262   : > { %v3124_v13 = vpop.f32.mrb[183].mxu0 }
 0x263   : > { %v3347_v36 = vpop.f32.mrb[182].mxu1 }
 0x264   : > { %v7640_v24 = vadd.f32 %v3347_v36, %v3122_v0  ;;  %v3349_v25 = vpop.f32.mrb[183].mxu1 }
 0x266   : > { %v3127_v11 = vpop.f32.mrb[184].mxu0 }
 0x267   : > { %v3129_v58 = vpop.f32.mrb[185].mxu0 }
 0x268   : > { %v3352_v54 = vpop.f32.mrb[184].mxu1 }
 0x269   : > { %v7642_v53 = vadd.f32 %v3352_v54, %v3127_v11  ;;  %v3354_v40 = vpop.f32.mrb[185].mxu1  ;;  %v2763_v54 = vld [vmem:[%s7654_s26 + $0x10] sm:$0xff] }
 0x26a   : > { %v3132_v32 = vpop.f32.mrb[186].mxu0 }
 0x26b   : > { %v3134_v8 = vpop.f32.mrb[187].mxu0 }
 0x26e   : > { %v3357_v7 = vpop.f32.mrb[186].mxu1 }
 0x26f   : > { %v7644_v38 = vadd.f32 %v3357_v7, %v3132_v32  ;;  %v3359_v2 = vpop.f32.mrb[187].mxu1 }
 0x270   : > { %v3137_v43 = vpop.f32.mrb[188].mxu0 }
 0x271   : > { %v3139_v12 = vpop.f32.mrb[189].mxu0 }
 0x272   : > { %v3362_v17 = vpop.f32.mrb[188].mxu1  ;;  %v2764_v12 = vld [vmem:[%s7654_s26 + $0x18] sm:$0xff] }
 0x273   : > { %v7646_v10 = vadd.f32 %v3362_v17, %v3137_v43  ;;  %v3364_v19 = vpop.f32.mrb[189].mxu1 }
 0x274   : > { %v3142_v29 = vpop.f32.mrb[190].mxu0 }
 0x275   : > { %v3144_v35 = vpop.f32.mrb[191].mxu0 }
 0x278   : > { %v3367_v52 = vpop.f32.mrb[190].mxu1 }
 0x279   : > { %v7648_v21 = vadd.f32 %v3367_v52, %v3142_v29  ;;  %v3369_v57 = vpop.f32.mrb[191].mxu1 }
 0x29e   : > { %v3437_v51 = vpop.f32.mrb[192].mxu0 }
 0x29f   : > { %v3438_v56 = vadd.f32 %v3437_v51, %v7550_v59  ;;  %v3439_v1 = vpop.f32.mrb[193].mxu0  ;;  %v2765_v51 = vld [vmem:[%s7654_s26 + $0x20] sm:$0xff] }
 0x2a0   : > { %v3662_v4 = vpop.f32.mrb[192].mxu1 }
 0x2a1   : > { %v3663_v26 = vadd.f32 %v3662_v4, %v3438_v56  ;;  %v3664_v48 = vpop.f32.mrb[193].mxu1 }
 0x2a2   : > { %v3442_v49 = vpop.f32.mrb[194].mxu0 }
 0x2a3   : > { %v3821_v28 = vadd.f32 %v3663_v26, %v2761_v34  ;;  %v3443_v6 = vadd.f32 %v3442_v49, %v7555_v16  ;;  %v3444_v27 = vpop.f32.mrb[195].mxu0  ;;  %v2766_v49 = vld [vmem:[%s7654_s26 + $0x28] sm:$0xff] }
 0x2a4   : > { %v3667_v59 = vpop.f32.mrb[194].mxu1 }
 0x2a5   : > { %3853 = vst.msk [vmem:[%s7662_s15] sm:$0xff] %vm314_vm0, %v3821_v28  ;;  %v3668_v0 = vadd.f32 %v3667_v59, %v3443_v6  ;;  %v3669_v13 = vpop.f32.mrb[195].mxu1 }
 0x2a6   : > { %v3447_v36 = vpop.f32.mrb[196].mxu0  ;;  %v2767_v13 = vld [vmem:[%s7654_s26 + $0x30] sm:$0xff] }
 0x2a7   : > { %v3822_v25 = vadd.f32 %v3668_v0, %v2762_v20  ;;  %v3448_v11 = vadd.f32 %v3447_v36, %v7559_v47  ;;  %v3449_v58 = vpop.f32.mrb[197].mxu0 }
 0x2a8   : > { %v3672_v40 = vpop.f32.mrb[196].mxu1 }
 0x2a9   : > { %3854 = vst.msk [vmem:[%s7662_s15 + $0x8] sm:$0xff] %vm314_vm0, %v3822_v25  ;;  %v3673_v16 = vadd.f32 %v3672_v40, %v3448_v11  ;;  %v3674_v32 = vpop.f32.mrb[197].mxu1 }
 0x2aa   : > { %v3452_v8 = vpop.f32.mrb[198].mxu0 }
 0x2ab   : > { %v3823_v7 = vadd.f32 %v3673_v16, %v2763_v54  ;;  %v3453_v2 = vadd.f32 %v3452_v8, %v7564_v22  ;;  %v3454_v43 = vpop.f32.mrb[199].mxu0  ;;  %v2768_v16 = vld [vmem:[%s7654_s26 + $0x38] sm:$0xff] }
 0x2ac   : > { %v3677_v17 = vpop.f32.mrb[198].mxu1 }
 0x2ad   : > { %3855 = vst.msk [vmem:[%s7662_s15 + $0x10] sm:$0xff] %vm314_vm0, %v3823_v7  ;;  %v3678_v47 = vadd.f32 %v3677_v17, %v3453_v2  ;;  %v3679_v19 = vpop.f32.mrb[199].mxu1  ;;  %v2769_v17 = vld [vmem:[%s7654_s26 + $0x40] sm:$0xff] }
 0x2ae   : > { %v3457_v29 = vpop.f32.mrb[200].mxu0 }
 0x2af   : > { %v3824_v35 = vadd.f32 %v3678_v47, %v2764_v12  ;;  %v3458_v52 = vadd.f32 %v3457_v29, %v7568_v42  ;;  %v3459_v57 = vpop.f32.mrb[201].mxu0 }
 0x2b0   : > { %v3682_v56 = vpop.f32.mrb[200].mxu1 }
 0x2b1   : > { %3856 = vst.msk [vmem:[%s7662_s15 + $0x18] sm:$0xff] %vm314_vm0, %v3824_v35  ;;  %v3683_v22 = vadd.f32 %v3682_v56, %v3458_v52  ;;  %v3684_v1 = vpop.f32.mrb[201].mxu1 }
 0x2b2   : > { %v3462_v34 = vpop.f32.mrb[202].mxu0 }
 0x2b3   : > { %v3825_v4 = vadd.f32 %v3683_v22, %v2765_v51  ;;  %v3463_v26 = vadd.f32 %v3462_v34, %v7572_v14  ;;  %v3464_v48 = vpop.f32.mrb[203].mxu0  ;;  %v2770_v51 = vld [vmem:[%s7654_s26 + $0x48] sm:$0xff] }
 0x2b4   : > { %v3687_v28 = vpop.f32.mrb[202].mxu1  ;;  %v2771_v48 = vld [vmem:[%s7654_s26 + $0x50] sm:$0xff] }
 0x2b5   : > { %3857 = vst.msk [vmem:[%s7662_s15 + $0x20] sm:$0xff] %vm314_vm0, %v3825_v4  ;;  %v3688_v42 = vadd.f32 %v3687_v28, %v3463_v26  ;;  %v3689_v6 = vpop.f32.mrb[203].mxu1 }
 0x2b6   : > { %v3467_v27 = vpop.f32.mrb[204].mxu0 }
 0x2b7   : > { %v3826_v20 = vadd.f32 %v3688_v42, %v2766_v49  ;;  %v3468_v59 = vadd.f32 %v3467_v27, %v7576_v5  ;;  %v3469_v0 = vpop.f32.mrb[205].mxu0 }
 0x2b8   : > { %v3692_v36 = vpop.f32.mrb[204].mxu1 }
 0x2b9   : > { %3858 = vst.msk [vmem:[%s7662_s15 + $0x28] sm:$0xff] %vm314_vm0, %v3826_v20  ;;  %v3693_v14 = vadd.f32 %v3692_v36, %v3468_v59  ;;  %v3694_v25 = vpop.f32.mrb[205].mxu1  ;;  %v2772_v59 = vld [vmem:[%s7654_s26 + $0x58] sm:$0xff] }
 0x2ba   : > { %v3472_v11 = vpop.f32.mrb[206].mxu0 }
 0x2bb   : > { %v3827_v58 = vadd.f32 %v3693_v14, %v2767_v13  ;;  %v3473_v54 = vadd.f32 %v3472_v11, %v7581_v30  ;;  %v3474_v40 = vpop.f32.mrb[207].mxu0 }
 0x2bc   : > { %v3697_v32 = vpop.f32.mrb[206].mxu1 }
 0x2bd   : > { %3859 = vst.msk [vmem:[%s7662_s15 + $0x30] sm:$0xff] %vm314_vm0, %v3827_v58  ;;  %v3698_v5 = vadd.f32 %v3697_v32, %v3473_v54  ;;  %v3699_v8 = vpop.f32.mrb[207].mxu1  ;;  %v2773_v58 = vld [vmem:[%s7654_s26 + $0x60] sm:$0xff] }
 0x2be   : > { %v3477_v7 = vpop.f32.mrb[208].mxu0 }
 0x2bf   : > { %v3828_v2 = vadd.f32 %v3698_v5, %v2768_v16  ;;  %v3478_v43 = vadd.f32 %v3477_v7, %v7585_v3  ;;  %v3479_v12 = vpop.f32.mrb[209].mxu0  ;;  %v2774_v7 = vld [vmem:[%s7654_s26 + $0x68] sm:$0xff] }
 0x2c0   : > { %v3702_v47 = vpop.f32.mrb[208].mxu1 }
 0x2c1   : > { %3860 = vst.msk [vmem:[%s7662_s15 + $0x38] sm:$0xff] %vm314_vm0, %v3828_v2  ;;  %v3703_v30 = vadd.f32 %v3702_v47, %v3478_v43  ;;  %v3704_v19 = vpop.f32.mrb[209].mxu1 }
 0x2c2   : > { %v3482_v29 = vpop.f32.mrb[210].mxu0  ;;  %v2775_v19 = vld [vmem:[%s7654_s26 + $0x70] sm:$0xff] }
 0x2c3   : > { %v3829_v35 = vadd.f32 %v3703_v30, %v2769_v17  ;;  %v3483_v52 = vadd.f32 %v3482_v29, %v7589_v45  ;;  %v3484_v57 = vpop.f32.mrb[211].mxu0 }
 0x2c4   : > { %v3707_v56 = vpop.f32.mrb[210].mxu1 }
 0x2c5   : > { %3861 = vst.msk [vmem:[%s7662_s15 + $0x40] sm:$0xff] %vm314_vm0, %v3829_v35  ;;  %v3708_v3 = vadd.f32 %v3707_v56, %v3483_v52  ;;  %v3709_v22 = vpop.f32.mrb[211].mxu1 }
 0x2c6   : > { %v3487_v1 = vpop.f32.mrb[212].mxu0 }
 0x2c7   : > { %v3830_v34 = vadd.f32 %v3708_v3, %v2770_v51  ;;  %v3488_v4 = vadd.f32 %v3487_v1, %v7593_v37  ;;  %v3489_v26 = vpop.f32.mrb[213].mxu0  ;;  %v2776_v3 = vld [vmem:[%s7654_s26 + $0x78] sm:$0xff] }
 0x2c8   : > { %v3712_v49 = vpop.f32.mrb[212].mxu1 }
 0x2c9   : > { %3862 = vst.msk [vmem:[%s7662_s15 + $0x48] sm:$0xff] %vm314_vm0, %v3830_v34  ;;  %v3713_v45 = vadd.f32 %v3712_v49, %v3488_v4  ;;  %v3714_v28 = vpop.f32.mrb[213].mxu1  ;;  %v2777_v49 = vld [vmem:[%s7654_s26 + $0x80] sm:$0xff] }
 0x2ca   : > { %v3492_v42 = vpop.f32.mrb[214].mxu0 }
 0x2cb   : > { %v3831_v6 = vadd.f32 %v3713_v45, %v2771_v48  ;;  %v3493_v27 = vadd.f32 %v3492_v42, %v7597_v62  ;;  %v3494_v20 = vpop.f32.mrb[215].mxu0 }
 0x2cc   : > { %v3717_v0 = vpop.f32.mrb[214].mxu1 }
 0x2cd   : > { %3863 = vst.msk [vmem:[%s7662_s15 + $0x50] sm:$0xff] %vm314_vm0, %v3831_v6  ;;  %v3718_v37 = vadd.f32 %v3717_v0, %v3493_v27  ;;  %v3719_v13 = vpop.f32.mrb[215].mxu1 }
 0x2ce   : > { %v3497_v36 = vpop.f32.mrb[216].mxu0 }
 0x2cf   : > { %v3832_v14 = vadd.f32 %v3718_v37, %v2772_v59  ;;  %v3498_v25 = vadd.f32 %v3497_v36, %v7601_v46  ;;  %v3499_v11 = vpop.f32.mrb[217].mxu0  ;;  %v2778_v59 = vld [vmem:[%s7654_s26 + $0x88] sm:$0xff] }
 0x2d0   : > { %v3722_v54 = vpop.f32.mrb[216].mxu1  ;;  %v2779_v11 = vld [vmem:[%s7654_s26 + $0x90] sm:$0xff] }
 0x2d1   : > { %3864 = vst.msk [vmem:[%s7662_s15 + $0x58] sm:$0xff] %vm314_vm0, %v3832_v14  ;;  %v3723_v62 = vadd.f32 %v3722_v54, %v3498_v25  ;;  %v3724_v40 = vpop.f32.mrb[217].mxu1 }
 0x2d2   : > { %v3502_v16 = vpop.f32.mrb[218].mxu0 }
 0x2d3   : > { %v3833_v32 = vadd.f32 %v3723_v62, %v2773_v58  ;;  %v3503_v5 = vadd.f32 %v3502_v16, %v7605_v33  ;;  %v3504_v8 = vpop.f32.mrb[219].mxu0 }
 0x2d4   : > { %v3727_v2 = vpop.f32.mrb[218].mxu1 }
 0x2d5   : > { %3865 = vst.msk [vmem:[%s7662_s15 + $0x60] sm:$0xff] %vm314_vm0, %v3833_v32  ;;  %v3728_v46 = vadd.f32 %v3727_v2, %v3503_v5  ;;  %v3729_v43 = vpop.f32.mrb[219].mxu1  ;;  %v2780_v5 = vld [vmem:[%s7654_s26 + $0x98] sm:$0xff] }
 0x2d6   : > { %v3507_v12 = vpop.f32.mrb[220].mxu0 }
 0x2d7   : > { %v3834_v17 = vadd.f32 %v3728_v46, %v2774_v7  ;;  %v3508_v47 = vadd.f32 %v3507_v12, %v7609_v63  ;;  %v3509_v30 = vpop.f32.mrb[221].mxu0 }
 0x2d8   : > { %v3732_v29 = vpop.f32.mrb[220].mxu1 }
 0x2d9   : > { %3866 = vst.msk [vmem:[%s7662_s15 + $0x68] sm:$0xff] %vm314_vm0, %v3834_v17  ;;  %v3733_v33 = vadd.f32 %v3732_v29, %v3508_v47  ;;  %v3734_v35 = vpop.f32.mrb[221].mxu1  ;;  %v2781_v17 = vld [vmem:[%s7654_s26 + $0xa0] sm:$0xff] }
 0x2da   : > { %v3512_v52 = vpop.f32.mrb[222].mxu0 }
 0x2db   : > { %v3835_v57 = vadd.f32 %v3733_v33, %v2775_v19  ;;  %v3513_v51 = vadd.f32 %v3512_v52, %v7613_v55  ;;  %v3514_v56 = vpop.f32.mrb[223].mxu0  ;;  %v2782_v52 = vld [vmem:[%s7654_s26 + $0xa8] sm:$0xff] }
 0x2dc   : > { %v3737_v22 = vpop.f32.mrb[222].mxu1 }
 0x2dd   : > { %3867 = vst.msk [vmem:[%s7662_s15 + $0x70] sm:$0xff] %vm314_vm0, %v3835_v57  ;;  %v3738_v63 = vadd.f32 %v3737_v22, %v3513_v51  ;;  %v3739_v1 = vpop.f32.mrb[223].mxu1 }
 0x2de   : > { %v3517_v34 = vpop.f32.mrb[224].mxu0  ;;  %v2783_v1 = vld [vmem:[%s7654_s26 + $0xb0] sm:$0xff] }
 0x2df   : > { %v3836_v4 = vadd.f32 %v3738_v63, %v2776_v3  ;;  %v3518_v26 = vadd.f32 %v3517_v34, %v7617_v60  ;;  %v3519_v48 = vpop.f32.mrb[225].mxu0 }
 0x2e0   : > { %v3742_v45 = vpop.f32.mrb[224].mxu1 }
 0x2e1   : > { %3868 = vst.msk [vmem:[%s7662_s15 + $0x78] sm:$0xff] %vm314_vm0, %v3836_v4  ;;  %v3743_v55 = vadd.f32 %v3742_v45, %v3518_v26  ;;  %v3744_v28 = vpop.f32.mrb[225].mxu1 }
 0x2e2   : > { %v3522_v42 = vpop.f32.mrb[226].mxu0 }
 0x2e3   : > { %v3837_v6 = vadd.f32 %v3743_v55, %v2777_v49  ;;  %v3523_v27 = vadd.f32 %v3522_v42, %v7620_v23  ;;  %v3524_v20 = vpop.f32.mrb[227].mxu0  ;;  %v2784_v55 = vld [vmem:[%s7654_s26 + $0xb8] sm:$0xff] }
 0x2e4   : > { %v3747_v0 = vpop.f32.mrb[226].mxu1 }
 0x2e5   : > { %3869 = vst.msk [vmem:[%s7662_s15 + $0x80] sm:$0xff] %vm314_vm0, %v3837_v6  ;;  %v3748_v60 = vadd.f32 %v3747_v0, %v3523_v27  ;;  %v3749_v37 = vpop.f32.mrb[227].mxu1  ;;  %v2785_v0 = vld [vmem:[%s7654_s26 + $0xc0] sm:$0xff] }
 0x2e6   : > { %v3527_v13 = vpop.f32.mrb[228].mxu0 }
 0x2e7   : > { %v3838_v36 = vadd.f32 %v3748_v60, %v2778_v59  ;;  %v3528_v14 = vadd.f32 %v3527_v13, %v7622_v31  ;;  %v3529_v25 = vpop.f32.mrb[229].mxu0 }
 0x2e8   : > { %v3752_v58 = vpop.f32.mrb[228].mxu1 }
 0x2e9   : > { %3870 = vst.msk [vmem:[%s7662_s15 + $0x88] sm:$0xff] %vm314_vm0, %v3838_v36  ;;  %v3753_v23 = vadd.f32 %v3752_v58, %v3528_v14  ;;  %v3754_v54 = vpop.f32.mrb[229].mxu1 }
 0x2ea   : > { %v3532_v62 = vpop.f32.mrb[230].mxu0 }
 0x2eb   : > { %v3839_v40 = vadd.f32 %v3753_v23, %v2779_v11  ;;  %v3533_v16 = vadd.f32 %v3532_v62, %v7624_v9  ;;  %v3534_v32 = vpop.f32.mrb[231].mxu0  ;;  %v2786_v11 = vld [vmem:[%s7654_s26 + $0xc8] sm:$0xff] }
 0x2ec   : > { %v3757_v8 = vpop.f32.mrb[230].mxu1  ;;  %v2787_v32 = vld [vmem:[%s7654_s26 + $0xd0] sm:$0xff] }
 0x2ed   : > { %3871 = vst.msk [vmem:[%s7662_s15 + $0x90] sm:$0xff] %vm314_vm0, %v3839_v40  ;;  %v3758_v31 = vadd.f32 %v3757_v8, %v3533_v16  ;;  %v3759_v7 = vpop.f32.mrb[231].mxu1 }
 0x2ee   : > { %v3537_v2 = vpop.f32.mrb[232].mxu0 }
 0x2ef   : > { %v3840_v46 = vadd.f32 %v3758_v31, %v2780_v5  ;;  %v3538_v43 = vadd.f32 %v3537_v2, %v7626_v61  ;;  %v3539_v12 = vpop.f32.mrb[233].mxu0 }
 0x2f0   : > { %v3762_v47 = vpop.f32.mrb[232].mxu1 }
 0x2f1   : > { %3872 = vst.msk [vmem:[%s7662_s15 + $0x98] sm:$0xff] %vm314_vm0, %v3840_v46  ;;  %v3763_v9 = vadd.f32 %v3762_v47, %v3538_v43  ;;  %v3764_v30 = vpop.f32.mrb[233].mxu1  ;;  %v2788_v43 = vld [vmem:[%s7654_s26 + $0xd8] sm:$0xff] }
 0x2f2   : > { %v3542_v19 = vpop.f32.mrb[234].mxu0 }
 0x2f3   : > { %v3841_v29 = vadd.f32 %v3763_v9, %v2781_v17  ;;  %v3543_v33 = vadd.f32 %v3542_v19, %v7628_v44  ;;  %v3544_v35 = vpop.f32.mrb[235].mxu0 }
 0x2f4   : > { %v3767_v57 = vpop.f32.mrb[234].mxu1 }
 0x2f5   : > { %3873 = vst.msk [vmem:[%s7662_s15 + $0xa0] sm:$0xff] %vm314_vm0, %v3841_v29  ;;  %v3768_v61 = vadd.f32 %v3767_v57, %v3543_v33  ;;  %v3769_v51 = vpop.f32.mrb[235].mxu1  ;;  %v2789_v29 = vld [vmem:[%s7654_s26 + $0xe0] sm:$0xff] }
 0x2f6   : > { %v3547_v56 = vpop.f32.mrb[236].mxu0 }
 0x2f7   : > { %v3842_v3 = vadd.f32 %v3768_v61, %v2782_v52  ;;  %v3548_v22 = vadd.f32 %v3547_v56, %v7630_v50  ;;  %v3549_v63 = vpop.f32.mrb[237].mxu0  ;;  %v2790_v56 = vld [vmem:[%s7654_s26 + $0xe8] sm:$0xff] }
 0x2f8   : > { %v3772_v34 = vpop.f32.mrb[236].mxu1 }
 0x2f9   : > { %3874 = vst.msk [vmem:[%s7662_s15 + $0xa8] sm:$0xff] %vm314_vm0, %v3842_v3  ;;  %v3773_v44 = vadd.f32 %v3772_v34, %v3548_v22  ;;  %v3774_v4 = vpop.f32.mrb[237].mxu1 }
 0x2fa   : > { %v3552_v26 = vpop.f32.mrb[238].mxu0  ;;  %v2791_v4 = vld [vmem:[%s7654_s26 + $0xf0] sm:$0xff] }
 0x2fb   : > { %v3843_v48 = vadd.f32 %v3773_v44, %v2783_v1  ;;  %v3553_v49 = vadd.f32 %v3552_v26, %v7632_v39  ;;  %v3554_v45 = vpop.f32.mrb[239].mxu0 }
 0x2fc   : > { %v3777_v28 = vpop.f32.mrb[238].mxu1 }
 0x2fd   : > { %3875 = vst.msk [vmem:[%s7662_s15 + $0xb0] sm:$0xff] %vm314_vm0, %v3843_v48  ;;  %v3778_v50 = vadd.f32 %v3777_v28, %v3553_v49  ;;  %v3779_v42 = vpop.f32.mrb[239].mxu1 }
 0x2fe   : > { %v3557_v6 = vpop.f32.mrb[240].mxu0 }
 0x2ff   : > { %v3844_v27 = vadd.f32 %v3778_v50, %v2784_v55  ;;  %v3558_v20 = vadd.f32 %v3557_v6, %v7634_v18  ;;  %v3559_v59 = vpop.f32.mrb[241].mxu0  ;;  %v2792_v50 = vld [vmem:[%s7654_s26 + $0xf8] sm:$0xff] }
 0x300   : > { %v3782_v60 = vpop.f32.mrb[240].mxu1 }
 0x301   : > { %3876 = vst.msk [vmem:[%s7662_s15 + $0xb8] sm:$0xff] %vm314_vm0, %v3844_v27  ;;  %v3783_v39 = vadd.f32 %v3782_v60, %v3558_v20  ;;  %v3784_v37 = vpop.f32.mrb[241].mxu1 }
 0x302   : > { %v3562_v13 = vpop.f32.mrb[242].mxu0 }
 0x303   : > { %v3845_v36 = vadd.f32 %v3783_v39, %v2785_v0  ;;  %v3563_v14 = vadd.f32 %v3562_v13, %v7636_v41  ;;  %v3564_v25 = vpop.f32.mrb[243].mxu0 }
 0x304   : > { %v3787_v58 = vpop.f32.mrb[242].mxu1 }
 0x305   : > { %3877 = vst.msk [vmem:[%s7662_s15 + $0xc0] sm:$0xff] %vm314_vm0, %v3845_v36  ;;  %v3788_v18 = vadd.f32 %v3787_v58, %v3563_v14  ;;  %v3789_v23 = vpop.f32.mrb[243].mxu1 }
 0x306   : > { %v3567_v54 = vpop.f32.mrb[244].mxu0 }
 0x307   : > { %v3846_v62 = vadd.f32 %v3788_v18, %v2786_v11  ;;  %v3568_v40 = vadd.f32 %v3567_v54, %v7638_v15  ;;  %v3569_v16 = vpop.f32.mrb[245].mxu0 }
 0x308   : > { %v3792_v5 = vpop.f32.mrb[244].mxu1 }
 0x309   : > { %3878 = vst.msk [vmem:[%s7662_s15 + $0xc8] sm:$0xff] %vm314_vm0, %v3846_v62  ;;  %v3793_v41 = vadd.f32 %v3792_v5, %v3568_v40  ;;  %v3794_v8 = vpop.f32.mrb[245].mxu1 }
 0x30a   : > { %v3572_v31 = vpop.f32.mrb[246].mxu0 }
 0x30b   : > { %v3847_v7 = vadd.f32 %v3793_v41, %v2787_v32  ;;  %v3573_v2 = vadd.f32 %v3572_v31, %v7640_v24  ;;  %v3574_v46 = vpop.f32.mrb[247].mxu0 }
 0x30c   : > { %v3797_v12 = vpop.f32.mrb[246].mxu1 }
 0x30d   : > { %3879 = vst.msk [vmem:[%s7662_s15 + $0xd0] sm:$0xff] %vm314_vm0, %v3847_v7  ;;  %v3798_v15 = vadd.f32 %v3797_v12, %v3573_v2  ;;  %v3799_v17 = vpop.f32.mrb[247].mxu1 }
 0x30e   : > { %v3577_v47 = vpop.f32.mrb[248].mxu0 }
 0x30f   : > { %v3848_v9 = vadd.f32 %v3798_v15, %v2788_v43  ;;  %v3578_v30 = vadd.f32 %v3577_v47, %v7642_v53  ;;  %v3579_v19 = vpop.f32.mrb[249].mxu0 }
 0x310   : > { %v3802_v33 = vpop.f32.mrb[248].mxu1 }
 0x311   : > { %3880 = vst.msk [vmem:[%s7662_s15 + $0xd8] sm:$0xff] %vm314_vm0, %v3848_v9  ;;  %v3803_v24 = vadd.f32 %v3802_v33, %v3578_v30  ;;  %v3804_v35 = vpop.f32.mrb[249].mxu1 }
 0x312   : > { %v3582_v52 = vpop.f32.mrb[250].mxu0 }
 0x313   : > { %v3849_v57 = vadd.f32 %v3803_v24, %v2789_v29  ;;  %v3583_v61 = vadd.f32 %v3582_v52, %v7644_v38  ;;  %v3584_v51 = vpop.f32.mrb[251].mxu0 }
 0x314   : > { %v3807_v3 = vpop.f32.mrb[250].mxu1 }
 0x315   : > { %3881 = vst.msk [vmem:[%s7662_s15 + $0xe0] sm:$0xff] %vm314_vm0, %v3849_v57  ;;  %v3808_v53 = vadd.f32 %v3807_v3, %v3583_v61  ;;  %v3809_v22 = vpop.f32.mrb[251].mxu1 }
 0x316   : > { %v3587_v63 = vpop.f32.mrb[252].mxu0 }
 0x317   : > { %v3850_v1 = vadd.f32 %v3808_v53, %v2790_v56  ;;  %v3588_v34 = vadd.f32 %v3587_v63, %v7646_v10  ;;  %v3589_v44 = vpop.f32.mrb[253].mxu0 }
 0x318   : > { %v3812_v26 = vpop.f32.mrb[252].mxu1 }
 0x319   : > { %3882 = vst.msk [vmem:[%s7662_s15 + $0xe8] sm:$0xff] %vm314_vm0, %v3850_v1  ;;  %v3813_v38 = vadd.f32 %v3812_v26, %v3588_v34  ;;  %v3814_v48 = vpop.f32.mrb[253].mxu1 }
 0x31a   : > { %v3592_v49 = vpop.f32.mrb[254].mxu0 }
 0x31b   : > { %v3851_v45 = vadd.f32 %v3813_v38, %v2791_v4  ;;  %v3593_v55 = vadd.f32 %v3592_v49, %v7648_v21  ;;  %v3594_v28 = vpop.f32.mrb[255].mxu0 }
 0x31d   : > { %v3817_v42 = vpop.f32.mrb[254].mxu1  ;;  %3883 = vst.msk [vmem:[%s7662_s15 + $0xf0] sm:$0xff] %vm314_vm0, %v3851_v45 }
 0x31e   : > { %v3818_v6 = vadd.f32 %v3817_v42, %v3593_v55  ;;  %v3819_v27 = vpop.f32.mrb[255].mxu1 }
 0x320   : > { %v3852_v10 = vadd.f32 %v3818_v6, %v2792_v50 }
 0x322   : > { %3884 = vst.msk [vmem:[%s7662_s15 + $0xf8] sm:$0xff] %vm314_vm0, %v3852_v10 }
 0x323 PF: > { %s15_s18 = sadd.s32 1, %s4850_s18  }
 0x324   : > { %p12_p4 = scmp.ge.s32.totalorder %s15_s18, 4  }
 0x326   :  { %14 = sbr.rel (!%p12_p4) target bundleno = 1 (0x1), region = 73 }

// kernel: _forward_core.3
= control target key start
LH: loop header
LB: loop body
LE: loop exit
PB: predicated region body
PF: predicated region fallthrough
CT: control target
= control target key end

     0   :  { %vm278_vm0 = vcmask 1043456   ;;  %vm85_vm1 = vcmask 31744   ;;  %s2751_s1 = inlined_call_operand.vmem [shape: f32[4,128], index: 1, kind: input, shape index: {}]   ;;  %s2752_s0 = inlined_call_operand.vmem [shape: f32[512,4], index: 0, kind: input, shape index: {}]   ;;  %s2753_s3 = inlined_call_operand.vmem [shape: f32[128,128], index: 3, kind: input, shape index: {}]   ;;  %s2754_s2 = inlined_call_operand.vmem [shape: f32[1,128], index: 2, kind: input, shape index: {}]   ;;  %s2755_s4 = inlined_call_operand.vmem [shape: f32[1,128], index: 4, kind: input, shape index: {}]   ;;  %s2756_s5 = inlined_call_operand.vmem [shape: f32[512,128], index: 5, kind: output, shape index: {}]  }
   0x1   :  { %v84_v0 = vld [vmem:[%s2751_s1] sm:$0xf]  ;;  %v21_v2 = vld [vmem:[%s2752_s0 + $0x8] sm:$0xff]  ;;  %v22_v3 = vld [vmem:[%s2752_s0 + $0x10] sm:$0xff] }
   0x2   :  { %v20_v1 = vld [vmem:[%s2752_s0] sm:$0xff]  ;;  %1682 = vmatprep.subr.msk.mxu0 %vm278_vm0, %v84_v0  ;;  %v23_v4 = vld [vmem:[%s2752_s0 + $0x18] sm:$0xff]  ;;  %v25_v6 = vld [vmem:[%s2752_s0 + $0x28] sm:$0xff] }
   0x3   :  { %1684 = vmatprep.mubr.msk.f32.mxu0 %vm85_vm1, %v20_v1  ;;  %1683 = vmatpush3.msk.msra.mxu0 %vm278_vm0, %v84_v0  ;;  %v24_v5 = vld [vmem:[%s2752_s0 + $0x20] sm:$0xff]  ;;  %v26_v7 = vld [vmem:[%s2752_s0 + $0x30] sm:$0xff]  ;;  %v27_v8 = vld [vmem:[%s2752_s0 + $0x38] sm:$0xff] }
   0x4   :  { %1685 = vmatmul.mubr.msk.f32.vlgmr.msra.gmra.mrb[0].mxu0 %vm85_vm1, %v21_v2  ;;  %v28_v9 = vld [vmem:[%s2752_s0 + $0x40] sm:$0xff]  ;;  %v29_v10 = vld [vmem:[%s2752_s0 + $0x48] sm:$0xff]  ;;  %v30_v11 = vld [vmem:[%s2752_s0 + $0x50] sm:$0xff] }
   0x5   :  { %1687 = vmatprep.mubr.msk.f32.mxu0 %vm85_vm1, %v22_v3  ;;  %v31_v12 = vld [vmem:[%s2752_s0 + $0x58] sm:$0xff]  ;;  %v32_v13 = vld [vmem:[%s2752_s0 + $0x60] sm:$0xff]  ;;  %v995_v15 = vld [vmem:[%s2753_s3 + $0x8] sm:$0xff] }
   0x6   :  { %v994_v14 = vld [vmem:[%s2753_s3] sm:$0xff]  ;;  %v996_v16 = vld [vmem:[%s2753_s3 + $0x10] sm:$0xff]  ;;  %v997_v17 = vld [vmem:[%s2753_s3 + $0x18] sm:$0xff] }
   0x7   :  { %v1908_v18 = vpack.c.bf16 %v995_v15, %v994_v14  ;;  %v1912_v19 = vpack.c.bf16 %v997_v17, %v996_v16  ;;  %v33_v20 = vld [vmem:[%s2752_s0 + $0x68] sm:$0xff]  ;;  %v998_v21 = vld [vmem:[%s2753_s3 + $0x20] sm:$0xff]  ;;  %v34_v23 = vld [vmem:[%s2752_s0 + $0x70] sm:$0xff] }
   0x8   :  { %1688 = vmatmul.mubr.msk.f32.gmra.mrb[2].mxu0 %vm85_vm1, %v23_v4  ;;  %v999_v22 = vld [vmem:[%s2753_s3 + $0x28] sm:$0xff]  ;;  %v35_v25 = vld [vmem:[%s2752_s0 + $0x78] sm:$0xff]  ;;  %v36_v26 = vld [vmem:[%s2752_s0 + $0x80] sm:$0xff] }
   0x9   :  { %1690 = vmatprep.mubr.msk.f32.mxu0 %vm85_vm1, %v24_v5  ;;  %1909 = vmatprep.subr.bf16.mxu0 %v1908_v18  ;;  %v1916_v24 = vpack.c.bf16 %v999_v22, %v998_v21  ;;  %v37_v27 = vld [vmem:[%s2752_s0 + $0x88] sm:$0xff]  ;;  %v38_v28 = vld [vmem:[%s2752_s0 + $0x90] sm:$0xff]  ;;  %v39_v29 = vld [vmem:[%s2752_s0 + $0x98] sm:$0xff] }
   0xa   :  { %1940 = vmatprep.subr.bf16.mxu1 %v1908_v18  ;;  %1911 = vmatpush3.bf16.msra.mxu0 %v1908_v18  ;;  %v40_v30 = vld [vmem:[%s2752_s0 + $0xa0] sm:$0xff]  ;;  %v41_v31 = vld [vmem:[%s2752_s0 + $0xa8] sm:$0xff]  ;;  %v42_v32 = vld [vmem:[%s2752_s0 + $0xb0] sm:$0xff] }
   0xb   :  { %1948 = vmatpush3.bf16.msra.mxu1 %v1908_v18  ;;  %1913 = vmatprep.subr.bf16.mxu0 %v1912_v19  ;;  %v43_v33 = vld [vmem:[%s2752_s0 + $0xb8] sm:$0xff]  ;;  %v44_v34 = vld [vmem:[%s2752_s0 + $0xc0] sm:$0xff]  ;;  %v45_v35 = vld [vmem:[%s2752_s0 + $0xc8] sm:$0xff] }
   0xc   :  { %1691 = vmatmul.mubr.msk.f32.gmra.mrb[4].mxu0 %vm85_vm1, %v25_v6  ;;  %1941 = vmatprep.subr.bf16.mxu1 %v1912_v19  ;;  %v46_v36 = vld [vmem:[%s2752_s0 + $0xd0] sm:$0xff]  ;;  %v47_v37 = vld [vmem:[%s2752_s0 + $0xd8] sm:$0xff]  ;;  %v48_v38 = vld [vmem:[%s2752_s0 + $0xe0] sm:$0xff] }
   0xd   :  { %1693 = vmatprep.mubr.msk.f32.mxu0 %vm85_vm1, %v26_v7  ;;  %v49_v39 = vld [vmem:[%s2752_s0 + $0xe8] sm:$0xff]  ;;  %v50_v40 = vld [vmem:[%s2752_s0 + $0xf0] sm:$0xff]  ;;  %v51_v41 = vld [vmem:[%s2752_s0 + $0xf8] sm:$0xff] }
   0xe   :  { %1915 = vmatpush3.bf16.msra.mxu0 %v1912_v19  ;;  %v52_v42 = vld [vmem:[%s2752_s0 + $0x100] sm:$0xff]  ;;  %v53_v43 = vld [vmem:[%s2752_s0 + $0x108] sm:$0xff]  ;;  %v54_v44 = vld [vmem:[%s2752_s0 + $0x110] sm:$0xff] }
   0xf   :  { %1949 = vmatpush3.bf16.msra.mxu1 %v1912_v19  ;;  %1917 = vmatprep.subr.bf16.mxu0 %v1916_v24  ;;  %v55_v45 = vld [vmem:[%s2752_s0 + $0x118] sm:$0xff]  ;;  %v56_v46 = vld [vmem:[%s2752_s0 + $0x120] sm:$0xff]  ;;  %v57_v47 = vld [vmem:[%s2752_s0 + $0x128] sm:$0xff] }
  0x10   :  { %1694 = vmatmul.mubr.msk.f32.gmra.mrb[6].mxu0 %vm85_vm1, %v27_v8  ;;  %1942 = vmatprep.subr.bf16.mxu1 %v1916_v24  ;;  %v58_v48 = vld [vmem:[%s2752_s0 + $0x130] sm:$0xff]  ;;  %v59_v49 = vld [vmem:[%s2752_s0 + $0x138] sm:$0xff]  ;;  %v60_v50 = vld [vmem:[%s2752_s0 + $0x140] sm:$0xff] }
  0x11   :  { %1696 = vmatprep.mubr.msk.f32.mxu0 %vm85_vm1, %v28_v9  ;;  %v61_v51 = vld [vmem:[%s2752_s0 + $0x148] sm:$0xff]  ;;  %v62_v52 = vld [vmem:[%s2752_s0 + $0x150] sm:$0xff]  ;;  %v63_v53 = vld [vmem:[%s2752_s0 + $0x158] sm:$0xff] }
  0x12   :  { %1919 = vmatpush3.bf16.msra.mxu0 %v1916_v24  ;;  %v64_v54 = vld [vmem:[%s2752_s0 + $0x160] sm:$0xff]  ;;  %v1000_v55 = vld [vmem:[%s2753_s3 + $0x30] sm:$0xff]  ;;  %v1001_v56 = vld [vmem:[%s2753_s3 + $0x38] sm:$0xff] }
  0x13   :  { %1950 = vmatpush3.bf16.msra.mxu1 %v1916_v24  ;;  %v1920_v57 = vpack.c.bf16 %v1001_v56, %v1000_v55  ;;  %v65_v58 = vld [vmem:[%s2752_s0 + $0x168] sm:$0xff]  ;;  %v66_v59 = vld [vmem:[%s2752_s0 + $0x170] sm:$0xff]  ;;  %v1002_v60 = vld [vmem:[%s2753_s3 + $0x40] sm:$0xff] }
  0x14   :  { %1697 = vmatmul.mubr.msk.f32.gmra.mrb[8].mxu0 %vm85_vm1, %v29_v10  ;;  %v1003_v61 = vld [vmem:[%s2753_s3 + $0x48] sm:$0xff]  ;;  %v67_v63 = vld [vmem:[%s2752_s0 + $0x178] sm:$0xff]  ;;  %v68_v0 = vld [vmem:[%s2752_s0 + $0x180] sm:$0xff] }
  0x15   :  { %1699 = vmatprep.mubr.msk.f32.mxu0 %vm85_vm1, %v30_v11  ;;  %1921 = vmatprep.subr.bf16.mxu0 %v1920_v57  ;;  %v1924_v62 = vpack.c.bf16 %v1003_v61, %v1002_v60  ;;  %v1004_v1 = vld [vmem:[%s2753_s3 + $0x50] sm:$0xff]  ;;  %v1005_v2 = vld [vmem:[%s2753_s3 + $0x58] sm:$0xff]  ;;  %v69_v4 = vld [vmem:[%s2752_s0 + $0x188] sm:$0xff] }
  0x16   :  { %1923 = vmatpush3.bf16.msra.mxu0 %v1920_v57  ;;  %1943 = vmatprep.subr.bf16.mxu1 %v1920_v57  ;;  %v1928_v3 = vpack.c.bf16 %v1005_v2, %v1004_v1  ;;  %v70_v5 = vld [vmem:[%s2752_s0 + $0x190] sm:$0xff]  ;;  %v1006_v6 = vld [vmem:[%s2753_s3 + $0x60] sm:$0xff]  ;;  %v1007_v7 = vld [vmem:[%s2753_s3 + $0x68] sm:$0xff] }
  0x17   :  { %1951 = vmatpush3.bf16.msra.mxu1 %v1920_v57  ;;  %1925 = vmatprep.subr.bf16.mxu0 %v1924_v62  ;;  %v1932_v8 = vpack.c.bf16 %v1007_v7, %v1006_v6  ;;  %v71_v9 = vld [vmem:[%s2752_s0 + $0x198] sm:$0xff]  ;;  %v72_v10 = vld [vmem:[%s2752_s0 + $0x1a0] sm:$0xff]  ;;  %v1008_v11 = vld [vmem:[%s2753_s3 + $0x70] sm:$0xff] }
  0x18   :  { %1700 = vmatmul.mubr.msk.f32.gmra.mrb[10].mxu0 %vm85_vm1, %v31_v12  ;;  %1944 = vmatprep.subr.bf16.mxu1 %v1924_v62  ;;  %v1009_v12 = vld [vmem:[%s2753_s3 + $0x78] sm:$0xff]  ;;  %v73_v14 = vld [vmem:[%s2752_s0 + $0x1a8] sm:$0xff]  ;;  %v74_v15 = vld [vmem:[%s2752_s0 + $0x1b0] sm:$0xff] }
  0x19   :  { %1702 = vmatprep.mubr.msk.f32.mxu0 %vm85_vm1, %v32_v13  ;;  %v1936_v13 = vpack.c.bf16 %v1009_v12, %v1008_v11  ;;  %v75_v16 = vld [vmem:[%s2752_s0 + $0x1b8] sm:$0xff]  ;;  %v76_v17 = vld [vmem:[%s2752_s0 + $0x1c0] sm:$0xff]  ;;  %v77_v18 = vld [vmem:[%s2752_s0 + $0x1c8] sm:$0xff] }
  0x1a   :  { %1927 = vmatpush3.bf16.msra.mxu0 %v1924_v62  ;;  %v78_v19 = vld [vmem:[%s2752_s0 + $0x1d0] sm:$0xff]  ;;  %v80_v21 = vld [vmem:[%s2752_s0 + $0x1e0] sm:$0xff]  ;;  %v81_v22 = vld [vmem:[%s2752_s0 + $0x1e8] sm:$0xff] }
  0x1b   :  { %1952 = vmatpush3.bf16.msra.mxu1 %v1924_v62  ;;  %1929 = vmatprep.subr.bf16.mxu0 %v1928_v3  ;;  %v83_v24 = vld [vmem:[%s2752_s0 + $0x1f8] sm:$0xff] }
  0x1c   :  { %1703 = vmatmul.mubr.msk.f32.gmra.mrb[12].mxu0 %vm85_vm1, %v33_v20  ;;  %1945 = vmatprep.subr.bf16.mxu1 %v1928_v3  ;;  %v79_v20 = vld [vmem:[%s2752_s0 + $0x1d8] sm:$0xff] }
  0x1d   :  { %1705 = vmatprep.mubr.msk.f32.mxu0 %vm85_vm1, %v34_v23  ;;  %v82_v23 = vld [vmem:[%s2752_s0 + $0x1f0] sm:$0xff] }
  0x1e   :  { %1931 = vmatpush3.bf16.msra.mxu0 %v1928_v3 }
  0x1f   :  { %1953 = vmatpush3.bf16.msra.mxu1 %v1928_v3  ;;  %1933 = vmatprep.subr.bf16.mxu0 %v1932_v8 }
  0x20   :  { %1706 = vmatmul.mubr.msk.f32.gmra.mrb[14].mxu0 %vm85_vm1, %v35_v25  ;;  %1946 = vmatprep.subr.bf16.mxu1 %v1932_v8  ;;  %v2424_v25 = vld [vmem:[%s2754_s2] ss:$0 sm:$0xff] }
  0x21   :  { %1708 = vmatprep.mubr.msk.f32.mxu0 %vm85_vm1, %v36_v26 }
  0x22   :  { %1935 = vmatpush3.bf16.msra.mxu0 %v1932_v8 }
  0x23   :  { %1954 = vmatpush3.bf16.msra.mxu1 %v1932_v8  ;;  %1937 = vmatprep.subr.bf16.mxu0 %v1936_v13 }
  0x24   :  { %1709 = vmatmul.mubr.msk.f32.gmra.mrb[16].mxu0 %vm85_vm1, %v37_v27  ;;  %1947 = vmatprep.subr.bf16.mxu1 %v1936_v13 }
  0x25   :  { %1711 = vmatprep.mubr.msk.f32.mxu0 %vm85_vm1, %v38_v28 }
  0x26   :  { %1939 = vmatpush3.bf16.msra.mxu0 %v1936_v13 }
  0x27   :  { %1955 = vmatpush3.bf16.msra.mxu1 %v1936_v13 }
  0x28   :  { %1712 = vmatmul.mubr.msk.f32.gmra.mrb[18].mxu0 %vm85_vm1, %v39_v29 }
  0x29   :  { %1714 = vmatprep.mubr.msk.f32.mxu0 %vm85_vm1, %v40_v30 }
  0x2c   :  { %1715 = vmatmul.mubr.msk.f32.gmra.mrb[20].mxu0 %vm85_vm1, %v41_v31 }
  0x2d   :  { %1717 = vmatprep.mubr.msk.f32.mxu0 %vm85_vm1, %v42_v32 }
  0x30   :  { %1718 = vmatmul.mubr.msk.f32.gmra.mrb[22].mxu0 %vm85_vm1, %v43_v33 }
  0x31   :  { %1720 = vmatprep.mubr.msk.f32.mxu0 %vm85_vm1, %v44_v34 }
  0x34   :  { %1721 = vmatmul.mubr.msk.f32.gmra.mrb[24].mxu0 %vm85_vm1, %v45_v35 }
  0x35   :  { %1723 = vmatprep.mubr.msk.f32.mxu0 %vm85_vm1, %v46_v36 }
  0x38   :  { %1724 = vmatmul.mubr.msk.f32.gmra.mrb[26].mxu0 %vm85_vm1, %v47_v37 }
  0x39   :  { %1726 = vmatprep.mubr.msk.f32.mxu0 %vm85_vm1, %v48_v38 }
  0x3c   :  { %1727 = vmatmul.mubr.msk.f32.gmra.mrb[28].mxu0 %vm85_vm1, %v49_v39 }
  0x3d   :  { %1729 = vmatprep.mubr.msk.f32.mxu0 %vm85_vm1, %v50_v40 }
  0x40   :  { %1730 = vmatmul.mubr.msk.f32.gmra.mrb[30].mxu0 %vm85_vm1, %v51_v41 }
  0x41   :  { %1732 = vmatprep.mubr.msk.f32.mxu0 %vm85_vm1, %v52_v42 }
  0x44   :  { %1733 = vmatmul.mubr.msk.f32.gmra.mrb[32].mxu0 %vm85_vm1, %v53_v43 }
  0x45   :  { %1735 = vmatprep.mubr.msk.f32.mxu0 %vm85_vm1, %v54_v44 }
  0x48   :  { %1736 = vmatmul.mubr.msk.f32.gmra.mrb[34].mxu0 %vm85_vm1, %v55_v45 }
  0x49   :  { %1738 = vmatprep.mubr.msk.f32.mxu0 %vm85_vm1, %v56_v46 }
  0x4c   :  { %1739 = vmatmul.mubr.msk.f32.gmra.mrb[36].mxu0 %vm85_vm1, %v57_v47 }
  0x4d   :  { %1741 = vmatprep.mubr.msk.f32.mxu0 %vm85_vm1, %v58_v48 }
  0x50   :  { %1742 = vmatmul.mubr.msk.f32.gmra.mrb[38].mxu0 %vm85_vm1, %v59_v49 }
  0x51   :  { %1744 = vmatprep.mubr.msk.f32.mxu0 %vm85_vm1, %v60_v50 }
  0x54   :  { %1745 = vmatmul.mubr.msk.f32.gmra.mrb[40].mxu0 %vm85_vm1, %v61_v51 }
  0x55   :  { %1747 = vmatprep.mubr.msk.f32.mxu0 %vm85_vm1, %v62_v52 }
  0x58   :  { %1748 = vmatmul.mubr.msk.f32.gmra.mrb[42].mxu0 %vm85_vm1, %v63_v53 }
  0x59   :  { %1750 = vmatprep.mubr.msk.f32.mxu0 %vm85_vm1, %v64_v54 }
  0x5c   :  { %1751 = vmatmul.mubr.msk.f32.gmra.mrb[44].mxu0 %vm85_vm1, %v65_v58 }
  0x5d   :  { %1753 = vmatprep.mubr.msk.f32.mxu0 %vm85_vm1, %v66_v59 }
  0x60   :  { %1754 = vmatmul.mubr.msk.f32.gmra.mrb[46].mxu0 %vm85_vm1, %v67_v63 }
  0x61   :  { %1756 = vmatprep.mubr.msk.f32.mxu0 %vm85_vm1, %v68_v0 }
  0x64   :  { %1757 = vmatmul.mubr.msk.f32.gmra.mrb[48].mxu0 %vm85_vm1, %v69_v4 }
  0x65   :  { %1759 = vmatprep.mubr.msk.f32.mxu0 %vm85_vm1, %v70_v5 }
  0x68   :  { %1760 = vmatmul.mubr.msk.f32.gmra.mrb[50].mxu0 %vm85_vm1, %v71_v9 }
  0x69   :  { %1762 = vmatprep.mubr.msk.f32.mxu0 %vm85_vm1, %v72_v10 }
  0x6c   :  { %1763 = vmatmul.mubr.msk.f32.gmra.mrb[52].mxu0 %vm85_vm1, %v73_v14 }
  0x6d   :  { %1765 = vmatprep.mubr.msk.f32.mxu0 %vm85_vm1, %v74_v15 }
  0x70   :  { %1766 = vmatmul.mubr.msk.f32.gmra.mrb[54].mxu0 %vm85_vm1, %v75_v16 }
  0x71   :  { %1768 = vmatprep.mubr.msk.f32.mxu0 %vm85_vm1, %v76_v17 }
  0x74   :  { %1769 = vmatmul.mubr.msk.f32.gmra.mrb[56].mxu0 %vm85_vm1, %v77_v18 }
  0x75   :  { %1771 = vmatprep.mubr.msk.f32.mxu0 %vm85_vm1, %v78_v19 }
  0x78   :  { %1772 = vmatmul.mubr.msk.f32.gmra.mrb[58].mxu0 %vm85_vm1, %v79_v20 }
  0x79   :  { %1774 = vmatprep.mubr.msk.f32.mxu0 %vm85_vm1, %v80_v21 }
  0x7c   :  { %1775 = vmatmul.mubr.msk.f32.gmra.mrb[60].mxu0 %vm85_vm1, %v81_v22 }
  0x7d   :  { %1777 = vmatprep.mubr.msk.f32.mxu0 %vm85_vm1, %v82_v23 }
  0x80   :  { %1778 = vmatmul.mubr.msk.f32.gmra.mrb[62].mxu0 %vm85_vm1, %v83_v24 }
  0xd7   :  { %v1686_v26 = vpop.f32.mrb[0].mxu0 }
  0xd8   :  { %v675_v27 = vsub.f32 %v1686_v26, %v2424_v25  ;;  %v348_v28 = vpop.f32.mrb[1].mxu0 }
  0xd9   :  { %v674_v29 = vsub.f32 %v348_v28, %v2424_v25 }
  0xda   :  { %v739_v30 = vmul.f32 %v675_v27, %v675_v27 }
  0xdb   :  { %v738_v31 = vmul.f32 %v674_v29, %v674_v29  ;;  %v1689_v32 = vpop.f32.mrb[2].mxu0 }
  0xdc   :  { %v803_v33 = vsub.f32 0.0, %v739_v30  ;;  %v677_v34 = vsub.f32 %v1689_v32, %v2424_v25  ;;  %v358_v35 = vpop.f32.mrb[3].mxu0 }
  0xdd   :  { %v802_v36 = vsub.f32 0.0, %v738_v31  ;;  %v676_v37 = vsub.f32 %v358_v35, %v2424_v25 }
  0xde   :  { %v868_v38 = vmul.f32 1.442695, %v803_v33  ;;  %v741_v39 = vmul.f32 %v677_v34, %v677_v34 }
  0xdf   :  { %v866_v40 = vmul.f32 1.442695, %v802_v36  ;;  %v740_v41 = vmul.f32 %v676_v37, %v676_v37  ;;  %v1692_v42 = vpop.f32.mrb[4].mxu0 }
  0xe0   :  { %v805_v43 = vsub.f32 0.0, %v741_v39  ;;  %v679_v44 = vsub.f32 %v1692_v42, %v2424_v25  ;;  %v368_v45 = vpop.f32.mrb[5].mxu0 }
  0xe1   :  { %1956 = vpow2.f32 %v866_v40  ;;  %v804_v46 = vsub.f32 0.0, %v740_v41  ;;  %v678_v47 = vsub.f32 %v368_v45, %v2424_v25 }
  0xe2   :  { %1958 = vpow2.f32 %v868_v38  ;;  %v872_v48 = vmul.f32 1.442695, %v805_v43  ;;  %v743_v49 = vmul.f32 %v679_v44, %v679_v44 }
  0xe3   :  { %v870_v50 = vmul.f32 1.442695, %v804_v46  ;;  %v742_v51 = vmul.f32 %v678_v47, %v678_v47  ;;  %v1695_v52 = vpop.f32.mrb[6].mxu0 }
  0xe4   :  { %v807_v53 = vsub.f32 0.0, %v743_v49  ;;  %v681_v54 = vsub.f32 %v1695_v52, %v2424_v25  ;;  %v378_v55 = vpop.f32.mrb[7].mxu0 }
  0xe5   :  { %1960 = vpow2.f32 %v870_v50  ;;  %v806_v56 = vsub.f32 0.0, %v742_v51  ;;  %v680_v57 = vsub.f32 %v378_v55, %v2424_v25 }
  0xe6   :  { %1962 = vpow2.f32 %v872_v48  ;;  %v876_v58 = vmul.f32 1.442695, %v807_v53  ;;  %v745_v59 = vmul.f32 %v681_v54, %v681_v54 }
  0xe7   :  { %v874_v60 = vmul.f32 1.442695, %v806_v56  ;;  %v744_v61 = vmul.f32 %v680_v57, %v680_v57  ;;  %v1698_v62 = vpop.f32.mrb[8].mxu0 }
  0xe8   :  { %v809_v63 = vsub.f32 0.0, %v745_v59  ;;  %v683_v0 = vsub.f32 %v1698_v62, %v2424_v25  ;;  %v388_v1 = vpop.f32.mrb[9].mxu0 }
  0xe9   :  { %1964 = vpow2.f32 %v874_v60  ;;  %v808_v2 = vsub.f32 0.0, %v744_v61  ;;  %v682_v3 = vsub.f32 %v388_v1, %v2424_v25 }
  0xea   :  { %1966 = vpow2.f32 %v876_v58  ;;  %v880_v4 = vmul.f32 1.442695, %v809_v63  ;;  %v747_v5 = vmul.f32 %v683_v0, %v683_v0 }
  0xeb   :  { %v1957_v6 = vpop.eup %1956  ;;  %v878_v7 = vmul.f32 1.442695, %v808_v2  ;;  %v746_v8 = vmul.f32 %v682_v3, %v682_v3  ;;  %v1701_v9 = vpop.f32.mrb[10].mxu0 }
  0xec   :  { %v1959_v10 = vpop.eup %1958  ;;  %v811_v11 = vsub.f32 0.0, %v747_v5  ;;  %v685_v12 = vsub.f32 %v1701_v9, %v2424_v25  ;;  %v398_v13 = vpop.f32.mrb[11].mxu0  ;;  %1812 = vmatprep.mubr.f32.mxu0 %v1957_v6 }
  0xed   :  { %v810_v14 = vsub.f32 0.0, %v746_v8  ;;  %v684_v15 = vsub.f32 %v398_v13, %v2424_v25  ;;  %1813 = vmatmul.mubr.f32.vlgmr.msra.gmra.mrb[64].mxu0 %v1959_v10  ;;  %1968 = vpow2.f32 %v878_v7 }
  0xee   :  { %1970 = vpow2.f32 %v880_v4  ;;  %v884_v16 = vmul.f32 1.442695, %v811_v11  ;;  %v749_v17 = vmul.f32 %v685_v12, %v685_v12 }
  0xef   :  { %v1961_v18 = vpop.eup %1960  ;;  %v882_v19 = vmul.f32 1.442695, %v810_v14  ;;  %v748_v20 = vmul.f32 %v684_v15, %v684_v15  ;;  %v1704_v21 = vpop.f32.mrb[12].mxu0 }
  0xf0   :  { %v1963_v22 = vpop.eup %1962  ;;  %v813_v23 = vsub.f32 0.0, %v749_v17  ;;  %v687_v24 = vsub.f32 %v1704_v21, %v2424_v25  ;;  %v408_v26 = vpop.f32.mrb[13].mxu0  ;;  %1815 = vmatprep.mubr.f32.mxu0 %v1961_v18 }
  0xf1   :  { %1972 = vpow2.f32 %v882_v19  ;;  %v812_v27 = vsub.f32 0.0, %v748_v20  ;;  %v686_v28 = vsub.f32 %v408_v26, %v2424_v25  ;;  %1816 = vmatmul.mubr.f32.gmra.mrb[66].mxu0 %v1963_v22 }
  0xf2   :  { %1974 = vpow2.f32 %v884_v16  ;;  %v888_v29 = vmul.f32 1.442695, %v813_v23  ;;  %v751_v30 = vmul.f32 %v687_v24, %v687_v24 }
  0xf3   :  { %v1965_v31 = vpop.eup %1964  ;;  %v886_v32 = vmul.f32 1.442695, %v812_v27  ;;  %v750_v33 = vmul.f32 %v686_v28, %v686_v28  ;;  %v1707_v34 = vpop.f32.mrb[14].mxu0 }
  0xf4   :  { %v1967_v35 = vpop.eup %1966  ;;  %v815_v36 = vsub.f32 0.0, %v751_v30  ;;  %v689_v37 = vsub.f32 %v1707_v34, %v2424_v25  ;;  %v418_v38 = vpop.f32.mrb[15].mxu0  ;;  %1818 = vmatprep.mubr.f32.mxu0 %v1965_v31 }
  0xf5   :  { %1976 = vpow2.f32 %v886_v32  ;;  %v814_v39 = vsub.f32 0.0, %v750_v33  ;;  %v688_v40 = vsub.f32 %v418_v38, %v2424_v25  ;;  %1819 = vmatmul.mubr.f32.gmra.mrb[68].mxu0 %v1967_v35 }
  0xf6   :  { %1978 = vpow2.f32 %v888_v29  ;;  %v892_v41 = vmul.f32 1.442695, %v815_v36  ;;  %v753_v42 = vmul.f32 %v689_v37, %v689_v37 }
  0xf7   :  { %v1969_v43 = vpop.eup %1968  ;;  %v890_v44 = vmul.f32 1.442695, %v814_v39  ;;  %v752_v45 = vmul.f32 %v688_v40, %v688_v40  ;;  %v1710_v46 = vpop.f32.mrb[16].mxu0 }
  0xf8   :  { %v1971_v47 = vpop.eup %1970  ;;  %v817_v48 = vsub.f32 0.0, %v753_v42  ;;  %v691_v49 = vsub.f32 %v1710_v46, %v2424_v25  ;;  %v428_v50 = vpop.f32.mrb[17].mxu0  ;;  %1821 = vmatprep.mubr.f32.mxu1 %v1969_v43 }
  0xf9   :  { %1980 = vpow2.f32 %v890_v44  ;;  %v816_v51 = vsub.f32 0.0, %v752_v45  ;;  %v690_v52 = vsub.f32 %v428_v50, %v2424_v25  ;;  %1822 = vmatmul.mubr.f32.vlgmr.msra.gmra.mrb[0].mxu1 %v1971_v47 }
  0xfa   :  { %1982 = vpow2.f32 %v892_v41  ;;  %v896_v53 = vmul.f32 1.442695, %v817_v48  ;;  %v755_v54 = vmul.f32 %v691_v49, %v691_v49 }
  0xfb   :  { %v1973_v55 = vpop.eup %1972  ;;  %v894_v56 = vmul.f32 1.442695, %v816_v51  ;;  %v754_v57 = vmul.f32 %v690_v52, %v690_v52  ;;  %v1713_v58 = vpop.f32.mrb[18].mxu0 }
  0xfc   :  { %v1975_v59 = vpop.eup %1974  ;;  %v819_v60 = vsub.f32 0.0, %v755_v54  ;;  %v693_v61 = vsub.f32 %v1713_v58, %v2424_v25  ;;  %v438_v62 = vpop.f32.mrb[19].mxu0  ;;  %1824 = vmatprep.mubr.f32.mxu1 %v1973_v55 }
  0xfd   :  { %1984 = vpow2.f32 %v894_v56  ;;  %v818_v63 = vsub.f32 0.0, %v754_v57  ;;  %v692_v0 = vsub.f32 %v438_v62, %v2424_v25  ;;  %1825 = vmatmul.mubr.f32.gmra.mrb[2].mxu1 %v1975_v59 }
  0xfe   :  { %1986 = vpow2.f32 %v896_v53  ;;  %v900_v1 = vmul.f32 1.442695, %v819_v60  ;;  %v757_v2 = vmul.f32 %v693_v61, %v693_v61 }
  0xff   :  { %v1977_v3 = vpop.eup %1976  ;;  %v898_v4 = vmul.f32 1.442695, %v818_v63  ;;  %v756_v5 = vmul.f32 %v692_v0, %v692_v0  ;;  %v1716_v6 = vpop.f32.mrb[20].mxu0 }
 0x100   :  { %v1979_v7 = vpop.eup %1978  ;;  %v821_v8 = vsub.f32 0.0, %v757_v2  ;;  %v695_v9 = vsub.f32 %v1716_v6, %v2424_v25  ;;  %v448_v10 = vpop.f32.mrb[21].mxu0  ;;  %1827 = vmatprep.mubr.f32.mxu1 %v1977_v3 }
 0x101   :  { %1988 = vpow2.f32 %v898_v4  ;;  %v820_v11 = vsub.f32 0.0, %v756_v5  ;;  %v694_v12 = vsub.f32 %v448_v10, %v2424_v25  ;;  %1828 = vmatmul.mubr.f32.gmra.mrb[4].mxu1 %v1979_v7 }
 0x102   :  { %1990 = vpow2.f32 %v900_v1  ;;  %v904_v13 = vmul.f32 1.442695, %v821_v8  ;;  %v759_v14 = vmul.f32 %v695_v9, %v695_v9 }
 0x103   :  { %v1981_v15 = vpop.eup %1980  ;;  %v902_v16 = vmul.f32 1.442695, %v820_v11  ;;  %v758_v17 = vmul.f32 %v694_v12, %v694_v12  ;;  %v1719_v18 = vpop.f32.mrb[22].mxu0 }
 0x104   :  { %v1983_v19 = vpop.eup %1982  ;;  %v823_v20 = vsub.f32 0.0, %v759_v14  ;;  %v697_v21 = vsub.f32 %v1719_v18, %v2424_v25  ;;  %v458_v22 = vpop.f32.mrb[23].mxu0  ;;  %1830 = vmatprep.mubr.f32.mxu1 %v1981_v15 }
 0x105   :  { %1992 = vpow2.f32 %v902_v16  ;;  %v822_v23 = vsub.f32 0.0, %v758_v17  ;;  %v696_v24 = vsub.f32 %v458_v22, %v2424_v25  ;;  %1831 = vmatmul.mubr.f32.gmra.mrb[6].mxu1 %v1983_v19 }
 0x106   :  { %1994 = vpow2.f32 %v904_v13  ;;  %v908_v26 = vmul.f32 1.442695, %v823_v20  ;;  %v761_v27 = vmul.f32 %v697_v21, %v697_v21 }
 0x107   :  { %v1985_v28 = vpop.eup %1984  ;;  %v906_v29 = vmul.f32 1.442695, %v822_v23  ;;  %v760_v30 = vmul.f32 %v696_v24, %v696_v24  ;;  %v1722_v31 = vpop.f32.mrb[24].mxu0 }
 0x108   :  { %v1987_v32 = vpop.eup %1986  ;;  %v825_v33 = vsub.f32 0.0, %v761_v27  ;;  %v699_v34 = vsub.f32 %v1722_v31, %v2424_v25  ;;  %v468_v35 = vpop.f32.mrb[25].mxu0  ;;  %1833 = vmatprep.mubr.f32.mxu1 %v1985_v28 }
 0x109   :  { %1996 = vpow2.f32 %v906_v29  ;;  %v824_v36 = vsub.f32 0.0, %v760_v30  ;;  %v698_v37 = vsub.f32 %v468_v35, %v2424_v25  ;;  %1834 = vmatmul.mubr.f32.gmra.mrb[8].mxu1 %v1987_v32 }
 0x10a   :  { %1998 = vpow2.f32 %v908_v26  ;;  %v912_v38 = vmul.f32 1.442695, %v825_v33  ;;  %v763_v39 = vmul.f32 %v699_v34, %v699_v34 }
 0x10b   :  { %v1989_v40 = vpop.eup %1988  ;;  %v910_v41 = vmul.f32 1.442695, %v824_v36  ;;  %v762_v42 = vmul.f32 %v698_v37, %v698_v37  ;;  %v1725_v43 = vpop.f32.mrb[26].mxu0 }
 0x10c   :  { %v1991_v44 = vpop.eup %1990  ;;  %v827_v45 = vsub.f32 0.0, %v763_v39  ;;  %v701_v46 = vsub.f32 %v1725_v43, %v2424_v25  ;;  %v478_v47 = vpop.f32.mrb[27].mxu0  ;;  %1836 = vmatprep.mubr.f32.mxu1 %v1989_v40 }
 0x10d   :  { %2000 = vpow2.f32 %v910_v41  ;;  %v826_v48 = vsub.f32 0.0, %v762_v42  ;;  %v700_v49 = vsub.f32 %v478_v47, %v2424_v25  ;;  %1837 = vmatmul.mubr.f32.gmra.mrb[10].mxu1 %v1991_v44 }
 0x10e   :  { %2002 = vpow2.f32 %v912_v38  ;;  %v916_v50 = vmul.f32 1.442695, %v827_v45  ;;  %v765_v51 = vmul.f32 %v701_v46, %v701_v46 }
 0x10f   :  { %v1993_v52 = vpop.eup %1992  ;;  %v914_v53 = vmul.f32 1.442695, %v826_v48  ;;  %v764_v54 = vmul.f32 %v700_v49, %v700_v49  ;;  %v1728_v55 = vpop.f32.mrb[28].mxu0 }
 0x110   :  { %v1995_v56 = vpop.eup %1994  ;;  %v829_v57 = vsub.f32 0.0, %v765_v51  ;;  %v703_v58 = vsub.f32 %v1728_v55, %v2424_v25  ;;  %v488_v59 = vpop.f32.mrb[29].mxu0  ;;  %1839 = vmatprep.mubr.f32.mxu1 %v1993_v52 }
 0x111   :  { %2004 = vpow2.f32 %v914_v53  ;;  %v828_v60 = vsub.f32 0.0, %v764_v54  ;;  %v702_v61 = vsub.f32 %v488_v59, %v2424_v25  ;;  %1840 = vmatmul.mubr.f32.gmra.mrb[12].mxu1 %v1995_v56 }
 0x112   :  { %2006 = vpow2.f32 %v916_v50  ;;  %v920_v62 = vmul.f32 1.442695, %v829_v57  ;;  %v767_v63 = vmul.f32 %v703_v58, %v703_v58 }
 0x113   :  { %v1997_v0 = vpop.eup %1996  ;;  %v918_v1 = vmul.f32 1.442695, %v828_v60  ;;  %v766_v2 = vmul.f32 %v702_v61, %v702_v61  ;;  %v1731_v3 = vpop.f32.mrb[30].mxu0 }
 0x114   :  { %v1999_v4 = vpop.eup %1998  ;;  %v831_v5 = vsub.f32 0.0, %v767_v63  ;;  %v705_v6 = vsub.f32 %v1731_v3, %v2424_v25  ;;  %v498_v7 = vpop.f32.mrb[31].mxu0  ;;  %1842 = vmatprep.mubr.f32.mxu1 %v1997_v0 }
 0x115   :  { %2008 = vpow2.f32 %v918_v1  ;;  %v830_v8 = vsub.f32 0.0, %v766_v2  ;;  %v704_v9 = vsub.f32 %v498_v7, %v2424_v25  ;;  %1843 = vmatmul.mubr.f32.gmra.mrb[14].mxu1 %v1999_v4 }
 0x116   :  { %2010 = vpow2.f32 %v920_v62  ;;  %v924_v10 = vmul.f32 1.442695, %v831_v5  ;;  %v769_v11 = vmul.f32 %v705_v6, %v705_v6 }
 0x117   :  { %v2001_v12 = vpop.eup %2000  ;;  %v922_v13 = vmul.f32 1.442695, %v830_v8  ;;  %v768_v14 = vmul.f32 %v704_v9, %v704_v9  ;;  %v1734_v15 = vpop.f32.mrb[32].mxu0 }
 0x118   :  { %v2003_v16 = vpop.eup %2002  ;;  %v833_v17 = vsub.f32 0.0, %v769_v11  ;;  %v707_v18 = vsub.f32 %v1734_v15, %v2424_v25  ;;  %v508_v19 = vpop.f32.mrb[33].mxu0  ;;  %1845 = vmatprep.mubr.f32.mxu1 %v2001_v12 }
 0x119   :  { %2012 = vpow2.f32 %v922_v13  ;;  %v832_v20 = vsub.f32 0.0, %v768_v14  ;;  %v706_v21 = vsub.f32 %v508_v19, %v2424_v25  ;;  %1846 = vmatmul.mubr.f32.gmra.mrb[16].mxu1 %v2003_v16 }
 0x11a   :  { %2014 = vpow2.f32 %v924_v10  ;;  %v928_v22 = vmul.f32 1.442695, %v833_v17  ;;  %v771_v23 = vmul.f32 %v707_v18, %v707_v18 }
 0x11b   :  { %v2005_v24 = vpop.eup %2004  ;;  %v926_v26 = vmul.f32 1.442695, %v832_v20  ;;  %v770_v27 = vmul.f32 %v706_v21, %v706_v21  ;;  %v1737_v28 = vpop.f32.mrb[34].mxu0 }
 0x11c   :  { %v2007_v29 = vpop.eup %2006  ;;  %v835_v30 = vsub.f32 0.0, %v771_v23  ;;  %v709_v31 = vsub.f32 %v1737_v28, %v2424_v25  ;;  %v518_v32 = vpop.f32.mrb[35].mxu0  ;;  %1848 = vmatprep.mubr.f32.mxu1 %v2005_v24 }
 0x11d   :  { %2016 = vpow2.f32 %v926_v26  ;;  %v834_v33 = vsub.f32 0.0, %v770_v27  ;;  %v708_v34 = vsub.f32 %v518_v32, %v2424_v25  ;;  %1849 = vmatmul.mubr.f32.gmra.mrb[18].mxu1 %v2007_v29 }
 0x11e   :  { %2018 = vpow2.f32 %v928_v22  ;;  %v932_v35 = vmul.f32 1.442695, %v835_v30  ;;  %v773_v36 = vmul.f32 %v709_v31, %v709_v31 }
 0x11f   :  { %v2009_v37 = vpop.eup %2008  ;;  %v930_v38 = vmul.f32 1.442695, %v834_v33  ;;  %v772_v39 = vmul.f32 %v708_v34, %v708_v34  ;;  %v1740_v40 = vpop.f32.mrb[36].mxu0 }
 0x120   :  { %v2011_v41 = vpop.eup %2010  ;;  %v837_v42 = vsub.f32 0.0, %v773_v36  ;;  %v711_v43 = vsub.f32 %v1740_v40, %v2424_v25  ;;  %v528_v44 = vpop.f32.mrb[37].mxu0  ;;  %1851 = vmatprep.mubr.f32.mxu1 %v2009_v37 }
 0x121   :  { %2020 = vpow2.f32 %v930_v38  ;;  %v836_v45 = vsub.f32 0.0, %v772_v39  ;;  %v710_v46 = vsub.f32 %v528_v44, %v2424_v25  ;;  %1852 = vmatmul.mubr.f32.gmra.mrb[20].mxu1 %v2011_v41 }
 0x122   :  { %2022 = vpow2.f32 %v932_v35  ;;  %v936_v47 = vmul.f32 1.442695, %v837_v42  ;;  %v775_v48 = vmul.f32 %v711_v43, %v711_v43 }
 0x123   :  { %v2013_v49 = vpop.eup %2012  ;;  %v934_v50 = vmul.f32 1.442695, %v836_v45  ;;  %v774_v51 = vmul.f32 %v710_v46, %v710_v46  ;;  %v1743_v52 = vpop.f32.mrb[38].mxu0 }
 0x124   :  { %v2015_v53 = vpop.eup %2014  ;;  %v839_v54 = vsub.f32 0.0, %v775_v48  ;;  %v713_v55 = vsub.f32 %v1743_v52, %v2424_v25  ;;  %v538_v56 = vpop.f32.mrb[39].mxu0  ;;  %1854 = vmatprep.mubr.f32.mxu1 %v2013_v49 }
 0x125   :  { %2024 = vpow2.f32 %v934_v50  ;;  %v838_v57 = vsub.f32 0.0, %v774_v51  ;;  %v712_v58 = vsub.f32 %v538_v56, %v2424_v25  ;;  %1855 = vmatmul.mubr.f32.gmra.mrb[22].mxu1 %v2015_v53 }
 0x126   :  { %2026 = vpow2.f32 %v936_v47  ;;  %v940_v59 = vmul.f32 1.442695, %v839_v54  ;;  %v777_v60 = vmul.f32 %v713_v55, %v713_v55 }
 0x127   :  { %v2017_v61 = vpop.eup %2016  ;;  %v938_v62 = vmul.f32 1.442695, %v838_v57  ;;  %v776_v63 = vmul.f32 %v712_v58, %v712_v58  ;;  %v1746_v0 = vpop.f32.mrb[40].mxu0 }
 0x128   :  { %v2019_v1 = vpop.eup %2018  ;;  %v841_v2 = vsub.f32 0.0, %v777_v60  ;;  %v715_v3 = vsub.f32 %v1746_v0, %v2424_v25  ;;  %v548_v4 = vpop.f32.mrb[41].mxu0  ;;  %1857 = vmatprep.mubr.f32.mxu1 %v2017_v61 }
 0x129   :  { %2028 = vpow2.f32 %v938_v62  ;;  %v840_v5 = vsub.f32 0.0, %v776_v63  ;;  %v714_v6 = vsub.f32 %v548_v4, %v2424_v25  ;;  %1858 = vmatmul.mubr.f32.gmra.mrb[24].mxu1 %v2019_v1 }
 0x12a   :  { %2030 = vpow2.f32 %v940_v59  ;;  %v944_v7 = vmul.f32 1.442695, %v841_v2  ;;  %v779_v8 = vmul.f32 %v715_v3, %v715_v3 }
 0x12b   :  { %v2021_v9 = vpop.eup %2020  ;;  %v942_v10 = vmul.f32 1.442695, %v840_v5  ;;  %v778_v11 = vmul.f32 %v714_v6, %v714_v6  ;;  %v1749_v12 = vpop.f32.mrb[42].mxu0 }
 0x12c   :  { %v2023_v13 = vpop.eup %2022  ;;  %v843_v14 = vsub.f32 0.0, %v779_v8  ;;  %v717_v15 = vsub.f32 %v1749_v12, %v2424_v25  ;;  %v558_v16 = vpop.f32.mrb[43].mxu0  ;;  %1860 = vmatprep.mubr.f32.mxu1 %v2021_v9 }
 0x12d   :  { %2032 = vpow2.f32 %v942_v10  ;;  %v842_v17 = vsub.f32 0.0, %v778_v11  ;;  %v716_v18 = vsub.f32 %v558_v16, %v2424_v25  ;;  %1861 = vmatmul.mubr.f32.gmra.mrb[26].mxu1 %v2023_v13 }
 0x12e   :  { %2034 = vpow2.f32 %v944_v7  ;;  %v948_v19 = vmul.f32 1.442695, %v843_v14  ;;  %v781_v20 = vmul.f32 %v717_v15, %v717_v15 }
 0x12f   :  { %v2025_v21 = vpop.eup %2024  ;;  %v946_v22 = vmul.f32 1.442695, %v842_v17  ;;  %v780_v23 = vmul.f32 %v716_v18, %v716_v18  ;;  %v1752_v24 = vpop.f32.mrb[44].mxu0 }
 0x130   :  { %v2027_v26 = vpop.eup %2026  ;;  %v845_v27 = vsub.f32 0.0, %v781_v20  ;;  %v719_v28 = vsub.f32 %v1752_v24, %v2424_v25  ;;  %v568_v29 = vpop.f32.mrb[45].mxu0  ;;  %1863 = vmatprep.mubr.f32.mxu1 %v2025_v21 }
 0x131   :  { %2036 = vpow2.f32 %v946_v22  ;;  %v844_v30 = vsub.f32 0.0, %v780_v23  ;;  %v718_v31 = vsub.f32 %v568_v29, %v2424_v25  ;;  %1864 = vmatmul.mubr.f32.gmra.mrb[28].mxu1 %v2027_v26 }
 0x132   :  { %2038 = vpow2.f32 %v948_v19  ;;  %v952_v32 = vmul.f32 1.442695, %v845_v27  ;;  %v783_v33 = vmul.f32 %v719_v28, %v719_v28 }
 0x133   :  { %v2029_v34 = vpop.eup %2028  ;;  %v950_v35 = vmul.f32 1.442695, %v844_v30  ;;  %v782_v36 = vmul.f32 %v718_v31, %v718_v31  ;;  %v1755_v37 = vpop.f32.mrb[46].mxu0 }
 0x134   :  { %v2031_v38 = vpop.eup %2030  ;;  %v847_v39 = vsub.f32 0.0, %v783_v33  ;;  %v721_v40 = vsub.f32 %v1755_v37, %v2424_v25  ;;  %v578_v41 = vpop.f32.mrb[47].mxu0  ;;  %1866 = vmatprep.mubr.f32.mxu1 %v2029_v34 }
 0x135   :  { %2040 = vpow2.f32 %v950_v35  ;;  %v846_v42 = vsub.f32 0.0, %v782_v36  ;;  %v720_v43 = vsub.f32 %v578_v41, %v2424_v25  ;;  %1867 = vmatmul.mubr.f32.gmra.mrb[30].mxu1 %v2031_v38 }
 0x136   :  { %2042 = vpow2.f32 %v952_v32  ;;  %v956_v44 = vmul.f32 1.442695, %v847_v39  ;;  %v785_v45 = vmul.f32 %v721_v40, %v721_v40 }
 0x137   :  { %v2033_v46 = vpop.eup %2032  ;;  %v954_v47 = vmul.f32 1.442695, %v846_v42  ;;  %v784_v48 = vmul.f32 %v720_v43, %v720_v43  ;;  %v1758_v49 = vpop.f32.mrb[48].mxu0 }
 0x138   :  { %v2035_v50 = vpop.eup %2034  ;;  %v849_v51 = vsub.f32 0.0, %v785_v45  ;;  %v723_v52 = vsub.f32 %v1758_v49, %v2424_v25  ;;  %v588_v53 = vpop.f32.mrb[49].mxu0  ;;  %1869 = vmatprep.mubr.f32.mxu1 %v2033_v46 }
 0x139   :  { %2044 = vpow2.f32 %v954_v47  ;;  %v848_v54 = vsub.f32 0.0, %v784_v48  ;;  %v722_v55 = vsub.f32 %v588_v53, %v2424_v25  ;;  %1870 = vmatmul.mubr.f32.gmra.mrb[32].mxu1 %v2035_v50 }
 0x13a   :  { %2046 = vpow2.f32 %v956_v44  ;;  %v960_v56 = vmul.f32 1.442695, %v849_v51  ;;  %v787_v57 = vmul.f32 %v723_v52, %v723_v52 }
 0x13b   :  { %v2037_v58 = vpop.eup %2036  ;;  %v958_v59 = vmul.f32 1.442695, %v848_v54  ;;  %v786_v60 = vmul.f32 %v722_v55, %v722_v55  ;;  %v1761_v61 = vpop.f32.mrb[50].mxu0 }
 0x13c   :  { %v2039_v62 = vpop.eup %2038  ;;  %v851_v63 = vsub.f32 0.0, %v787_v57  ;;  %v725_v0 = vsub.f32 %v1761_v61, %v2424_v25  ;;  %v598_v1 = vpop.f32.mrb[51].mxu0  ;;  %1872 = vmatprep.mubr.f32.mxu1 %v2037_v58 }
 0x13d   :  { %2048 = vpow2.f32 %v958_v59  ;;  %v850_v2 = vsub.f32 0.0, %v786_v60  ;;  %v724_v3 = vsub.f32 %v598_v1, %v2424_v25  ;;  %1873 = vmatmul.mubr.f32.gmra.mrb[34].mxu1 %v2039_v62 }
 0x13e   :  { %2050 = vpow2.f32 %v960_v56  ;;  %v964_v4 = vmul.f32 1.442695, %v851_v63  ;;  %v789_v5 = vmul.f32 %v725_v0, %v725_v0 }
 0x13f   :  { %v2041_v6 = vpop.eup %2040  ;;  %v962_v7 = vmul.f32 1.442695, %v850_v2  ;;  %v788_v8 = vmul.f32 %v724_v3, %v724_v3  ;;  %v1764_v9 = vpop.f32.mrb[52].mxu0 }
 0x140   :  { %v2043_v10 = vpop.eup %2042  ;;  %v853_v11 = vsub.f32 0.0, %v789_v5  ;;  %v727_v12 = vsub.f32 %v1764_v9, %v2424_v25  ;;  %v608_v13 = vpop.f32.mrb[53].mxu0  ;;  %1875 = vmatprep.mubr.f32.mxu1 %v2041_v6 }
 0x141   :  { %2052 = vpow2.f32 %v962_v7  ;;  %v852_v14 = vsub.f32 0.0, %v788_v8  ;;  %v726_v15 = vsub.f32 %v608_v13, %v2424_v25  ;;  %1876 = vmatmul.mubr.f32.gmra.mrb[36].mxu1 %v2043_v10 }
 0x142   :  { %2054 = vpow2.f32 %v964_v4  ;;  %v968_v16 = vmul.f32 1.442695, %v853_v11  ;;  %v791_v17 = vmul.f32 %v727_v12, %v727_v12 }
 0x143   :  { %v2045_v18 = vpop.eup %2044  ;;  %v966_v19 = vmul.f32 1.442695, %v852_v14  ;;  %v790_v20 = vmul.f32 %v726_v15, %v726_v15  ;;  %v1767_v21 = vpop.f32.mrb[54].mxu0 }
 0x144   :  { %v2047_v22 = vpop.eup %2046  ;;  %v855_v23 = vsub.f32 0.0, %v791_v17  ;;  %v729_v24 = vsub.f32 %v1767_v21, %v2424_v25  ;;  %v618_v26 = vpop.f32.mrb[55].mxu0  ;;  %1878 = vmatprep.mubr.f32.mxu1 %v2045_v18 }
 0x145   :  { %2056 = vpow2.f32 %v966_v19  ;;  %v854_v27 = vsub.f32 0.0, %v790_v20  ;;  %v728_v28 = vsub.f32 %v618_v26, %v2424_v25  ;;  %1879 = vmatmul.mubr.f32.gmra.mrb[38].mxu1 %v2047_v22 }
 0x146   :  { %2058 = vpow2.f32 %v968_v16  ;;  %v972_v29 = vmul.f32 1.442695, %v855_v23  ;;  %v793_v30 = vmul.f32 %v729_v24, %v729_v24 }
 0x147   :  { %v2049_v31 = vpop.eup %2048  ;;  %v970_v32 = vmul.f32 1.442695, %v854_v27  ;;  %v792_v33 = vmul.f32 %v728_v28, %v728_v28  ;;  %v1770_v34 = vpop.f32.mrb[56].mxu0 }
 0x148   :  { %v2051_v35 = vpop.eup %2050  ;;  %v857_v36 = vsub.f32 0.0, %v793_v30  ;;  %v731_v37 = vsub.f32 %v1770_v34, %v2424_v25  ;;  %v628_v38 = vpop.f32.mrb[57].mxu0  ;;  %1881 = vmatprep.mubr.f32.mxu1 %v2049_v31  ;;  %v2493_v31 = vld [vmem:[%s2755_s4] ss:$0 sm:$0xff] }
 0x149   :  { %2060 = vpow2.f32 %v970_v32  ;;  %v856_v39 = vsub.f32 0.0, %v792_v33  ;;  %v730_v40 = vsub.f32 %v628_v38, %v2424_v25  ;;  %1882 = vmatmul.mubr.f32.gmra.mrb[40].mxu1 %v2051_v35 }
 0x14a   :  { %2062 = vpow2.f32 %v972_v29  ;;  %v976_v41 = vmul.f32 1.442695, %v857_v36  ;;  %v795_v42 = vmul.f32 %v731_v37, %v731_v37 }
 0x14b   :  { %v2053_v43 = vpop.eup %2052  ;;  %v974_v44 = vmul.f32 1.442695, %v856_v39  ;;  %v794_v45 = vmul.f32 %v730_v40, %v730_v40  ;;  %v1773_v46 = vpop.f32.mrb[58].mxu0 }
 0x14c   :  { %v2055_v47 = vpop.eup %2054  ;;  %v859_v48 = vsub.f32 0.0, %v795_v42  ;;  %v733_v49 = vsub.f32 %v1773_v46, %v2424_v25  ;;  %v638_v50 = vpop.f32.mrb[59].mxu0  ;;  %1884 = vmatprep.mubr.f32.mxu1 %v2053_v43 }
 0x14d   :  { %2064 = vpow2.f32 %v974_v44  ;;  %v858_v51 = vsub.f32 0.0, %v794_v45  ;;  %v732_v52 = vsub.f32 %v638_v50, %v2424_v25  ;;  %1885 = vmatmul.mubr.f32.gmra.mrb[42].mxu1 %v2055_v47 }
 0x14e   :  { %2066 = vpow2.f32 %v976_v41  ;;  %v980_v53 = vmul.f32 1.442695, %v859_v48  ;;  %v797_v54 = vmul.f32 %v733_v49, %v733_v49 }
 0x14f   :  { %v2057_v55 = vpop.eup %2056  ;;  %v978_v56 = vmul.f32 1.442695, %v858_v51  ;;  %v796_v57 = vmul.f32 %v732_v52, %v732_v52  ;;  %v1776_v58 = vpop.f32.mrb[60].mxu0 }
 0x150   :  { %v2059_v59 = vpop.eup %2058  ;;  %v861_v60 = vsub.f32 0.0, %v797_v54  ;;  %v735_v61 = vsub.f32 %v1776_v58, %v2424_v25  ;;  %v648_v62 = vpop.f32.mrb[61].mxu0  ;;  %1887 = vmatprep.mubr.f32.mxu1 %v2057_v55 }
 0x151   :  { %2068 = vpow2.f32 %v978_v56  ;;  %v860_v63 = vsub.f32 0.0, %v796_v57  ;;  %v734_v0 = vsub.f32 %v648_v62, %v2424_v25  ;;  %1888 = vmatmul.mubr.f32.gmra.mrb[44].mxu1 %v2059_v59 }
 0x152   :  { %2070 = vpow2.f32 %v980_v53  ;;  %v984_v1 = vmul.f32 1.442695, %v861_v60  ;;  %v799_v2 = vmul.f32 %v735_v61, %v735_v61 }
 0x153   :  { %v2061_v3 = vpop.eup %2060  ;;  %v982_v4 = vmul.f32 1.442695, %v860_v63  ;;  %v798_v5 = vmul.f32 %v734_v0, %v734_v0  ;;  %v1779_v6 = vpop.f32.mrb[62].mxu0 }
 0x154   :  { %v2063_v7 = vpop.eup %2062  ;;  %v863_v8 = vsub.f32 0.0, %v799_v2  ;;  %v737_v9 = vsub.f32 %v1779_v6, %v2424_v25  ;;  %v658_v10 = vpop.f32.mrb[63].mxu0  ;;  %1890 = vmatprep.mubr.f32.mxu1 %v2061_v3 }
 0x155   :  { %2072 = vpow2.f32 %v982_v4  ;;  %v862_v11 = vsub.f32 0.0, %v798_v5  ;;  %v736_v12 = vsub.f32 %v658_v10, %v2424_v25  ;;  %1891 = vmatmul.mubr.f32.gmra.mrb[46].mxu1 %v2063_v7 }
 0x156   :  { %2074 = vpow2.f32 %v984_v1  ;;  %v988_v13 = vmul.f32 1.442695, %v863_v8  ;;  %v801_v14 = vmul.f32 %v737_v9, %v737_v9 }
 0x157   :  { %v2065_v15 = vpop.eup %2064  ;;  %v986_v16 = vmul.f32 1.442695, %v862_v11  ;;  %v800_v17 = vmul.f32 %v736_v12, %v736_v12 }
 0x158   :  { %v2067_v18 = vpop.eup %2066  ;;  %v865_v19 = vsub.f32 0.0, %v801_v14  ;;  %1893 = vmatprep.mubr.f32.mxu1 %v2065_v15 }
 0x159   :  { %2076 = vpow2.f32 %v986_v16  ;;  %v864_v20 = vsub.f32 0.0, %v800_v17  ;;  %1894 = vmatmul.mubr.f32.gmra.mrb[48].mxu1 %v2067_v18 }
 0x15a   :  { %2078 = vpow2.f32 %v988_v13  ;;  %v992_v21 = vmul.f32 1.442695, %v865_v19 }
 0x15b   :  { %v2069_v22 = vpop.eup %2068  ;;  %v990_v23 = vmul.f32 1.442695, %v864_v20 }
 0x15c   :  { %v2071_v24 = vpop.eup %2070  ;;  %1896 = vmatprep.mubr.f32.mxu1 %v2069_v22 }
 0x15d   :  { %2080 = vpow2.f32 %v990_v23  ;;  %1897 = vmatmul.mubr.f32.gmra.mrb[50].mxu1 %v2071_v24 }
 0x15e   :  { %2082 = vpow2.f32 %v992_v21 }
 0x15f   :  { %v2073_v25 = vpop.eup %2072 }
 0x160   :  { %v2075_v26 = vpop.eup %2074  ;;  %1899 = vmatprep.mubr.f32.mxu1 %v2073_v25 }
 0x161   :  { %1900 = vmatmul.mubr.f32.gmra.mrb[52].mxu1 %v2075_v26 }
 0x163   :  { %v2077_v27 = vpop.eup %2076 }
 0x164   :  { %v2079_v28 = vpop.eup %2078  ;;  %1902 = vmatprep.mubr.f32.mxu1 %v2077_v27 }
 0x165   :  { %1903 = vmatmul.mubr.f32.gmra.mrb[54].mxu1 %v2079_v28 }
 0x167   :  { %v2081_v29 = vpop.eup %2080 }
 0x168   :  { %v2083_v30 = vpop.eup %2082  ;;  %1905 = vmatprep.mubr.f32.mxu1 %v2081_v29 }
 0x169   :  { %1906 = vmatmul.mubr.f32.gmra.mrb[56].mxu1 %v2083_v30 }
 0x1c0   :  { %v1814_v32 = vpop.f32.mrb[64].mxu0 }
 0x1c1   :  { %v1089_v33 = vadd.f32 %v1814_v32, %v2493_v31  ;;  %v1083_v34 = vpop.f32.mrb[65].mxu0 }
 0x1c2   :  { %v1084_v35 = vadd.f32 %v2493_v31, %v1083_v34 }
 0x1c3   :  { %1403 = vst [vmem:[%s2756_s5 + $0x8] sm:$0xff] %v1089_v33 }
 0x1c4   :  { %1402 = vst [vmem:[%s2756_s5] sm:$0xff] %v1084_v35  ;;  %v1817_v36 = vpop.f32.mrb[66].mxu0 }
 0x1c5   :  { %v1099_v37 = vadd.f32 %v1817_v36, %v2493_v31  ;;  %v1093_v38 = vpop.f32.mrb[67].mxu0 }
 0x1c6   :  { %v1094_v39 = vadd.f32 %v2493_v31, %v1093_v38 }
 0x1c7   :  { %1405 = vst [vmem:[%s2756_s5 + $0x18] sm:$0xff] %v1099_v37 }
 0x1c8   :  { %1404 = vst [vmem:[%s2756_s5 + $0x10] sm:$0xff] %v1094_v39  ;;  %v1820_v40 = vpop.f32.mrb[68].mxu0 }
 0x1c9   :  { %v1109_v41 = vadd.f32 %v1820_v40, %v2493_v31  ;;  %v1103_v42 = vpop.f32.mrb[69].mxu0 }
 0x1ca   :  { %v1104_v43 = vadd.f32 %v2493_v31, %v1103_v42 }
 0x1cb   :  { %1407 = vst [vmem:[%s2756_s5 + $0x28] sm:$0xff] %v1109_v41 }
 0x1cc   :  { %1406 = vst [vmem:[%s2756_s5 + $0x20] sm:$0xff] %v1104_v43  ;;  %v1823_v44 = vpop.f32.mrb[0].mxu1 }
 0x1cd   :  { %v1119_v45 = vadd.f32 %v1823_v44, %v2493_v31  ;;  %v1113_v46 = vpop.f32.mrb[1].mxu1 }
 0x1ce   :  { %v1114_v47 = vadd.f32 %v2493_v31, %v1113_v46 }
 0x1cf   :  { %1409 = vst [vmem:[%s2756_s5 + $0x38] sm:$0xff] %v1119_v45 }
 0x1d0   :  { %1408 = vst [vmem:[%s2756_s5 + $0x30] sm:$0xff] %v1114_v47  ;;  %v1826_v48 = vpop.f32.mrb[2].mxu1 }
 0x1d1   :  { %v1129_v49 = vadd.f32 %v1826_v48, %v2493_v31  ;;  %v1123_v50 = vpop.f32.mrb[3].mxu1 }
 0x1d2   :  { %v1124_v51 = vadd.f32 %v2493_v31, %v1123_v50 }
 0x1d3   :  { %1411 = vst [vmem:[%s2756_s5 + $0x48] sm:$0xff] %v1129_v49 }
 0x1d4   :  { %1410 = vst [vmem:[%s2756_s5 + $0x40] sm:$0xff] %v1124_v51  ;;  %v1829_v52 = vpop.f32.mrb[4].mxu1 }
 0x1d5   :  { %v1139_v53 = vadd.f32 %v1829_v52, %v2493_v31  ;;  %v1133_v54 = vpop.f32.mrb[5].mxu1 }
 0x1d6   :  { %v1134_v55 = vadd.f32 %v2493_v31, %v1133_v54 }
 0x1d7   :  { %1413 = vst [vmem:[%s2756_s5 + $0x58] sm:$0xff] %v1139_v53 }
 0x1d8   :  { %1412 = vst [vmem:[%s2756_s5 + $0x50] sm:$0xff] %v1134_v55  ;;  %v1832_v56 = vpop.f32.mrb[6].mxu1 }
 0x1d9   :  { %v1149_v57 = vadd.f32 %v1832_v56, %v2493_v31  ;;  %v1143_v58 = vpop.f32.mrb[7].mxu1 }
 0x1da   :  { %v1144_v59 = vadd.f32 %v2493_v31, %v1143_v58 }
 0x1db   :  { %1415 = vst [vmem:[%s2756_s5 + $0x68] sm:$0xff] %v1149_v57 }
 0x1dc   :  { %1414 = vst [vmem:[%s2756_s5 + $0x60] sm:$0xff] %v1144_v59  ;;  %v1835_v60 = vpop.f32.mrb[8].mxu1 }
 0x1dd   :  { %v1159_v61 = vadd.f32 %v1835_v60, %v2493_v31  ;;  %v1153_v62 = vpop.f32.mrb[9].mxu1 }
 0x1de   :  { %v1154_v63 = vadd.f32 %v2493_v31, %v1153_v62 }
 0x1df   :  { %1417 = vst [vmem:[%s2756_s5 + $0x78] sm:$0xff] %v1159_v61 }
 0x1e0   :  { %1416 = vst [vmem:[%s2756_s5 + $0x70] sm:$0xff] %v1154_v63  ;;  %v1838_v0 = vpop.f32.mrb[10].mxu1 }
 0x1e1   :  { %v1169_v1 = vadd.f32 %v1838_v0, %v2493_v31  ;;  %v1163_v2 = vpop.f32.mrb[11].mxu1 }
 0x1e2   :  { %v1164_v3 = vadd.f32 %v2493_v31, %v1163_v2 }
 0x1e3   :  { %1419 = vst [vmem:[%s2756_s5 + $0x88] sm:$0xff] %v1169_v1 }
 0x1e4   :  { %1418 = vst [vmem:[%s2756_s5 + $0x80] sm:$0xff] %v1164_v3  ;;  %v1841_v4 = vpop.f32.mrb[12].mxu1 }
 0x1e5   :  { %v1179_v5 = vadd.f32 %v1841_v4, %v2493_v31  ;;  %v1173_v6 = vpop.f32.mrb[13].mxu1 }
 0x1e6   :  { %v1174_v7 = vadd.f32 %v2493_v31, %v1173_v6 }
 0x1e7   :  { %1421 = vst [vmem:[%s2756_s5 + $0x98] sm:$0xff] %v1179_v5 }
 0x1e8   :  { %1420 = vst [vmem:[%s2756_s5 + $0x90] sm:$0xff] %v1174_v7  ;;  %v1844_v8 = vpop.f32.mrb[14].mxu1 }
 0x1e9   :  { %v1189_v9 = vadd.f32 %v1844_v8, %v2493_v31  ;;  %v1183_v10 = vpop.f32.mrb[15].mxu1 }
 0x1ea   :  { %v1184_v11 = vadd.f32 %v2493_v31, %v1183_v10 }
 0x1eb   :  { %1423 = vst [vmem:[%s2756_s5 + $0xa8] sm:$0xff] %v1189_v9 }
 0x1ec   :  { %1422 = vst [vmem:[%s2756_s5 + $0xa0] sm:$0xff] %v1184_v11  ;;  %v1847_v12 = vpop.f32.mrb[16].mxu1 }
 0x1ed   :  { %v1199_v13 = vadd.f32 %v1847_v12, %v2493_v31  ;;  %v1193_v14 = vpop.f32.mrb[17].mxu1 }
 0x1ee   :  { %v1194_v15 = vadd.f32 %v2493_v31, %v1193_v14 }
 0x1ef   :  { %1425 = vst [vmem:[%s2756_s5 + $0xb8] sm:$0xff] %v1199_v13 }
 0x1f0   :  { %1424 = vst [vmem:[%s2756_s5 + $0xb0] sm:$0xff] %v1194_v15  ;;  %v1850_v16 = vpop.f32.mrb[18].mxu1 }
 0x1f1   :  { %v1209_v17 = vadd.f32 %v1850_v16, %v2493_v31  ;;  %v1203_v18 = vpop.f32.mrb[19].mxu1 }
 0x1f2   :  { %v1204_v19 = vadd.f32 %v2493_v31, %v1203_v18 }
 0x1f3   :  { %1427 = vst [vmem:[%s2756_s5 + $0xc8] sm:$0xff] %v1209_v17 }
 0x1f4   :  { %1426 = vst [vmem:[%s2756_s5 + $0xc0] sm:$0xff] %v1204_v19  ;;  %v1853_v20 = vpop.f32.mrb[20].mxu1 }
 0x1f5   :  { %v1219_v21 = vadd.f32 %v1853_v20, %v2493_v31  ;;  %v1213_v22 = vpop.f32.mrb[21].mxu1 }
 0x1f6   :  { %v1214_v23 = vadd.f32 %v2493_v31, %v1213_v22 }
 0x1f7   :  { %1429 = vst [vmem:[%s2756_s5 + $0xd8] sm:$0xff] %v1219_v21 }
 0x1f8   :  { %1428 = vst [vmem:[%s2756_s5 + $0xd0] sm:$0xff] %v1214_v23  ;;  %v1856_v24 = vpop.f32.mrb[22].mxu1 }
 0x1f9   :  { %v1229_v25 = vadd.f32 %v1856_v24, %v2493_v31  ;;  %v1223_v26 = vpop.f32.mrb[23].mxu1 }
 0x1fa   :  { %v1224_v27 = vadd.f32 %v2493_v31, %v1223_v26 }
 0x1fb   :  { %1431 = vst [vmem:[%s2756_s5 + $0xe8] sm:$0xff] %v1229_v25 }
 0x1fc   :  { %1430 = vst [vmem:[%s2756_s5 + $0xe0] sm:$0xff] %v1224_v27  ;;  %v1859_v28 = vpop.f32.mrb[24].mxu1 }
 0x1fd   :  { %v1239_v29 = vadd.f32 %v1859_v28, %v2493_v31  ;;  %v1233_v30 = vpop.f32.mrb[25].mxu1 }
 0x1fe   :  { %v1234_v32 = vadd.f32 %v2493_v31, %v1233_v30 }
 0x1ff   :  { %1433 = vst [vmem:[%s2756_s5 + $0xf8] sm:$0xff] %v1239_v29 }
 0x200   :  { %1432 = vst [vmem:[%s2756_s5 + $0xf0] sm:$0xff] %v1234_v32  ;;  %v1862_v33 = vpop.f32.mrb[26].mxu1 }
 0x201   :  { %v1249_v34 = vadd.f32 %v1862_v33, %v2493_v31  ;;  %v1243_v35 = vpop.f32.mrb[27].mxu1 }
 0x202   :  { %v1244_v36 = vadd.f32 %v2493_v31, %v1243_v35 }
 0x203   :  { %1435 = vst [vmem:[%s2756_s5 + $0x108] sm:$0xff] %v1249_v34 }
 0x204   :  { %1434 = vst [vmem:[%s2756_s5 + $0x100] sm:$0xff] %v1244_v36  ;;  %v1865_v37 = vpop.f32.mrb[28].mxu1 }
 0x205   :  { %v1259_v38 = vadd.f32 %v1865_v37, %v2493_v31  ;;  %v1253_v39 = vpop.f32.mrb[29].mxu1 }
 0x206   :  { %v1254_v40 = vadd.f32 %v2493_v31, %v1253_v39 }
 0x207   :  { %1437 = vst [vmem:[%s2756_s5 + $0x118] sm:$0xff] %v1259_v38 }
 0x208   :  { %1436 = vst [vmem:[%s2756_s5 + $0x110] sm:$0xff] %v1254_v40  ;;  %v1868_v41 = vpop.f32.mrb[30].mxu1 }
 0x209   :  { %v1269_v42 = vadd.f32 %v1868_v41, %v2493_v31  ;;  %v1263_v43 = vpop.f32.mrb[31].mxu1 }
 0x20a   :  { %v1264_v44 = vadd.f32 %v2493_v31, %v1263_v43 }
 0x20b   :  { %1439 = vst [vmem:[%s2756_s5 + $0x128] sm:$0xff] %v1269_v42 }
 0x20c   :  { %1438 = vst [vmem:[%s2756_s5 + $0x120] sm:$0xff] %v1264_v44  ;;  %v1871_v45 = vpop.f32.mrb[32].mxu1 }
 0x20d   :  { %v1279_v46 = vadd.f32 %v1871_v45, %v2493_v31  ;;  %v1273_v47 = vpop.f32.mrb[33].mxu1 }
 0x20e   :  { %v1274_v48 = vadd.f32 %v2493_v31, %v1273_v47 }
 0x20f   :  { %1441 = vst [vmem:[%s2756_s5 + $0x138] sm:$0xff] %v1279_v46 }
 0x210   :  { %1440 = vst [vmem:[%s2756_s5 + $0x130] sm:$0xff] %v1274_v48  ;;  %v1874_v49 = vpop.f32.mrb[34].mxu1 }
 0x211   :  { %v1289_v50 = vadd.f32 %v1874_v49, %v2493_v31  ;;  %v1283_v51 = vpop.f32.mrb[35].mxu1 }
 0x212   :  { %v1284_v52 = vadd.f32 %v2493_v31, %v1283_v51 }
 0x213   :  { %1443 = vst [vmem:[%s2756_s5 + $0x148] sm:$0xff] %v1289_v50 }
 0x214   :  { %1442 = vst [vmem:[%s2756_s5 + $0x140] sm:$0xff] %v1284_v52  ;;  %v1877_v53 = vpop.f32.mrb[36].mxu1 }
 0x215   :  { %v1299_v54 = vadd.f32 %v1877_v53, %v2493_v31  ;;  %v1293_v55 = vpop.f32.mrb[37].mxu1 }
 0x216   :  { %v1294_v56 = vadd.f32 %v2493_v31, %v1293_v55 }
 0x217   :  { %1445 = vst [vmem:[%s2756_s5 + $0x158] sm:$0xff] %v1299_v54 }
 0x218   :  { %1444 = vst [vmem:[%s2756_s5 + $0x150] sm:$0xff] %v1294_v56  ;;  %v1880_v57 = vpop.f32.mrb[38].mxu1 }
 0x219   :  { %v1309_v58 = vadd.f32 %v1880_v57, %v2493_v31  ;;  %v1303_v59 = vpop.f32.mrb[39].mxu1 }
 0x21a   :  { %v1304_v60 = vadd.f32 %v2493_v31, %v1303_v59 }
 0x21b   :  { %1447 = vst [vmem:[%s2756_s5 + $0x168] sm:$0xff] %v1309_v58 }
 0x21c   :  { %1446 = vst [vmem:[%s2756_s5 + $0x160] sm:$0xff] %v1304_v60  ;;  %v1883_v61 = vpop.f32.mrb[40].mxu1 }
 0x21d   :  { %v1319_v62 = vadd.f32 %v1883_v61, %v2493_v31  ;;  %v1313_v63 = vpop.f32.mrb[41].mxu1 }
 0x21e   :  { %v1314_v0 = vadd.f32 %v2493_v31, %v1313_v63 }
 0x21f   :  { %1449 = vst [vmem:[%s2756_s5 + $0x178] sm:$0xff] %v1319_v62 }
 0x220   :  { %1448 = vst [vmem:[%s2756_s5 + $0x170] sm:$0xff] %v1314_v0  ;;  %v1886_v1 = vpop.f32.mrb[42].mxu1 }
 0x221   :  { %v1329_v2 = vadd.f32 %v1886_v1, %v2493_v31  ;;  %v1323_v3 = vpop.f32.mrb[43].mxu1 }
 0x222   :  { %v1324_v4 = vadd.f32 %v2493_v31, %v1323_v3 }
 0x223   :  { %1451 = vst [vmem:[%s2756_s5 + $0x188] sm:$0xff] %v1329_v2 }
 0x224   :  { %1450 = vst [vmem:[%s2756_s5 + $0x180] sm:$0xff] %v1324_v4  ;;  %v1889_v5 = vpop.f32.mrb[44].mxu1 }
 0x225   :  { %v1339_v6 = vadd.f32 %v1889_v5, %v2493_v31  ;;  %v1333_v7 = vpop.f32.mrb[45].mxu1 }
 0x226   :  { %v1334_v8 = vadd.f32 %v2493_v31, %v1333_v7 }
 0x227   :  { %1453 = vst [vmem:[%s2756_s5 + $0x198] sm:$0xff] %v1339_v6 }
 0x228   :  { %1452 = vst [vmem:[%s2756_s5 + $0x190] sm:$0xff] %v1334_v8  ;;  %v1892_v9 = vpop.f32.mrb[46].mxu1 }
 0x229   :  { %v1349_v10 = vadd.f32 %v1892_v9, %v2493_v31  ;;  %v1343_v11 = vpop.f32.mrb[47].mxu1 }
 0x22a   :  { %v1344_v12 = vadd.f32 %v2493_v31, %v1343_v11 }
 0x22b   :  { %1455 = vst [vmem:[%s2756_s5 + $0x1a8] sm:$0xff] %v1349_v10 }
 0x22c   :  { %1454 = vst [vmem:[%s2756_s5 + $0x1a0] sm:$0xff] %v1344_v12  ;;  %v1895_v13 = vpop.f32.mrb[48].mxu1 }
 0x22d   :  { %v1359_v14 = vadd.f32 %v1895_v13, %v2493_v31  ;;  %v1353_v15 = vpop.f32.mrb[49].mxu1 }
 0x22e   :  { %v1354_v16 = vadd.f32 %v2493_v31, %v1353_v15 }
 0x22f   :  { %1457 = vst [vmem:[%s2756_s5 + $0x1b8] sm:$0xff] %v1359_v14 }
 0x230   :  { %1456 = vst [vmem:[%s2756_s5 + $0x1b0] sm:$0xff] %v1354_v16  ;;  %v1898_v17 = vpop.f32.mrb[50].mxu1 }
 0x231   :  { %v1369_v18 = vadd.f32 %v1898_v17, %v2493_v31  ;;  %v1363_v19 = vpop.f32.mrb[51].mxu1 }
 0x232   :  { %v1364_v20 = vadd.f32 %v2493_v31, %v1363_v19 }
 0x233   :  { %1459 = vst [vmem:[%s2756_s5 + $0x1c8] sm:$0xff] %v1369_v18 }
 0x234   :  { %1458 = vst [vmem:[%s2756_s5 + $0x1c0] sm:$0xff] %v1364_v20  ;;  %v1901_v21 = vpop.f32.mrb[52].mxu1 }
 0x235   :  { %v1379_v22 = vadd.f32 %v1901_v21, %v2493_v31  ;;  %v1373_v23 = vpop.f32.mrb[53].mxu1 }
 0x236   :  { %v1374_v24 = vadd.f32 %v2493_v31, %v1373_v23 }
 0x237   :  { %1461 = vst [vmem:[%s2756_s5 + $0x1d8] sm:$0xff] %v1379_v22 }
 0x238   :  { %1460 = vst [vmem:[%s2756_s5 + $0x1d0] sm:$0xff] %v1374_v24  ;;  %v1904_v25 = vpop.f32.mrb[54].mxu1 }
 0x239   :  { %v1389_v26 = vadd.f32 %v1904_v25, %v2493_v31  ;;  %v1383_v27 = vpop.f32.mrb[55].mxu1 }
 0x23a   :  { %v1384_v28 = vadd.f32 %v2493_v31, %v1383_v27 }
 0x23b   :  { %1463 = vst [vmem:[%s2756_s5 + $0x1e8] sm:$0xff] %v1389_v26 }
 0x23c   :  { %1462 = vst [vmem:[%s2756_s5 + $0x1e0] sm:$0xff] %v1384_v28  ;;  %v1907_v29 = vpop.f32.mrb[56].mxu1 }
 0x23d   :  { %v1399_v30 = vadd.f32 %v1907_v29, %v2493_v31  ;;  %v1393_v32 = vpop.f32.mrb[57].mxu1 }
 0x23e   :  { %v1394_v33 = vadd.f32 %v2493_v31, %v1393_v32 }
 0x23f   :  { %1465 = vst [vmem:[%s2756_s5 + $0x1f8] sm:$0xff] %v1399_v30 }
 0x240   :  { %1464 = vst [vmem:[%s2756_s5 + $0x1f0] sm:$0xff] %v1394_v33 }

</bundles_post_ra>
